<compile_context>
chip_gen: v7x
topology: tpu7x:2x2x1
jax: 0.10.0
libtpu: 0.0.40
codegen_flags: <defaults>
</compile_context>

<pallas_src>
import jax
import jax.numpy as jnp
from jax.experimental import pallas as pl
from jax.experimental.pallas import tpu as pltpu

SELU_ALPHA = 1.6732632423543772
SELU_SCALE = 1.0507009873554805
BN_EPS = 1e-5
CP = 128  # lane-width channel padding for every conv


def _selu(v):
    return SELU_SCALE * jnp.where(v > 0, v, SELU_ALPHA * (jnp.exp(v) - 1.0))


# ----------------------------------------------------------------------------
# The single fused kernel
# ----------------------------------------------------------------------------
def _make_chessnet_kernel(n, h, w, num_blocks):
    r = n * h * w
    inv_r = 1.0 / r

    def kernel(x_ref, w_in_ref, b_in_ref,
               w1s_ref, g1s_ref, be1s_ref,
               w2s_ref, g2s_ref, be2s_ref,
               w_out_ref, b_out_ref,
               o_ref, xpad_ref):

        def write_act(val_2d):
            # Place an (R, CP) activation into the interior of the zero-bordered
            # NHWC scratch (borders stay zero == conv "same" zero padding).
            xpad_ref[:, 1:1 + h, 1:1 + w, :] = val_2d.reshape(n, h, w, CP)

        def conv3x3(weight_bf16):
            # In-VMEM im2col: nine statically shifted windows of the padded
            # activation, concatenated along lanes, then one MXU matmul with
            # bf16 operands and f32 accumulation.
            slabs = []
            for dy in range(3):
                for dx in range(3):
                    win = xpad_ref[:, dy:dy + h, dx:dx + w, :]
                    slabs.append(win.reshape(r, CP).astype(jnp.bfloat16))
            patches = jnp.concatenate(slabs, axis=-1)            # (R, 9*CP)
            return jnp.dot(patches, weight_bf16,
                           preferred_element_type=jnp.float32)   # (R, CP) f32

        def batchnorm(acc, gamma, beta):
            # Training-mode BatchNorm2d: single-pass batch stats over the R rows
            # (= N*H*W), biased variance, eps = 1e-5.
            s1 = jnp.sum(acc, axis=0, keepdims=True)
            s2 = jnp.sum(acc * acc, axis=0, keepdims=True)
            mean = s1 * inv_r
            var = s2 * inv_r - mean * mean
            return (acc - mean) * (jax.lax.rsqrt(var + BN_EPS) * gamma) + beta

        # ---- set up padded activation scratch -------------------------------
        xpad_ref[...] = jnp.zeros_like(xpad_ref)
        xpad_ref[:, 1:1 + h, 1:1 + w, :] = x_ref[...]

        # ---- input conv + ReLU ----------------------------------------------
        act = jnp.maximum(conv3x3(w_in_ref[...]) + b_in_ref[...], 0.0)
        write_act(act)

        # ---- residual blocks (unrolled; straight-line kernel) ----------------
        # Conv biases are omitted here: BN's mean subtraction cancels them exactly.
        for i in range(num_blocks):
            h1 = _selu(batchnorm(conv3x3(w1s_ref[i]), g1s_ref[i], be1s_ref[i]))
            write_act(h1)
            act = _selu(batchnorm(conv3x3(w2s_ref[i]), g2s_ref[i], be2s_ref[i]) + act)
            write_act(act)

        # ---- output conv (no activation); (R, 128) store is lane-dense -------
        o_ref[...] = conv3x3(w_out_ref[...]) + b_out_ref[...]

    return kernel


# ----------------------------------------------------------------------------
# Wrapper: parameter padding / packing and the single pallas_call
# ----------------------------------------------------------------------------
def _pad_weight(w_hwio):
    kh, kw, cin, cout = w_hwio.shape
    wp = jnp.zeros((kh, kw, CP, CP), jnp.float32)
    wp = wp.at[:, :, :cin, :cout].set(w_hwio)
    return wp.reshape(kh * kw * CP, CP).astype(jnp.bfloat16)   # (9*CP, CP) bf16


def _pad_vec(v):
    return jnp.pad(v.astype(jnp.float32), (0, CP - v.shape[0])).reshape(1, CP)


def chessnet_forward(x_nchw, params):
    x = jnp.transpose(x_nchw, (0, 2, 3, 1)).astype(jnp.float32)   # NHWC
    n, h, w, cin = x.shape
    blocks = params["blocks"]
    num_blocks = len(blocks)
    assert num_blocks >= 1
    r = n * h * w

    x_p = jnp.pad(x, ((0, 0), (0, 0), (0, 0), (0, CP - cin)))

    w_in, b_in = _pad_weight(params["in_w"]), _pad_vec(params["in_b"])
    w_out, b_out = _pad_weight(params["out_w"]), _pad_vec(params["out_b"])
    w1s = jnp.stack([_pad_weight(b_["w1"]) for b_ in blocks])     # (L, 9*CP, CP)
    g1s = jnp.stack([_pad_vec(b_["g1"]) for b_ in blocks])        # (L, 1, CP)
    be1s = jnp.stack([_pad_vec(b_["be1"]) for b_ in blocks])
    w2s = jnp.stack([_pad_weight(b_["w2"]) for b_ in blocks])
    g2s = jnp.stack([_pad_vec(b_["g2"]) for b_ in blocks])
    be2s = jnp.stack([_pad_vec(b_["be2"]) for b_ in blocks])

    vmem = pl.BlockSpec(memory_space=pltpu.MemorySpace.VMEM)
    out = pl.pallas_call(
        _make_chessnet_kernel(n, h, w, num_blocks),
        out_shape=jax.ShapeDtypeStruct((r, CP), jnp.float32),
        in_specs=[vmem] * 11,
        out_specs=vmem,
        scratch_shapes=[pltpu.VMEM((n, h + 2, w + 2, CP), jnp.float32)],
    )(x_p, w_in, b_in, w1s, g1s, be1s, w2s, g2s, be2s, w_out, b_out)

    out = out[:, :2].reshape(n, h, w, 2)
    return jnp.transpose(out, (0, 3, 1, 2))   # back to NCHW


# ----------------------------------------------------------------------------
# Parameter init (deterministic, PyTorch-Conv2d-style uniform bounds)
# ----------------------------------------------------------------------------
def _init_conv(key, cin, cout):
    bound = 1.0 / (cin * 9.0) ** 0.5
    kw_, kb_ = jax.random.split(key)
    wgt = jax.random.uniform(kw_, (3, 3, cin, cout), jnp.float32, -bound, bound)  # HWIO
    b = jax.random.uniform(kb_, (cout,), jnp.float32, -bound, bound)
    return wgt, b


def init_chessnet(key, hidden_layers, hidden_size):
    keys = jax.random.split(key, 2 + 2 * hidden_layers)
    params = {}
    params["in_w"], params["in_b"] = _init_conv(keys[0], 6, hidden_size)
    blocks = []
    for i in range(hidden_layers):
        w1, b1 = _init_conv(keys[1 + 2 * i], hidden_size, hidden_size)
        w2, b2 = _init_conv(keys[2 + 2 * i], hidden_size, hidden_size)
        blocks.append(dict(
            w1=w1, b1=b1, g1=jnp.ones((hidden_size,), jnp.float32),
            be1=jnp.zeros((hidden_size,), jnp.float32),
            w2=w2, b2=b2, g2=jnp.ones((hidden_size,), jnp.float32),
            be2=jnp.zeros((hidden_size,), jnp.float32),
        ))
    params["blocks"] = blocks
    params["out_w"], params["out_b"] = _init_conv(keys[-1], hidden_size, 2)
    return params


# ----------------------------------------------------------------------------
# Reference (matches ChessNet.forward; conv operands bf16-rounded like the kernel)
# ----------------------------------------------------------------------------
def _ref_conv(x_nhwc, w_hwio, b):
    y = jax.lax.conv_general_dilated(
        x_nhwc.astype(jnp.bfloat16), w_hwio.astype(jnp.bfloat16),
        (1, 1), "SAME", dimension_numbers=("NHWC", "HWIO", "NHWC"),
        preferred_element_type=jnp.float32)
    return y + b


def _ref_bn(x, g, b):
    mean = jnp.mean(x, axis=(0, 1, 2), keepdims=True)
    var = jnp.mean(jnp.square(x - mean), axis=(0, 1, 2), keepdims=True)
    return (x - mean) * jax.lax.rsqrt(var + BN_EPS) * g + b


def chessnet_ref(x_nchw, params):
    x = jnp.transpose(x_nchw, (0, 2, 3, 1)).astype(jnp.float32)
    x = jnp.maximum(_ref_conv(x, params["in_w"], params["in_b"]), 0.0)
    for blk in params["blocks"]:
        xi = x
        h1 = _selu(_ref_bn(_ref_conv(x, blk["w1"], blk["b1"]), blk["g1"], blk["be1"]))
        h2 = _ref_bn(_ref_conv(h1, blk["w2"], blk["b2"]), blk["g2"], blk["be2"]) + xi
        x = _selu(h2)
    out = _ref_conv(x, params["out_w"], params["out_b"])
    return jnp.transpose(out, (0, 3, 1, 2))


if __name__ == "__main__":
    # Chess-like shapes: batch=2, 6 input planes, 8x8 board,
    # hidden_size=32 channels, hidden_layers=2 residual blocks.
    BATCH, H, W = 2, 8, 8
    HIDDEN_LAYERS, HIDDEN_SIZE = 2, 32

    key = jax.random.PRNGKey(0)
    kx, kp = jax.random.split(key)
    x = jax.random.normal(kx, (BATCH, 6, H, W), jnp.float32)
    params = init_chessnet(kp, HIDDEN_LAYERS, HIDDEN_SIZE)

    fwd = jax.jit(chessnet_forward)
    out = jax.block_until_ready(fwd(x, params))
    assert out.shape == (BATCH, 2, H, W), out.shape

    ref = jax.block_until_ready(chessnet_ref(x, params))
    err = float(jnp.max(jnp.abs(out - ref)))
    if not (err < 1e-2):
        raise AssertionError(f"Pallas vs reference mismatch, max abs err = {err}")

    print("KERNEL_OK")
</pallas_src>

<mosaic_0001>
module attributes {stable_mosaic.version = 11 : i64} {
  func.func @kernel(%arg0: memref<2x8x8x128xf32, #tpu.memory_space<vmem>>, %arg1: memref<1152x128xbf16, #tpu.memory_space<vmem>>, %arg2: memref<1x128xf32, #tpu.memory_space<vmem>>, %arg3: memref<2x1152x128xbf16, #tpu.memory_space<vmem>>, %arg4: memref<2x1x128xf32, #tpu.memory_space<vmem>>, %arg5: memref<2x1x128xf32, #tpu.memory_space<vmem>>, %arg6: memref<2x1152x128xbf16, #tpu.memory_space<vmem>>, %arg7: memref<2x1x128xf32, #tpu.memory_space<vmem>>, %arg8: memref<2x1x128xf32, #tpu.memory_space<vmem>>, %arg9: memref<1152x128xbf16, #tpu.memory_space<vmem>>, %arg10: memref<1x128xf32, #tpu.memory_space<vmem>>, %arg11: memref<128x128xf32, #tpu.memory_space<vmem>>, %arg12: memref<2x10x10x128xf32, #tpu.memory_space<vmem>>) attributes {dimension_semantics = [], scalar_prefetch = 0 : i64, scratch_operands = 1 : i64, tpu.core_type = #tpu.core_type<tc>} {
    %cst = arith.constant 0.000000e+00 : f32
    %0 = vector.broadcast %cst : f32 to vector<2x10x10x128xf32>
    %c0 = arith.constant 0 : index
    %c0_0 = arith.constant 0 : index
    %c0_1 = arith.constant 0 : index
    %c0_2 = arith.constant 0 : index
    %1 = vector.load %arg12[%c0, %c0_0, %c0_1, %c0_2] : memref<2x10x10x128xf32, #tpu.memory_space<vmem>>, vector<2x10x10x128xf32>
    tpu.vector_store %arg12[%c0, %c0_0, %c0_1, %c0_2], %0 {strides = array<i32>} : memref<2x10x10x128xf32, #tpu.memory_space<vmem>>, vector<2x10x10x128xf32>,
    %c0_3 = arith.constant 0 : index
    %c0_4 = arith.constant 0 : index
    %c0_5 = arith.constant 0 : index
    %c0_6 = arith.constant 0 : index
    %2 = vector.load %arg0[%c0_3, %c0_4, %c0_5, %c0_6] : memref<2x8x8x128xf32, #tpu.memory_space<vmem>>, vector<2x8x8x128xf32>
    %c0_7 = arith.constant 0 : index
    %c1 = arith.constant 1 : index
    %c1_8 = arith.constant 1 : index
    %c0_9 = arith.constant 0 : index
    %3 = vector.load %arg12[%c0_7, %c1, %c1_8, %c0_9] : memref<2x10x10x128xf32, #tpu.memory_space<vmem>>, vector<2x8x8x128xf32>
    tpu.vector_store %arg12[%c0_7, %c1, %c1_8, %c0_9], %2 {strides = array<i32>} : memref<2x10x10x128xf32, #tpu.memory_space<vmem>>, vector<2x8x8x128xf32>,
    %c0_10 = arith.constant 0 : index
    %c0_11 = arith.constant 0 : index
    %4 = vector.load %arg1[%c0_10, %c0_11] : memref<1152x128xbf16, #tpu.memory_space<vmem>>, vector<1152x128xbf16>
    %c0_12 = arith.constant 0 : index
    %c0_13 = arith.constant 0 : index
    %c0_14 = arith.constant 0 : index
    %c0_15 = arith.constant 0 : index
    %5 = vector.load %arg12[%c0_12, %c0_13, %c0_14, %c0_15] : memref<2x10x10x128xf32, #tpu.memory_space<vmem>>, vector<2x8x8x128xf32>
    %6 = vector.shape_cast %5 : vector<2x8x8x128xf32> to vector<128x128xf32>
    %7 = arith.truncf %6 : vector<128x128xf32> to vector<128x128xbf16>
    %c0_16 = arith.constant 0 : index
    %c0_17 = arith.constant 0 : index
    %c1_18 = arith.constant 1 : index
    %c0_19 = arith.constant 0 : index
    %8 = vector.load %arg12[%c0_16, %c0_17, %c1_18, %c0_19] : memref<2x10x10x128xf32, #tpu.memory_space<vmem>>, vector<2x8x8x128xf32>
    %9 = vector.shape_cast %8 : vector<2x8x8x128xf32> to vector<128x128xf32>
    %10 = arith.truncf %9 : vector<128x128xf32> to vector<128x128xbf16>
    %c0_20 = arith.constant 0 : index
    %c0_21 = arith.constant 0 : index
    %c2 = arith.constant 2 : index
    %c0_22 = arith.constant 0 : index
    %11 = vector.load %arg12[%c0_20, %c0_21, %c2, %c0_22] : memref<2x10x10x128xf32, #tpu.memory_space<vmem>>, vector<2x8x8x128xf32>
    %12 = vector.shape_cast %11 : vector<2x8x8x128xf32> to vector<128x128xf32>
    %13 = arith.truncf %12 : vector<128x128xf32> to vector<128x128xbf16>
    %c0_23 = arith.constant 0 : index
    %c1_24 = arith.constant 1 : index
    %c0_25 = arith.constant 0 : index
    %c0_26 = arith.constant 0 : index
    %14 = vector.load %arg12[%c0_23, %c1_24, %c0_25, %c0_26] : memref<2x10x10x128xf32, #tpu.memory_space<vmem>>, vector<2x8x8x128xf32>
    %15 = vector.shape_cast %14 : vector<2x8x8x128xf32> to vector<128x128xf32>
    %16 = arith.truncf %15 : vector<128x128xf32> to vector<128x128xbf16>
    %c0_27 = arith.constant 0 : index
    %c1_28 = arith.constant 1 : index
    %c1_29 = arith.constant 1 : index
    %c0_30 = arith.constant 0 : index
    %17 = vector.load %arg12[%c0_27, %c1_28, %c1_29, %c0_30] : memref<2x10x10x128xf32, #tpu.memory_space<vmem>>, vector<2x8x8x128xf32>
    %18 = vector.shape_cast %17 : vector<2x8x8x128xf32> to vector<128x128xf32>
    %19 = arith.truncf %18 : vector<128x128xf32> to vector<128x128xbf16>
    %c0_31 = arith.constant 0 : index
    %c1_32 = arith.constant 1 : index
    %c2_33 = arith.constant 2 : index
    %c0_34 = arith.constant 0 : index
    %20 = vector.load %arg12[%c0_31, %c1_32, %c2_33, %c0_34] : memref<2x10x10x128xf32, #tpu.memory_space<vmem>>, vector<2x8x8x128xf32>
    %21 = vector.shape_cast %20 : vector<2x8x8x128xf32> to vector<128x128xf32>
    %22 = arith.truncf %21 : vector<128x128xf32> to vector<128x128xbf16>
    %c0_35 = arith.constant 0 : index
    %c2_36 = arith.constant 2 : index
    %c0_37 = arith.constant 0 : index
    %c0_38 = arith.constant 0 : index
    %23 = vector.load %arg12[%c0_35, %c2_36, %c0_37, %c0_38] : memref<2x10x10x128xf32, #tpu.memory_space<vmem>>, vector<2x8x8x128xf32>
    %24 = vector.shape_cast %23 : vector<2x8x8x128xf32> to vector<128x128xf32>
    %25 = arith.truncf %24 : vector<128x128xf32> to vector<128x128xbf16>
    %c0_39 = arith.constant 0 : index
    %c2_40 = arith.constant 2 : index
    %c1_41 = arith.constant 1 : index
    %c0_42 = arith.constant 0 : index
    %26 = vector.load %arg12[%c0_39, %c2_40, %c1_41, %c0_42] : memref<2x10x10x128xf32, #tpu.memory_space<vmem>>, vector<2x8x8x128xf32>
    %27 = vector.shape_cast %26 : vector<2x8x8x128xf32> to vector<128x128xf32>
    %28 = arith.truncf %27 : vector<128x128xf32> to vector<128x128xbf16>
    %c0_43 = arith.constant 0 : index
    %c2_44 = arith.constant 2 : index
    %c2_45 = arith.constant 2 : index
    %c0_46 = arith.constant 0 : index
    %29 = vector.load %arg12[%c0_43, %c2_44, %c2_45, %c0_46] : memref<2x10x10x128xf32, #tpu.memory_space<vmem>>, vector<2x8x8x128xf32>
    %30 = vector.shape_cast %29 : vector<2x8x8x128xf32> to vector<128x128xf32>
    %31 = arith.truncf %30 : vector<128x128xf32> to vector<128x128xbf16>
    %32 = tpu.concatenate %7, %10, %13, %16, %19, %22, %25, %28, %31 in 1 : vector<128x128xbf16>, vector<128x128xbf16>, vector<128x128xbf16>, vector<128x128xbf16>, vector<128x128xbf16>, vector<128x128xbf16>, vector<128x128xbf16>, vector<128x128xbf16>, vector<128x128xbf16> -> vector<128x1152xbf16>
    %cst_47 = arith.constant dense<0.000000e+00> : vector<128x128xf32>
    %33 = tpu.matmul %32, %4, %cst_47 {dimension_numbers = #tpu.dot_dimension_numbers<[1], [0], [0], [1], [0, 0, 1, 1], [], []>} : vector<128x1152xbf16>, vector<1152x128xbf16>, vector<128x128xf32> -> vector<128x128xf32>
    %c0_48 = arith.constant 0 : index
    %c0_49 = arith.constant 0 : index
    %34 = vector.load %arg2[%c0_48, %c0_49] : memref<1x128xf32, #tpu.memory_space<vmem>>, vector<1x128xf32>
    %35 = vector.broadcast %34 : vector<1x128xf32> to vector<128x128xf32>
    %36 = arith.addf %33, %35 : vector<128x128xf32>
    %cst_50 = arith.constant 0.000000e+00 : f32
    %37 = vector.broadcast %cst_50 : f32 to vector<128x128xf32>
    %38 = arith.maximumf %36, %37 : vector<128x128xf32>
    %39 = vector.shape_cast %38 : vector<128x128xf32> to vector<2x8x8x128xf32>
    %c0_51 = arith.constant 0 : index
    %c1_52 = arith.constant 1 : index
    %c1_53 = arith.constant 1 : index
    %c0_54 = arith.constant 0 : index
    %40 = vector.load %arg12[%c0_51, %c1_52, %c1_53, %c0_54] : memref<2x10x10x128xf32, #tpu.memory_space<vmem>>, vector<2x8x8x128xf32>
    tpu.vector_store %arg12[%c0_51, %c1_52, %c1_53, %c0_54], %39 {strides = array<i32>} : memref<2x10x10x128xf32, #tpu.memory_space<vmem>>, vector<2x8x8x128xf32>,
    %c0_55 = arith.constant 0 : index
    %c0_56 = arith.constant 0 : index
    %c0_57 = arith.constant 0 : index
    %41 = vector.load %arg3[%c0_55, %c0_56, %c0_57] : memref<2x1152x128xbf16, #tpu.memory_space<vmem>>, vector<1x1152x128xbf16>
    %42 = vector.shape_cast %41 : vector<1x1152x128xbf16> to vector<1152x128xbf16>
    %c0_58 = arith.constant 0 : index
    %c0_59 = arith.constant 0 : index
    %c0_60 = arith.constant 0 : index
    %c0_61 = arith.constant 0 : index
    %43 = vector.load %arg12[%c0_58, %c0_59, %c0_60, %c0_61] : memref<2x10x10x128xf32, #tpu.memory_space<vmem>>, vector<2x8x8x128xf32>
    %44 = vector.shape_cast %43 : vector<2x8x8x128xf32> to vector<128x128xf32>
    %45 = arith.truncf %44 : vector<128x128xf32> to vector<128x128xbf16>
    %c0_62 = arith.constant 0 : index
    %c0_63 = arith.constant 0 : index
    %c1_64 = arith.constant 1 : index
    %c0_65 = arith.constant 0 : index
    %46 = vector.load %arg12[%c0_62, %c0_63, %c1_64, %c0_65] : memref<2x10x10x128xf32, #tpu.memory_space<vmem>>, vector<2x8x8x128xf32>
    %47 = vector.shape_cast %46 : vector<2x8x8x128xf32> to vector<128x128xf32>
    %48 = arith.truncf %47 : vector<128x128xf32> to vector<128x128xbf16>
    %c0_66 = arith.constant 0 : index
    %c0_67 = arith.constant 0 : index
    %c2_68 = arith.constant 2 : index
    %c0_69 = arith.constant 0 : index
    %49 = vector.load %arg12[%c0_66, %c0_67, %c2_68, %c0_69] : memref<2x10x10x128xf32, #tpu.memory_space<vmem>>, vector<2x8x8x128xf32>
    %50 = vector.shape_cast %49 : vector<2x8x8x128xf32> to vector<128x128xf32>
    %51 = arith.truncf %50 : vector<128x128xf32> to vector<128x128xbf16>
    %c0_70 = arith.constant 0 : index
    %c1_71 = arith.constant 1 : index
    %c0_72 = arith.constant 0 : index
    %c0_73 = arith.constant 0 : index
    %52 = vector.load %arg12[%c0_70, %c1_71, %c0_72, %c0_73] : memref<2x10x10x128xf32, #tpu.memory_space<vmem>>, vector<2x8x8x128xf32>
    %53 = vector.shape_cast %52 : vector<2x8x8x128xf32> to vector<128x128xf32>
    %54 = arith.truncf %53 : vector<128x128xf32> to vector<128x128xbf16>
    %c0_74 = arith.constant 0 : index
    %c1_75 = arith.constant 1 : index
    %c1_76 = arith.constant 1 : index
    %c0_77 = arith.constant 0 : index
    %55 = vector.load %arg12[%c0_74, %c1_75, %c1_76, %c0_77] : memref<2x10x10x128xf32, #tpu.memory_space<vmem>>, vector<2x8x8x128xf32>
    %56 = vector.shape_cast %55 : vector<2x8x8x128xf32> to vector<128x128xf32>
    %57 = arith.truncf %56 : vector<128x128xf32> to vector<128x128xbf16>
    %c0_78 = arith.constant 0 : index
    %c1_79 = arith.constant 1 : index
    %c2_80 = arith.constant 2 : index
    %c0_81 = arith.constant 0 : index
    %58 = vector.load %arg12[%c0_78, %c1_79, %c2_80, %c0_81] : memref<2x10x10x128xf32, #tpu.memory_space<vmem>>, vector<2x8x8x128xf32>
    %59 = vector.shape_cast %58 : vector<2x8x8x128xf32> to vector<128x128xf32>
    %60 = arith.truncf %59 : vector<128x128xf32> to vector<128x128xbf16>
    %c0_82 = arith.constant 0 : index
    %c2_83 = arith.constant 2 : index
    %c0_84 = arith.constant 0 : index
    %c0_85 = arith.constant 0 : index
    %61 = vector.load %arg12[%c0_82, %c2_83, %c0_84, %c0_85] : memref<2x10x10x128xf32, #tpu.memory_space<vmem>>, vector<2x8x8x128xf32>
    %62 = vector.shape_cast %61 : vector<2x8x8x128xf32> to vector<128x128xf32>
    %63 = arith.truncf %62 : vector<128x128xf32> to vector<128x128xbf16>
    %c0_86 = arith.constant 0 : index
    %c2_87 = arith.constant 2 : index
    %c1_88 = arith.constant 1 : index
    %c0_89 = arith.constant 0 : index
    %64 = vector.load %arg12[%c0_86, %c2_87, %c1_88, %c0_89] : memref<2x10x10x128xf32, #tpu.memory_space<vmem>>, vector<2x8x8x128xf32>
    %65 = vector.shape_cast %64 : vector<2x8x8x128xf32> to vector<128x128xf32>
    %66 = arith.truncf %65 : vector<128x128xf32> to vector<128x128xbf16>
    %c0_90 = arith.constant 0 : index
    %c2_91 = arith.constant 2 : index
    %c2_92 = arith.constant 2 : index
    %c0_93 = arith.constant 0 : index
    %67 = vector.load %arg12[%c0_90, %c2_91, %c2_92, %c0_93] : memref<2x10x10x128xf32, #tpu.memory_space<vmem>>, vector<2x8x8x128xf32>
    %68 = vector.shape_cast %67 : vector<2x8x8x128xf32> to vector<128x128xf32>
    %69 = arith.truncf %68 : vector<128x128xf32> to vector<128x128xbf16>
    %70 = tpu.concatenate %45, %48, %51, %54, %57, %60, %63, %66, %69 in 1 : vector<128x128xbf16>, vector<128x128xbf16>, vector<128x128xbf16>, vector<128x128xbf16>, vector<128x128xbf16>, vector<128x128xbf16>, vector<128x128xbf16>, vector<128x128xbf16>, vector<128x128xbf16> -> vector<128x1152xbf16>
    %cst_94 = arith.constant dense<0.000000e+00> : vector<128x128xf32>
    %71 = tpu.matmul %70, %42, %cst_94 {dimension_numbers = #tpu.dot_dimension_numbers<[1], [0], [0], [1], [0, 0, 1, 1], [], []>} : vector<128x1152xbf16>, vector<1152x128xbf16>, vector<128x128xf32> -> vector<128x128xf32>
    %c0_95 = arith.constant 0 : index
    %c0_96 = arith.constant 0 : index
    %c0_97 = arith.constant 0 : index
    %72 = vector.load %arg4[%c0_95, %c0_96, %c0_97] : memref<2x1x128xf32, #tpu.memory_space<vmem>>, vector<1x1x128xf32>
    %73 = vector.shape_cast %72 : vector<1x1x128xf32> to vector<1x128xf32>
    %c0_98 = arith.constant 0 : index
    %c0_99 = arith.constant 0 : index
    %c0_100 = arith.constant 0 : index
    %74 = vector.load %arg5[%c0_98, %c0_99, %c0_100] : memref<2x1x128xf32, #tpu.memory_space<vmem>>, vector<1x1x128xf32>
    %75 = vector.shape_cast %74 : vector<1x1x128xf32> to vector<1x128xf32>
    %cst_101 = arith.constant dense<0.000000e+00> : vector<128xf32>
    %76 = vector.multi_reduction <add>, %71, %cst_101 [0] : vector<128x128xf32> to vector<128xf32>
    %77 = vector.shape_cast %76 : vector<128xf32> to vector<1x128xf32>
    %78 = arith.mulf %71, %71 : vector<128x128xf32>
    %cst_102 = arith.constant dense<0.000000e+00> : vector<128xf32>
    %79 = vector.multi_reduction <add>, %78, %cst_102 [0] : vector<128x128xf32> to vector<128xf32>
    %80 = vector.shape_cast %79 : vector<128xf32> to vector<1x128xf32>
    %cst_103 = arith.constant 7.812500e-03 : f32
    %81 = vector.broadcast %cst_103 : f32 to vector<1x128xf32>
    %82 = arith.mulf %77, %81 : vector<1x128xf32>
    %cst_104 = arith.constant 7.812500e-03 : f32
    %83 = vector.broadcast %cst_104 : f32 to vector<1x128xf32>
    %84 = arith.mulf %80, %83 : vector<1x128xf32>
    %85 = arith.mulf %82, %82 : vector<1x128xf32>
    %86 = arith.subf %84, %85 : vector<1x128xf32>
    %87 = vector.broadcast %82 : vector<1x128xf32> to vector<128x128xf32>
    %88 = arith.subf %71, %87 : vector<128x128xf32>
    %cst_105 = arith.constant 9.99999974E-6 : f32
    %89 = vector.broadcast %cst_105 : f32 to vector<1x128xf32>
    %90 = arith.addf %86, %89 : vector<1x128xf32>
    %91 = math.rsqrt %90 : vector<1x128xf32>
    %92 = arith.mulf %91, %73 : vector<1x128xf32>
    %93 = vector.broadcast %92 : vector<1x128xf32> to vector<128x128xf32>
    %94 = arith.mulf %88, %93 : vector<128x128xf32>
    %95 = vector.broadcast %75 : vector<1x128xf32> to vector<128x128xf32>
    %96 = arith.addf %94, %95 : vector<128x128xf32>
    %cst_106 = arith.constant 0.000000e+00 : f32
    %97 = vector.broadcast %cst_106 : f32 to vector<128x128xf32>
    %98 = arith.cmpf ogt, %96, %97 : vector<128x128xf32>
    %99 = math.exp %96 : vector<128x128xf32>
    %cst_107 = arith.constant 1.000000e+00 : f32
    %100 = vector.broadcast %cst_107 : f32 to vector<128x128xf32>
    %101 = arith.subf %99, %100 : vector<128x128xf32>
    %cst_108 = arith.constant 1.67326319 : f32
    %102 = vector.broadcast %cst_108 : f32 to vector<128x128xf32>
    %103 = arith.mulf %102, %101 : vector<128x128xf32>
    %104 = arith.select %98, %96, %103 : vector<128x128xi1>, vector<128x128xf32>
    %cst_109 = arith.constant 1.05070102 : f32
    %105 = vector.broadcast %cst_109 : f32 to vector<128x128xf32>
    %106 = arith.mulf %105, %104 : vector<128x128xf32>
    %107 = vector.shape_cast %106 : vector<128x128xf32> to vector<2x8x8x128xf32>
    %c0_110 = arith.constant 0 : index
    %c1_111 = arith.constant 1 : index
    %c1_112 = arith.constant 1 : index
    %c0_113 = arith.constant 0 : index
    %108 = vector.load %arg12[%c0_110, %c1_111, %c1_112, %c0_113] : memref<2x10x10x128xf32, #tpu.memory_space<vmem>>, vector<2x8x8x128xf32>
    tpu.vector_store %arg12[%c0_110, %c1_111, %c1_112, %c0_113], %107 {strides = array<i32>} : memref<2x10x10x128xf32, #tpu.memory_space<vmem>>, vector<2x8x8x128xf32>,
    %c0_114 = arith.constant 0 : index
    %c0_115 = arith.constant 0 : index
    %c0_116 = arith.constant 0 : index
    %109 = vector.load %arg6[%c0_114, %c0_115, %c0_116] : memref<2x1152x128xbf16, #tpu.memory_space<vmem>>, vector<1x1152x128xbf16>
    %110 = vector.shape_cast %109 : vector<1x1152x128xbf16> to vector<1152x128xbf16>
    %c0_117 = arith.constant 0 : index
    %c0_118 = arith.constant 0 : index
    %c0_119 = arith.constant 0 : index
    %c0_120 = arith.constant 0 : index
    %111 = vector.load %arg12[%c0_117, %c0_118, %c0_119, %c0_120] : memref<2x10x10x128xf32, #tpu.memory_space<vmem>>, vector<2x8x8x128xf32>
    %112 = vector.shape_cast %111 : vector<2x8x8x128xf32> to vector<128x128xf32>
    %113 = arith.truncf %112 : vector<128x128xf32> to vector<128x128xbf16>
    %c0_121 = arith.constant 0 : index
    %c0_122 = arith.constant 0 : index
    %c1_123 = arith.constant 1 : index
    %c0_124 = arith.constant 0 : index
    %114 = vector.load %arg12[%c0_121, %c0_122, %c1_123, %c0_124] : memref<2x10x10x128xf32, #tpu.memory_space<vmem>>, vector<2x8x8x128xf32>
    %115 = vector.shape_cast %114 : vector<2x8x8x128xf32> to vector<128x128xf32>
    %116 = arith.truncf %115 : vector<128x128xf32> to vector<128x128xbf16>
    %c0_125 = arith.constant 0 : index
    %c0_126 = arith.constant 0 : index
    %c2_127 = arith.constant 2 : index
    %c0_128 = arith.constant 0 : index
    %117 = vector.load %arg12[%c0_125, %c0_126, %c2_127, %c0_128] : memref<2x10x10x128xf32, #tpu.memory_space<vmem>>, vector<2x8x8x128xf32>
    %118 = vector.shape_cast %117 : vector<2x8x8x128xf32> to vector<128x128xf32>
    %119 = arith.truncf %118 : vector<128x128xf32> to vector<128x128xbf16>
    %c0_129 = arith.constant 0 : index
    %c1_130 = arith.constant 1 : index
    %c0_131 = arith.constant 0 : index
    %c0_132 = arith.constant 0 : index
    %120 = vector.load %arg12[%c0_129, %c1_130, %c0_131, %c0_132] : memref<2x10x10x128xf32, #tpu.memory_space<vmem>>, vector<2x8x8x128xf32>
    %121 = vector.shape_cast %120 : vector<2x8x8x128xf32> to vector<128x128xf32>
    %122 = arith.truncf %121 : vector<128x128xf32> to vector<128x128xbf16>
    %c0_133 = arith.constant 0 : index
    %c1_134 = arith.constant 1 : index
    %c1_135 = arith.constant 1 : index
    %c0_136 = arith.constant 0 : index
    %123 = vector.load %arg12[%c0_133, %c1_134, %c1_135, %c0_136] : memref<2x10x10x128xf32, #tpu.memory_space<vmem>>, vector<2x8x8x128xf32>
    %124 = vector.shape_cast %123 : vector<2x8x8x128xf32> to vector<128x128xf32>
    %125 = arith.truncf %124 : vector<128x128xf32> to vector<128x128xbf16>
    %c0_137 = arith.constant 0 : index
    %c1_138 = arith.constant 1 : index
    %c2_139 = arith.constant 2 : index
    %c0_140 = arith.constant 0 : index
    %126 = vector.load %arg12[%c0_137, %c1_138, %c2_139, %c0_140] : memref<2x10x10x128xf32, #tpu.memory_space<vmem>>, vector<2x8x8x128xf32>
    %127 = vector.shape_cast %126 : vector<2x8x8x128xf32> to vector<128x128xf32>
    %128 = arith.truncf %127 : vector<128x128xf32> to vector<128x128xbf16>
    %c0_141 = arith.constant 0 : index
    %c2_142 = arith.constant 2 : index
    %c0_143 = arith.constant 0 : index
    %c0_144 = arith.constant 0 : index
    %129 = vector.load %arg12[%c0_141, %c2_142, %c0_143, %c0_144] : memref<2x10x10x128xf32, #tpu.memory_space<vmem>>, vector<2x8x8x128xf32>
    %130 = vector.shape_cast %129 : vector<2x8x8x128xf32> to vector<128x128xf32>
    %131 = arith.truncf %130 : vector<128x128xf32> to vector<128x128xbf16>
    %c0_145 = arith.constant 0 : index
    %c2_146 = arith.constant 2 : index
    %c1_147 = arith.constant 1 : index
    %c0_148 = arith.constant 0 : index
    %132 = vector.load %arg12[%c0_145, %c2_146, %c1_147, %c0_148] : memref<2x10x10x128xf32, #tpu.memory_space<vmem>>, vector<2x8x8x128xf32>
    %133 = vector.shape_cast %132 : vector<2x8x8x128xf32> to vector<128x128xf32>
    %134 = arith.truncf %133 : vector<128x128xf32> to vector<128x128xbf16>
    %c0_149 = arith.constant 0 : index
    %c2_150 = arith.constant 2 : index
    %c2_151 = arith.constant 2 : index
    %c0_152 = arith.constant 0 : index
    %135 = vector.load %arg12[%c0_149, %c2_150, %c2_151, %c0_152] : memref<2x10x10x128xf32, #tpu.memory_space<vmem>>, vector<2x8x8x128xf32>
    %136 = vector.shape_cast %135 : vector<2x8x8x128xf32> to vector<128x128xf32>
    %137 = arith.truncf %136 : vector<128x128xf32> to vector<128x128xbf16>
    %138 = tpu.concatenate %113, %116, %119, %122, %125, %128, %131, %134, %137 in 1 : vector<128x128xbf16>, vector<128x128xbf16>, vector<128x128xbf16>, vector<128x128xbf16>, vector<128x128xbf16>, vector<128x128xbf16>, vector<128x128xbf16>, vector<128x128xbf16>, vector<128x128xbf16> -> vector<128x1152xbf16>
    %cst_153 = arith.constant dense<0.000000e+00> : vector<128x128xf32>
    %139 = tpu.matmul %138, %110, %cst_153 {dimension_numbers = #tpu.dot_dimension_numbers<[1], [0], [0], [1], [0, 0, 1, 1], [], []>} : vector<128x1152xbf16>, vector<1152x128xbf16>, vector<128x128xf32> -> vector<128x128xf32>
    %c0_154 = arith.constant 0 : index
    %c0_155 = arith.constant 0 : index
    %c0_156 = arith.constant 0 : index
    %140 = vector.load %arg7[%c0_154, %c0_155, %c0_156] : memref<2x1x128xf32, #tpu.memory_space<vmem>>, vector<1x1x128xf32>
    %141 = vector.shape_cast %140 : vector<1x1x128xf32> to vector<1x128xf32>
    %c0_157 = arith.constant 0 : index
    %c0_158 = arith.constant 0 : index
    %c0_159 = arith.constant 0 : index
    %142 = vector.load %arg8[%c0_157, %c0_158, %c0_159] : memref<2x1x128xf32, #tpu.memory_space<vmem>>, vector<1x1x128xf32>
    %143 = vector.shape_cast %142 : vector<1x1x128xf32> to vector<1x128xf32>
    %cst_160 = arith.constant dense<0.000000e+00> : vector<128xf32>
    %144 = vector.multi_reduction <add>, %139, %cst_160 [0] : vector<128x128xf32> to vector<128xf32>
    %145 = vector.shape_cast %144 : vector<128xf32> to vector<1x128xf32>
    %146 = arith.mulf %139, %139 : vector<128x128xf32>
    %cst_161 = arith.constant dense<0.000000e+00> : vector<128xf32>
    %147 = vector.multi_reduction <add>, %146, %cst_161 [0] : vector<128x128xf32> to vector<128xf32>
    %148 = vector.shape_cast %147 : vector<128xf32> to vector<1x128xf32>
    %cst_162 = arith.constant 7.812500e-03 : f32
    %149 = vector.broadcast %cst_162 : f32 to vector<1x128xf32>
    %150 = arith.mulf %145, %149 : vector<1x128xf32>
    %cst_163 = arith.constant 7.812500e-03 : f32
    %151 = vector.broadcast %cst_163 : f32 to vector<1x128xf32>
    %152 = arith.mulf %148, %151 : vector<1x128xf32>
    %153 = arith.mulf %150, %150 : vector<1x128xf32>
    %154 = arith.subf %152, %153 : vector<1x128xf32>
    %155 = vector.broadcast %150 : vector<1x128xf32> to vector<128x128xf32>
    %156 = arith.subf %139, %155 : vector<128x128xf32>
    %cst_164 = arith.constant 9.99999974E-6 : f32
    %157 = vector.broadcast %cst_164 : f32 to vector<1x128xf32>
    %158 = arith.addf %154, %157 : vector<1x128xf32>
    %159 = math.rsqrt %158 : vector<1x128xf32>
    %160 = arith.mulf %159, %141 : vector<1x128xf32>
    %161 = vector.broadcast %160 : vector<1x128xf32> to vector<128x128xf32>
    %162 = arith.mulf %156, %161 : vector<128x128xf32>
    %163 = vector.broadcast %143 : vector<1x128xf32> to vector<128x128xf32>
    %164 = arith.addf %162, %163 : vector<128x128xf32>
    %165 = arith.addf %164, %38 : vector<128x128xf32>
    %cst_165 = arith.constant 0.000000e+00 : f32
    %166 = vector.broadcast %cst_165 : f32 to vector<128x128xf32>
    %167 = arith.cmpf ogt, %165, %166 : vector<128x128xf32>
    %168 = math.exp %165 : vector<128x128xf32>
    %cst_166 = arith.constant 1.000000e+00 : f32
    %169 = vector.broadcast %cst_166 : f32 to vector<128x128xf32>
    %170 = arith.subf %168, %169 : vector<128x128xf32>
    %cst_167 = arith.constant 1.67326319 : f32
    %171 = vector.broadcast %cst_167 : f32 to vector<128x128xf32>
    %172 = arith.mulf %171, %170 : vector<128x128xf32>
    %173 = arith.select %167, %165, %172 : vector<128x128xi1>, vector<128x128xf32>
    %cst_168 = arith.constant 1.05070102 : f32
    %174 = vector.broadcast %cst_168 : f32 to vector<128x128xf32>
    %175 = arith.mulf %174, %173 : vector<128x128xf32>
    %176 = vector.shape_cast %175 : vector<128x128xf32> to vector<2x8x8x128xf32>
    %c0_169 = arith.constant 0 : index
    %c1_170 = arith.constant 1 : index
    %c1_171 = arith.constant 1 : index
    %c0_172 = arith.constant 0 : index
    %177 = vector.load %arg12[%c0_169, %c1_170, %c1_171, %c0_172] : memref<2x10x10x128xf32, #tpu.memory_space<vmem>>, vector<2x8x8x128xf32>
    tpu.vector_store %arg12[%c0_169, %c1_170, %c1_171, %c0_172], %176 {strides = array<i32>} : memref<2x10x10x128xf32, #tpu.memory_space<vmem>>, vector<2x8x8x128xf32>,
    %c1_173 = arith.constant 1 : index
    %c0_174 = arith.constant 0 : index
    %c0_175 = arith.constant 0 : index
    %178 = vector.load %arg3[%c1_173, %c0_174, %c0_175] : memref<2x1152x128xbf16, #tpu.memory_space<vmem>>, vector<1x1152x128xbf16>
    %179 = vector.shape_cast %178 : vector<1x1152x128xbf16> to vector<1152x128xbf16>
    %c0_176 = arith.constant 0 : index
    %c0_177 = arith.constant 0 : index
    %c0_178 = arith.constant 0 : index
    %c0_179 = arith.constant 0 : index
    %180 = vector.load %arg12[%c0_176, %c0_177, %c0_178, %c0_179] : memref<2x10x10x128xf32, #tpu.memory_space<vmem>>, vector<2x8x8x128xf32>
    %181 = vector.shape_cast %180 : vector<2x8x8x128xf32> to vector<128x128xf32>
    %182 = arith.truncf %181 : vector<128x128xf32> to vector<128x128xbf16>
    %c0_180 = arith.constant 0 : index
    %c0_181 = arith.constant 0 : index
    %c1_182 = arith.constant 1 : index
    %c0_183 = arith.constant 0 : index
    %183 = vector.load %arg12[%c0_180, %c0_181, %c1_182, %c0_183] : memref<2x10x10x128xf32, #tpu.memory_space<vmem>>, vector<2x8x8x128xf32>
    %184 = vector.shape_cast %183 : vector<2x8x8x128xf32> to vector<128x128xf32>
    %185 = arith.truncf %184 : vector<128x128xf32> to vector<128x128xbf16>
    %c0_184 = arith.constant 0 : index
    %c0_185 = arith.constant 0 : index
    %c2_186 = arith.constant 2 : index
    %c0_187 = arith.constant 0 : index
    %186 = vector.load %arg12[%c0_184, %c0_185, %c2_186, %c0_187] : memref<2x10x10x128xf32, #tpu.memory_space<vmem>>, vector<2x8x8x128xf32>
    %187 = vector.shape_cast %186 : vector<2x8x8x128xf32> to vector<128x128xf32>
    %188 = arith.truncf %187 : vector<128x128xf32> to vector<128x128xbf16>
    %c0_188 = arith.constant 0 : index
    %c1_189 = arith.constant 1 : index
    %c0_190 = arith.constant 0 : index
    %c0_191 = arith.constant 0 : index
    %189 = vector.load %arg12[%c0_188, %c1_189, %c0_190, %c0_191] : memref<2x10x10x128xf32, #tpu.memory_space<vmem>>, vector<2x8x8x128xf32>
    %190 = vector.shape_cast %189 : vector<2x8x8x128xf32> to vector<128x128xf32>
    %191 = arith.truncf %190 : vector<128x128xf32> to vector<128x128xbf16>
    %c0_192 = arith.constant 0 : index
    %c1_193 = arith.constant 1 : index
    %c1_194 = arith.constant 1 : index
    %c0_195 = arith.constant 0 : index
    %192 = vector.load %arg12[%c0_192, %c1_193, %c1_194, %c0_195] : memref<2x10x10x128xf32, #tpu.memory_space<vmem>>, vector<2x8x8x128xf32>
    %193 = vector.shape_cast %192 : vector<2x8x8x128xf32> to vector<128x128xf32>
    %194 = arith.truncf %193 : vector<128x128xf32> to vector<128x128xbf16>
    %c0_196 = arith.constant 0 : index
    %c1_197 = arith.constant 1 : index
    %c2_198 = arith.constant 2 : index
    %c0_199 = arith.constant 0 : index
    %195 = vector.load %arg12[%c0_196, %c1_197, %c2_198, %c0_199] : memref<2x10x10x128xf32, #tpu.memory_space<vmem>>, vector<2x8x8x128xf32>
    %196 = vector.shape_cast %195 : vector<2x8x8x128xf32> to vector<128x128xf32>
    %197 = arith.truncf %196 : vector<128x128xf32> to vector<128x128xbf16>
    %c0_200 = arith.constant 0 : index
    %c2_201 = arith.constant 2 : index
    %c0_202 = arith.constant 0 : index
    %c0_203 = arith.constant 0 : index
    %198 = vector.load %arg12[%c0_200, %c2_201, %c0_202, %c0_203] : memref<2x10x10x128xf32, #tpu.memory_space<vmem>>, vector<2x8x8x128xf32>
    %199 = vector.shape_cast %198 : vector<2x8x8x128xf32> to vector<128x128xf32>
    %200 = arith.truncf %199 : vector<128x128xf32> to vector<128x128xbf16>
    %c0_204 = arith.constant 0 : index
    %c2_205 = arith.constant 2 : index
    %c1_206 = arith.constant 1 : index
    %c0_207 = arith.constant 0 : index
    %201 = vector.load %arg12[%c0_204, %c2_205, %c1_206, %c0_207] : memref<2x10x10x128xf32, #tpu.memory_space<vmem>>, vector<2x8x8x128xf32>
    %202 = vector.shape_cast %201 : vector<2x8x8x128xf32> to vector<128x128xf32>
    %203 = arith.truncf %202 : vector<128x128xf32> to vector<128x128xbf16>
    %c0_208 = arith.constant 0 : index
    %c2_209 = arith.constant 2 : index
    %c2_210 = arith.constant 2 : index
    %c0_211 = arith.constant 0 : index
    %204 = vector.load %arg12[%c0_208, %c2_209, %c2_210, %c0_211] : memref<2x10x10x128xf32, #tpu.memory_space<vmem>>, vector<2x8x8x128xf32>
    %205 = vector.shape_cast %204 : vector<2x8x8x128xf32> to vector<128x128xf32>
    %206 = arith.truncf %205 : vector<128x128xf32> to vector<128x128xbf16>
    %207 = tpu.concatenate %182, %185, %188, %191, %194, %197, %200, %203, %206 in 1 : vector<128x128xbf16>, vector<128x128xbf16>, vector<128x128xbf16>, vector<128x128xbf16>, vector<128x128xbf16>, vector<128x128xbf16>, vector<128x128xbf16>, vector<128x128xbf16>, vector<128x128xbf16> -> vector<128x1152xbf16>
    %cst_212 = arith.constant dense<0.000000e+00> : vector<128x128xf32>
    %208 = tpu.matmul %207, %179, %cst_212 {dimension_numbers = #tpu.dot_dimension_numbers<[1], [0], [0], [1], [0, 0, 1, 1], [], []>} : vector<128x1152xbf16>, vector<1152x128xbf16>, vector<128x128xf32> -> vector<128x128xf32>
    %c1_213 = arith.constant 1 : index
    %c0_214 = arith.constant 0 : index
    %c0_215 = arith.constant 0 : index
    %209 = vector.load %arg4[%c1_213, %c0_214, %c0_215] : memref<2x1x128xf32, #tpu.memory_space<vmem>>, vector<1x1x128xf32>
    %210 = vector.shape_cast %209 : vector<1x1x128xf32> to vector<1x128xf32>
    %c1_216 = arith.constant 1 : index
    %c0_217 = arith.constant 0 : index
    %c0_218 = arith.constant 0 : index
    %211 = vector.load %arg5[%c1_216, %c0_217, %c0_218] : memref<2x1x128xf32, #tpu.memory_space<vmem>>, vector<1x1x128xf32>
    %212 = vector.shape_cast %211 : vector<1x1x128xf32> to vector<1x128xf32>
    %cst_219 = arith.constant dense<0.000000e+00> : vector<128xf32>
    %213 = vector.multi_reduction <add>, %208, %cst_219 [0] : vector<128x128xf32> to vector<128xf32>
    %214 = vector.shape_cast %213 : vector<128xf32> to vector<1x128xf32>
    %215 = arith.mulf %208, %208 : vector<128x128xf32>
    %cst_220 = arith.constant dense<0.000000e+00> : vector<128xf32>
    %216 = vector.multi_reduction <add>, %215, %cst_220 [0] : vector<128x128xf32> to vector<128xf32>
    %217 = vector.shape_cast %216 : vector<128xf32> to vector<1x128xf32>
    %cst_221 = arith.constant 7.812500e-03 : f32
    %218 = vector.broadcast %cst_221 : f32 to vector<1x128xf32>
    %219 = arith.mulf %214, %218 : vector<1x128xf32>
    %cst_222 = arith.constant 7.812500e-03 : f32
    %220 = vector.broadcast %cst_222 : f32 to vector<1x128xf32>
    %221 = arith.mulf %217, %220 : vector<1x128xf32>
    %222 = arith.mulf %219, %219 : vector<1x128xf32>
    %223 = arith.subf %221, %222 : vector<1x128xf32>
    %224 = vector.broadcast %219 : vector<1x128xf32> to vector<128x128xf32>
    %225 = arith.subf %208, %224 : vector<128x128xf32>
    %cst_223 = arith.constant 9.99999974E-6 : f32
    %226 = vector.broadcast %cst_223 : f32 to vector<1x128xf32>
    %227 = arith.addf %223, %226 : vector<1x128xf32>
    %228 = math.rsqrt %227 : vector<1x128xf32>
    %229 = arith.mulf %228, %210 : vector<1x128xf32>
    %230 = vector.broadcast %229 : vector<1x128xf32> to vector<128x128xf32>
    %231 = arith.mulf %225, %230 : vector<128x128xf32>
    %232 = vector.broadcast %212 : vector<1x128xf32> to vector<128x128xf32>
    %233 = arith.addf %231, %232 : vector<128x128xf32>
    %cst_224 = arith.constant 0.000000e+00 : f32
    %234 = vector.broadcast %cst_224 : f32 to vector<128x128xf32>
    %235 = arith.cmpf ogt, %233, %234 : vector<128x128xf32>
    %236 = math.exp %233 : vector<128x128xf32>
    %cst_225 = arith.constant 1.000000e+00 : f32
    %237 = vector.broadcast %cst_225 : f32 to vector<128x128xf32>
    %238 = arith.subf %236, %237 : vector<128x128xf32>
    %cst_226 = arith.constant 1.67326319 : f32
    %239 = vector.broadcast %cst_226 : f32 to vector<128x128xf32>
    %240 = arith.mulf %239, %238 : vector<128x128xf32>
    %241 = arith.select %235, %233, %240 : vector<128x128xi1>, vector<128x128xf32>
    %cst_227 = arith.constant 1.05070102 : f32
    %242 = vector.broadcast %cst_227 : f32 to vector<128x128xf32>
    %243 = arith.mulf %242, %241 : vector<128x128xf32>
    %244 = vector.shape_cast %243 : vector<128x128xf32> to vector<2x8x8x128xf32>
    %c0_228 = arith.constant 0 : index
    %c1_229 = arith.constant 1 : index
    %c1_230 = arith.constant 1 : index
    %c0_231 = arith.constant 0 : index
    %245 = vector.load %arg12[%c0_228, %c1_229, %c1_230, %c0_231] : memref<2x10x10x128xf32, #tpu.memory_space<vmem>>, vector<2x8x8x128xf32>
    tpu.vector_store %arg12[%c0_228, %c1_229, %c1_230, %c0_231], %244 {strides = array<i32>} : memref<2x10x10x128xf32, #tpu.memory_space<vmem>>, vector<2x8x8x128xf32>,
    %c1_232 = arith.constant 1 : index
    %c0_233 = arith.constant 0 : index
    %c0_234 = arith.constant 0 : index
    %246 = vector.load %arg6[%c1_232, %c0_233, %c0_234] : memref<2x1152x128xbf16, #tpu.memory_space<vmem>>, vector<1x1152x128xbf16>
    %247 = vector.shape_cast %246 : vector<1x1152x128xbf16> to vector<1152x128xbf16>
    %c0_235 = arith.constant 0 : index
    %c0_236 = arith.constant 0 : index
    %c0_237 = arith.constant 0 : index
    %c0_238 = arith.constant 0 : index
    %248 = vector.load %arg12[%c0_235, %c0_236, %c0_237, %c0_238] : memref<2x10x10x128xf32, #tpu.memory_space<vmem>>, vector<2x8x8x128xf32>
    %249 = vector.shape_cast %248 : vector<2x8x8x128xf32> to vector<128x128xf32>
    %250 = arith.truncf %249 : vector<128x128xf32> to vector<128x128xbf16>
    %c0_239 = arith.constant 0 : index
    %c0_240 = arith.constant 0 : index
    %c1_241 = arith.constant 1 : index
    %c0_242 = arith.constant 0 : index
    %251 = vector.load %arg12[%c0_239, %c0_240, %c1_241, %c0_242] : memref<2x10x10x128xf32, #tpu.memory_space<vmem>>, vector<2x8x8x128xf32>
    %252 = vector.shape_cast %251 : vector<2x8x8x128xf32> to vector<128x128xf32>
    %253 = arith.truncf %252 : vector<128x128xf32> to vector<128x128xbf16>
    %c0_243 = arith.constant 0 : index
    %c0_244 = arith.constant 0 : index
    %c2_245 = arith.constant 2 : index
    %c0_246 = arith.constant 0 : index
    %254 = vector.load %arg12[%c0_243, %c0_244, %c2_245, %c0_246] : memref<2x10x10x128xf32, #tpu.memory_space<vmem>>, vector<2x8x8x128xf32>
    %255 = vector.shape_cast %254 : vector<2x8x8x128xf32> to vector<128x128xf32>
    %256 = arith.truncf %255 : vector<128x128xf32> to vector<128x128xbf16>
    %c0_247 = arith.constant 0 : index
    %c1_248 = arith.constant 1 : index
    %c0_249 = arith.constant 0 : index
    %c0_250 = arith.constant 0 : index
    %257 = vector.load %arg12[%c0_247, %c1_248, %c0_249, %c0_250] : memref<2x10x10x128xf32, #tpu.memory_space<vmem>>, vector<2x8x8x128xf32>
    %258 = vector.shape_cast %257 : vector<2x8x8x128xf32> to vector<128x128xf32>
    %259 = arith.truncf %258 : vector<128x128xf32> to vector<128x128xbf16>
    %c0_251 = arith.constant 0 : index
    %c1_252 = arith.constant 1 : index
    %c1_253 = arith.constant 1 : index
    %c0_254 = arith.constant 0 : index
    %260 = vector.load %arg12[%c0_251, %c1_252, %c1_253, %c0_254] : memref<2x10x10x128xf32, #tpu.memory_space<vmem>>, vector<2x8x8x128xf32>
    %261 = vector.shape_cast %260 : vector<2x8x8x128xf32> to vector<128x128xf32>
    %262 = arith.truncf %261 : vector<128x128xf32> to vector<128x128xbf16>
    %c0_255 = arith.constant 0 : index
    %c1_256 = arith.constant 1 : index
    %c2_257 = arith.constant 2 : index
    %c0_258 = arith.constant 0 : index
    %263 = vector.load %arg12[%c0_255, %c1_256, %c2_257, %c0_258] : memref<2x10x10x128xf32, #tpu.memory_space<vmem>>, vector<2x8x8x128xf32>
    %264 = vector.shape_cast %263 : vector<2x8x8x128xf32> to vector<128x128xf32>
    %265 = arith.truncf %264 : vector<128x128xf32> to vector<128x128xbf16>
    %c0_259 = arith.constant 0 : index
    %c2_260 = arith.constant 2 : index
    %c0_261 = arith.constant 0 : index
    %c0_262 = arith.constant 0 : index
    %266 = vector.load %arg12[%c0_259, %c2_260, %c0_261, %c0_262] : memref<2x10x10x128xf32, #tpu.memory_space<vmem>>, vector<2x8x8x128xf32>
    %267 = vector.shape_cast %266 : vector<2x8x8x128xf32> to vector<128x128xf32>
    %268 = arith.truncf %267 : vector<128x128xf32> to vector<128x128xbf16>
    %c0_263 = arith.constant 0 : index
    %c2_264 = arith.constant 2 : index
    %c1_265 = arith.constant 1 : index
    %c0_266 = arith.constant 0 : index
    %269 = vector.load %arg12[%c0_263, %c2_264, %c1_265, %c0_266] : memref<2x10x10x128xf32, #tpu.memory_space<vmem>>, vector<2x8x8x128xf32>
    %270 = vector.shape_cast %269 : vector<2x8x8x128xf32> to vector<128x128xf32>
    %271 = arith.truncf %270 : vector<128x128xf32> to vector<128x128xbf16>
    %c0_267 = arith.constant 0 : index
    %c2_268 = arith.constant 2 : index
    %c2_269 = arith.constant 2 : index
    %c0_270 = arith.constant 0 : index
    %272 = vector.load %arg12[%c0_267, %c2_268, %c2_269, %c0_270] : memref<2x10x10x128xf32, #tpu.memory_space<vmem>>, vector<2x8x8x128xf32>
    %273 = vector.shape_cast %272 : vector<2x8x8x128xf32> to vector<128x128xf32>
    %274 = arith.truncf %273 : vector<128x128xf32> to vector<128x128xbf16>
    %275 = tpu.concatenate %250, %253, %256, %259, %262, %265, %268, %271, %274 in 1 : vector<128x128xbf16>, vector<128x128xbf16>, vector<128x128xbf16>, vector<128x128xbf16>, vector<128x128xbf16>, vector<128x128xbf16>, vector<128x128xbf16>, vector<128x128xbf16>, vector<128x128xbf16> -> vector<128x1152xbf16>
    %cst_271 = arith.constant dense<0.000000e+00> : vector<128x128xf32>
    %276 = tpu.matmul %275, %247, %cst_271 {dimension_numbers = #tpu.dot_dimension_numbers<[1], [0], [0], [1], [0, 0, 1, 1], [], []>} : vector<128x1152xbf16>, vector<1152x128xbf16>, vector<128x128xf32> -> vector<128x128xf32>
    %c1_272 = arith.constant 1 : index
    %c0_273 = arith.constant 0 : index
    %c0_274 = arith.constant 0 : index
    %277 = vector.load %arg7[%c1_272, %c0_273, %c0_274] : memref<2x1x128xf32, #tpu.memory_space<vmem>>, vector<1x1x128xf32>
    %278 = vector.shape_cast %277 : vector<1x1x128xf32> to vector<1x128xf32>
    %c1_275 = arith.constant 1 : index
    %c0_276 = arith.constant 0 : index
    %c0_277 = arith.constant 0 : index
    %279 = vector.load %arg8[%c1_275, %c0_276, %c0_277] : memref<2x1x128xf32, #tpu.memory_space<vmem>>, vector<1x1x128xf32>
    %280 = vector.shape_cast %279 : vector<1x1x128xf32> to vector<1x128xf32>
    %cst_278 = arith.constant dense<0.000000e+00> : vector<128xf32>
    %281 = vector.multi_reduction <add>, %276, %cst_278 [0] : vector<128x128xf32> to vector<128xf32>
    %282 = vector.shape_cast %281 : vector<128xf32> to vector<1x128xf32>
    %283 = arith.mulf %276, %276 : vector<128x128xf32>
    %cst_279 = arith.constant dense<0.000000e+00> : vector<128xf32>
    %284 = vector.multi_reduction <add>, %283, %cst_279 [0] : vector<128x128xf32> to vector<128xf32>
    %285 = vector.shape_cast %284 : vector<128xf32> to vector<1x128xf32>
    %cst_280 = arith.constant 7.812500e-03 : f32
    %286 = vector.broadcast %cst_280 : f32 to vector<1x128xf32>
    %287 = arith.mulf %282, %286 : vector<1x128xf32>
    %cst_281 = arith.constant 7.812500e-03 : f32
    %288 = vector.broadcast %cst_281 : f32 to vector<1x128xf32>
    %289 = arith.mulf %285, %288 : vector<1x128xf32>
    %290 = arith.mulf %287, %287 : vector<1x128xf32>
    %291 = arith.subf %289, %290 : vector<1x128xf32>
    %292 = vector.broadcast %287 : vector<1x128xf32> to vector<128x128xf32>
    %293 = arith.subf %276, %292 : vector<128x128xf32>
    %cst_282 = arith.constant 9.99999974E-6 : f32
    %294 = vector.broadcast %cst_282 : f32 to vector<1x128xf32>
    %295 = arith.addf %291, %294 : vector<1x128xf32>
    %296 = math.rsqrt %295 : vector<1x128xf32>
    %297 = arith.mulf %296, %278 : vector<1x128xf32>
    %298 = vector.broadcast %297 : vector<1x128xf32> to vector<128x128xf32>
    %299 = arith.mulf %293, %298 : vector<128x128xf32>
    %300 = vector.broadcast %280 : vector<1x128xf32> to vector<128x128xf32>
    %301 = arith.addf %299, %300 : vector<128x128xf32>
    %302 = arith.addf %301, %175 : vector<128x128xf32>
    %cst_283 = arith.constant 0.000000e+00 : f32
    %303 = vector.broadcast %cst_283 : f32 to vector<128x128xf32>
    %304 = arith.cmpf ogt, %302, %303 : vector<128x128xf32>
    %305 = math.exp %302 : vector<128x128xf32>
    %cst_284 = arith.constant 1.000000e+00 : f32
    %306 = vector.broadcast %cst_284 : f32 to vector<128x128xf32>
    %307 = arith.subf %305, %306 : vector<128x128xf32>
    %cst_285 = arith.constant 1.67326319 : f32
    %308 = vector.broadcast %cst_285 : f32 to vector<128x128xf32>
    %309 = arith.mulf %308, %307 : vector<128x128xf32>
    %310 = arith.select %304, %302, %309 : vector<128x128xi1>, vector<128x128xf32>
    %cst_286 = arith.constant 1.05070102 : f32
    %311 = vector.broadcast %cst_286 : f32 to vector<128x128xf32>
    %312 = arith.mulf %311, %310 : vector<128x128xf32>
    %313 = vector.shape_cast %312 : vector<128x128xf32> to vector<2x8x8x128xf32>
    %c0_287 = arith.constant 0 : index
    %c1_288 = arith.constant 1 : index
    %c1_289 = arith.constant 1 : index
    %c0_290 = arith.constant 0 : index
    %314 = vector.load %arg12[%c0_287, %c1_288, %c1_289, %c0_290] : memref<2x10x10x128xf32, #tpu.memory_space<vmem>>, vector<2x8x8x128xf32>
    tpu.vector_store %arg12[%c0_287, %c1_288, %c1_289, %c0_290], %313 {strides = array<i32>} : memref<2x10x10x128xf32, #tpu.memory_space<vmem>>, vector<2x8x8x128xf32>,
    %c0_291 = arith.constant 0 : index
    %c0_292 = arith.constant 0 : index
    %315 = vector.load %arg9[%c0_291, %c0_292] : memref<1152x128xbf16, #tpu.memory_space<vmem>>, vector<1152x128xbf16>
    %c0_293 = arith.constant 0 : index
    %c0_294 = arith.constant 0 : index
    %c0_295 = arith.constant 0 : index
    %c0_296 = arith.constant 0 : index
    %316 = vector.load %arg12[%c0_293, %c0_294, %c0_295, %c0_296] : memref<2x10x10x128xf32, #tpu.memory_space<vmem>>, vector<2x8x8x128xf32>
    %317 = vector.shape_cast %316 : vector<2x8x8x128xf32> to vector<128x128xf32>
    %318 = arith.truncf %317 : vector<128x128xf32> to vector<128x128xbf16>
    %c0_297 = arith.constant 0 : index
    %c0_298 = arith.constant 0 : index
    %c1_299 = arith.constant 1 : index
    %c0_300 = arith.constant 0 : index
    %319 = vector.load %arg12[%c0_297, %c0_298, %c1_299, %c0_300] : memref<2x10x10x128xf32, #tpu.memory_space<vmem>>, vector<2x8x8x128xf32>
    %320 = vector.shape_cast %319 : vector<2x8x8x128xf32> to vector<128x128xf32>
    %321 = arith.truncf %320 : vector<128x128xf32> to vector<128x128xbf16>
    %c0_301 = arith.constant 0 : index
    %c0_302 = arith.constant 0 : index
    %c2_303 = arith.constant 2 : index
    %c0_304 = arith.constant 0 : index
    %322 = vector.load %arg12[%c0_301, %c0_302, %c2_303, %c0_304] : memref<2x10x10x128xf32, #tpu.memory_space<vmem>>, vector<2x8x8x128xf32>
    %323 = vector.shape_cast %322 : vector<2x8x8x128xf32> to vector<128x128xf32>
    %324 = arith.truncf %323 : vector<128x128xf32> to vector<128x128xbf16>
    %c0_305 = arith.constant 0 : index
    %c1_306 = arith.constant 1 : index
    %c0_307 = arith.constant 0 : index
    %c0_308 = arith.constant 0 : index
    %325 = vector.load %arg12[%c0_305, %c1_306, %c0_307, %c0_308] : memref<2x10x10x128xf32, #tpu.memory_space<vmem>>, vector<2x8x8x128xf32>
    %326 = vector.shape_cast %325 : vector<2x8x8x128xf32> to vector<128x128xf32>
    %327 = arith.truncf %326 : vector<128x128xf32> to vector<128x128xbf16>
    %c0_309 = arith.constant 0 : index
    %c1_310 = arith.constant 1 : index
    %c1_311 = arith.constant 1 : index
    %c0_312 = arith.constant 0 : index
    %328 = vector.load %arg12[%c0_309, %c1_310, %c1_311, %c0_312] : memref<2x10x10x128xf32, #tpu.memory_space<vmem>>, vector<2x8x8x128xf32>
    %329 = vector.shape_cast %328 : vector<2x8x8x128xf32> to vector<128x128xf32>
    %330 = arith.truncf %329 : vector<128x128xf32> to vector<128x128xbf16>
    %c0_313 = arith.constant 0 : index
    %c1_314 = arith.constant 1 : index
    %c2_315 = arith.constant 2 : index
    %c0_316 = arith.constant 0 : index
    %331 = vector.load %arg12[%c0_313, %c1_314, %c2_315, %c0_316] : memref<2x10x10x128xf32, #tpu.memory_space<vmem>>, vector<2x8x8x128xf32>
    %332 = vector.shape_cast %331 : vector<2x8x8x128xf32> to vector<128x128xf32>
    %333 = arith.truncf %332 : vector<128x128xf32> to vector<128x128xbf16>
    %c0_317 = arith.constant 0 : index
    %c2_318 = arith.constant 2 : index
    %c0_319 = arith.constant 0 : index
    %c0_320 = arith.constant 0 : index
    %334 = vector.load %arg12[%c0_317, %c2_318, %c0_319, %c0_320] : memref<2x10x10x128xf32, #tpu.memory_space<vmem>>, vector<2x8x8x128xf32>
    %335 = vector.shape_cast %334 : vector<2x8x8x128xf32> to vector<128x128xf32>
    %336 = arith.truncf %335 : vector<128x128xf32> to vector<128x128xbf16>
    %c0_321 = arith.constant 0 : index
    %c2_322 = arith.constant 2 : index
    %c1_323 = arith.constant 1 : index
    %c0_324 = arith.constant 0 : index
    %337 = vector.load %arg12[%c0_321, %c2_322, %c1_323, %c0_324] : memref<2x10x10x128xf32, #tpu.memory_space<vmem>>, vector<2x8x8x128xf32>
    %338 = vector.shape_cast %337 : vector<2x8x8x128xf32> to vector<128x128xf32>
    %339 = arith.truncf %338 : vector<128x128xf32> to vector<128x128xbf16>
    %c0_325 = arith.constant 0 : index
    %c2_326 = arith.constant 2 : index
    %c2_327 = arith.constant 2 : index
    %c0_328 = arith.constant 0 : index
    %340 = vector.load %arg12[%c0_325, %c2_326, %c2_327, %c0_328] : memref<2x10x10x128xf32, #tpu.memory_space<vmem>>, vector<2x8x8x128xf32>
    %341 = vector.shape_cast %340 : vector<2x8x8x128xf32> to vector<128x128xf32>
    %342 = arith.truncf %341 : vector<128x128xf32> to vector<128x128xbf16>
    %343 = tpu.concatenate %318, %321, %324, %327, %330, %333, %336, %339, %342 in 1 : vector<128x128xbf16>, vector<128x128xbf16>, vector<128x128xbf16>, vector<128x128xbf16>, vector<128x128xbf16>, vector<128x128xbf16>, vector<128x128xbf16>, vector<128x128xbf16>, vector<128x128xbf16> -> vector<128x1152xbf16>
    %cst_329 = arith.constant dense<0.000000e+00> : vector<128x128xf32>
    %344 = tpu.matmul %343, %315, %cst_329 {dimension_numbers = #tpu.dot_dimension_numbers<[1], [0], [0], [1], [0, 0, 1, 1], [], []>} : vector<128x1152xbf16>, vector<1152x128xbf16>, vector<128x128xf32> -> vector<128x128xf32>
    %c0_330 = arith.constant 0 : index
    %c0_331 = arith.constant 0 : index
    %345 = vector.load %arg10[%c0_330, %c0_331] : memref<1x128xf32, #tpu.memory_space<vmem>>, vector<1x128xf32>
    %346 = vector.broadcast %345 : vector<1x128xf32> to vector<128x128xf32>
    %347 = arith.addf %344, %346 : vector<128x128xf32>
    %c0_332 = arith.constant 0 : index
    %c0_333 = arith.constant 0 : index
    %348 = vector.load %arg11[%c0_332, %c0_333] : memref<128x128xf32, #tpu.memory_space<vmem>>, vector<128x128xf32>
    tpu.vector_store %arg11[%c0_332, %c0_333], %347 {strides = array<i32>} : memref<128x128xf32, #tpu.memory_space<vmem>>, vector<128x128xf32>,
    return
  }
}

</mosaic_0001>

<bundles_post_ra>
// kernel: chessnet_forward.1
= control target key start
LH: loop header
LB: loop body
LE: loop exit
PB: predicated region body
PF: predicated region fallthrough
CT: control target
= control target key end

     0   :  { %v12084_v1 = vmov 0.0   ;;  %s16461_s1 = inlined_call_operand.vmem [shape: bf16[1152,128], index: 1, kind: input, shape index: {}]   ;;  %s16462_s0 = inlined_call_operand.vmem [shape: f32[2,8,8,128], index: 0, kind: input, shape index: {}]   ;;  %s16463_s3 = inlined_call_operand.vmem [shape: bf16[2,1152,128], index: 3, kind: input, shape index: {}]   ;;  %s16464_s2 = inlined_call_operand.vmem [shape: f32[1,128], index: 2, kind: input, shape index: {}]   ;;  %s16465_s6 = inlined_call_operand.vmem [shape: bf16[2,1152,128], index: 6, kind: input, shape index: {}]   ;;  %s16466_s4 = inlined_call_operand.vmem [shape: f32[2,1,128], index: 4, kind: input, shape index: {}]   ;;  %s16467_s5 = inlined_call_operand.vmem [shape: f32[2,1,128], index: 5, kind: input, shape index: {}]   ;;  %s16468_s7 = inlined_call_operand.vmem [shape: f32[2,1,128], index: 7, kind: input, shape index: {}]   ;;  %s16469_s8 = inlined_call_operand.vmem [shape: f32[2,1,128], index: 8, kind: input, shape index: {}]   ;;  %s16470_s9 = inlined_call_operand.vmem [shape: bf16[1152,128], index: 9, kind: input, shape index: {}]   ;;  %s16471_s10 = inlined_call_operand.vmem [shape: f32[1,128], index: 10, kind: input, shape index: {}]   ;;  %s16472_s11 = inlined_call_operand.vmem [shape: f32[128,128], index: 11, kind: output, shape index: {}]  }
   0x1   :  { %v11510_v0 = vld [vmem:[%s16461_s1 + $0x40] sm:$0xff]   ;;  %39 = vst [vmem:[#allocation2] sm:$0xff] %v12084_v1  ;;  %40 = vst [vmem:[#allocation2 + $0x8] sm:$0x3] %v12084_v1  ;;  %v11514_v5 = vld [vmem:[%s16461_s1 + $0x48] sm:$0xff]  }
   0x2   :  { %41 = vst [vmem:[#allocation2 + $0x10] sm:$0xff] %v12084_v1  ;;  %42 = vst [vmem:[#allocation2 + $0x18] sm:$0x3] %v12084_v1  ;;  %v11511_v2 = vld [vmem:[%s16461_s1] sm:$0xff]   ;;  %9685 = vmatprep.subr.bf16.mxu0 %v11510_v0  ;;  %v11515_v6 = vld [vmem:[%s16461_s1 + $0x8] sm:$0xff]  }
   0x3   :  { %43 = vst [vmem:[#allocation2 + $0x20] sm:$0xff] %v12084_v1  ;;  %44 = vst [vmem:[#allocation2 + $0x28] sm:$0x3] %v12084_v1  ;;  %v11512_v3 = vld [vmem:[%s16461_s1 + $0xc0] sm:$0xff]   ;;  %9686 = vmatpush3.bf16.msra.mxu0 %v11511_v2  ;;  %v11516_v7 = vld [vmem:[%s16461_s1 + $0xc8] sm:$0xff]  }
   0x4   :  { %45 = vst [vmem:[#allocation2 + $0x30] sm:$0xff] %v12084_v1  ;;  %46 = vst [vmem:[#allocation2 + $0x38] sm:$0x3] %v12084_v1  ;;  %v11513_v4 = vld [vmem:[%s16461_s1 + $0x80] sm:$0xff]   ;;  %9749 = vmatprep.subr.bf16.mxu1 %v11512_v3  ;;  %9687 = vmatprep.subr.bf16.mxu0 %v11514_v5  ;;  %v11517_v8 = vld [vmem:[%s16461_s1 + $0x88] sm:$0xff]  }
   0x5   :  { %47 = vst [vmem:[#allocation2 + $0x40] sm:$0xff] %v12084_v1  ;;  %48 = vst [vmem:[#allocation2 + $0x48] sm:$0x3] %v12084_v1  ;;  %9750 = vmatpush3.bf16.msra.mxu1 %v11513_v4  ;;  %v11518_v9 = vld [vmem:[%s16461_s1 + $0x50] sm:$0xff]   ;;  %v11522_v13 = vld [vmem:[%s16461_s1 + $0x58] sm:$0xff]  }
   0x6   :  { %49 = vst [vmem:[#allocation2 + $0x50] sm:$0xff] %v12084_v1  ;;  %50 = vst [vmem:[#allocation2 + $0x58] sm:$0x3] %v12084_v1  ;;  %9751 = vmatprep.subr.bf16.mxu1 %v11516_v7  ;;  %v11519_v10 = vld [vmem:[%s16461_s1 + $0x10] sm:$0xff]   ;;  %v11523_v14 = vld [vmem:[%s16461_s1 + $0x18] sm:$0xff]  }
   0x7   :  { %51 = vst [vmem:[#allocation2 + $0x60] sm:$0xff] %v12084_v1  ;;  %52 = vst [vmem:[#allocation2 + $0x68] sm:$0x3] %v12084_v1  ;;  %9688 = vmatpush3.bf16.msra.mxu0 %v11515_v6  ;;  %v11520_v11 = vld [vmem:[%s16461_s1 + $0xd0] sm:$0xff]   ;;  %v11524_v15 = vld [vmem:[%s16461_s1 + $0xd8] sm:$0xff]  }
   0x8   :  { %53 = vst [vmem:[#allocation2 + $0x70] sm:$0xff] %v12084_v1  ;;  %54 = vst [vmem:[#allocation2 + $0x78] sm:$0x3] %v12084_v1  ;;  %9689 = vmatprep.subr.bf16.mxu0 %v11518_v9  ;;  %v11521_v12 = vld [vmem:[%s16461_s1 + $0x90] sm:$0xff]   ;;  %v11525_v16 = vld [vmem:[%s16461_s1 + $0x98] sm:$0xff]  }
   0x9   :  { %55 = vst [vmem:[#allocation2 + $0x80] sm:$0xff] %v12084_v1  ;;  %56 = vst [vmem:[#allocation2 + $0x88] sm:$0x3] %v12084_v1  ;;  %9752 = vmatpush3.bf16.msra.mxu1 %v11517_v8  ;;  %v11526_v17 = vld [vmem:[%s16461_s1 + $0x60] sm:$0xff]   ;;  %v11530_v21 = vld [vmem:[%s16461_s1 + $0x68] sm:$0xff]  }
   0xa   :  { %57 = vst [vmem:[#allocation2 + $0x90] sm:$0xff] %v12084_v1  ;;  %58 = vst [vmem:[#allocation2 + $0x98] sm:$0x3] %v12084_v1  ;;  %9753 = vmatprep.subr.bf16.mxu1 %v11520_v11  ;;  %v11527_v18 = vld [vmem:[%s16461_s1 + $0x20] sm:$0xff]   ;;  %v11531_v22 = vld [vmem:[%s16461_s1 + $0x28] sm:$0xff]  }
   0xb   :  { %59 = vst [vmem:[#allocation2 + $0xa0] sm:$0xff] %v12084_v1  ;;  %60 = vst [vmem:[#allocation2 + $0xa8] sm:$0x3] %v12084_v1  ;;  %9690 = vmatpush3.bf16.msra.mxu0 %v11519_v10  ;;  %v11528_v19 = vld [vmem:[%s16461_s1 + $0xe0] sm:$0xff]   ;;  %v11532_v23 = vld [vmem:[%s16461_s1 + $0xe8] sm:$0xff]  }
   0xc   :  { %61 = vst [vmem:[#allocation2 + $0xb0] sm:$0xff] %v12084_v1  ;;  %62 = vst [vmem:[#allocation2 + $0xb8] sm:$0x3] %v12084_v1  ;;  %9691 = vmatprep.subr.bf16.mxu0 %v11522_v13  ;;  %v11529_v20 = vld [vmem:[%s16461_s1 + $0xa0] sm:$0xff]   ;;  %v11533_v24 = vld [vmem:[%s16461_s1 + $0xa8] sm:$0xff]  }
   0xd   :  { %63 = vst [vmem:[#allocation2 + $0xc0] sm:$0xff] %v12084_v1  ;;  %64 = vst [vmem:[#allocation2 + $0xc8] sm:$0x3] %v12084_v1  ;;  %9754 = vmatpush3.bf16.msra.mxu1 %v11521_v12  ;;  %v11534_v25 = vld [vmem:[%s16461_s1 + $0x70] sm:$0xff]   ;;  %v11538_v29 = vld [vmem:[%s16461_s1 + $0x78] sm:$0xff]  }
   0xe   :  { %65 = vst [vmem:[#allocation2 + $0xd0] sm:$0xff] %v12084_v1  ;;  %66 = vst [vmem:[#allocation2 + $0xd8] sm:$0x3] %v12084_v1  ;;  %9755 = vmatprep.subr.bf16.mxu1 %v11524_v15  ;;  %v11535_v26 = vld [vmem:[%s16461_s1 + $0x30] sm:$0xff]   ;;  %v11539_v30 = vld [vmem:[%s16461_s1 + $0x38] sm:$0xff]  }
   0xf   :  { %67 = vst [vmem:[#allocation2 + $0xe0] sm:$0xff] %v12084_v1  ;;  %68 = vst [vmem:[#allocation2 + $0xe8] sm:$0x3] %v12084_v1  ;;  %9692 = vmatpush3.bf16.msra.mxu0 %v11523_v14  ;;  %v11536_v27 = vld [vmem:[%s16461_s1 + $0xf0] sm:$0xff]   ;;  %v11540_v31 = vld [vmem:[%s16461_s1 + $0xf8] sm:$0xff]  }
  0x10   :  { %69 = vst [vmem:[#allocation2 + $0xf0] sm:$0xff] %v12084_v1  ;;  %70 = vst [vmem:[#allocation2 + $0xf8] sm:$0x3] %v12084_v1  ;;  %9693 = vmatprep.subr.bf16.mxu0 %v11526_v17  ;;  %v11537_v28 = vld [vmem:[%s16461_s1 + $0xb0] sm:$0xff]   ;;  %v12281_v32 = vld [vmem:[%s16462_s0] sm:$0xff] }
  0x11   :  { %71 = vst [vmem:[#allocation2 + $0x100] sm:$0xff] %v12084_v1  ;;  %72 = vst [vmem:[#allocation2 + $0x108] sm:$0x3] %v12084_v1  ;;  %9756 = vmatpush3.bf16.msra.mxu1 %v11525_v16  ;;  %v280_v33 = vld [vmem:[#allocation2 + $0x1] sm:$0xff]  ;;  %v11541_v35 = vld [vmem:[%s16461_s1 + $0xb8] sm:$0xff]  }
  0x12   :  { %73 = vst [vmem:[#allocation2 + $0x110] sm:$0xff] %v12084_v1  ;;  %74 = vst [vmem:[#allocation2 + $0x118] sm:$0x3] %v12084_v1  ;;  %9757 = vmatprep.subr.bf16.mxu1 %v11528_v19  ;;  %v296_v34 = vpack.c.bf16 %v12281_v32, %v280_v33  ;;  %v11542_v36 = vld [vmem:[%s16461_s1 + $0x140] sm:$0xff]   ;;  %v12294_v37 = vld [vmem:[%s16462_s0 + $0x8] sm:$0xff] }
  0x13   :  { %75 = vst [vmem:[#allocation2 + $0x120] sm:$0xff] %v12084_v1  ;;  %76 = vst [vmem:[#allocation2 + $0x128] sm:$0x3] %v12084_v1  ;;  %9694 = vmatpush3.bf16.msra.mxu0 %v11527_v18  ;;  %v368_v38 = vpack.c.bf16 %v12294_v37, %v12281_v32  ;;  %v12302_v39 = vld [vmem:[%s16462_s0 + $0x10] sm:$0xff]  ;;  %v12308_v40 = vld [vmem:[%s16462_s0 + $0x18] sm:$0xff] }
  0x14   :  { %77 = vst [vmem:[#allocation2 + $0x130] sm:$0xff] %v12084_v1  ;;  %78 = vst [vmem:[#allocation2 + $0x138] sm:$0x3] %v12084_v1  ;;  %9695 = vmatprep.subr.bf16.mxu0 %v11530_v21  ;;  %944 = vmatprep.mubr.bf16.mxu0 %v296_v34  ;;  %v11543_v41 = vld [vmem:[%s16461_s1 + $0x100] sm:$0xff]   ;;  %v369_v43 = vpack.c.bf16 %v12308_v40, %v12302_v39  ;;  %v12325_v47 = vpack.c.bf16 %v12302_v39, %v12294_v37  ;;  %v11544_v48 = vld [vmem:[%s16461_s1 + $0x148] sm:$0xff]  }
  0x15   :  { %9758 = vmatpush3.bf16.msra.mxu1 %v11529_v20  ;;  %96 = vst [vmem:[#allocation2 + $0x11] sm:$0xff] %v12281_v32  ;;  %97 = vst [vmem:[#allocation2 + $0x21] sm:$0xff] %v12294_v37  ;;  %v304_v42 = vld [vmem:[#allocation2 + $0x2] sm:$0xff]  ;;  %v12344_v55 = vld [vmem:[%s16462_s0 + $0x30] sm:$0xff] }
  0x16   :  { %9759 = vmatprep.subr.bf16.mxu1 %v11532_v23  ;;  %98 = vst [vmem:[#allocation2 + $0x31] sm:$0xff] %v12302_v39  ;;  %99 = vst [vmem:[#allocation2 + $0x41] sm:$0xff] %v12308_v40  ;;  %v12319_v44 = vld [vmem:[%s16462_s0 + $0x20] sm:$0xff]  ;;  %v12335_v50 = vld [vmem:[%s16462_s0 + $0x28] sm:$0xff] }
  0x17   :  { %9696 = vmatpush3.bf16.msra.mxu0 %v11531_v22  ;;  %100 = vst [vmem:[#allocation2 + $0x51] sm:$0xff] %v12319_v44  ;;  %101 = vst [vmem:[#allocation2 + $0x61] sm:$0xff] %v12335_v50  ;;  %v370_v53 = vpack.c.bf16 %v12335_v50, %v12319_v44  ;;  %v11545_v57 = vld [vmem:[%s16461_s1 + $0x108] sm:$0xff]   ;;  %v11546_v59 = vld [vmem:[%s16461_s1 + $0x150] sm:$0xff]   ;;  %v12378_v5 = vpack.c.bf16 %v12319_v44, %v12308_v40  ;;  %v12424_v23 = vpack.c.bf16 %v12344_v55, %v12335_v50 }
  0x18   :  { %9697 = vmatprep.subr.bf16.mxu0 %v11534_v25  ;;  %102 = vst [vmem:[#allocation2 + $0x71] sm:$0xff] %v12344_v55  ;;  %v12357_v60 = vld [vmem:[%s16462_s0 + $0x38] sm:$0xff]  ;;  %v11547_v3 = vld [vmem:[%s16461_s1 + $0x110] sm:$0xff]   ;;  %v12374_v4 = vld [vmem:[%s16462_s0 + $0x40] sm:$0xff] }
  0x19   :  { %9760 = vmatpush3.bf16.msra.mxu1 %v11533_v24  ;;  %103 = vst [vmem:[#allocation2 + $0x81] sm:$0xff] %v12357_v60  ;;  %v371_v63 = vpack.c.bf16 %v12357_v60, %v12344_v55  ;;  %104 = vst [vmem:[#allocation2 + $0xb1] sm:$0xff] %v12374_v4  ;;  %v11548_v8 = vld [vmem:[%s16461_s1 + $0x158] sm:$0xff]   ;;  %v12391_v10 = vld [vmem:[%s16462_s0 + $0x48] sm:$0xff] }
  0x1a   :  { %9761 = vmatprep.subr.bf16.mxu1 %v11536_v27  ;;  %105 = vst [vmem:[#allocation2 + $0xc1] sm:$0xff] %v12391_v10  ;;  %v372_v12 = vpack.c.bf16 %v12391_v10, %v12374_v4  ;;  %v11549_v13 = vld [vmem:[%s16461_s1 + $0x118] sm:$0xff]   ;;  %v11550_v16 = vld [vmem:[%s16461_s1 + $0x160] sm:$0xff]   ;;  %v11554_v24 = vld [vmem:[%s16461_s1 + $0x1c8] sm:$0xff]  }
  0x1b   :  { %9698 = vmatpush3.bf16.msra.mxu0 %v11535_v26  ;;  %v11552_v17 = vld [vmem:[%s16461_s1 + $0x1c0] sm:$0xff]   ;;  %v12432_v25 = vld [vmem:[%s16462_s0 + $0x50] sm:$0xff]  ;;  %v11555_v26 = vld [vmem:[%s16461_s1 + $0x188] sm:$0xff]  }
  0x1c   :  { %9699 = vmatprep.subr.bf16.mxu0 %v11538_v29  ;;  %v257_v45 = vld [vmem:[#allocation2 + $0x10] sm:$0xff]  ;;  %v329_v51 = vld [vmem:[#allocation2 + $0x20] sm:$0xff]  ;;  %106 = vst [vmem:[#allocation2 + $0xd1] sm:$0xff] %v12432_v25  ;;  %v11557_v33 = vld [vmem:[%s16461_s1 + $0x128] sm:$0xff]  }
  0x1d   :  { %9762 = vmatpush3.bf16.msra.mxu1 %v11537_v28  ;;  %v12321_v46 = vld [vmem:[#allocation2 + $0x12] sm:$0xff]  ;;  %v272_v49 = vpack.c.bf16 %v257_v45, %v12084_v1  ;;  %v344_v54 = vpack.c.bf16 %v329_v51, %v257_v45  ;;  %v331_v58 = vld [vmem:[#allocation2 + $0x40] sm:$0xff]  ;;  %v11556_v28 = vld [vmem:[%s16461_s1 + $0x168] sm:$0xff]  }
  0x1e   :  { %9763 = vmatprep.subr.bf16.mxu1 %v11540_v31  ;;  %v320_v52 = vpack.c.bf16 %v12321_v46, %v304_v42  ;;  %v259_v56 = vld [vmem:[#allocation2 + $0x30] sm:$0xff]  ;;  %v12359_v62 = vld [vmem:[#allocation2 + $0x22] sm:$0xff]  ;;  %v11577_v32 = vld [vmem:[%s16461_s1 + $0x218] sm:$0xff]  }
  0x1f   :  { %9700 = vmatpush3.bf16.msra.mxu0 %v11539_v30  ;;  %1041 = vmatprep.mubr.bf16.mxu1 %v344_v54  ;;  %v345_v61 = vpack.c.bf16 %v331_v58, %v259_v56  ;;  %v12364_v0 = vpack.c.bf16 %v259_v56, %v329_v51  ;;  %v12366_v2 = vld [vmem:[#allocation2 + $0x32] sm:$0xff]  ;;  %v333_v7 = vld [vmem:[#allocation2 + $0x60] sm:$0xff]  ;;  %v11579_v39 = vld [vmem:[%s16461_s1 + $0x228] sm:$0xff]  }
  0x20   :  { %9813 = vmatprep.subr.bf16.mxu0 %v11542_v36  ;;  %v261_v6 = vld [vmem:[#allocation2 + $0x50] sm:$0xff]  ;;  %v12386_v9 = vpack.c.bf16 %v12366_v2, %v12359_v62  ;;  %v12401_v14 = vld [vmem:[#allocation2 + $0x42] sm:$0xff]  ;;  %v12450_v30 = vld [vmem:[%s16462_s0 + $0x58] sm:$0xff] }
  0x21   :  { %9764 = vmatpush3.bf16.msra.mxu1 %v11541_v35  ;;  %v346_v11 = vpack.c.bf16 %v333_v7, %v261_v6  ;;  %v12403_v15 = vld [vmem:[#allocation2 + $0x52] sm:$0xff]  ;;  %v11553_v19 = vld [vmem:[%s16461_s1 + $0x180] sm:$0xff]   ;;  %v12415_v20 = vpack.c.bf16 %v261_v6, %v331_v58  ;;  %107 = vst [vmem:[#allocation2 + $0xe1] sm:$0xff] %v12450_v30  ;;  %v373_v34 = vpack.c.bf16 %v12450_v30, %v12432_v25 }
  0x22   :  { %945 = vmatmul.mubr.bf16.vlgmr.msra.gmra.mrb[0].mxu0 %v272_v49  ;;  %v263_v18 = vld [vmem:[#allocation2 + $0x70] sm:$0xff]  ;;  %v12417_v21 = vld [vmem:[#allocation2 + $0x80] sm:$0xff]  ;;  %9877 = vmatprep.subr.bf16.mxu1 %v11552_v17  ;;  %v12440_v27 = vpack.c.bf16 %v12403_v15, %v12401_v14  ;;  %v11561_v56 = vld [vmem:[%s16461_s1 + $0x198] sm:$0xff]  }
  0x23   :  { %9814 = vmatpush3.bf16.msra.mxu0 %v11543_v41  ;;  %952 = vmatprep.mubr.bf16.mxu0 %v12325_v47  ;;  %v11551_v22 = vld [vmem:[%s16461_s1 + $0x120] sm:$0xff]   ;;  %v347_v29 = vpack.c.bf16 %v12417_v21, %v263_v18  ;;  %v12461_v36 = vld [vmem:[#allocation2 + $0x72] sm:$0xff]  ;;  %v12470_v45 = vpack.c.bf16 %v263_v18, %v333_v7  ;;  %v420_v50 = vpack.c.bf16 %v12084_v1, %v12417_v21 }
  0x24   :  { %9815 = vmatprep.subr.bf16.mxu0 %v11544_v48  ;;  %1042 = vmatmul.mubr.bf16.vlgmr.msra.gmra.mrb[0].mxu1 %v320_v52  ;;  %v288_v31 = vld [vmem:[#allocation2 + $0xa1] sm:$0xff]  ;;  %v11558_v41 = vld [vmem:[%s16461_s1 + $0x1d0] sm:$0xff]   ;;  %v11560_v48 = vld [vmem:[%s16461_s1 + $0x1d8] sm:$0xff]  }
  0x25   :  { %1049 = vmatprep.mubr.bf16.mxu1 %v345_v61  ;;  %9878 = vmatpush3.bf16.msra.mxu1 %v11553_v19  ;;  %v12459_v35 = vld [vmem:[#allocation2 + $0x62] sm:$0xff]  ;;  %v11559_v42 = vld [vmem:[%s16461_s1 + $0x190] sm:$0xff]   ;;  %v300_v51 = vpack.c.bf16 %v12374_v4, %v288_v31  ;;  %v12516_v19 = vpack.c.bf16 %v12432_v25, %v12391_v10  ;;  %v11581_v44 = vld [vmem:[%s16461_s1 + $0x238] sm:$0xff]  }
  0x26   :  { %9879 = vmatprep.subr.bf16.mxu1 %v11554_v24  ;;  %v12478_v49 = vld [vmem:[%s16462_s0 + $0x60] sm:$0xff]  ;;  %v265_v52 = vld [vmem:[#allocation2 + $0xb0] sm:$0xff]  ;;  %v11585_v25 = vld [vmem:[%s16463_s3 + $0x8] sm:$0xff]  }
  0x27   :  { %9816 = vmatpush3.bf16.msra.mxu0 %v11545_v57  ;;  %v337_v54 = vld [vmem:[#allocation2 + $0xc0] sm:$0xff]  ;;  %108 = vst [vmem:[#allocation2 + $0xf1] sm:$0xff] %v12478_v49  ;;  %v12487_v57 = vpack.c.bf16 %v12461_v36, %v12459_v35  ;;  %v11562_v58 = vld [vmem:[%s16461_s1 + $0x170] sm:$0xff]  }
  0x28   :  { %9817 = vmatprep.subr.bf16.mxu0 %v11546_v59  ;;  %v12495_v59 = vld [vmem:[%s16462_s0 + $0x68] sm:$0xff]  ;;  %v348_v61 = vpack.c.bf16 %v337_v54, %v265_v52  ;;  %v11563_v6 = vld [vmem:[%s16461_s1 + $0x130] sm:$0xff]   ;;  %v339_v18 = vld [vmem:[#allocation2 + $0xe0] sm:$0xff] }
  0x29   :  { %9880 = vmatpush3.bf16.msra.mxu1 %v11555_v26  ;;  %109 = vst [vmem:[#allocation2 + $0x101] sm:$0xff] %v12495_v59  ;;  %v312_v7 = vld [vmem:[#allocation2 + $0xa2] sm:$0xff]  ;;  %v267_v17 = vld [vmem:[#allocation2 + $0xd0] sm:$0xff] }
  0x2a   :  { %953 = vmatmul.mubr.bf16.gmra.mrb[4].mxu0 %v12364_v0  ;;  %9881 = vmatprep.subr.bf16.mxu1 %v11558_v41  ;;  %v12524_v24 = vld [vmem:[%s16462_s0 + $0x70] sm:$0xff]  ;;  %v11567_v26 = vld [vmem:[%s16461_s1 + $0x1a8] sm:$0xff]   ;;  %v349_v31 = vpack.c.bf16 %v339_v18, %v267_v17  ;;  %v11569_v41 = vld [vmem:[%s16461_s1 + $0x138] sm:$0xff]  }
  0x2b   :  { %960 = vmatprep.mubr.bf16.mxu0 %v12378_v5  ;;  %9818 = vmatpush3.bf16.msra.mxu0 %v11547_v3  ;;  %v374_v3 = vpack.c.bf16 %v12495_v59, %v12478_v49  ;;  %110 = vst [vmem:[#allocation2 + $0x111] sm:$0xff] %v12524_v24  ;;  %v383_v37 = vld [vmem:[#allocation2 + $0x82] sm:$0xff] }
  0x2c   :  { %9819 = vmatprep.subr.bf16.mxu0 %v11548_v8  ;;  %1050 = vmatmul.mubr.bf16.gmra.mrb[4].mxu1 %v12386_v9  ;;  %v12504_v8 = vld [vmem:[#allocation2 + $0xb2] sm:$0xff]  ;;  %v11583_v21 = vld [vmem:[%s16463_s3] sm:$0xff]  }
  0x2d   :  { %1057 = vmatprep.mubr.bf16.mxu1 %v346_v11  ;;  %9882 = vmatpush3.bf16.msra.mxu1 %v11559_v42  ;;  %v11564_v11 = vld [vmem:[%s16461_s1 + $0x1e0] sm:$0xff]  }
  0x2e   :  { %9883 = vmatprep.subr.bf16.mxu1 %v11560_v48  ;;  %v12546_v48 = vld [vmem:[#allocation2 + $0xc2] sm:$0xff] }
  0x2f   :  { %9820 = vmatpush3.bf16.msra.mxu0 %v11549_v13  ;;  %v11565_v13 = vld [vmem:[%s16461_s1 + $0x1a0] sm:$0xff]  }
  0x30   :  { %9821 = vmatprep.subr.bf16.mxu0 %v11550_v16  ;;  %v276_v16 = vpack.c.bf16 %v265_v52, %v12084_v1  ;;  %v11570_v52 = vld [vmem:[%s16461_s1 + $0x1f0] sm:$0xff]  }
  0x31   :  { %9884 = vmatpush3.bf16.msra.mxu1 %v11561_v56  ;;  %v11571_v56 = vld [vmem:[%s16461_s1 + $0x1b0] sm:$0xff]  }
  0x32   :  { %961 = vmatmul.mubr.bf16.gmra.mrb[8].mxu0 %v12415_v20  ;;  %9885 = vmatprep.subr.bf16.mxu1 %v11564_v11  ;;  %v341_v11 = vld [vmem:[#allocation2 + $0x100] sm:$0xff] }
  0x33   :  { %968 = vmatprep.mubr.bf16.mxu0 %v12424_v23  ;;  %9822 = vmatpush3.bf16.msra.mxu0 %v11551_v22  ;;  %v11566_v22 = vld [vmem:[%s16461_s1 + $0x1e8] sm:$0xff]  }
  0x34   :  { %9823 = vmatprep.subr.bf16.mxu0 %v11556_v28  ;;  %1058 = vmatmul.mubr.bf16.gmra.mrb[8].mxu1 %v12440_v27  ;;  %v324_v28 = vpack.c.bf16 %v12504_v8, %v312_v7  ;;  %v269_v7 = vld [vmem:[#allocation2 + $0xf0] sm:$0xff] }
  0x35   :  { %1065 = vmatprep.mubr.bf16.mxu1 %v347_v29  ;;  %9886 = vmatpush3.bf16.msra.mxu1 %v11565_v13  ;;  %v11568_v29 = vld [vmem:[%s16461_s1 + $0x178] sm:$0xff]  }
  0x36   :  { %9887 = vmatprep.subr.bf16.mxu1 %v11566_v22  ;;  %v11573_v13 = vld [vmem:[%s16461_s1 + $0x1b8] sm:$0xff]   ;;  %v12577_v22 = vld [vmem:[#allocation2 + $0xe2] sm:$0xff] }
  0x37   :  { %9824 = vmatpush3.bf16.msra.mxu0 %v11557_v33  ;;  %v12537_v33 = vld [vmem:[%s16462_s0 + $0x78] sm:$0xff] }
  0x38   :  { %9825 = vmatprep.subr.bf16.mxu0 %v11562_v58  ;;  %111 = vst [vmem:[#allocation2 + $0x121] sm:$0xff] %v12537_v33  ;;  %v375_v42 = vpack.c.bf16 %v12537_v33, %v12524_v24  ;;  %v12556_v58 = vpack.c.bf16 %v267_v17, %v337_v54  ;;  %v350_v17 = vpack.c.bf16 %v341_v11, %v269_v7 }
  0x39   :  { %9888 = vmatpush3.bf16.msra.mxu1 %v11567_v26  ;;  %v12580_v26 = vld [vmem:[#allocation2 + $0xf2] sm:$0xff] }
  0x3a   :  { %969 = vmatmul.mubr.bf16.gmra.mrb[12].mxu0 %v12470_v45  ;;  %9889 = vmatprep.subr.bf16.mxu1 %v11570_v52  ;;  %v12592_v52 = vpack.c.bf16 %v12580_v26, %v12577_v22 }
  0x3b   :  { %976 = vmatprep.mubr.bf16.mxu0 %v300_v51  ;;  %9826 = vmatpush3.bf16.msra.mxu0 %v11563_v6  ;;  %v12548_v51 = vld [vmem:[#allocation2 + $0xd2] sm:$0xff]  ;;  %v12563_v6 = vpack.c.bf16 %v12478_v49, %v12450_v30  ;;  %v11590_v49 = vld [vmem:[%s16463_s3 + $0x60] sm:$0xff]  }
  0x3c   :  { %1066 = vmatmul.mubr.bf16.gmra.mrb[12].mxu1 %v12487_v57  ;;  %9827 = vmatprep.subr.bf16.mxu0 %v11568_v29  ;;  %v12570_v54 = vpack.c.bf16 %v12548_v51, %v12546_v48  ;;  %v271_v29 = vld [vmem:[#allocation2 + $0x110] sm:$0xff] }
  0x3d   :  { %1073 = vmatprep.mubr.bf16.mxu1 %v348_v61  ;;  %v11572_v61 = vld [vmem:[%s16461_s1 + $0x1f8] sm:$0xff]   ;;  %9890 = vmatpush3.bf16.msra.mxu1 %v11571_v56  ;;  %v11587_v30 = vld [vmem:[%s16463_s3 + $0x10] sm:$0xff]  }
  0x3e   :  { %9891 = vmatprep.subr.bf16.mxu1 %v11572_v61  ;;  %v318_v61 = vld [vmem:[#allocation2 + $0x102] sm:$0xff] }
  0x3f   :  { %9828 = vmatpush3.bf16.msra.mxu0 %v11569_v41  ;;  %v12588_v41 = vld [vmem:[#allocation2 + $0x120] sm:$0xff]  ;;  %v398_v1 = vpack.c.bf16 %v318_v61, %v12580_v26 }
  0x40   :  { %v351_v56 = vpack.c.bf16 %v12588_v41, %v271_v29  ;;  %v391_v55 = vld [vmem:[#allocation2 + $0x122] sm:$0xff] }
  0x41   :  { %9892 = vmatpush3.bf16.msra.mxu1 %v11573_v13  ;;  %v392_v13 = vpack.c.bf16 %v12359_v62, %v12321_v46  ;;  %v11576_v46 = vld [vmem:[%s16461_s1 + $0x210] sm:$0xff]   ;;  %v395_v62 = vpack.c.bf16 %v383_v37, %v12461_v36  ;;  %v11592_v36 = vld [vmem:[%s16463_s3 + $0xc0] sm:$0xff]  }
  0x42   :  { %977 = vmatmul.mubr.bf16.gmra.mrb[16].mxu0 %v276_v16  ;;  %v11574_v16 = vld [vmem:[%s16461_s1 + $0x200] sm:$0xff]  }
  0x43   :  { %984 = vmatprep.mubr.bf16.mxu0 %v12516_v19  ;;  %11317 = vmatprep.subr.bf16.mxu0 %v11574_v16 }
  0x44   :  { %1074 = vmatmul.mubr.bf16.gmra.mrb[16].mxu1 %v324_v28  ;;  %v12582_v28 = vpack.c.bf16 %v269_v7, %v339_v18  ;;  %v12598_v18 = vpack.c.bf16 %v271_v29, %v341_v11  ;;  %v12600_v7 = vld [vmem:[#allocation2 + $0x112] sm:$0xff]  ;;  %v393_v11 = vpack.c.bf16 %v12401_v14, %v12366_v2  ;;  %v11575_v29 = vld [vmem:[%s16461_s1 + $0x208] sm:$0xff]   ;;  %v396_v2 = vpack.c.bf16 %v12546_v48, %v12504_v8  ;;  %v12748_v48 = vld [vmem:[%s16464_s2] ss:$0 sm:$0xff] }
  0x45   :  { %1081 = vmatprep.mubr.bf16.mxu1 %v349_v31  ;;  %v12586_v31 = vpack.c.bf16 %v12524_v24, %v12495_v59  ;;  %v11594_v59 = vld [vmem:[%s16463_s3 + $0xc8] sm:$0xff]   ;;  %v11598_v8 = vld [vmem:[%s16463_s3 + $0xd0] sm:$0xff]  }
  0x46   :  { %v11596_v24 = vld [vmem:[%s16463_s3 + $0x68] sm:$0xff]  }
  0x4a   :  { %985 = vmatmul.mubr.bf16.gmra.mrb[20].mxu0 %v12556_v58 }
  0x4b   :  { %992 = vmatprep.mubr.bf16.mxu0 %v12563_v6 }
  0x4c   :  { %1082 = vmatmul.mubr.bf16.gmra.mrb[20].mxu1 %v12570_v54 }
  0x4d   :  { %1089 = vmatprep.mubr.bf16.mxu1 %v350_v17  ;;  %v12605_v17 = vpack.c.bf16 %v12600_v7, %v318_v61 }
  0x52   :  { %993 = vmatmul.mubr.bf16.gmra.mrb[24].mxu0 %v12582_v28 }
  0x53   :  { %1000 = vmatprep.mubr.bf16.mxu0 %v12586_v31 }
  0x54   :  { %1090 = vmatmul.mubr.bf16.gmra.mrb[24].mxu1 %v12592_v52 }
  0x55   :  { %1097 = vmatprep.mubr.bf16.mxu1 %v351_v56 }
  0x5a   :  { %1001 = vmatmul.mubr.bf16.gmra.mrb[28].mxu0 %v12598_v18 }
  0x5b   :  { %1138 = vmatprep.mubr.bf16.mxu0 %v392_v13 }
  0x5c   :  { %1098 = vmatmul.mubr.bf16.gmra.mrb[28].mxu1 %v12605_v17 }
  0x5d   :  { %1235 = vmatprep.mubr.bf16.mxu1 %v12325_v47  ;;  %v394_v47 = vpack.c.bf16 %v12459_v35, %v12403_v15  ;;  %v464_v15 = vld [vmem:[#allocation2 + $0x132] sm:$0xff] }
  0x5e   :  { %v11589_v35 = vld [vmem:[%s16463_s3 + $0x18] sm:$0xff]  }
  0x62   :  { %1139 = vmatmul.mubr.bf16.vlgmr.msra.gmra.mrb[32].mxu0 %v368_v38  ;;  %v11578_v38 = vld [vmem:[%s16461_s1 + $0x220] sm:$0xff]  }
  0x63   :  { %11318 = vmatpush3.bf16.msra.mxu0 %v11574_v16  ;;  %1146 = vmatprep.mubr.bf16.mxu0 %v393_v11  ;;  %v11606_v11 = vld [vmem:[%s16463_s3 + $0xe8] sm:$0xff]  }
  0x64   :  { %11319 = vmatprep.subr.bf16.mxu0 %v11575_v29  ;;  %1236 = vmatmul.mubr.bf16.vlgmr.msra.gmra.mrb[32].mxu1 %v12364_v0  ;;  %v432_v0 = vld [vmem:[#allocation2 + $0x91] sm:$0xff] }
  0x65   :  { %1243 = vmatprep.mubr.bf16.mxu1 %v12378_v5  ;;  %v444_v40 = vpack.c.bf16 %v432_v0, %v12357_v60  ;;  %v399_v60 = vpack.c.bf16 %v391_v55, %v12600_v7  ;;  %v12078_v5 = vld [vmem:[#allocation2] sm:$0xff] }
  0x66   :  { %v424_v10 = vpack.c.bf16 %v12078_v5, %v12588_v41 }
  0x67   :  { %11320 = vmatpush3.bf16.msra.mxu0 %v11575_v29 }
  0x68   :  { %11321 = vmatprep.subr.bf16.mxu0 %v11576_v46 }
  0x6a   :  { %1147 = vmatmul.mubr.bf16.gmra.mrb[36].mxu0 %v369_v43  ;;  %v11580_v43 = vld [vmem:[%s16461_s1 + $0x230] sm:$0xff]  }
  0x6b   :  { %1154 = vmatprep.mubr.bf16.mxu0 %v394_v47  ;;  %11322 = vmatpush3.bf16.msra.mxu0 %v11576_v46  ;;  %v11603_v47 = vld [vmem:[%s16463_s3 + $0x30] sm:$0xff]  }
  0x6c   :  { %11323 = vmatprep.subr.bf16.mxu0 %v11577_v32  ;;  %1244 = vmatmul.mubr.bf16.gmra.mrb[36].mxu1 %v12415_v20  ;;  %v472_v20 = vpack.c.bf16 %v464_v15, %v391_v55 }
  0x6d   :  { %1251 = vmatprep.mubr.bf16.mxu1 %v12424_v23  ;;  %v11584_v23 = vld [vmem:[%s16463_s3 + $0x48] sm:$0xff]  }
  0x6f   :  { %11324 = vmatpush3.bf16.msra.mxu0 %v11577_v32  ;;  %v11607_v32 = vld [vmem:[%s16463_s3 + $0xa8] sm:$0xff]  }
  0x70   :  { %11325 = vmatprep.subr.bf16.mxu0 %v11578_v38 }
  0x72   :  { %1155 = vmatmul.mubr.bf16.gmra.mrb[40].mxu0 %v370_v53  ;;  %v397_v53 = vpack.c.bf16 %v12577_v22, %v12548_v51  ;;  %v11601_v51 = vld [vmem:[%s16463_s3 + $0x98] sm:$0xff]   ;;  %v11604_v22 = vld [vmem:[%s16463_s3 + $0xe0] sm:$0xff]  }
  0x73   :  { %1162 = vmatprep.mubr.bf16.mxu0 %v395_v62  ;;  %11326 = vmatpush3.bf16.msra.mxu0 %v11578_v38 }
  0x74   :  { %11327 = vmatprep.subr.bf16.mxu0 %v11579_v39  ;;  %1252 = vmatmul.mubr.bf16.gmra.mrb[40].mxu1 %v12470_v45  ;;  %v11593_v45 = vld [vmem:[%s16463_s3 + $0x80] sm:$0xff]  }
  0x75   :  { %1259 = vmatprep.mubr.bf16.mxu1 %v444_v40  ;;  %v11610_v40 = vld [vmem:[%s16463_s3 + $0xf0] sm:$0xff]  }
  0x77   :  { %11328 = vmatpush3.bf16.msra.mxu0 %v11579_v39 }
  0x78   :  { %11329 = vmatprep.subr.bf16.mxu0 %v11580_v43 }
  0x7a   :  { %1163 = vmatmul.mubr.bf16.gmra.mrb[44].mxu0 %v371_v63  ;;  %v440_v63 = vld [vmem:[#allocation2 + $0x131] sm:$0xff] }
  0x7b   :  { %1170 = vmatprep.mubr.bf16.mxu0 %v396_v2  ;;  %11330 = vmatpush3.bf16.msra.mxu0 %v11580_v43  ;;  %v448_v4 = vpack.c.bf16 %v440_v63, %v12537_v33  ;;  %v11597_v33 = vld [vmem:[%s16463_s3 + $0x28] sm:$0xff]  }
  0x7c   :  { %11331 = vmatprep.subr.bf16.mxu0 %v11581_v44  ;;  %1260 = vmatmul.mubr.bf16.gmra.mrb[44].mxu1 %v420_v50  ;;  %v11611_v50 = vld [vmem:[%s16463_s3 + $0xb0] sm:$0xff]  }
  0x7d   :  { %1267 = vmatprep.mubr.bf16.mxu1 %v12516_v19  ;;  %v11599_v19 = vld [vmem:[%s16463_s3 + $0x90] sm:$0xff]  }
  0x7f   :  { %11332 = vmatpush3.bf16.msra.mxu0 %v11581_v44  ;;  %v11608_v44 = vld [vmem:[%s16463_s3 + $0x78] sm:$0xff]  }
  0x80   :  { %10021 = vmatprep.subr.bf16.mxu0 %v11592_v36 }
  0x82   :  { %1171 = vmatmul.mubr.bf16.gmra.mrb[48].mxu0 %v372_v12  ;;  %v456_v12 = vld [vmem:[#allocation2 + $0x92] sm:$0xff] }
  0x83   :  { %1178 = vmatprep.mubr.bf16.mxu0 %v397_v53  ;;  %v468_v14 = vpack.c.bf16 %v456_v12, %v383_v37  ;;  %v11612_v12 = vld [vmem:[%s16463_s3 + $0xf8] sm:$0xff]  }
  0x84   :  { %1268 = vmatmul.mubr.bf16.gmra.mrb[48].mxu1 %v12556_v58 }
  0x85   :  { %1275 = vmatprep.mubr.bf16.mxu1 %v12563_v6 }
  0x8a   :  { %1179 = vmatmul.mubr.bf16.gmra.mrb[52].mxu0 %v373_v34  ;;  %v11588_v34 = vld [vmem:[%s16463_s3 + $0x58] sm:$0xff]  }
  0x8b   :  { %1186 = vmatprep.mubr.bf16.mxu0 %v398_v1 }
  0x8c   :  { %1276 = vmatmul.mubr.bf16.gmra.mrb[52].mxu1 %v12582_v28 }
  0x8d   :  { %1283 = vmatprep.mubr.bf16.mxu1 %v12586_v31  ;;  %v11605_v31 = vld [vmem:[%s16463_s3 + $0xa0] sm:$0xff]  }
  0x92   :  { %1187 = vmatmul.mubr.bf16.gmra.mrb[56].mxu0 %v374_v3  ;;  %v11595_v3 = vld [vmem:[%s16463_s3 + $0x88] sm:$0xff]  }
  0x93   :  { %1194 = vmatprep.mubr.bf16.mxu0 %v399_v60  ;;  %v11609_v60 = vld [vmem:[%s16463_s3 + $0x38] sm:$0xff]  }
  0x94   :  { %1284 = vmatmul.mubr.bf16.gmra.mrb[56].mxu1 %v12598_v18 }
  0x95   :  { %1291 = vmatprep.mubr.bf16.mxu1 %v448_v4 }
  0x9a   :  { %1195 = vmatmul.mubr.bf16.gmra.mrb[60].mxu0 %v375_v42  ;;  %v11600_v42 = vld [vmem:[%s16463_s3 + $0xd8] sm:$0xff]  }
  0x9b   :  { %11333 = vmatprep.mubr.bf16.mxu0 %v12386_v9  ;;  %v11582_v9 = vld [vmem:[%s16463_s3 + $0x40] sm:$0xff]  }
  0x9c   :  { %1292 = vmatmul.mubr.bf16.gmra.mrb[60].mxu1 %v424_v10  ;;  %9957 = vmatprep.subr.bf16.mxu1 %v11582_v9 }
  0x9d   :  { %9958 = vmatpush3.bf16.msra.mxu1 %v11583_v21 }
  0x9e   :  { %9959 = vmatprep.subr.bf16.mxu1 %v11584_v23 }
  0xa1   :  { %9960 = vmatpush3.bf16.msra.mxu1 %v11585_v25 }
  0xa2   :  { %11334 = vmatmul.mubr.bf16.vlgmr.msra.gmra.mrb[64].mxu0 %v12440_v27  ;;  %v11586_v27 = vld [vmem:[%s16463_s3 + $0x50] sm:$0xff]  }
  0xa3   :  { %11337 = vmatprep.mubr.bf16.mxu0 %v12487_v57  ;;  %9961 = vmatprep.subr.bf16.mxu1 %v11586_v27  ;;  %v11591_v57 = vld [vmem:[%s16463_s3 + $0x20] sm:$0xff]  }
  0xa4   :  { %10022 = vmatpush3.bf16.msra.mxu0 %v11593_v45 }
  0xa5   :  { %9962 = vmatpush3.bf16.msra.mxu1 %v11587_v30  ;;  %10023 = vmatprep.subr.bf16.mxu0 %v11594_v59 }
  0xa6   :  { %9963 = vmatprep.subr.bf16.mxu1 %v11588_v34 }
  0xa8   :  { %10024 = vmatpush3.bf16.msra.mxu0 %v11595_v3 }
  0xa9   :  { %9964 = vmatpush3.bf16.msra.mxu1 %v11589_v35  ;;  %10025 = vmatprep.subr.bf16.mxu0 %v11598_v8  ;;  %v11614_v8 = vld [vmem:[%s16463_s3 + $0x140] sm:$0xff]  }
  0xaa   :  { %11338 = vmatmul.mubr.bf16.gmra.mrb[68].mxu0 %v468_v14  ;;  %9965 = vmatprep.subr.bf16.mxu1 %v11590_v49 }
  0xab   :  { %11341 = vmatprep.mubr.bf16.mxu0 %v12570_v54 }
  0xac   :  { %10026 = vmatpush3.bf16.msra.mxu0 %v11599_v19 }
  0xad   :  { %9966 = vmatpush3.bf16.msra.mxu1 %v11591_v57  ;;  %10027 = vmatprep.subr.bf16.mxu0 %v11600_v42 }
  0xae   :  { %9967 = vmatprep.subr.bf16.mxu1 %v11596_v24 }
  0xb0   :  { %10028 = vmatpush3.bf16.msra.mxu0 %v11601_v51 }
  0xb1   :  { %9968 = vmatpush3.bf16.msra.mxu1 %v11597_v33  ;;  %10029 = vmatprep.subr.bf16.mxu0 %v11604_v22 }
  0xb2   :  { %11342 = vmatmul.mubr.bf16.gmra.mrb[72].mxu0 %v12592_v52 }
  0xb3   :  { %11345 = vmatprep.mubr.bf16.mxu0 %v12605_v17  ;;  %v11602_v17 = vld [vmem:[%s16463_s3 + $0x70] sm:$0xff]  }
  0xb4   :  { %10030 = vmatpush3.bf16.msra.mxu0 %v11605_v31  ;;  %9969 = vmatprep.subr.bf16.mxu1 %v11602_v17 }
  0xb5   :  { %10031 = vmatprep.subr.bf16.mxu0 %v11606_v11  ;;  %9970 = vmatpush3.bf16.msra.mxu1 %v11603_v47 }
  0xb6   :  { %9971 = vmatprep.subr.bf16.mxu1 %v11608_v44 }
  0xb8   :  { %10032 = vmatpush3.bf16.msra.mxu0 %v11607_v32 }
  0xb9   :  { %10033 = vmatprep.subr.bf16.mxu0 %v11610_v40  ;;  %9972 = vmatpush3.bf16.msra.mxu1 %v11609_v60 }
  0xba   :  { %11346 = vmatmul.mubr.bf16.gmra.mrb[76].mxu0 %v472_v20  ;;  %v11613_v20 = vld [vmem:[%s16463_s3 + $0xb8] sm:$0xff]   ;;  %10085 = vmatprep.subr.bf16.mxu1 %v11614_v8 }
  0xbc   :  { %10034 = vmatpush3.bf16.msra.mxu0 %v11611_v50 }
  0xbd   :  { %10035 = vmatprep.subr.bf16.mxu0 %v11612_v12 }
  0xc0   :  { %10036 = vmatpush3.bf16.msra.mxu0 %v11613_v20 }
  0xf5   :  { %v9701_v58 = vpop.f32.mrb[0].mxu0 }
  0xf6   :  { %v9702_v6 = vpop.f32.mrb[1].mxu0 }
  0xf7   :  { %v9703_v54 = vadd.f32 %v9702_v6, %v9701_v58  ;;  %v9704_v16 = vpop.f32.mrb[2].mxu0  ;;  %v9765_v26 = vpop.f32.mrb[0].mxu1 }
  0xf8   :  { %v9705_v28 = vpop.f32.mrb[3].mxu0  ;;  %v9766_v56 = vpop.f32.mrb[1].mxu1 }
  0xf9   :  { %v947_v41 = vadd.f32 %v9703_v54, %v12748_v48  ;;  %v9706_v52 = vadd.f32 %v9705_v28, %v9704_v16  ;;  %v9767_v18 = vadd.f32 %v9766_v56, %v9765_v26  ;;  %v9768_v61 = vpop.f32.mrb[2].mxu1 }
  0xfa   :  { %v9769_v13 = vpop.f32.mrb[3].mxu1 }
  0xfb   :  { %v950_v7 = vadd.f32 %v9706_v52, %v12748_v48  ;;  %v12767_v29 = vadd.f32 %v9767_v18, %v947_v41  ;;  %v9770_v46 = vadd.f32 %v9769_v13, %v9768_v61 }
  0xfd   :  { %v9707_v37 = vpop.f32.mrb[4].mxu0  ;;  %v12775_v38 = vadd.f32 %v9770_v46, %v950_v7 }
  0xfe   :  { %v9708_v62 = vpop.f32.mrb[5].mxu0 }
  0xff   :  { %v9709_v0 = vadd.f32 %v9708_v62, %v9707_v37  ;;  %v9710_v39 = vpop.f32.mrb[6].mxu0  ;;  %v9771_v43 = vpop.f32.mrb[4].mxu1 }
 0x100   :  { %v9711_v2 = vpop.f32.mrb[7].mxu0  ;;  %v9772_v55 = vpop.f32.mrb[5].mxu1 }
 0x101   :  { %v955_v53 = vadd.f32 %v9709_v0, %v12748_v48  ;;  %v9712_v1 = vadd.f32 %v9711_v2, %v9710_v39  ;;  %v9773_v63 = vadd.f32 %v9772_v55, %v9771_v43  ;;  %v9774_v4 = vpop.f32.mrb[6].mxu1 }
 0x102   :  { %v9775_v10 = vpop.f32.mrb[7].mxu1 }
 0x103   :  { %v958_v5 = vadd.f32 %v9712_v1, %v12748_v48  ;;  %v12794_v14 = vadd.f32 %v9773_v63, %v955_v53  ;;  %v9776_v15 = vadd.f32 %v9775_v10, %v9774_v4 }
 0x105   :  { %v9713_v9 = vpop.f32.mrb[8].mxu0  ;;  %v12799_v21 = vadd.f32 %v9776_v15, %v958_v5 }
 0x106   :  { %v9714_v23 = vpop.f32.mrb[9].mxu0 }
 0x107   :  { %v9715_v25 = vadd.f32 %v9714_v23, %v9713_v9  ;;  %v9716_v27 = vpop.f32.mrb[10].mxu0  ;;  %v9777_v30 = vpop.f32.mrb[8].mxu1 }
 0x108   :  { %v9717_v34 = vpop.f32.mrb[11].mxu0  ;;  %v9778_v45 = vpop.f32.mrb[9].mxu1 }
 0x109   :  { %v963_v35 = vadd.f32 %v9715_v25, %v12748_v48  ;;  %v9718_v36 = vadd.f32 %v9717_v34, %v9716_v27  ;;  %v9779_v49 = vadd.f32 %v9778_v45, %v9777_v30  ;;  %v9780_v57 = vpop.f32.mrb[10].mxu1 }
 0x10a   :  { %v9781_v3 = vpop.f32.mrb[11].mxu1 }
 0x10b   :  { %v966_v59 = vadd.f32 %v9718_v36, %v12748_v48  ;;  %v12806_v19 = vadd.f32 %v9779_v49, %v963_v35  ;;  %v9782_v24 = vadd.f32 %v9781_v3, %v9780_v57  ;;  %v11623_v35 = vld [vmem:[%s16463_s3 + $0x1c0] sm:$0xff]  }
 0x10c   :  { %10149 = vmatprep.subr.bf16.mxu0 %v11623_v35 }
 0x10d   :  { %v9719_v33 = vpop.f32.mrb[12].mxu0  ;;  %v12808_v42 = vadd.f32 %v9782_v24, %v966_v59 }
 0x10e   :  { %v9720_v51 = vpop.f32.mrb[13].mxu0 }
 0x10f   :  { %v9721_v58 = vadd.f32 %v9720_v51, %v9719_v33  ;;  %v9722_v6 = vpop.f32.mrb[14].mxu0  ;;  %v9783_v54 = vpop.f32.mrb[12].mxu1 }
 0x110   :  { %v9723_v16 = vpop.f32.mrb[15].mxu0  ;;  %v9784_v28 = vpop.f32.mrb[13].mxu1 }
 0x111   :  { %v971_v22 = vadd.f32 %v9721_v58, %v12748_v48  ;;  %v9724_v26 = vadd.f32 %v9723_v16, %v9722_v6  ;;  %v9785_v31 = vadd.f32 %v9784_v28, %v9783_v54  ;;  %v9786_v41 = vpop.f32.mrb[14].mxu1 }
 0x112   :  { %v9787_v56 = vpop.f32.mrb[15].mxu1 }
 0x113   :  { %v974_v52 = vadd.f32 %v9724_v26, %v12748_v48  ;;  %v12812_v18 = vadd.f32 %v9785_v31, %v971_v22  ;;  %v9788_v61 = vadd.f32 %v9787_v56, %v9786_v41 }
 0x115   :  { %v9725_v7 = vpop.f32.mrb[16].mxu0  ;;  %v12814_v13 = vadd.f32 %v9788_v61, %v974_v52 }
 0x116   :  { %v9726_v17 = vpop.f32.mrb[17].mxu0 }
 0x117   :  { %v9727_v11 = vadd.f32 %v9726_v17, %v9725_v7  ;;  %v9728_v46 = vpop.f32.mrb[18].mxu0  ;;  %v9789_v47 = vpop.f32.mrb[16].mxu1 }
 0x118   :  { %v9729_v32 = vpop.f32.mrb[19].mxu0  ;;  %v9790_v0 = vpop.f32.mrb[17].mxu1 }
 0x119   :  { %v979_v37 = vadd.f32 %v9727_v11, %v12748_v48  ;;  %v9730_v62 = vadd.f32 %v9729_v32, %v9728_v46  ;;  %v9791_v39 = vadd.f32 %v9790_v0, %v9789_v47  ;;  %v9792_v40 = vpop.f32.mrb[18].mxu1 }
 0x11a   :  { %v9793_v2 = vpop.f32.mrb[19].mxu1 }
 0x11b   :  { %v982_v43 = vadd.f32 %v9730_v62, %v12748_v48  ;;  %v12818_v44 = vadd.f32 %v9791_v39, %v979_v37  ;;  %v9794_v50 = vadd.f32 %v9793_v2, %v9792_v40 }
 0x11d   :  { %v9731_v53 = vpop.f32.mrb[20].mxu0  ;;  %v12820_v1 = vadd.f32 %v9794_v50, %v982_v43 }
 0x11e   :  { %v9732_v55 = vpop.f32.mrb[21].mxu0 }
 0x11f   :  { %v9733_v60 = vadd.f32 %v9732_v55, %v9731_v53  ;;  %v9734_v63 = vpop.f32.mrb[22].mxu0  ;;  %v9795_v4 = vpop.f32.mrb[20].mxu1 }
 0x120   :  { %v9735_v5 = vpop.f32.mrb[23].mxu0  ;;  %v9796_v15 = vpop.f32.mrb[21].mxu1 }
 0x121   :  { %v987_v10 = vadd.f32 %v9733_v60, %v12748_v48  ;;  %v9736_v12 = vadd.f32 %v9735_v5, %v9734_v63  ;;  %v9797_v20 = vadd.f32 %v9796_v15, %v9795_v4  ;;  %v9798_v9 = vpop.f32.mrb[22].mxu1 }
 0x122   :  { %v9799_v25 = vpop.f32.mrb[23].mxu1 }
 0x123   :  { %v990_v23 = vadd.f32 %v9736_v12, %v12748_v48  ;;  %v12824_v27 = vadd.f32 %v9797_v20, %v987_v10  ;;  %v9800_v30 = vadd.f32 %v9799_v25, %v9798_v9 }
 0x125   :  { %v9737_v34 = vpop.f32.mrb[24].mxu0  ;;  %v12829_v36 = vadd.f32 %v9800_v30, %v990_v23 }
 0x126   :  { %v9738_v45 = vpop.f32.mrb[25].mxu0 }
 0x127   :  { %v9739_v49 = vadd.f32 %v9738_v45, %v9737_v34  ;;  %v9740_v57 = vpop.f32.mrb[26].mxu0  ;;  %v9801_v59 = vpop.f32.mrb[24].mxu1 }
 0x128   :  { %v9741_v3 = vpop.f32.mrb[27].mxu0  ;;  %v9802_v33 = vpop.f32.mrb[25].mxu1 }
 0x129   :  { %v995_v8 = vadd.f32 %v9739_v49, %v12748_v48  ;;  %v9742_v24 = vadd.f32 %v9741_v3, %v9740_v57  ;;  %v9803_v51 = vadd.f32 %v9802_v33, %v9801_v59  ;;  %v9804_v58 = vpop.f32.mrb[26].mxu1 }
 0x12a   :  { %v9805_v54 = vpop.f32.mrb[27].mxu1 }
 0x12b   :  { %v998_v6 = vadd.f32 %v9742_v24, %v12748_v48  ;;  %v12833_v16 = vadd.f32 %v9803_v51, %v995_v8  ;;  %v9806_v22 = vadd.f32 %v9805_v54, %v9804_v58 }
 0x12d   :  { %v9743_v26 = vpop.f32.mrb[28].mxu0  ;;  %v12835_v28 = vadd.f32 %v9806_v22, %v998_v6 }
 0x12e   :  { %v9744_v31 = vpop.f32.mrb[29].mxu0 }
 0x12f   :  { %v9745_v41 = vadd.f32 %v9744_v31, %v9743_v26  ;;  %v9746_v52 = vpop.f32.mrb[30].mxu0  ;;  %v9807_v56 = vpop.f32.mrb[28].mxu1 }
 0x130   :  { %v9747_v61 = vpop.f32.mrb[31].mxu0  ;;  %v9808_v11 = vpop.f32.mrb[29].mxu1 }
 0x131   :  { %v1003_v7 = vadd.f32 %v9745_v41, %v12748_v48  ;;  %v9748_v17 = vadd.f32 %v9747_v61, %v9746_v52  ;;  %v9809_v46 = vadd.f32 %v9808_v11, %v9807_v56  ;;  %v9810_v47 = vpop.f32.mrb[30].mxu1 }
 0x132   :  { %v9811_v37 = vpop.f32.mrb[31].mxu1 }
 0x133   :  { %v1006_v32 = vadd.f32 %v9748_v17, %v12748_v48  ;;  %v12839_v62 = vadd.f32 %v9809_v46, %v1003_v7  ;;  %v9812_v0 = vadd.f32 %v9811_v37, %v9810_v47 }
 0x135   :  { %v9829_v39 = vpop.f32.mrb[32].mxu0  ;;  %v12841_v40 = vadd.f32 %v9812_v0, %v1006_v32 }
 0x136   :  { %v9830_v43 = vpop.f32.mrb[33].mxu0 }
 0x137   :  { %v9831_v2 = vadd.f32 %v9830_v43, %v9829_v39  ;;  %v9832_v50 = vpop.f32.mrb[34].mxu0  ;;  %v9893_v53 = vpop.f32.mrb[32].mxu1 }
 0x138   :  { %v9833_v55 = vpop.f32.mrb[35].mxu0  ;;  %v9894_v4 = vpop.f32.mrb[33].mxu1 }
 0x139   :  { %v1141_v60 = vadd.f32 %v9831_v2, %v12767_v29  ;;  %v9834_v63 = vadd.f32 %v9833_v55, %v9832_v50  ;;  %v9895_v5 = vadd.f32 %v9894_v4, %v9893_v53  ;;  %v9896_v10 = vpop.f32.mrb[34].mxu1 }
 0x13a   :  { %v9897_v12 = vpop.f32.mrb[35].mxu1 }
 0x13b   :  { %v1144_v48 = vadd.f32 %v9834_v63, %v12775_v38  ;;  %v9898_v15 = vadd.f32 %v9897_v12, %v9896_v10  ;;  %v12845_v20 = vadd.f32 %v9895_v5, %v1141_v60 }
 0x13d   :  { %v9835_v9 = vpop.f32.mrb[36].mxu0  ;;  %v12847_v25 = vadd.f32 %v9898_v15, %v1144_v48 }
 0x13e   :  { %v9836_v23 = vpop.f32.mrb[37].mxu0 }
 0x13f   :  { %v9837_v30 = vadd.f32 %v9836_v23, %v9835_v9  ;;  %v9838_v34 = vpop.f32.mrb[38].mxu0  ;;  %v9899_v35 = vpop.f32.mrb[36].mxu1 }
 0x140   :  { %v9839_v45 = vpop.f32.mrb[39].mxu0  ;;  %v9900_v57 = vpop.f32.mrb[37].mxu1 }
 0x141   :  { %v1149_v29 = vadd.f32 %v9837_v30, %v12794_v14  ;;  %v9840_v49 = vadd.f32 %v9839_v45, %v9838_v34  ;;  %v9901_v59 = vadd.f32 %v9900_v57, %v9899_v35  ;;  %v9902_v3 = vpop.f32.mrb[38].mxu1 }
 0x142   :  { %v9903_v8 = vpop.f32.mrb[39].mxu1 }
 0x143   :  { %v1152_v38 = vadd.f32 %v9840_v49, %v12799_v21  ;;  %v9904_v24 = vadd.f32 %v9903_v8, %v9902_v3  ;;  %v12851_v33 = vadd.f32 %v9901_v59, %v1149_v29 }
 0x145   :  { %v9841_v51 = vpop.f32.mrb[40].mxu0  ;;  %v12853_v6 = vadd.f32 %v9904_v24, %v1152_v38 }
 0x146   :  { %v9842_v58 = vpop.f32.mrb[41].mxu0 }
 0x147   :  { %v9843_v54 = vadd.f32 %v9842_v58, %v9841_v51  ;;  %v9844_v22 = vpop.f32.mrb[42].mxu0  ;;  %v9905_v26 = vpop.f32.mrb[40].mxu1 }
 0x148   :  { %v9845_v31 = vpop.f32.mrb[43].mxu0  ;;  %v9906_v52 = vpop.f32.mrb[41].mxu1 }
 0x149   :  { %v1157_v14 = vadd.f32 %v9843_v54, %v12806_v19  ;;  %v9846_v41 = vadd.f32 %v9845_v31, %v9844_v22  ;;  %v9907_v56 = vadd.f32 %v9906_v52, %v9905_v26  ;;  %v9908_v61 = vpop.f32.mrb[42].mxu1 }
 0x14a   :  { %v9909_v7 = vpop.f32.mrb[43].mxu1 }
 0x14b   :  { %v1160_v21 = vadd.f32 %v9846_v41, %v12808_v42  ;;  %v9910_v17 = vadd.f32 %v9909_v7, %v9908_v61  ;;  %v12857_v11 = vadd.f32 %v9907_v56, %v1157_v14 }
 0x14d   :  { %v9847_v46 = vpop.f32.mrb[44].mxu0  ;;  %v12859_v32 = vadd.f32 %v9910_v17, %v1160_v21 }
 0x14e   :  { %v9848_v47 = vpop.f32.mrb[45].mxu0 }
 0x14f   :  { %v9849_v37 = vadd.f32 %v9848_v47, %v9847_v46  ;;  %v9850_v0 = vpop.f32.mrb[46].mxu0  ;;  %v9911_v39 = vpop.f32.mrb[44].mxu1 }
 0x150   :  { %v9851_v43 = vpop.f32.mrb[47].mxu0  ;;  %v9912_v50 = vpop.f32.mrb[45].mxu1 }
 0x151   :  { %v1165_v19 = vadd.f32 %v9849_v37, %v12812_v18  ;;  %v9852_v2 = vadd.f32 %v9851_v43, %v9850_v0  ;;  %v9913_v53 = vadd.f32 %v9912_v50, %v9911_v39  ;;  %v9914_v55 = vpop.f32.mrb[46].mxu1 }
 0x152   :  { %v9915_v60 = vpop.f32.mrb[47].mxu1 }
 0x153   :  { %v1168_v42 = vadd.f32 %v9852_v2, %v12814_v13  ;;  %v9916_v63 = vadd.f32 %v9915_v60, %v9914_v55  ;;  %v12863_v4 = vadd.f32 %v9913_v53, %v1165_v19 }
 0x155   :  { %v9853_v5 = vpop.f32.mrb[48].mxu0  ;;  %v12865_v48 = vadd.f32 %v9916_v63, %v1168_v42 }
 0x156   :  { %v9854_v10 = vpop.f32.mrb[49].mxu0 }
 0x157   :  { %v9855_v12 = vadd.f32 %v9854_v10, %v9853_v5  ;;  %v9856_v15 = vpop.f32.mrb[50].mxu0  ;;  %v9917_v9 = vpop.f32.mrb[48].mxu1 }
 0x158   :  { %v9857_v23 = vpop.f32.mrb[51].mxu0  ;;  %v9918_v34 = vpop.f32.mrb[49].mxu1 }
 0x159   :  { %v1173_v18 = vadd.f32 %v9855_v12, %v12818_v44  ;;  %v9858_v30 = vadd.f32 %v9857_v23, %v9856_v15  ;;  %v9919_v35 = vadd.f32 %v9918_v34, %v9917_v9  ;;  %v9920_v45 = vpop.f32.mrb[50].mxu1 }
 0x15a   :  { %v9921_v29 = vpop.f32.mrb[51].mxu1 }
 0x15b   :  { %v1176_v13 = vadd.f32 %v9858_v30, %v12820_v1  ;;  %v9922_v49 = vadd.f32 %v9921_v29, %v9920_v45  ;;  %v12869_v57 = vadd.f32 %v9919_v35, %v1173_v18 }
 0x15d   :  { %v9859_v59 = vpop.f32.mrb[52].mxu0  ;;  %v12871_v38 = vadd.f32 %v9922_v49, %v1176_v13 }
 0x15e   :  { %v9860_v3 = vpop.f32.mrb[53].mxu0 }
 0x15f   :  { %v9861_v8 = vadd.f32 %v9860_v3, %v9859_v59  ;;  %v9862_v24 = vpop.f32.mrb[54].mxu0  ;;  %v9923_v51 = vpop.f32.mrb[52].mxu1 }
 0x160   :  { %v9863_v58 = vpop.f32.mrb[55].mxu0  ;;  %v9924_v22 = vpop.f32.mrb[53].mxu1 }
 0x161   :  { %v1181_v44 = vadd.f32 %v9861_v8, %v12824_v27  ;;  %v9864_v54 = vadd.f32 %v9863_v58, %v9862_v24  ;;  %v9925_v26 = vadd.f32 %v9924_v22, %v9923_v51  ;;  %v9926_v31 = vpop.f32.mrb[54].mxu1  ;;  %v1597_v24 = vld [vmem:[#allocation2 + $0x1] sm:$0xff] }
 0x162   :  { %v9927_v14 = vpop.f32.mrb[55].mxu1 }
 0x163   :  { %v1184_v1 = vadd.f32 %v9864_v54, %v12829_v36  ;;  %v9928_v41 = vadd.f32 %v9927_v14, %v9926_v31  ;;  %v12875_v52 = vadd.f32 %v9925_v26, %v1181_v44 }
 0x165   :  { %v9865_v56 = vpop.f32.mrb[56].mxu0  ;;  %v12877_v21 = vadd.f32 %v9928_v41, %v1184_v1 }
 0x166   :  { %v9866_v61 = vpop.f32.mrb[57].mxu0 }
 0x167   :  { %v9867_v7 = vadd.f32 %v9866_v61, %v9865_v56  ;;  %v9868_v17 = vpop.f32.mrb[58].mxu0  ;;  %v9929_v46 = vpop.f32.mrb[56].mxu1 }
 0x168   :  { %v9869_v47 = vpop.f32.mrb[59].mxu0  ;;  %v9930_v0 = vpop.f32.mrb[57].mxu1 }
 0x169   :  { %v1189_v27 = vadd.f32 %v9867_v7, %v12833_v16  ;;  %v9870_v37 = vadd.f32 %v9869_v47, %v9868_v17  ;;  %v9931_v39 = vadd.f32 %v9930_v0, %v9929_v46  ;;  %v9932_v43 = vpop.f32.mrb[58].mxu1  ;;  %v12925_v7 = vld [vmem:[#allocation2] sm:$0xff] }
 0x16a   :  { %v9933_v19 = vpop.f32.mrb[59].mxu1  ;;  %v1621_v17 = vld [vmem:[#allocation2 + $0x2] sm:$0xff] }
 0x16b   :  { %v1192_v36 = vadd.f32 %v9870_v37, %v12835_v28  ;;  %v9934_v2 = vadd.f32 %v9933_v19, %v9932_v43  ;;  %v12881_v50 = vadd.f32 %v9931_v39, %v1189_v27  ;;  %v11625_v43 = vld [vmem:[%s16463_s3 + $0x180] sm:$0xff]  }
 0x16d   :  { %v9871_v53 = vpop.f32.mrb[60].mxu0  ;;  %v12883_v42 = vadd.f32 %v9934_v2, %v1192_v36 }
 0x16e   :  { %v9872_v55 = vpop.f32.mrb[61].mxu0 }
 0x16f   :  { %v9873_v60 = vadd.f32 %v9872_v55, %v9871_v53  ;;  %v9874_v63 = vpop.f32.mrb[62].mxu0  ;;  %v9935_v5 = vpop.f32.mrb[60].mxu1  ;;  %v11617_v55 = vld [vmem:[%s16463_s3 + $0x108] sm:$0xff]  }
 0x170   :  { %v9875_v10 = vpop.f32.mrb[63].mxu0  ;;  %v9936_v15 = vpop.f32.mrb[61].mxu1 }
 0x171   :  { %v1197_v16 = vadd.f32 %v9873_v60, %v12839_v62  ;;  %v9876_v12 = vadd.f32 %v9875_v10, %v9874_v63  ;;  %v9937_v9 = vadd.f32 %v9936_v15, %v9935_v5  ;;  %v9938_v23 = vpop.f32.mrb[62].mxu1  ;;  %v11626_v60 = vld [vmem:[%s16463_s3 + $0x1c8] sm:$0xff]   ;;  %v11618_v10 = vld [vmem:[%s16463_s3 + $0x150] sm:$0xff]  }
 0x172   :  { %v9939_v18 = vpop.f32.mrb[63].mxu1 }
 0x173   :  { %v1200_v28 = vadd.f32 %v9876_v12, %v12841_v40  ;;  %v9940_v30 = vadd.f32 %v9939_v18, %v9938_v23  ;;  %v12887_v34 = vadd.f32 %v9937_v9, %v1197_v16 }
 0x175   :  { %v11335_v35 = vpop.f32.mrb[64].mxu0  ;;  %v12890_v29 = vadd.f32 %v9940_v30, %v1200_v28  ;;  %v11619_v28 = vld [vmem:[%s16463_s3 + $0x110] sm:$0xff]  }
 0x176   :  { %v1343_v45 = vadd.f32 %v11335_v35, %v12851_v33  ;;  %v1334_v13 = vpop.f32.mrb[65].mxu0  ;;  %v11627_v35 = vld [vmem:[%s16463_s3 + $0x188] sm:$0xff]  }
 0x177   :  { %v1335_v49 = vadd.f32 %v1334_v13, %v12845_v20  ;;  %v11336_v59 = vpop.f32.mrb[66].mxu0 }
 0x178   :  { %v12893_v62 = vmax.f32 %v1343_v45, 0.0  ;;  %v1346_v3 = vadd.f32 %v11336_v59, %v12853_v6  ;;  %v1337_v8 = vpop.f32.mrb[67].mxu0 }
 0x179   :  { %v12896_v40 = vmax.f32 %v1335_v49, 0.0  ;;  %v1338_v51 = vadd.f32 %v1337_v8, %v12847_v25  ;;  %v11630_v49 = vld [vmem:[%s16463_s3 + $0x1d0] sm:$0xff]  }
 0x17a   :  { %1415 = vst [vmem:[#allocation2 + $0x31] sm:$0xff] %v12893_v62  ;;  %v12900_v58 = vmax.f32 %v1346_v3, 0.0 }
 0x17b   :  { %1413 = vst [vmem:[#allocation2 + $0x11] sm:$0xff] %v12896_v40  ;;  %v12903_v33 = vmax.f32 %v1338_v51, 0.0  ;;  %v1613_v20 = vpack.c.bf16 %v12896_v40, %v1597_v24 }
 0x17c   :  { %1416 = vst [vmem:[#allocation2 + $0x41] sm:$0xff] %v12900_v58 }
 0x17d   :  { %1414 = vst [vmem:[#allocation2 + $0x21] sm:$0xff] %v12903_v33  ;;  %v11339_v6 = vpop.f32.mrb[68].mxu0  ;;  %2253 = vmatprep.mubr.bf16.mxu1 %v1613_v20  ;;  %v12936_v47 = vpack.c.bf16 %v12893_v62, %v12903_v33 }
 0x17e   :  { %v1359_v44 = vadd.f32 %v11339_v6, %v12863_v4  ;;  %v1350_v54 = vpop.f32.mrb[69].mxu0  ;;  %v11615_v4 = vld [vmem:[%s16463_s3 + $0x100] sm:$0xff]   ;;  %v11621_v6 = vld [vmem:[%s16463_s3 + $0x118] sm:$0xff]  }
 0x17f   :  { %v1351_v25 = vadd.f32 %v1350_v54, %v12857_v11  ;;  %v11340_v22 = vpop.f32.mrb[70].mxu0 }
 0x180   :  { %v12910_v26 = vmax.f32 %v1359_v44, 0.0  ;;  %v1362_v31 = vadd.f32 %v11340_v22, %v12865_v48  ;;  %v1353_v1 = vpop.f32.mrb[71].mxu0  ;;  %v11631_v22 = vld [vmem:[%s16463_s3 + $0x190] sm:$0xff]  }
 0x181   :  { %v12913_v14 = vmax.f32 %v1351_v25, 0.0  ;;  %v1354_v41 = vadd.f32 %v1353_v1, %v12859_v32  ;;  %v11616_v32 = vld [vmem:[%s16463_s3 + $0x148] sm:$0xff]   ;;  %v1647_v53 = vld [vmem:[#allocation2 + $0x30] sm:$0xff] }
 0x182   :  { %1419 = vst [vmem:[#allocation2 + $0x71] sm:$0xff] %v12910_v26  ;;  %v12917_v56 = vmax.f32 %v1362_v31, 0.0  ;;  %v1574_v61 = vld [vmem:[#allocation2 + $0x10] sm:$0xff] }
 0x183   :  { %1417 = vst [vmem:[#allocation2 + $0x51] sm:$0xff] %v12913_v14  ;;  %v12923_v11 = vmax.f32 %v1354_v41, 0.0  ;;  %v1589_v48 = vpack.c.bf16 %v1574_v61, %v12925_v7  ;;  %v12928_v46 = vld [vmem:[#allocation2 + $0x12] sm:$0xff]  ;;  %v12938_v37 = vld [vmem:[#allocation2 + $0x40] sm:$0xff]  ;;  %v12986_v45 = vpack.c.bf16 %v12913_v14, %v12900_v58 }
 0x184   :  { %1420 = vst [vmem:[#allocation2 + $0x81] sm:$0xff] %v12917_v56  ;;  %v1646_v27 = vld [vmem:[#allocation2 + $0x20] sm:$0xff]  ;;  %v1637_v2 = vpack.c.bf16 %v12928_v46, %v1621_v17  ;;  %v12995_v3 = vld [vmem:[#allocation2 + $0x32] sm:$0xff] }
 0x185   :  { %1418 = vst [vmem:[#allocation2 + $0x61] sm:$0xff] %v12923_v11  ;;  %v11343_v0 = vpop.f32.mrb[72].mxu0  ;;  %2254 = vmatmul.mubr.bf16.vlgmr.msra.gmra.mrb[64].mxu1 %v1589_v48  ;;  %v1661_v39 = vpack.c.bf16 %v1646_v27, %v1574_v61  ;;  %v12973_v18 = vpack.c.bf16 %v1647_v53, %v1646_v27  ;;  %v12975_v30 = vld [vmem:[#allocation2 + $0x22] sm:$0xff] }
 0x186   :  { %v1375_v36 = vadd.f32 %v11343_v0, %v12875_v52  ;;  %v1366_v19 = vpop.f32.mrb[73].mxu0  ;;  %2261 = vmatprep.mubr.bf16.mxu1 %v12936_v47  ;;  %10086 = vmatpush3.bf16.msra.mxu1 %v11615_v4  ;;  %v1662_v52 = vpack.c.bf16 %v12938_v37, %v1647_v53  ;;  %v13001_v51 = vpack.c.bf16 %v12995_v3, %v12975_v30  ;;  %v11633_v0 = vld [vmem:[%s16463_s3 + $0x198] sm:$0xff]   ;;  %v11629_v53 = vld [vmem:[%s16463_s3 + $0x128] sm:$0xff]  }
 0x187   :  { %v1367_v63 = vadd.f32 %v1366_v19, %v12869_v57  ;;  %v11344_v5 = vpop.f32.mrb[74].mxu0  ;;  %2350 = vmatprep.mubr.bf16.mxu0 %v1661_v39  ;;  %10087 = vmatprep.subr.bf16.mxu1 %v11616_v32  ;;  %v13047_v39 = vpack.c.bf16 %v12910_v26, %v12923_v11 }
 0x188   :  { %v12958_v16 = vmax.f32 %v1375_v36, 0.0  ;;  %v1378_v12 = vadd.f32 %v11344_v5, %v12877_v21  ;;  %v1369_v15 = vpop.f32.mrb[75].mxu0  ;;  %2351 = vmatmul.mubr.bf16.vlgmr.msra.gmra.mrb[80].mxu0 %v1637_v2  ;;  %v13056_v36 = vld [vmem:[#allocation2 + $0x42] sm:$0xff] }
 0x189   :  { %v12961_v9 = vmax.f32 %v1367_v63, 0.0  ;;  %v1370_v23 = vadd.f32 %v1369_v15, %v12871_v38  ;;  %2358 = vmatprep.mubr.bf16.mxu0 %v1662_v52  ;;  %10150 = vmatpush3.bf16.msra.mxu0 %v11625_v43  ;;  %v11620_v38 = vld [vmem:[%s16463_s3 + $0x158] sm:$0xff]   ;;  %v11636_v43 = vld [vmem:[%s16463_s3 + $0x1e0] sm:$0xff]   ;;  %v1651_v2 = vld [vmem:[#allocation2 + $0x70] sm:$0xff] }
 0x18a   :  { %1423 = vst [vmem:[#allocation2 + $0xd1] sm:$0xff] %v12958_v16  ;;  %v12965_v57 = vmax.f32 %v1378_v12, 0.0  ;;  %10088 = vmatpush3.bf16.msra.mxu1 %v11617_v55  ;;  %10151 = vmatprep.subr.bf16.mxu0 %v11626_v60  ;;  %v1649_v20 = vld [vmem:[#allocation2 + $0x50] sm:$0xff]  ;;  %v11637_v63 = vld [vmem:[%s16463_s3 + $0x1a0] sm:$0xff]   ;;  %v11638_v5 = vld [vmem:[%s16463_s3 + $0x1e8] sm:$0xff]  }
 0x18b   :  { %1421 = vst [vmem:[#allocation2 + $0xb1] sm:$0xff] %v12961_v9  ;;  %v12971_v21 = vmax.f32 %v1370_v23, 0.0  ;;  %10089 = vmatprep.subr.bf16.mxu1 %v11618_v10  ;;  %v13034_v32 = vpack.c.bf16 %v1649_v20, %v12938_v37  ;;  %v13036_v27 = vld [vmem:[#allocation2 + $0x52] sm:$0xff]  ;;  %v13049_v37 = vld [vmem:[#allocation2 + $0x80] sm:$0xff]  ;;  %v11639_v23 = vld [vmem:[%s16463_s3 + $0x1a8] sm:$0xff]  }
 0x18c   :  { %1424 = vst [vmem:[#allocation2 + $0xe1] sm:$0xff] %v12965_v57  ;;  %v12988_v13 = vld [vmem:[#allocation2 + $0x60] sm:$0xff]  ;;  %v13061_v19 = vpack.c.bf16 %v13036_v27, %v13056_v36  ;;  %v1664_v55 = vpack.c.bf16 %v13049_v37, %v1651_v2  ;;  %v11634_v60 = vld [vmem:[%s16463_s3 + $0x170] sm:$0xff]  }
 0x18d   :  { %1422 = vst [vmem:[#allocation2 + $0xc1] sm:$0xff] %v12971_v21  ;;  %v11347_v59 = vpop.f32.mrb[76].mxu0  ;;  %2262 = vmatmul.mubr.bf16.gmra.mrb[68].mxu1 %v12973_v18  ;;  %v1663_v25 = vpack.c.bf16 %v12988_v13, %v1649_v20  ;;  %10152 = vmatpush3.bf16.msra.mxu0 %v11627_v35  ;;  %v1605_v52 = vld [vmem:[#allocation2 + $0xa1] sm:$0xff]  ;;  %v11635_v10 = vld [vmem:[%s16463_s3 + $0x130] sm:$0xff]   ;;  %v13081_v12 = vpack.c.bf16 %v1651_v2, %v12988_v13 }
 0x18e   :  { %v1391_v8 = vadd.f32 %v11347_v59, %v12887_v34  ;;  %v1382_v24 = vpop.f32.mrb[77].mxu0  ;;  %2269 = vmatprep.mubr.bf16.mxu1 %v12986_v45  ;;  %10090 = vmatpush3.bf16.msra.mxu1 %v11619_v28  ;;  %v11622_v34 = vld [vmem:[%s16463_s3 + $0x160] sm:$0xff]   ;;  %v11640_v28 = vld [vmem:[%s16463_s3 + $0x178] sm:$0xff]   ;;  %v11642_v13 = vld [vmem:[%s16463_s3 + $0x1f0] sm:$0xff]  }
 0x18f   :  { %v1383_v44 = vadd.f32 %v1382_v24, %v12881_v50  ;;  %v11348_v54 = vpop.f32.mrb[78].mxu0  ;;  %10091 = vmatprep.subr.bf16.mxu1 %v11620_v38  ;;  %10153 = vmatprep.subr.bf16.mxu0 %v11630_v49  ;;  %v11632_v50 = vld [vmem:[%s16463_s3 + $0x1d8] sm:$0xff]   ;;  %v13083_v15 = vld [vmem:[#allocation2 + $0x62] sm:$0xff]  ;;  %v1617_v38 = vpack.c.bf16 %v12961_v9, %v1605_v52 }
 0x190   :  { %v13014_v31 = vmax.f32 %v1391_v8, 0.0  ;;  %v1394_v1 = vadd.f32 %v11348_v54, %v12890_v29  ;;  %v1385_v41 = vpop.f32.mrb[79].mxu0  ;;  %2359 = vmatmul.mubr.bf16.gmra.mrb[84].mxu0 %v13001_v51  ;;  %v11624_v29 = vld [vmem:[%s16463_s3 + $0x120] sm:$0xff]   ;;  %v13096_v49 = vld [vmem:[#allocation2 + $0x72] sm:$0xff] }
 0x191   :  { %v13021_v61 = vmax.f32 %v1383_v44, 0.0  ;;  %v1386_v4 = vadd.f32 %v1385_v41, %v12883_v42  ;;  %2366 = vmatprep.mubr.bf16.mxu0 %v1663_v25  ;;  %v11628_v42 = vld [vmem:[%s16463_s3 + $0x168] sm:$0xff]   ;;  %10154 = vmatpush3.bf16.msra.mxu0 %v11631_v22  ;;  %v13100_v59 = vpack.c.bf16 %v13096_v49, %v13083_v15  ;;  %v11641_v24 = vld [vmem:[%s16463_s3 + $0x138] sm:$0xff]   ;;  %v11646_v44 = vld [vmem:[%s16463_s3 + $0x200] sm:$0xff]   ;;  %v13123_v41 = vpack.c.bf16 %v12958_v16, %v12971_v21 }
 0x192   :  { %16484 = vst [vmem:[#allocation3_spill] sm:$0xff] %v13014_v31  ;;  %1427 = vst [vmem:[#allocation2 + $0x111] sm:$0xff] %v13014_v31  ;;  %v13025_v48 = vmax.f32 %v1394_v1, 0.0  ;;  %10092 = vmatpush3.bf16.msra.mxu1 %v11621_v6  ;;  %10155 = vmatprep.subr.bf16.mxu0 %v11632_v50  ;;  %v1653_v8 = vld [vmem:[#allocation2 + $0xb0] sm:$0xff]  ;;  %v11644_v54 = vld [vmem:[%s16463_s3 + $0x1f8] sm:$0xff]  }
 0x193   :  { %16485 = vst [vmem:[#allocation4_spill] sm:$0xff] %v13021_v61  ;;  %1425 = vst [vmem:[#allocation2 + $0xf1] sm:$0xff] %v13021_v61  ;;  %v13031_v17 = vmax.f32 %v1386_v4, 0.0  ;;  %10093 = vmatprep.subr.bf16.mxu1 %v11622_v34  ;;  %v11643_v6 = vld [vmem:[%s16463_s3 + $0x1b0] sm:$0xff]   ;;  %v1593_v25 = vpack.c.bf16 %v1653_v8, %v12925_v7  ;;  %v1629_v34 = vld [vmem:[#allocation2 + $0xa2] sm:$0xff]  ;;  %v13133_v2 = vpack.c.bf16 %v13021_v61, %v12965_v57 }
 0x194   :  { %16486 = vst [vmem:[#allocation5_spill] sm:$0xff] %v13025_v48  ;;  %1428 = vst [vmem:[#allocation2 + $0x121] sm:$0xff] %v13025_v48  ;;  %v1654_v35 = vld [vmem:[#allocation2 + $0xc0] sm:$0xff]  ;;  %v13116_v22 = vld [vmem:[#allocation2 + $0xb2] sm:$0xff] }
 0x195   :  { %16487 = vst [vmem:[#allocation6_spill] sm:$0xff] %v13031_v17  ;;  %1426 = vst [vmem:[#allocation2 + $0x101] sm:$0xff] %v13031_v17  ;;  %2270 = vmatmul.mubr.bf16.gmra.mrb[72].mxu1 %v13034_v32  ;;  %10156 = vmatpush3.bf16.msra.mxu0 %v11633_v0  ;;  %v1665_v20 = vpack.c.bf16 %v1654_v35, %v1653_v8  ;;  %v11645_v1 = vld [vmem:[%s16463_s3 + $0x1b8] sm:$0xff]   ;;  %v1656_v50 = vld [vmem:[#allocation2 + $0xe0] sm:$0xff]  ;;  %v1641_v4 = vpack.c.bf16 %v13116_v22, %v1629_v34 }
 0x196   :  { %2277 = vmatprep.mubr.bf16.mxu1 %v13047_v39  ;;  %10094 = vmatpush3.bf16.msra.mxu1 %v11624_v29  ;;  %v1655_v29 = vld [vmem:[#allocation2 + $0xd0] sm:$0xff]  ;;  %v1685_v34 = vpack.c.bf16 %v12903_v33, %v12896_v40 }
 0x197   :  { %10095 = vmatprep.subr.bf16.mxu1 %v11628_v42  ;;  %10157 = vmatprep.subr.bf16.mxu0 %v11636_v43  ;;  %v1666_v42 = vpack.c.bf16 %v1656_v50, %v1655_v29  ;;  %v13127_v0 = vpack.c.bf16 %v1655_v29, %v1654_v35  ;;  %v13129_v43 = vld [vmem:[#allocation2 + $0xc2] sm:$0xff] }
 0x198   :  { %2367 = vmatmul.mubr.bf16.gmra.mrb[88].mxu0 %v13061_v19  ;;  %v1713_v29 = vpack.c.bf16 %v13129_v43, %v13116_v22 }
 0x199   :  { %2374 = vmatprep.mubr.bf16.mxu0 %v1664_v55  ;;  %10158 = vmatpush3.bf16.msra.mxu0 %v11637_v63  ;;  %v13136_v55 = vld [vmem:[#allocation2 + $0xd2] sm:$0xff] }
 0x19a   :  { %10096 = vmatpush3.bf16.msra.mxu1 %v11629_v53  ;;  %10159 = vmatprep.subr.bf16.mxu0 %v11638_v5  ;;  %v1657_v63 = vld [vmem:[#allocation2 + $0xf0] sm:$0xff] }
 0x19b   :  { %10097 = vmatprep.subr.bf16.mxu1 %v11634_v60  ;;  %v13141_v60 = vpack.c.bf16 %v13136_v55, %v13129_v43  ;;  %v13144_v52 = vpack.c.bf16 %v1657_v63, %v1656_v50  ;;  %v1748_v50 = vld [vmem:[#allocation2 + $0x91] sm:$0xff]  ;;  %v1691_v43 = vpack.c.bf16 %v13031_v17, %v13021_v61 }
 0x19c   :  { %v1658_v53 = vld [vmem:[#allocation2 + $0x100] sm:$0xff] }
 0x19d   :  { %2278 = vmatmul.mubr.bf16.gmra.mrb[76].mxu1 %v13081_v12  ;;  %10160 = vmatpush3.bf16.msra.mxu0 %v11639_v23  ;;  %v1667_v5 = vpack.c.bf16 %v1658_v53, %v1657_v63  ;;  %v13150_v23 = vpack.c.bf16 %v13014_v31, %v13031_v17  ;;  %v1692_v63 = vpack.c.bf16 %v13025_v48, %v13014_v31 }
 0x19e   :  { %2285 = vmatprep.mubr.bf16.mxu1 %v1617_v38  ;;  %10098 = vmatpush3.bf16.msra.mxu1 %v11635_v10  ;;  %v13146_v10 = vld [vmem:[#allocation2 + $0xf2] sm:$0xff]  ;;  %v13155_v38 = vld [vmem:[#allocation2 + $0xe2] sm:$0xff] }
 0x19f   :  { %10099 = vmatprep.subr.bf16.mxu1 %v11640_v28  ;;  %10161 = vmatprep.subr.bf16.mxu0 %v11642_v13  ;;  %v13152_v28 = vld [vmem:[#allocation2 + $0x120] sm:$0xff]  ;;  %v13160_v35 = vpack.c.bf16 %v13146_v10, %v13155_v38  ;;  %v1659_v13 = vld [vmem:[#allocation2 + $0x110] sm:$0xff] }
 0x1a0   :  { %2375 = vmatmul.mubr.bf16.gmra.mrb[92].mxu0 %v13100_v59  ;;  %v1668_v8 = vpack.c.bf16 %v13152_v28, %v1659_v13 }
 0x1a1   :  { %2382 = vmatprep.mubr.bf16.mxu0 %v1665_v20  ;;  %10162 = vmatpush3.bf16.msra.mxu0 %v11643_v6  ;;  %v13166_v20 = vld [vmem:[#allocation2 + $0x102] sm:$0xff]  ;;  %v1709_v6 = vpack.c.bf16 %v12975_v30, %v12928_v46  ;;  %v1710_v30 = vpack.c.bf16 %v13056_v36, %v12995_v3  ;;  %v11649_v3 = vld [vmem:[%s16463_s3 + $0x218] sm:$0xff]   ;;  %v1711_v36 = vpack.c.bf16 %v13083_v15, %v13036_v27 }
 0x1a2   :  { %10100 = vmatpush3.bf16.msra.mxu1 %v11641_v24  ;;  %10163 = vmatprep.subr.bf16.mxu0 %v11644_v54  ;;  %v13164_v24 = vpack.c.bf16 %v1659_v13, %v1658_v53  ;;  %v13171_v54 = vld [vmem:[#allocation2 + $0x112] sm:$0xff]  ;;  %v11647_v46 = vld [vmem:[%s16463_s3 + $0x208] sm:$0xff]   ;;  %v1714_v53 = vpack.c.bf16 %v13155_v38, %v13136_v55  ;;  %v1715_v22 = vpack.c.bf16 %v13166_v20, %v13146_v10 }
 0x1a3   :  { %11349 = vmatprep.subr.bf16.mxu1 %v11646_v44  ;;  %v11651_v27 = vld [vmem:[%s16463_s3 + $0x228] sm:$0xff]   ;;  %v1756_v55 = vld [vmem:[#allocation2 + $0x131] sm:$0xff] }
 0x1a5   :  { %2286 = vmatmul.mubr.bf16.gmra.mrb[80].mxu1 %v1593_v25  ;;  %10164 = vmatpush3.bf16.msra.mxu0 %v11645_v1  ;;  %v13175_v25 = vpack.c.bf16 %v13171_v54, %v13166_v20  ;;  %v11648_v1 = vld [vmem:[%s16463_s3 + $0x210] sm:$0xff]  }
 0x1a6   :  { %2293 = vmatprep.mubr.bf16.mxu1 %v13123_v41 }
 0x1a8   :  { %2383 = vmatmul.mubr.bf16.gmra.mrb[96].mxu0 %v1641_v4  ;;  %v1688_v4 = vpack.c.bf16 %v12917_v56, %v12910_v26 }
 0x1a9   :  { %2390 = vmatprep.mubr.bf16.mxu0 %v1666_v42  ;;  %v1736_v42 = vpack.c.bf16 %v12925_v7, %v13049_v37  ;;  %v1690_v37 = vpack.c.bf16 %v12965_v57, %v12958_v16 }
 0x1ad   :  { %2294 = vmatmul.mubr.bf16.gmra.mrb[84].mxu1 %v13127_v0 }
 0x1ae   :  { %2301 = vmatprep.mubr.bf16.mxu1 %v13133_v2 }
 0x1b0   :  { %2391 = vmatmul.mubr.bf16.gmra.mrb[100].mxu0 %v13141_v60 }
 0x1b1   :  { %2398 = vmatprep.mubr.bf16.mxu0 %v1667_v5  ;;  %v1740_v5 = vpack.c.bf16 %v12925_v7, %v13152_v28 }
 0x1b5   :  { %2302 = vmatmul.mubr.bf16.gmra.mrb[88].mxu1 %v13144_v52 }
 0x1b6   :  { %2309 = vmatprep.mubr.bf16.mxu1 %v13150_v23 }
 0x1b8   :  { %2399 = vmatmul.mubr.bf16.gmra.mrb[104].mxu0 %v13160_v35 }
 0x1b9   :  { %2406 = vmatprep.mubr.bf16.mxu0 %v1668_v8 }
 0x1bd   :  { %2310 = vmatmul.mubr.bf16.gmra.mrb[92].mxu1 %v13164_v24 }
 0x1be   :  { %2447 = vmatprep.mubr.bf16.mxu1 %v1709_v6 }
 0x1c0   :  { %2407 = vmatmul.mubr.bf16.gmra.mrb[108].mxu0 %v13175_v25 }
 0x1c1   :  { %2544 = vmatprep.mubr.bf16.mxu0 %v12936_v47  ;;  %v1686_v47 = vpack.c.bf16 %v12900_v58, %v12893_v62 }
 0x1c5   :  { %2448 = vmatmul.mubr.bf16.vlgmr.msra.gmra.mrb[96].mxu1 %v1685_v34 }
 0x1c6   :  { %2455 = vmatprep.mubr.bf16.mxu1 %v1710_v30  ;;  %11350 = vmatpush3.bf16.msra.mxu1 %v11646_v44  ;;  %v1687_v44 = vpack.c.bf16 %v12923_v11, %v12913_v14 }
 0x1c7   :  { %11351 = vmatprep.subr.bf16.mxu1 %v11647_v46 }
 0x1c8   :  { %2545 = vmatmul.mubr.bf16.vlgmr.msra.gmra.mrb[112].mxu0 %v12973_v18  ;;  %v11650_v18 = vld [vmem:[%s16463_s3 + $0x220] sm:$0xff]  }
 0x1c9   :  { %2552 = vmatprep.mubr.bf16.mxu0 %v12986_v45  ;;  %v1700_v45 = vld [vmem:[#allocation2 + $0x82] sm:$0xff] }
 0x1ca   :  { %11352 = vmatpush3.bf16.msra.mxu1 %v11647_v46  ;;  %v1712_v15 = vpack.c.bf16 %v1700_v45, %v13096_v49  ;;  %v11653_v49 = vld [vmem:[%s16463_s3 + $0x238] sm:$0xff]  }
 0x1cb   :  { %11353 = vmatprep.subr.bf16.mxu1 %v11648_v1 }
 0x1cd   :  { %2456 = vmatmul.mubr.bf16.gmra.mrb[100].mxu1 %v1686_v47 }
 0x1ce   :  { %2463 = vmatprep.mubr.bf16.mxu1 %v1711_v36  ;;  %11354 = vmatpush3.bf16.msra.mxu1 %v11648_v1 }
 0x1cf   :  { %11355 = vmatprep.subr.bf16.mxu1 %v11649_v3 }
 0x1d0   :  { %2553 = vmatmul.mubr.bf16.gmra.mrb[116].mxu0 %v13034_v32  ;;  %v1760_v32 = vpack.c.bf16 %v1748_v50, %v12917_v56 }
 0x1d1   :  { %2560 = vmatprep.mubr.bf16.mxu0 %v13047_v39  ;;  %v11652_v39 = vld [vmem:[%s16463_s3 + $0x230] sm:$0xff]  }
 0x1d2   :  { %11356 = vmatpush3.bf16.msra.mxu1 %v11649_v3 }
 0x1d3   :  { %11357 = vmatprep.subr.bf16.mxu1 %v11650_v18 }
 0x1d5   :  { %2464 = vmatmul.mubr.bf16.gmra.mrb[104].mxu1 %v1687_v44 }
 0x1d6   :  { %2471 = vmatprep.mubr.bf16.mxu1 %v1712_v15  ;;  %11358 = vmatpush3.bf16.msra.mxu1 %v11650_v18 }
 0x1d7   :  { %11359 = vmatprep.subr.bf16.mxu1 %v11651_v27 }
 0x1d8   :  { %2561 = vmatmul.mubr.bf16.gmra.mrb[120].mxu0 %v13081_v12  ;;  %v1689_v12 = vpack.c.bf16 %v12971_v21, %v12961_v9 }
 0x1d9   :  { %2568 = vmatprep.mubr.bf16.mxu0 %v1760_v32 }
 0x1da   :  { %11360 = vmatpush3.bf16.msra.mxu1 %v11651_v27 }
 0x1db   :  { %11361 = vmatprep.subr.bf16.mxu1 %v11652_v39 }
 0x1dd   :  { %2472 = vmatmul.mubr.bf16.gmra.mrb[108].mxu1 %v1688_v4 }
 0x1de   :  { %2479 = vmatprep.mubr.bf16.mxu1 %v1713_v29  ;;  %11362 = vmatpush3.bf16.msra.mxu1 %v11652_v39 }
 0x1df   :  { %11363 = vmatprep.subr.bf16.mxu1 %v11653_v49 }
 0x1e0   :  { %2569 = vmatmul.mubr.bf16.gmra.mrb[124].mxu0 %v1736_v42 }
 0x1e1   :  { %2576 = vmatprep.mubr.bf16.mxu0 %v13123_v41  ;;  %v1708_v41 = vld [vmem:[#allocation2 + $0x122] sm:$0xff] }
 0x1e2   :  { %11364 = vmatpush3.bf16.msra.mxu1 %v11653_v49 }
 0x1e5   :  { %2480 = vmatmul.mubr.bf16.gmra.mrb[112].mxu1 %v1689_v12 }
 0x1e6   :  { %2487 = vmatprep.mubr.bf16.mxu1 %v1714_v53 }
 0x1e8   :  { %2577 = vmatmul.mubr.bf16.gmra.mrb[128].mxu0 %v13127_v0  ;;  %v1716_v0 = vpack.c.bf16 %v1708_v41, %v13171_v54 }
 0x1e9   :  { %2584 = vmatprep.mubr.bf16.mxu0 %v13133_v2  ;;  %v1764_v2 = vpack.c.bf16 %v1756_v55, %v13025_v48 }
 0x1ed   :  { %2488 = vmatmul.mubr.bf16.gmra.mrb[116].mxu1 %v1690_v37 }
 0x1ee   :  { %2495 = vmatprep.mubr.bf16.mxu1 %v1715_v22 }
 0x1f0   :  { %2585 = vmatmul.mubr.bf16.gmra.mrb[132].mxu0 %v13144_v52  ;;  %v1772_v52 = vld [vmem:[#allocation2 + $0x92] sm:$0xff] }
 0x1f1   :  { %2592 = vmatprep.mubr.bf16.mxu0 %v13150_v23  ;;  %v1784_v10 = vpack.c.bf16 %v1772_v52, %v1700_v45  ;;  %v1780_v23 = vld [vmem:[#allocation2 + $0x132] sm:$0xff] }
 0x1f2   :  { %v1788_v38 = vpack.c.bf16 %v1780_v23, %v1708_v41 }
 0x1f5   :  { %2496 = vmatmul.mubr.bf16.gmra.mrb[120].mxu1 %v1691_v43 }
 0x1f6   :  { %2503 = vmatprep.mubr.bf16.mxu1 %v1716_v0 }
 0x1f8   :  { %2593 = vmatmul.mubr.bf16.gmra.mrb[136].mxu0 %v13164_v24 }
 0x1f9   :  { %2600 = vmatprep.mubr.bf16.mxu0 %v1764_v2 }
 0x1fd   :  { %2504 = vmatmul.mubr.bf16.gmra.mrb[124].mxu1 %v1692_v63 }
 0x1fe   :  { %11365 = vmatprep.mubr.bf16.mxu1 %v13001_v51 }
 0x200   :  { %2601 = vmatmul.mubr.bf16.gmra.mrb[140].mxu0 %v1740_v5 }
 0x205   :  { %11366 = vmatmul.mubr.bf16.vlgmr.msra.gmra.mrb[128].mxu1 %v13061_v19 }
 0x206   :  { %11369 = vmatprep.mubr.bf16.mxu1 %v13100_v59 }
 0x20d   :  { %11370 = vmatmul.mubr.bf16.gmra.mrb[132].mxu1 %v1784_v10 }
 0x20e   :  { %11373 = vmatprep.mubr.bf16.mxu1 %v13141_v60 }
 0x215   :  { %11374 = vmatmul.mubr.bf16.gmra.mrb[136].mxu1 %v13160_v35 }
 0x216   :  { %11377 = vmatprep.mubr.bf16.mxu1 %v13175_v25 }
 0x21d   :  { %11378 = vmatmul.mubr.bf16.gmra.mrb[140].mxu1 %v1788_v38 }
 0x258   :  { %v9973_v51 = vpop.f32.mrb[64].mxu1 }
 0x259   :  { %v9974_v13 = vpop.f32.mrb[65].mxu1 }
 0x25a   :  { %v9975_v7 = vadd.f32 %v9974_v13, %v9973_v51  ;;  %v9976_v28 = vpop.f32.mrb[66].mxu1 }
 0x25b   :  { %v10037_v8 = vpop.f32.mrb[80].mxu0  ;;  %v9977_v19 = vpop.f32.mrb[67].mxu1 }
 0x25c   :  { %v9978_v24 = vadd.f32 %v9977_v19, %v9976_v28  ;;  %v10038_v59 = vpop.f32.mrb[81].mxu0 }
 0x25d   :  { %v10039_v20 = vadd.f32 %v10038_v59, %v10037_v8  ;;  %v10040_v6 = vpop.f32.mrb[82].mxu0 }
 0x25e   :  { %v10041_v54 = vpop.f32.mrb[83].mxu0 }
 0x25f   :  { %v13251_v34 = vadd.f32 %v10039_v20, %v9975_v7  ;;  %v10042_v60 = vadd.f32 %v10041_v54, %v10040_v6 }
 0x260   :  { %v9979_v35 = vpop.f32.mrb[68].mxu1 }
 0x261   :  { %v13253_v46 = vadd.f32 %v10042_v60, %v9978_v24  ;;  %v9980_v25 = vpop.f32.mrb[69].mxu1 }
 0x262   :  { %v9981_v30 = vadd.f32 %v9980_v25, %v9979_v35  ;;  %v9982_v1 = vpop.f32.mrb[70].mxu1 }
 0x263   :  { %v10043_v47 = vpop.f32.mrb[84].mxu0  ;;  %v9983_v3 = vpop.f32.mrb[71].mxu1 }
 0x264   :  { %v9984_v36 = vadd.f32 %v9983_v3, %v9982_v1  ;;  %v10044_v18 = vpop.f32.mrb[85].mxu0 }
 0x265   :  { %v10045_v45 = vadd.f32 %v10044_v18, %v10043_v47  ;;  %v10046_v44 = vpop.f32.mrb[86].mxu0 }
 0x266   :  { %v10047_v27 = vpop.f32.mrb[87].mxu0 }
 0x267   :  { %v13255_v15 = vadd.f32 %v10045_v45, %v9981_v30  ;;  %v10048_v50 = vadd.f32 %v10047_v27, %v10046_v44 }
 0x268   :  { %v9985_v32 = vpop.f32.mrb[72].mxu1 }
 0x269   :  { %v13257_v39 = vadd.f32 %v10048_v50, %v9984_v36  ;;  %v9986_v4 = vpop.f32.mrb[73].mxu1 }
 0x26a   :  { %v9987_v49 = vadd.f32 %v9986_v4, %v9985_v32  ;;  %v9988_v29 = vpop.f32.mrb[74].mxu1 }
 0x26b   :  { %v10049_v42 = vpop.f32.mrb[88].mxu0  ;;  %v9989_v12 = vpop.f32.mrb[75].mxu1 }
 0x26c   :  { %v9990_v53 = vadd.f32 %v9989_v12, %v9988_v29  ;;  %v10050_v37 = vpop.f32.mrb[89].mxu0 }
 0x26d   :  { %v10051_v22 = vadd.f32 %v10050_v37, %v10049_v42  ;;  %v10052_v41 = vpop.f32.mrb[90].mxu0 }
 0x26e   :  { %v10053_v43 = vpop.f32.mrb[91].mxu0 }
 0x26f   :  { %v13259_v0 = vadd.f32 %v10051_v22, %v9987_v49  ;;  %v10054_v55 = vadd.f32 %v10053_v43, %v10052_v41 }
 0x270   :  { %v9991_v2 = vpop.f32.mrb[76].mxu1 }
 0x271   :  { %v13261_v63 = vadd.f32 %v10054_v55, %v9990_v53  ;;  %v9992_v5 = vpop.f32.mrb[77].mxu1 }
 0x272   :  { %v9993_v52 = vadd.f32 %v9992_v5, %v9991_v2  ;;  %v9994_v10 = vpop.f32.mrb[78].mxu1 }
 0x273   :  { %v10055_v23 = vpop.f32.mrb[92].mxu0  ;;  %v9995_v38 = vpop.f32.mrb[79].mxu1 }
 0x274   :  { %v9996_v51 = vadd.f32 %v9995_v38, %v9994_v10  ;;  %v10056_v13 = vpop.f32.mrb[93].mxu0 }
 0x275   :  { %v10057_v7 = vadd.f32 %v10056_v13, %v10055_v23  ;;  %v10058_v28 = vpop.f32.mrb[94].mxu0 }
 0x276   :  { %v10059_v8 = vpop.f32.mrb[95].mxu0 }
 0x277   :  { %v13263_v19 = vadd.f32 %v10057_v7, %v9993_v52  ;;  %v10060_v24 = vadd.f32 %v10059_v8, %v10058_v28 }
 0x278   :  { %v9997_v59 = vpop.f32.mrb[80].mxu1 }
 0x279   :  { %v13265_v20 = vadd.f32 %v10060_v24, %v9996_v51  ;;  %v9998_v6 = vpop.f32.mrb[81].mxu1 }
 0x27a   :  { %v9999_v54 = vadd.f32 %v9998_v6, %v9997_v59  ;;  %v10000_v60 = vpop.f32.mrb[82].mxu1 }
 0x27b   :  { %v10061_v35 = vpop.f32.mrb[96].mxu0  ;;  %v10001_v25 = vpop.f32.mrb[83].mxu1 }
 0x27c   :  { %v10002_v30 = vadd.f32 %v10001_v25, %v10000_v60  ;;  %v10062_v1 = vpop.f32.mrb[97].mxu0 }
 0x27d   :  { %v10063_v47 = vadd.f32 %v10062_v1, %v10061_v35  ;;  %v10064_v3 = vpop.f32.mrb[98].mxu0 }
 0x27e   :  { %v10065_v36 = vpop.f32.mrb[99].mxu0 }
 0x27f   :  { %v13267_v18 = vadd.f32 %v10063_v47, %v9999_v54  ;;  %v10066_v45 = vadd.f32 %v10065_v36, %v10064_v3 }
 0x280   :  { %v10003_v44 = vpop.f32.mrb[84].mxu1 }
 0x281   :  { %v13269_v27 = vadd.f32 %v10066_v45, %v10002_v30  ;;  %v10004_v50 = vpop.f32.mrb[85].mxu1 }
 0x282   :  { %v10005_v32 = vadd.f32 %v10004_v50, %v10003_v44  ;;  %v10006_v4 = vpop.f32.mrb[86].mxu1 }
 0x283   :  { %v10067_v49 = vpop.f32.mrb[100].mxu0  ;;  %v10007_v29 = vpop.f32.mrb[87].mxu1 }
 0x284   :  { %v10008_v42 = vadd.f32 %v10007_v29, %v10006_v4  ;;  %v10068_v12 = vpop.f32.mrb[101].mxu0 }
 0x285   :  { %v10069_v53 = vadd.f32 %v10068_v12, %v10067_v49  ;;  %v10070_v37 = vpop.f32.mrb[102].mxu0 }
 0x286   :  { %v10071_v22 = vpop.f32.mrb[103].mxu0 }
 0x287   :  { %v13271_v41 = vadd.f32 %v10069_v53, %v10005_v32  ;;  %v10072_v43 = vadd.f32 %v10071_v22, %v10070_v37 }
 0x288   :  { %v10009_v55 = vpop.f32.mrb[88].mxu1 }
 0x289   :  { %v13273_v2 = vadd.f32 %v10072_v43, %v10008_v42  ;;  %v10010_v5 = vpop.f32.mrb[89].mxu1 }
 0x28a   :  { %v10011_v52 = vadd.f32 %v10010_v5, %v10009_v55  ;;  %v10012_v10 = vpop.f32.mrb[90].mxu1 }
 0x28b   :  { %v10073_v23 = vpop.f32.mrb[104].mxu0  ;;  %v10013_v38 = vpop.f32.mrb[91].mxu1 }
 0x28c   :  { %v10014_v51 = vadd.f32 %v10013_v38, %v10012_v10  ;;  %v10074_v13 = vpop.f32.mrb[105].mxu0 }
 0x28d   :  { %v10075_v7 = vadd.f32 %v10074_v13, %v10073_v23  ;;  %v10076_v28 = vpop.f32.mrb[106].mxu0 }
 0x28e   :  { %v10077_v8 = vpop.f32.mrb[107].mxu0 }
 0x28f   :  { %v13275_v24 = vadd.f32 %v10075_v7, %v10011_v52  ;;  %v10078_v59 = vadd.f32 %v10077_v8, %v10076_v28 }
 0x290   :  { %v10015_v6 = vpop.f32.mrb[92].mxu1 }
 0x291   :  { %v13277_v54 = vadd.f32 %v10078_v59, %v10014_v51  ;;  %v10016_v60 = vpop.f32.mrb[93].mxu1 }
 0x292   :  { %v10017_v35 = vadd.f32 %v10016_v60, %v10015_v6  ;;  %v10018_v25 = vpop.f32.mrb[94].mxu1 }
 0x293   :  { %v10079_v30 = vpop.f32.mrb[108].mxu0  ;;  %v10019_v1 = vpop.f32.mrb[95].mxu1 }
 0x294   :  { %v10020_v47 = vadd.f32 %v10019_v1, %v10018_v25  ;;  %v10080_v3 = vpop.f32.mrb[109].mxu0 }
 0x295   :  { %v10081_v36 = vadd.f32 %v10080_v3, %v10079_v30  ;;  %v10082_v45 = vpop.f32.mrb[110].mxu0 }
 0x296   :  { %v10083_v44 = vpop.f32.mrb[111].mxu0 }
 0x297   :  { %v13279_v50 = vadd.f32 %v10081_v36, %v10017_v35  ;;  %v10084_v32 = vadd.f32 %v10083_v44, %v10082_v45 }
 0x298   :  { %v10101_v4 = vpop.f32.mrb[96].mxu1 }
 0x299   :  { %v13281_v49 = vadd.f32 %v10084_v32, %v10020_v47  ;;  %v10102_v29 = vpop.f32.mrb[97].mxu1 }
 0x29a   :  { %v10103_v42 = vadd.f32 %v10102_v29, %v10101_v4  ;;  %v10104_v12 = vpop.f32.mrb[98].mxu1 }
 0x29b   :  { %v10165_v53 = vpop.f32.mrb[112].mxu0  ;;  %v10105_v37 = vpop.f32.mrb[99].mxu1 }
 0x29c   :  { %v2450_v22 = vadd.f32 %v10103_v42, %v13251_v34  ;;  %v10106_v43 = vadd.f32 %v10105_v37, %v10104_v12  ;;  %v10166_v55 = vpop.f32.mrb[113].mxu0 }
 0x29d   :  { %v10167_v5 = vadd.f32 %v10166_v55, %v10165_v53  ;;  %v10168_v52 = vpop.f32.mrb[114].mxu0 }
 0x29e   :  { %v2453_v10 = vadd.f32 %v10106_v43, %v13253_v46  ;;  %v10169_v23 = vpop.f32.mrb[115].mxu0 }
 0x29f   :  { %v10170_v38 = vadd.f32 %v10169_v23, %v10168_v52  ;;  %v13285_v51 = vadd.f32 %v10167_v5, %v2450_v22 }
 0x2a0   :  { %v10107_v13 = vpop.f32.mrb[100].mxu1 }
 0x2a1   :  { %v10108_v7 = vpop.f32.mrb[101].mxu1  ;;  %v13287_v28 = vadd.f32 %v10170_v38, %v2453_v10  ;;  %v11654_v10 = vld [vmem:[%s16465_s6 + $0x40] sm:$0xff]  }
 0x2a2   :  { %v10109_v8 = vadd.f32 %v10108_v7, %v10107_v13  ;;  %v10110_v59 = vpop.f32.mrb[102].mxu1  ;;  %v11655_v38 = vld [vmem:[%s16465_s6] sm:$0xff]   ;;  %10229 = vmatprep.subr.bf16.mxu0 %v11654_v10  ;;  %v11660_v10 = vld [vmem:[%s16465_s6 + $0x58] sm:$0xff]  }
 0x2a3   :  { %v10171_v6 = vpop.f32.mrb[116].mxu0  ;;  %v10111_v60 = vpop.f32.mrb[103].mxu1  ;;  %10230 = vmatpush3.bf16.msra.mxu0 %v11655_v38 }
 0x2a4   :  { %v2458_v34 = vadd.f32 %v10109_v8, %v13255_v15  ;;  %v10112_v35 = vadd.f32 %v10111_v60, %v10110_v59  ;;  %v10172_v25 = vpop.f32.mrb[117].mxu0  ;;  %v11665_v59 = vld [vmem:[%s16465_s6 + $0x80] sm:$0xff]  }
 0x2a5   :  { %v10173_v30 = vadd.f32 %v10172_v25, %v10171_v6  ;;  %v10174_v1 = vpop.f32.mrb[118].mxu0 }
 0x2a6   :  { %v2461_v46 = vadd.f32 %v10112_v35, %v13257_v39  ;;  %v10175_v47 = vpop.f32.mrb[119].mxu0 }
 0x2a7   :  { %v10176_v3 = vadd.f32 %v10175_v47, %v10174_v1  ;;  %v13291_v36 = vadd.f32 %v10173_v30, %v2458_v34  ;;  %v11656_v34 = vld [vmem:[%s16465_s6 + $0x48] sm:$0xff]  }
 0x2a8   :  { %v10113_v45 = vpop.f32.mrb[104].mxu1  ;;  %v11657_v1 = vld [vmem:[%s16465_s6 + $0x8] sm:$0xff]   ;;  %10231 = vmatprep.subr.bf16.mxu0 %v11656_v34 }
 0x2a9   :  { %v10114_v44 = vpop.f32.mrb[105].mxu1  ;;  %v13293_v32 = vadd.f32 %v10176_v3, %v2461_v46  ;;  %v11666_v3 = vld [vmem:[%s16465_s6 + $0xc8] sm:$0xff]   ;;  %10232 = vmatpush3.bf16.msra.mxu0 %v11657_v1  ;;  %v11664_v1 = vld [vmem:[%s16465_s6 + $0x20] sm:$0xff]  }
 0x2aa   :  { %v10115_v4 = vadd.f32 %v10114_v44, %v10113_v45  ;;  %v10116_v29 = vpop.f32.mrb[106].mxu1 }
 0x2ab   :  { %v10177_v42 = vpop.f32.mrb[120].mxu0  ;;  %v10117_v12 = vpop.f32.mrb[107].mxu1 }
 0x2ac   :  { %v2466_v15 = vadd.f32 %v10115_v4, %v13259_v0  ;;  %v10118_v53 = vadd.f32 %v10117_v12, %v10116_v29  ;;  %v10178_v37 = vpop.f32.mrb[121].mxu0 }
 0x2ad   :  { %v10179_v22 = vadd.f32 %v10178_v37, %v10177_v42  ;;  %v10180_v43 = vpop.f32.mrb[122].mxu0  ;;  %v11658_v42 = vld [vmem:[%s16465_s6 + $0x50] sm:$0xff]  }
 0x2ae   :  { %v2469_v39 = vadd.f32 %v10118_v53, %v13261_v63  ;;  %v10181_v55 = vpop.f32.mrb[123].mxu0  ;;  %v11663_v63 = vld [vmem:[%s16465_s6 + $0xc0] sm:$0xff]   ;;  %10233 = vmatprep.subr.bf16.mxu0 %v11658_v42  ;;  %v11669_v37 = vld [vmem:[%s16465_s6 + $0xd0] sm:$0xff]   ;;  %v11668_v42 = vld [vmem:[%s16465_s6 + $0x68] sm:$0xff]  }
 0x2af   :  { %v10182_v5 = vadd.f32 %v10181_v55, %v10180_v43  ;;  %v13297_v52 = vadd.f32 %v10179_v22, %v2466_v15  ;;  %10293 = vmatprep.subr.bf16.mxu1 %v11663_v63  ;;  %v11659_v15 = vld [vmem:[%s16465_s6 + $0x10] sm:$0xff]   ;;  %v11661_v63 = vld [vmem:[%s16465_s6 + $0x18] sm:$0xff]  }
 0x2b0   :  { %v10119_v23 = vpop.f32.mrb[108].mxu1  ;;  %10294 = vmatpush3.bf16.msra.mxu1 %v11665_v59  ;;  %10234 = vmatpush3.bf16.msra.mxu0 %v11659_v15  ;;  %v11672_v59 = vld [vmem:[%s16465_s6 + $0xd8] sm:$0xff]  }
 0x2b1   :  { %v10120_v0 = vpop.f32.mrb[109].mxu1  ;;  %v13305_v13 = vadd.f32 %v10182_v5, %v2469_v39  ;;  %10295 = vmatprep.subr.bf16.mxu1 %v11666_v3  ;;  %v11671_v39 = vld [vmem:[%s16465_s6 + $0x90] sm:$0xff]   ;;  %10235 = vmatprep.subr.bf16.mxu0 %v11660_v10 }
 0x2b2   :  { %v10121_v7 = vadd.f32 %v10120_v0, %v10119_v23  ;;  %v10122_v8 = vpop.f32.mrb[110].mxu1 }
 0x2b3   :  { %v10183_v6 = vpop.f32.mrb[124].mxu0  ;;  %v10123_v60 = vpop.f32.mrb[111].mxu1 }
 0x2b4   :  { %v2474_v35 = vadd.f32 %v10121_v7, %v13263_v19  ;;  %v10124_v25 = vadd.f32 %v10123_v60, %v10122_v8  ;;  %v10184_v30 = vpop.f32.mrb[125].mxu0  ;;  %v11667_v19 = vld [vmem:[%s16465_s6 + $0x88] sm:$0xff]   ;;  %10236 = vmatpush3.bf16.msra.mxu0 %v11661_v63 }
 0x2b5   :  { %v10185_v46 = vadd.f32 %v10184_v30, %v10183_v6  ;;  %v10186_v47 = vpop.f32.mrb[126].mxu0  ;;  %10296 = vmatpush3.bf16.msra.mxu1 %v11667_v19 }
 0x2b6   :  { %v2477_v45 = vadd.f32 %v10124_v25, %v13265_v20  ;;  %v10187_v44 = vpop.f32.mrb[127].mxu0  ;;  %10297 = vmatprep.subr.bf16.mxu1 %v11669_v37  ;;  %v11662_v25 = vld [vmem:[%s16465_s6 + $0x60] sm:$0xff]   ;;  %v11670_v37 = vld [vmem:[%s16465_s6 + $0x28] sm:$0xff]  }
 0x2b7   :  { %v10188_v4 = vadd.f32 %v10187_v44, %v10186_v47  ;;  %v13327_v29 = vadd.f32 %v10185_v46, %v2474_v35  ;;  %10237 = vmatprep.subr.bf16.mxu0 %v11662_v25  ;;  %v11675_v47 = vld [vmem:[%s16465_s6 + $0xe0] sm:$0xff]  }
 0x2b8   :  { %v10125_v12 = vpop.f32.mrb[112].mxu1  ;;  %10238 = vmatpush3.bf16.msra.mxu0 %v11664_v1  ;;  %v11677_v44 = vld [vmem:[%s16465_s6 + $0xa0] sm:$0xff]  }
 0x2b9   :  { %v10126_v20 = vpop.f32.mrb[113].mxu1  ;;  %v13335_v53 = vadd.f32 %v10188_v4, %v2477_v45  ;;  %10298 = vmatpush3.bf16.msra.mxu1 %v11671_v39  ;;  %10239 = vmatprep.subr.bf16.mxu0 %v11668_v42  ;;  %v11678_v39 = vld [vmem:[%s16465_s6 + $0xe8] sm:$0xff]  }
 0x2ba   :  { %v10127_v22 = vadd.f32 %v10126_v20, %v10125_v12  ;;  %v10128_v43 = vpop.f32.mrb[114].mxu1  ;;  %10299 = vmatprep.subr.bf16.mxu1 %v11672_v59  ;;  %v11681_v59 = vld [vmem:[%s16465_s6 + $0xf0] sm:$0xff]  }
 0x2bb   :  { %v10189_v55 = vpop.f32.mrb[128].mxu0  ;;  %v10129_v5 = vpop.f32.mrb[115].mxu1 }
 0x2bc   :  { %v2482_v23 = vadd.f32 %v10127_v22, %v13267_v18  ;;  %v10130_v38 = vadd.f32 %v10129_v5, %v10128_v43  ;;  %v10190_v0 = vpop.f32.mrb[129].mxu0  ;;  %v11673_v18 = vld [vmem:[%s16465_s6 + $0x98] sm:$0xff]   ;;  %10240 = vmatpush3.bf16.msra.mxu0 %v11670_v37 }
 0x2bd   :  { %v10191_v7 = vadd.f32 %v10190_v0, %v10189_v55  ;;  %v10192_v8 = vpop.f32.mrb[130].mxu0  ;;  %10300 = vmatpush3.bf16.msra.mxu1 %v11673_v18  ;;  %v11676_v0 = vld [vmem:[%s16465_s6 + $0x30] sm:$0xff]   ;;  %v11682_v18 = vld [vmem:[%s16465_s6 + $0x38] sm:$0xff]  }
 0x2be   :  { %v2485_v6 = vadd.f32 %v10130_v38, %v13269_v27  ;;  %v10193_v60 = vpop.f32.mrb[131].mxu0  ;;  %10301 = vmatprep.subr.bf16.mxu1 %v11675_v47  ;;  %v11674_v38 = vld [vmem:[%s16465_s6 + $0x70] sm:$0xff]  }
 0x2bf   :  { %v10194_v34 = vadd.f32 %v10193_v60, %v10192_v8  ;;  %v13357_v35 = vadd.f32 %v10191_v7, %v2482_v23  ;;  %10241 = vmatprep.subr.bf16.mxu0 %v11674_v38  ;;  %v11683_v47 = vld [vmem:[%s16465_s6 + $0xb0] sm:$0xff]  }
 0x2c0   :  { %v10131_v30 = vpop.f32.mrb[116].mxu1  ;;  %10242 = vmatpush3.bf16.msra.mxu0 %v11676_v0 }
 0x2c1   :  { %v10132_v27 = vpop.f32.mrb[117].mxu1  ;;  %v13365_v46 = vadd.f32 %v10194_v34, %v2485_v6  ;;  %10302 = vmatpush3.bf16.msra.mxu1 %v11677_v44  ;;  %v11684_v44 = vld [vmem:[%s16465_s6 + $0xf8] sm:$0xff]  }
 0x2c2   :  { %v10133_v3 = vadd.f32 %v10132_v27, %v10131_v30  ;;  %v10134_v45 = vpop.f32.mrb[118].mxu1  ;;  %10303 = vmatprep.subr.bf16.mxu1 %v11678_v39 }
 0x2c3   :  { %v10195_v19 = vpop.f32.mrb[132].mxu0  ;;  %v10135_v4 = vpop.f32.mrb[119].mxu1 }
 0x2c4   :  { %v2490_v12 = vadd.f32 %v10133_v3, %v13271_v41  ;;  %v10136_v15 = vadd.f32 %v10135_v4, %v10134_v45  ;;  %v10196_v20 = vpop.f32.mrb[133].mxu0  ;;  %v11679_v41 = vld [vmem:[%s16465_s6 + $0xa8] sm:$0xff]  }
 0x2c5   :  { %v10197_v22 = vadd.f32 %v10196_v20, %v10195_v19  ;;  %v10198_v43 = vpop.f32.mrb[134].mxu0  ;;  %10304 = vmatpush3.bf16.msra.mxu1 %v11679_v41 }
 0x2c6   :  { %v2493_v55 = vadd.f32 %v10136_v15, %v13273_v2  ;;  %v10199_v5 = vpop.f32.mrb[135].mxu0  ;;  %v11680_v2 = vld [vmem:[%s16465_s6 + $0x78] sm:$0xff]   ;;  %10305 = vmatprep.subr.bf16.mxu1 %v11681_v59 }
 0x2c7   :  { %v10200_v10 = vadd.f32 %v10199_v5, %v10198_v43  ;;  %v13387_v23 = vadd.f32 %v10197_v22, %v2490_v12  ;;  %10243 = vmatprep.subr.bf16.mxu0 %v11680_v2 }
 0x2c8   :  { %v10137_v63 = vpop.f32.mrb[120].mxu1  ;;  %10244 = vmatpush3.bf16.msra.mxu0 %v11682_v18 }
 0x2c9   :  { %v10138_v7 = vpop.f32.mrb[121].mxu1  ;;  %v13398_v8 = vadd.f32 %v10200_v10, %v2493_v55  ;;  %10306 = vmatpush3.bf16.msra.mxu1 %v11683_v47  ;;  %v11686_v55 = vld [vmem:[%s16465_s6 + $0x140] sm:$0xff]  }
 0x2ca   :  { %v10139_v6 = vadd.f32 %v10138_v7, %v10137_v63  ;;  %v10140_v60 = vpop.f32.mrb[122].mxu1  ;;  %10307 = vmatprep.subr.bf16.mxu1 %v11684_v44  ;;  %10357 = vmatprep.subr.bf16.mxu0 %v11686_v55 }
 0x2cb   :  { %v10201_v34 = vpop.f32.mrb[136].mxu0  ;;  %v10141_v25 = vpop.f32.mrb[123].mxu1 }
 0x2cc   :  { %v2498_v30 = vadd.f32 %v10139_v6, %v13275_v24  ;;  %v10142_v1 = vadd.f32 %v10141_v25, %v10140_v60  ;;  %v10202_v27 = vpop.f32.mrb[137].mxu0  ;;  %v11685_v24 = vld [vmem:[%s16465_s6 + $0xb8] sm:$0xff]  }
 0x2cd   :  { %v10203_v3 = vadd.f32 %v10202_v27, %v10201_v34  ;;  %v10204_v45 = vpop.f32.mrb[138].mxu0  ;;  %10308 = vmatpush3.bf16.msra.mxu1 %v11685_v24 }
 0x2ce   :  { %v2501_v19 = vadd.f32 %v10142_v1, %v13277_v54  ;;  %v10205_v4 = vpop.f32.mrb[139].mxu0 }
 0x2cf   :  { %v10206_v42 = vadd.f32 %v10205_v4, %v10204_v45  ;;  %v13417_v12 = vadd.f32 %v10203_v3, %v2498_v30 }
 0x2d0   :  { %v10143_v15 = vpop.f32.mrb[124].mxu1 }
 0x2d1   :  { %v10144_v20 = vpop.f32.mrb[125].mxu1  ;;  %v13419_v37 = vadd.f32 %v10206_v42, %v2501_v19 }
 0x2d2   :  { %v10145_v22 = vadd.f32 %v10144_v20, %v10143_v15  ;;  %v10146_v43 = vpop.f32.mrb[126].mxu1 }
 0x2d3   :  { %v10207_v39 = vpop.f32.mrb[140].mxu0  ;;  %v10147_v54 = vpop.f32.mrb[127].mxu1 }
 0x2d4   :  { %v2506_v5 = vadd.f32 %v10145_v22, %v13279_v50  ;;  %v10148_v41 = vadd.f32 %v10147_v54, %v10146_v43  ;;  %v10208_v10 = vpop.f32.mrb[141].mxu0 }
 0x2d5   :  { %v10209_v38 = vadd.f32 %v10208_v10, %v10207_v39  ;;  %v10210_v0 = vpop.f32.mrb[142].mxu0 }
 0x2d6   :  { %v2509_v63 = vadd.f32 %v10148_v41, %v13281_v49  ;;  %v10211_v2 = vpop.f32.mrb[143].mxu0 }
 0x2d7   :  { %v10212_v7 = vadd.f32 %v10211_v2, %v10210_v0  ;;  %v2603_v59 = vadd.f32 %v10209_v38, %v2506_v5 }
 0x2d8   :  { %v11367_v6 = vpop.f32.mrb[128].mxu1 }
 0x2d9   :  { %v13427_v60 = vadd.f32 %v11367_v6, %v13291_v36  ;;  %v2643_v18 = vpop.f32.mrb[129].mxu1  ;;  %v2606_v34 = vadd.f32 %v10212_v7, %v2509_v63 }
 0x2da   :  { %v13430_v25 = vadd.f32 %v2643_v18, %v13285_v51  ;;  %v11368_v50 = vpop.f32.mrb[130].mxu1 }
 0x2db   :  { %v13433_v30 = vadd.f32 %v11368_v50, %v13293_v32  ;;  %v2646_v1 = vpop.f32.mrb[131].mxu1  ;;  %v2731_v51 = vmul.f32 %v13427_v60, %v13427_v60 }
 0x2dc   :  { %v13436_v27 = vadd.f32 %v2646_v1, %v13287_v28  ;;  %v2729_v49 = vmul.f32 %v13430_v25, %v13430_v25 }
 0x2dd   :  { %v2732_v19 = vmul.f32 %v13433_v30, %v13433_v30 }
 0x2de   :  { %v2708_v36 = vadd.f32 %v13436_v27, %v13430_v25  ;;  %v2730_v47 = vmul.f32 %v13436_v27, %v13436_v27 }
 0x2e0   :  { %v2709_v3 = vadd.f32 %v2708_v36, %v13427_v60  ;;  %v2745_v32 = vadd.f32 %v2730_v47, %v2729_v49  ;;  %v11371_v45 = vpop.f32.mrb[132].mxu1 }
 0x2e1   :  { %v13448_v44 = vadd.f32 %v11371_v45, %v13327_v29  ;;  %v2659_v28 = vpop.f32.mrb[133].mxu1 }
 0x2e2   :  { %v2746_v4 = vadd.f32 %v2745_v32, %v2731_v51  ;;  %v13453_v24 = vadd.f32 %v2659_v28, %v13297_v52  ;;  %v2710_v42 = vadd.f32 %v2709_v3, %v13433_v30  ;;  %v11372_v15 = vpop.f32.mrb[134].mxu1 }
 0x2e3   :  { %v13457_v20 = vadd.f32 %v11372_v15, %v13335_v53  ;;  %v2662_v22 = vpop.f32.mrb[135].mxu1  ;;  %v2735_v53 = vmul.f32 %v13448_v44, %v13448_v44 }
 0x2e4   :  { %v2711_v43 = vadd.f32 %v2710_v42, %v13453_v24  ;;  %v2733_v29 = vmul.f32 %v13453_v24, %v13453_v24  ;;  %v2747_v39 = vadd.f32 %v2746_v4, %v2732_v19  ;;  %v13463_v54 = vadd.f32 %v2662_v22, %v13305_v13 }
 0x2e5   :  { %v2736_v13 = vmul.f32 %v13457_v20, %v13457_v20 }
 0x2e6   :  { %v2748_v55 = vadd.f32 %v2747_v39, %v2733_v29  ;;  %v2712_v52 = vadd.f32 %v2711_v43, %v13463_v54  ;;  %v2734_v5 = vmul.f32 %v13463_v54, %v13463_v54 }
 0x2e8   :  { %v2713_v41 = vadd.f32 %v2712_v52, %v13448_v44  ;;  %v2749_v10 = vadd.f32 %v2748_v55, %v2734_v5  ;;  %v11375_v38 = vpop.f32.mrb[136].mxu1  ;;  %v11695_v55 = vld [vmem:[%s16465_s6 + $0x1c0] sm:$0xff]  }
 0x2e9   :  { %v13472_v0 = vadd.f32 %v11375_v38, %v13387_v23  ;;  %v2675_v63 = vpop.f32.mrb[137].mxu1  ;;  %10421 = vmatprep.subr.bf16.mxu1 %v11695_v55 }
 0x2ea   :  { %v2750_v2 = vadd.f32 %v2749_v10, %v2735_v53  ;;  %v13477_v7 = vadd.f32 %v2675_v63, %v13357_v35  ;;  %v2714_v6 = vadd.f32 %v2713_v41, %v13457_v20  ;;  %v11376_v18 = vpop.f32.mrb[138].mxu1 }
 0x2eb   :  { %v13481_v50 = vadd.f32 %v11376_v18, %v13398_v8  ;;  %v2678_v1 = vpop.f32.mrb[139].mxu1  ;;  %v2739_v8 = vmul.f32 %v13472_v0, %v13472_v0 }
 0x2ec   :  { %v2715_v49 = vadd.f32 %v2714_v6, %v13477_v7  ;;  %v2737_v23 = vmul.f32 %v13477_v7, %v13477_v7  ;;  %v2751_v36 = vadd.f32 %v2750_v2, %v2736_v13  ;;  %v13487_v47 = vadd.f32 %v2678_v1, %v13365_v46 }
 0x2ed   :  { %v2740_v46 = vmul.f32 %v13481_v50, %v13481_v50 }
 0x2ee   :  { %v2752_v51 = vadd.f32 %v2751_v36, %v2737_v23  ;;  %v2716_v35 = vadd.f32 %v2715_v49, %v13487_v47  ;;  %v2738_v3 = vmul.f32 %v13487_v47, %v13487_v47 }
 0x2f0   :  { %v2717_v32 = vadd.f32 %v2716_v35, %v13472_v0  ;;  %v2753_v45 = vadd.f32 %v2752_v51, %v2738_v3  ;;  %v11379_v28 = vpop.f32.mrb[140].mxu1 }
 0x2f1   :  { %v13495_v19 = vadd.f32 %v11379_v28, %v2603_v59  ;;  %v2691_v4 = vpop.f32.mrb[141].mxu1 }
 0x2f2   :  { %v2754_v42 = vadd.f32 %v2753_v45, %v2739_v8  ;;  %v13500_v15 = vadd.f32 %v2691_v4, %v13417_v12  ;;  %v2718_v22 = vadd.f32 %v2717_v32, %v13481_v50  ;;  %v11380_v43 = vpop.f32.mrb[142].mxu1  ;;  %v2789_v32 = vlaneseq }
 0x2f3   :  { %v13503_v29 = vadd.f32 %v11380_v43, %v2606_v34  ;;  %v2694_v39 = vpop.f32.mrb[143].mxu1  ;;  %v2743_v10 = vmul.f32 %v13495_v19, %v13495_v19 }
 0x2f4   :  { %v2719_v59 = vadd.f32 %v2718_v22, %v13500_v15  ;;  %v2741_v52 = vmul.f32 %v13500_v15, %v13500_v15  ;;  %v2755_v5 = vadd.f32 %v2754_v42, %v2740_v46  ;;  %v13512_v53 = vadd.f32 %v2694_v39, %v13419_v37 }
 0x2f5   :  { %v2744_v13 = vmul.f32 %v13503_v29, %v13503_v29  ;;  %v2790_v42 = vshrl.u32 %v2789_v32, 7 }
 0x2f6   :  { %v2756_v12 = vadd.f32 %v2755_v5, %v2741_v52  ;;  %v2720_v41 = vadd.f32 %v2719_v59, %v13512_v53  ;;  %v2742_v34 = vmul.f32 %v13512_v53, %v13512_v53 }
 0x2f8   :  { %v2721_v38 = vadd.f32 %v2720_v41, %v13495_v19  ;;  %v2757_v63 = vadd.f32 %v2756_v12, %v2742_v34 }
 0x2fa   :  { %v2722_v2 = vadd.f32 %v2721_v38, %v13503_v29  ;;  %v2758_v37 = vadd.f32 %v2757_v63, %v2743_v10 }
 0x2fc   :  { %v2723_v6 = vrot.slane %v2722_v2, 4  ;;  %v2759_v18 = vadd.f32 %v2758_v37, %v2744_v13 }
 0x2fe   :  { %v2724_v1 = vadd.f32 %v2723_v6, %v2722_v2  ;;  %v2760_v49 = vrot.slane %v2759_v18, 4 }
 0x300   :  { %v2725_v23 = vrot.slane %v2724_v1, 2  ;;  %v2761_v36 = vadd.f32 %v2760_v49, %v2759_v18 }
 0x302   :  { %v2726_v51 = vadd.f32 %v2725_v23, %v2724_v1  ;;  %v2762_v35 = vrot.slane %v2761_v36, 2 }
 0x304   :  { %v2727_v3 = vrot.slane %v2726_v51, 1  ;;  %v2763_v8 = vadd.f32 %v2762_v35, %v2761_v36 }
 0x306   :  { %v2728_v45 = vadd.f32 %v2727_v3, %v2726_v51  ;;  %v2764_v28 = vrot.slane %v2763_v8, 1 }
 0x308   :  { %v2765_v4 = vadd.f32 %v2764_v28, %v2763_v8  ;;  %v13523_v46 = vmul.f32 0.0078125, %v2728_v45 }
 0x30a   :  { %v2767_v22 = vmul.f32 0.0078125, %v2765_v4  ;;  %v2768_v43 = vmul.f32 %v13523_v46, %v13523_v46  ;;  %v2771_v39 = vsub.f32 %v13436_v27, %v13523_v46  ;;  %v2772_v55 = vsub.f32 %v13427_v60, %v13523_v46 }
 0x30b   :  { %v2773_v59 = vsub.f32 %v13433_v30, %v13523_v46  ;;  %v2774_v52 = vsub.f32 %v13453_v24, %v13523_v46  ;;  %v2775_v5 = vsub.f32 %v13463_v54, %v13523_v46  ;;  %v2776_v12 = vsub.f32 %v13448_v44, %v13523_v46 }
 0x30c   :  { %v2769_v41 = vsub.f32 %v2767_v22, %v2768_v43  ;;  %v2779_v34 = vsub.f32 %v13487_v47, %v13523_v46  ;;  %v2780_v27 = vsub.f32 %v13472_v0, %v13523_v46  ;;  %v2781_v60 = vsub.f32 %v13481_v50, %v13523_v46 }
 0x30d   :  { %v2782_v30 = vsub.f32 %v13500_v15, %v13523_v46  ;;  %v2783_v24 = vsub.f32 %v13512_v53, %v13523_v46  ;;  %v2784_v54 = vsub.f32 %v13495_v19, %v13523_v46  ;;  %v2770_v44 = vsub.f32 %v13430_v25, %v13523_v46  ;;  %v2706_v19 = vld [vmem:[%s16466_s4] sm:$0x1] }
 0x30e   :  { %v2786_v10 = vadd.f32 1e-05, %v2769_v41  ;;  %v2777_v47 = vsub.f32 %v13457_v20, %v13523_v46  ;;  %v2778_v0 = vsub.f32 %v13477_v7, %v13523_v46  ;;  %v2785_v50 = vsub.f32 %v13503_v29, %v13523_v46  ;;  %v9036_v20 = vld [vmem:[%s16467_s5] ss:$0 sm:$0xff] }
 0x30f   :  { %v13559_v15 = vsub.s32 0, %v2790_v42 }
 0x310   :  { %11942 = vrsqrt.f32 %v2786_v10 }
 0x31a   :  { %v11943_v53 = vpop.eup %11942 }
 0x31b   :  { %v2788_v38 = vmul.f32 %v11943_v53, %v2706_v19 }
 0x31d   :  { %v2792_v25 = vrot.slane %v2788_v38, %v13559_v15 }
 0x31f   :  { %v2794_v63 = vmul.f32 %v2792_v25, %v2771_v39  ;;  %v2795_v7 = vmul.f32 %v2792_v25, %v2772_v55  ;;  %v2796_v13 = vmul.f32 %v2792_v25, %v2773_v59  ;;  %v2797_v2 = vmul.f32 %v2792_v25, %v2774_v52 }
 0x320   :  { %v2798_v29 = vmul.f32 %v2792_v25, %v2775_v5  ;;  %v2799_v37 = vmul.f32 %v2792_v25, %v2776_v12  ;;  %v2802_v6 = vmul.f32 %v2792_v25, %v2779_v34  ;;  %v2803_v18 = vmul.f32 %v2792_v25, %v2780_v27 }
 0x321   :  { %v2804_v1 = vmul.f32 %v2792_v25, %v2781_v60  ;;  %v2805_v49 = vmul.f32 %v2792_v25, %v2782_v30  ;;  %v2806_v23 = vmul.f32 %v2792_v25, %v2783_v24  ;;  %v2807_v36 = vmul.f32 %v2792_v25, %v2784_v54 }
 0x322   :  { %v13568_v51 = vadd.f32 %v9036_v20, %v2794_v63  ;;  %v13570_v35 = vadd.f32 %v9036_v20, %v2795_v7  ;;  %v13572_v3 = vadd.f32 %v9036_v20, %v2796_v13  ;;  %v13574_v8 = vadd.f32 %v9036_v20, %v2797_v2 }
 0x323   :  { %v13576_v32 = vadd.f32 %v9036_v20, %v2798_v29  ;;  %v13578_v45 = vadd.f32 %v9036_v20, %v2799_v37  ;;  %v13580_v28 = vadd.f32 %v9036_v20, %v2802_v6  ;;  %v13582_v4 = vadd.f32 %v9036_v20, %v2803_v18 }
 0x324   :  { %v13584_v46 = vadd.f32 %v9036_v20, %v2804_v1  ;;  %v2849_v42 = vmul.f32 1.442695, %v13568_v51  ;;  %v2851_v22 = vmul.f32 1.442695, %v13570_v35  ;;  %v2853_v43 = vmul.f32 1.442695, %v13572_v3 }
 0x325   :  { %v2793_v39 = vmul.f32 %v2792_v25, %v2770_v44  ;;  %v13589_v55 = vadd.f32 %v9036_v20, %v2805_v49  ;;  %v2855_v59 = vmul.f32 1.442695, %v13574_v8  ;;  %v2800_v52 = vmul.f32 %v2792_v25, %v2777_v47 }
 0x326   :  { %v13592_v5 = vadd.f32 %v9036_v20, %v2806_v23  ;;  %v13594_v12 = vadd.f32 %v9036_v20, %v2807_v36  ;;  %11944 = vpow2.f32 %v2849_v42  ;;  %v2857_v41 = vmul.f32 1.442695, %v13576_v32 }
 0x327   :  { %11946 = vpow2.f32 %v2851_v22  ;;  %v2859_v34 = vmul.f32 1.442695, %v13578_v45  ;;  %v2865_v27 = vmul.f32 1.442695, %v13580_v28  ;;  %v2867_v60 = vmul.f32 1.442695, %v13582_v4 }
 0x328   :  { %11948 = vpow2.f32 %v2853_v43  ;;  %v2869_v30 = vmul.f32 1.442695, %v13584_v46  ;;  %v2801_v24 = vmul.f32 %v2792_v25, %v2778_v0  ;;  %v13601_v54 = vadd.f32 %v9036_v20, %v2793_v39 }
 0x329   :  { %11950 = vpow2.f32 %v2855_v59  ;;  %v13603_v44 = vadd.f32 %v9036_v20, %v2800_v52  ;;  %v2808_v10 = vmul.f32 %v2792_v25, %v2785_v50  ;;  %v2871_v47 = vmul.f32 1.442695, %v13589_v55 }
 0x32a   :  { %11952 = vpow2.f32 %v2857_v41  ;;  %v2873_v19 = vmul.f32 1.442695, %v13592_v5  ;;  %v2875_v53 = vmul.f32 1.442695, %v13594_v12  ;;  %v13608_v38 = vadd.f32 %v9036_v20, %v2801_v24 }
 0x32b   :  { %11954 = vpow2.f32 %v2859_v34  ;;  %v13610_v63 = vadd.f32 %v9036_v20, %v2808_v10  ;;  %vm2832_vm0 = vcmp.gt.f32.partialorder %v13568_v51, 0.0  ;;  %vm2833_vm1 = vcmp.gt.f32.partialorder %v13570_v35, 0.0 }
 0x32c   :  { %11956 = vpow2.f32 %v2865_v27  ;;  %v2847_v0 = vmul.f32 1.442695, %v13601_v54  ;;  %v2861_v50 = vmul.f32 1.442695, %v13603_v44  ;;  %vm2834_vm2 = vcmp.gt.f32.partialorder %v13572_v3, 0.0 }
 0x32d   :  { %11958 = vpow2.f32 %v2867_v60  ;;  %v2863_v25 = vmul.f32 1.442695, %v13608_v38  ;;  %vm2835_vm3 = vcmp.gt.f32.partialorder %v13574_v8, 0.0  ;;  %v2877_v20 = vmul.f32 1.442695, %v13610_v63 }
 0x32e   :  { %11960 = vpow2.f32 %v2869_v30  ;;  %vm2836_vm4 = vcmp.gt.f32.partialorder %v13576_v32, 0.0  ;;  %vm2837_vm5 = vcmp.gt.f32.partialorder %v13578_v45, 0.0  ;;  %vm2840_vm6 = vcmp.gt.f32.partialorder %v13580_v28, 0.0 }
 0x32f   :  { %11962 = vpow2.f32 %v2871_v47  ;;  %vm2841_vm7 = vcmp.gt.f32.partialorder %v13582_v4, 0.0  ;;  %vm2842_vm8 = vcmp.gt.f32.partialorder %v13584_v46, 0.0  ;;  %vm2843_vm9 = vcmp.gt.f32.partialorder %v13589_v55, 0.0 }
 0x330   :  { %v11945_v7 = vpop.eup %11944  ;;  %11964 = vpow2.f32 %v2873_v19  ;;  %vm2844_vm10 = vcmp.gt.f32.partialorder %v13592_v5, 0.0  ;;  %vm2845_vm11 = vcmp.gt.f32.partialorder %v13594_v12, 0.0  ;;  %vm2831_vm12 = vcmp.gt.f32.partialorder %v13601_v54, 0.0 }
 0x331   :  { %v11947_v13 = vpop.eup %11946  ;;  %11966 = vpow2.f32 %v2875_v53  ;;  %v9038_v2 = vadd.f32 -1.0, %v11945_v7  ;;  %vm2838_vm13 = vcmp.gt.f32.partialorder %v13603_v44, 0.0  ;;  %vm2839_vm14 = vcmp.gt.f32.partialorder %v13608_v38, 0.0 }
 0x332   :  { %v11949_v29 = vpop.eup %11948  ;;  %v9039_v37 = vadd.f32 -1.0, %v11947_v13  ;;  %11968 = vpow2.f32 %v2847_v0  ;;  %vm2846_vm15 = vcmp.gt.f32.partialorder %v13610_v63, 0.0 }
 0x333   :  { %v11951_v6 = vpop.eup %11950  ;;  %v9040_v18 = vadd.f32 -1.0, %v11949_v29  ;;  %v2896_v1 = vmul.f32 1.6732632, %v9038_v2  ;;  %11970 = vpow2.f32 %v2861_v50 }
 0x334   :  { %v11953_v49 = vpop.eup %11952  ;;  %v9041_v23 = vadd.f32 -1.0, %v11951_v6  ;;  %v2897_v36 = vmul.f32 1.6732632, %v9039_v37  ;;  %11972 = vpow2.f32 %v2863_v25 }
 0x335   :  { %v11955_v42 = vpop.eup %11954  ;;  %v9042_v22 = vadd.f32 -1.0, %v11953_v49  ;;  %v2898_v43 = vmul.f32 1.6732632, %v9040_v18  ;;  %v2912_v39 = vsel %vm2832_vm0, %v13568_v51, %v2896_v1  ;;  %11974 = vpow2.f32 %v2877_v20 }
 0x336   :  { %v11957_v59 = vpop.eup %11956  ;;  %v9043_v52 = vadd.f32 -1.0, %v11955_v42  ;;  %v2899_v41 = vmul.f32 1.6732632, %v9041_v23  ;;  %v2913_v34 = vsel %vm2833_vm1, %v13570_v35, %v2897_v36  ;;  %v13633_v27 = vmul.f32 1.050701, %v2912_v39 }
 0x337   :  { %v11959_v60 = vpop.eup %11958  ;;  %v9046_v30 = vadd.f32 -1.0, %v11957_v59  ;;  %v2900_v24 = vmul.f32 1.6732632, %v9042_v22  ;;  %v2914_v51 = vsel %vm2834_vm2, %v13572_v3, %v2898_v43  ;;  %v13639_v10 = vmul.f32 1.050701, %v2913_v34 }
 0x338   :  { %v11961_v47 = vpop.eup %11960  ;;  %v9047_v19 = vadd.f32 -1.0, %v11959_v60  ;;  %v2901_v53 = vmul.f32 1.6732632, %v9043_v52  ;;  %v2915_v35 = vsel %vm2835_vm3, %v13574_v8, %v2899_v41  ;;  %v13644_v0 = vmul.f32 1.050701, %v2914_v51  ;;  %2944 = vst [vmem:[#allocation2 + $0x21] sm:$0xff] %v13633_v27 }
 0x339   :  { %v11963_v50 = vpop.eup %11962  ;;  %v9048_v25 = vadd.f32 -1.0, %v11961_v47  ;;  %v2904_v20 = vmul.f32 1.6732632, %v9046_v30  ;;  %v2916_v3 = vsel %vm2836_vm4, %v13576_v32, %v2900_v24  ;;  %v13651_v7 = vmul.f32 1.050701, %v2915_v35  ;;  %2945 = vst [vmem:[#allocation2 + $0x31] sm:$0xff] %v13639_v10 }
 0x33a   :  { %v11965_v13 = vpop.eup %11964  ;;  %v9049_v2 = vadd.f32 -1.0, %v11963_v50  ;;  %v2905_v8 = vmul.f32 1.6732632, %v9047_v19  ;;  %v2917_v29 = vsel %vm2837_vm5, %v13578_v45, %v2901_v53  ;;  %v13657_v37 = vmul.f32 1.050701, %v2916_v3  ;;  %2946 = vst [vmem:[#allocation2 + $0x41] sm:$0xff] %v13644_v0 }
 0x33b   :  { %v11967_v6 = vpop.eup %11966  ;;  %v9050_v18 = vadd.f32 -1.0, %v11965_v13  ;;  %v2906_v1 = vmul.f32 1.6732632, %v9048_v25  ;;  %v2920_v32 = vsel %vm2840_vm6, %v13580_v28, %v2904_v20  ;;  %v13663_v49 = vmul.f32 1.050701, %v2917_v29  ;;  %2947 = vst [vmem:[#allocation2 + $0x51] sm:$0xff] %v13651_v7 }
 0x33c   :  { %v11969_v23 = vpop.eup %11968  ;;  %v9051_v36 = vadd.f32 -1.0, %v11967_v6  ;;  %v2907_v42 = vmul.f32 1.6732632, %v9049_v2  ;;  %v2921_v45 = vsel %vm2841_vm7, %v13582_v4, %v2905_v8  ;;  %v13669_v22 = vmul.f32 1.050701, %v2920_v32  ;;  %2948 = vst [vmem:[#allocation2 + $0x61] sm:$0xff] %v13657_v37 }
 0x33d   :  { %v11971_v43 = vpop.eup %11970  ;;  %v2908_v39 = vmul.f32 1.6732632, %v9050_v18  ;;  %v2922_v28 = vsel %vm2842_vm8, %v13584_v46, %v2906_v1  ;;  %v13675_v59 = vmul.f32 1.050701, %v2921_v45  ;;  %2949 = vst [vmem:[#allocation2 + $0x71] sm:$0xff] %v13663_v49  ;;  %v9037_v52 = vadd.f32 -1.0, %v11969_v23 }
 0x33e   :  { %v11973_v41 = vpop.eup %11972  ;;  %v2909_v34 = vmul.f32 1.6732632, %v9051_v36  ;;  %v2923_v4 = vsel %vm2843_vm9, %v13589_v55, %v2907_v42  ;;  %v13681_v60 = vmul.f32 1.050701, %v2922_v28  ;;  %2952 = vst [vmem:[#allocation2 + $0xc1] sm:$0xff] %v13669_v22  ;;  %v13686_v30 = vpack.c.bf16 %v13639_v10, %v13633_v27  ;;  %v3127_v20 = vld [vmem:[#allocation2 + $0x1] sm:$0xff] }
 0x33f   :  { %v11975_v46 = vpop.eup %11974  ;;  %v2924_v24 = vsel %vm2844_vm10, %v13592_v5, %v2908_v39  ;;  %v13691_v51 = vmul.f32 1.050701, %v2923_v4  ;;  %2953 = vst [vmem:[#allocation2 + $0xd1] sm:$0xff] %v13675_v59  ;;  %v2895_v47 = vmul.f32 1.6732632, %v9037_v52  ;;  %v13696_v55 = vpack.c.bf16 %v13651_v7, %v13644_v0  ;;  %v3176_v39 = vld [vmem:[#allocation2 + $0x20] sm:$0xff] }
 0x340   :  { %v2925_v19 = vsel %vm2845_vm11, %v13594_v12, %v2909_v34  ;;  %v13701_v53 = vmul.f32 1.050701, %v2924_v24  ;;  %2954 = vst [vmem:[#allocation2 + $0xe1] sm:$0xff] %v13681_v60  ;;  %v13706_v5 = vpack.c.bf16 %v13663_v49, %v13657_v37  ;;  %v9044_v35 = vadd.f32 -1.0, %v11971_v43  ;;  %v3151_v28 = vld [vmem:[#allocation2 + $0x2] sm:$0xff] }
 0x341   :  { %v13708_v50 = vmul.f32 1.050701, %v2925_v19  ;;  %2955 = vst [vmem:[#allocation2 + $0xf1] sm:$0xff] %v13691_v51  ;;  %v2911_v25 = vsel %vm2831_vm12, %v13601_v54, %v2895_v47  ;;  %v9045_v2 = vadd.f32 -1.0, %v11973_v41  ;;  %v9052_v32 = vadd.f32 -1.0, %v11975_v46  ;;  %v3177_v41 = vld [vmem:[#allocation2 + $0x30] sm:$0xff] }
 0x342   :  { %2956 = vst [vmem:[#allocation2 + $0x101] sm:$0xff] %v13701_v53  ;;  %v13715_v12 = vmul.f32 1.050701, %v2911_v25  ;;  %v2902_v3 = vmul.f32 1.6732632, %v9044_v35  ;;  %v3178_v46 = vld [vmem:[#allocation2 + $0x40] sm:$0xff]  ;;  %v16488_v48 = vpack.c.bf16 %v13675_v59, %v13669_v22 }
 0x343   :  { %2957 = vst [vmem:[#allocation2 + $0x111] sm:$0xff] %v13708_v50  ;;  %v2903_v1 = vmul.f32 1.6732632, %v9045_v2  ;;  %v2910_v45 = vmul.f32 1.6732632, %v9052_v32  ;;  %v13750_v19 = vld [vmem:[#allocation2] sm:$0xff]  ;;  %v3192_v2 = vpack.c.bf16 %v3178_v46, %v3177_v41 }
 0x344   :  { %2943 = vst [vmem:[#allocation2 + $0x11] sm:$0xff] %v13715_v12  ;;  %v3143_v54 = vpack.c.bf16 %v13715_v12, %v3127_v20  ;;  %v2918_v29 = vsel %vm2838_vm13, %v13603_v44, %v2902_v3  ;;  %v11687_v20 = vld [vmem:[%s16465_s6 + $0x100] sm:$0xff]   ;;  %v11699_v32 = vld [vmem:[%s16465_s6 + $0x188] sm:$0xff]   ;;  %v13856_v36 = vld [vmem:[#allocation2 + $0x72] sm:$0xff] }
 0x345   :  { %v13728_v18 = vmul.f32 1.050701, %v2918_v29  ;;  %v2919_v44 = vsel %vm2839_vm14, %v13608_v38, %v2903_v1  ;;  %v2926_v34 = vsel %vm2846_vm15, %v13610_v63, %v2910_v45  ;;  %v11688_v63 = vld [vmem:[%s16465_s6 + $0x148] sm:$0xff]   ;;  %v11697_v3 = vld [vmem:[%s16465_s6 + $0x180] sm:$0xff]   ;;  %v11690_v1 = vld [vmem:[%s16465_s6 + $0x150] sm:$0xff]  }
 0x346   :  { %3783 = vmatprep.mubr.bf16.mxu0 %v3143_v54  ;;  %v13737_v42 = vmul.f32 1.050701, %v2919_v44  ;;  %v13748_v24 = vmul.f32 1.050701, %v2926_v34  ;;  %v11698_v54 = vld [vmem:[%s16465_s6 + $0x1c8] sm:$0xff]   ;;  %v13779_v45 = vld [vmem:[#allocation2 + $0x32] sm:$0xff] }
 0x347   :  { %2950 = vst [vmem:[#allocation2 + $0x81] sm:$0xff] %v13728_v18  ;;  %v11689_v29 = vld [vmem:[%s16465_s6 + $0x108] sm:$0xff]   ;;  %v3179_v34 = vld [vmem:[#allocation2 + $0x50] sm:$0xff] }
 0x348   :  { %2951 = vst [vmem:[#allocation2 + $0xb1] sm:$0xff] %v13737_v42  ;;  %2958 = vst [vmem:[#allocation2 + $0x121] sm:$0xff] %v13748_v24  ;;  %v13777_v44 = vld [vmem:[#allocation2 + $0x22] sm:$0xff]  ;;  %v3187_v17 = vld [vmem:[#allocation2 + $0xf0] sm:$0xff] }
 0x349   :  { %v11711_v52 = vld [vmem:[%s16465_s6 + $0x1a8] sm:$0xff]   ;;  %v3188_v61 = vld [vmem:[#allocation2 + $0x100] sm:$0xff]  ;;  %v13915_v59 = vld [vmem:[#allocation2 + $0xf2] sm:$0xff] }
 0x34a   :  { %v13854_v43 = vld [vmem:[#allocation2 + $0x62] sm:$0xff] }
 0x34b   :  { %v3175_v4 = vld [vmem:[#allocation2 + $0x10] sm:$0xff]  ;;  %v13868_v6 = vpack.c.bf16 %v13856_v36, %v13854_v43  ;;  %v13898_v31 = vld [vmem:[#allocation2 + $0xc2] sm:$0xff] }
 0x34c   :  { %v13746_v38 = vld [vmem:[#allocation2 + $0x12] sm:$0xff]  ;;  %v3191_v47 = vpack.c.bf16 %v3176_v39, %v3175_v4  ;;  %v3119_v35 = vpack.c.bf16 %v3175_v4, %v13750_v19  ;;  %v3180_v4 = vld [vmem:[#allocation2 + $0x60] sm:$0xff] }
 0x34d   :  { %v3167_v25 = vpack.c.bf16 %v13746_v38, %v3151_v28  ;;  %v11701_v28 = vld [vmem:[%s16465_s6 + $0x1d0] sm:$0xff]   ;;  %v13913_v22 = vld [vmem:[#allocation2 + $0xe2] sm:$0xff] }
 0x34e   :  { %3880 = vmatprep.mubr.bf16.mxu1 %v3191_v47  ;;  %3784 = vmatmul.mubr.bf16.vlgmr.msra.gmra.mrb[144].mxu0 %v3119_v35  ;;  %v13784_v47 = vpack.c.bf16 %v3177_v41, %v3176_v39  ;;  %v11691_v35 = vld [vmem:[%s16465_s6 + $0x110] sm:$0xff]   ;;  %v3193_v41 = vpack.c.bf16 %v3180_v4, %v3179_v34 }
 0x34f   :  { %3881 = vmatmul.mubr.bf16.vlgmr.msra.gmra.mrb[144].mxu1 %v3167_v25  ;;  %3791 = vmatprep.mubr.bf16.mxu0 %v13686_v30  ;;  %v13791_v25 = vpack.c.bf16 %v13779_v45, %v13777_v44  ;;  %v11703_v39 = vld [vmem:[%s16465_s6 + $0x190] sm:$0xff]  }
 0x350   :  { %3888 = vmatprep.mubr.bf16.mxu1 %v3192_v2  ;;  %10358 = vmatpush3.bf16.msra.mxu0 %v11687_v20  ;;  %v11692_v20 = vld [vmem:[%s16465_s6 + $0x158] sm:$0xff]   ;;  %v11694_v2 = vld [vmem:[%s16465_s6 + $0x160] sm:$0xff]  }
 0x351   :  { %10359 = vmatprep.subr.bf16.mxu0 %v11688_v63  ;;  %10422 = vmatpush3.bf16.msra.mxu1 %v11697_v3  ;;  %v11704_v63 = vld [vmem:[%s16465_s6 + $0x1d8] sm:$0xff]  }
 0x352   :  { %10423 = vmatprep.subr.bf16.mxu1 %v11698_v54  ;;  %v11693_v3 = vld [vmem:[%s16465_s6 + $0x118] sm:$0xff]  }
 0x353   :  { %v11705_v54 = vld [vmem:[%s16465_s6 + $0x198] sm:$0xff]  }
 0x354   :  { %10360 = vmatpush3.bf16.msra.mxu0 %v11689_v29  ;;  %v13814_v29 = vld [vmem:[#allocation2 + $0x42] sm:$0xff]  ;;  %v13891_v13 = vld [vmem:[#allocation2 + $0xb2] sm:$0xff] }
 0x355   :  { %10361 = vmatprep.subr.bf16.mxu0 %v11690_v1  ;;  %10424 = vmatpush3.bf16.msra.mxu1 %v11699_v32  ;;  %v13816_v1 = vld [vmem:[#allocation2 + $0x52] sm:$0xff]  ;;  %v11707_v32 = vld [vmem:[%s16465_s6 + $0x1e0] sm:$0xff]  }
 0x356   :  { %3792 = vmatmul.mubr.bf16.gmra.mrb[148].mxu0 %v13784_v47  ;;  %10425 = vmatprep.subr.bf16.mxu1 %v11701_v28  ;;  %v3181_v28 = vld [vmem:[#allocation2 + $0x70] sm:$0xff] }
 0x357   :  { %3889 = vmatmul.mubr.bf16.gmra.mrb[148].mxu1 %v13791_v25  ;;  %3799 = vmatprep.mubr.bf16.mxu0 %v13696_v55  ;;  %v13861_v23 = vpack.c.bf16 %v3181_v28, %v3180_v4  ;;  %v11715_v4 = vld [vmem:[%s16465_s6 + $0x1b0] sm:$0xff]  }
 0x358   :  { %3896 = vmatprep.mubr.bf16.mxu1 %v3193_v41  ;;  %10362 = vmatpush3.bf16.msra.mxu0 %v11691_v35  ;;  %v13821_v35 = vld [vmem:[#allocation2 + $0x80] sm:$0xff]  ;;  %v13830_v41 = vpack.c.bf16 %v13816_v1, %v13814_v29 }
 0x359   :  { %10363 = vmatprep.subr.bf16.mxu0 %v11692_v20  ;;  %10426 = vmatpush3.bf16.msra.mxu1 %v11703_v39  ;;  %v13823_v20 = vpack.c.bf16 %v3179_v34, %v3178_v46  ;;  %v11696_v39 = vld [vmem:[%s16465_s6 + $0x120] sm:$0xff]   ;;  %v3194_v34 = vpack.c.bf16 %v13821_v35, %v3181_v28 }
 0x35a   :  { %10427 = vmatprep.subr.bf16.mxu1 %v11704_v63  ;;  %v11700_v63 = vld [vmem:[%s16465_s6 + $0x168] sm:$0xff]   ;;  %v11709_v46 = vld [vmem:[%s16465_s6 + $0x1a0] sm:$0xff]  }
 0x35c   :  { %10364 = vmatpush3.bf16.msra.mxu0 %v11693_v3  ;;  %v11710_v3 = vld [vmem:[%s16465_s6 + $0x1e8] sm:$0xff]  }
 0x35d   :  { %10365 = vmatprep.subr.bf16.mxu0 %v11694_v2  ;;  %10428 = vmatpush3.bf16.msra.mxu1 %v11705_v54  ;;  %v11702_v2 = vld [vmem:[%s16465_s6 + $0x128] sm:$0xff]  }
 0x35e   :  { %3800 = vmatmul.mubr.bf16.gmra.mrb[152].mxu0 %v13823_v20  ;;  %10429 = vmatprep.subr.bf16.mxu1 %v11707_v32  ;;  %v3135_v54 = vld [vmem:[#allocation2 + $0xa1] sm:$0xff]  ;;  %v11706_v32 = vld [vmem:[%s16465_s6 + $0x170] sm:$0xff]  }
 0x35f   :  { %3897 = vmatmul.mubr.bf16.gmra.mrb[152].mxu1 %v13830_v41  ;;  %3807 = vmatprep.mubr.bf16.mxu0 %v13706_v5  ;;  %v3147_v8 = vpack.c.bf16 %v13737_v42, %v3135_v54  ;;  %v11717_v54 = vld [vmem:[%s16465_s6 + $0x1b8] sm:$0xff]  }
 0x360   :  { %3904 = vmatprep.mubr.bf16.mxu1 %v3194_v34  ;;  %10366 = vmatpush3.bf16.msra.mxu0 %v11696_v39  ;;  %v11713_v39 = vld [vmem:[%s16465_s6 + $0x1f0] sm:$0xff]  }
 0x361   :  { %10367 = vmatprep.subr.bf16.mxu0 %v11700_v63  ;;  %10430 = vmatpush3.bf16.msra.mxu1 %v11709_v46  ;;  %v3183_v34 = vld [vmem:[#allocation2 + $0xb0] sm:$0xff]  ;;  %v3184_v63 = vld [vmem:[#allocation2 + $0xc0] sm:$0xff] }
 0x362   :  { %10431 = vmatprep.subr.bf16.mxu1 %v11710_v3  ;;  %v11708_v46 = vld [vmem:[%s16465_s6 + $0x130] sm:$0xff]   ;;  %v11712_v3 = vld [vmem:[%s16465_s6 + $0x178] sm:$0xff]   ;;  %v3195_v28 = vpack.c.bf16 %v3184_v63, %v3183_v34 }
 0x364   :  { %10368 = vmatpush3.bf16.msra.mxu0 %v11702_v2  ;;  %v11716_v2 = vld [vmem:[%s16465_s6 + $0x1f8] sm:$0xff]  }
 0x365   :  { %10369 = vmatprep.subr.bf16.mxu0 %v11706_v32  ;;  %10432 = vmatpush3.bf16.msra.mxu1 %v11711_v52  ;;  %v11714_v52 = vld [vmem:[%s16465_s6 + $0x138] sm:$0xff]   ;;  %v11718_v32 = vld [vmem:[%s16465_s6 + $0x200] sm:$0xff]  }
 0x366   :  { %3808 = vmatmul.mubr.bf16.gmra.mrb[156].mxu0 %v13861_v23  ;;  %10433 = vmatprep.subr.bf16.mxu1 %v11713_v39  ;;  %v3159_v39 = vld [vmem:[#allocation2 + $0xa2] sm:$0xff] }
 0x367   :  { %3905 = vmatmul.mubr.bf16.gmra.mrb[156].mxu1 %v13868_v6  ;;  %3815 = vmatprep.mubr.bf16.mxu0 %v3147_v8  ;;  %v3185_v8 = vld [vmem:[#allocation2 + $0xd0] sm:$0xff] }
 0x368   :  { %3912 = vmatprep.mubr.bf16.mxu1 %v3195_v28  ;;  %10370 = vmatpush3.bf16.msra.mxu0 %v11708_v46  ;;  %v3186_v46 = vld [vmem:[#allocation2 + $0xe0] sm:$0xff]  ;;  %v3123_v28 = vpack.c.bf16 %v3183_v34, %v13750_v19  ;;  %v13902_v34 = vpack.c.bf16 %v3185_v8, %v3184_v63  ;;  %v3189_v63 = vld [vmem:[#allocation2 + $0x110] sm:$0xff] }
 0x369   :  { %10371 = vmatprep.subr.bf16.mxu0 %v11712_v3  ;;  %10434 = vmatpush3.bf16.msra.mxu1 %v11715_v4  ;;  %v3171_v3 = vpack.c.bf16 %v13891_v13, %v3159_v39  ;;  %v3196_v4 = vpack.c.bf16 %v3186_v46, %v3185_v8  ;;  %v13917_v39 = vld [vmem:[#allocation2 + $0x120] sm:$0xff]  ;;  %v13919_v8 = vpack.c.bf16 %v3187_v17, %v3186_v46 }
 0x36a   :  { %10435 = vmatprep.subr.bf16.mxu1 %v11716_v2  ;;  %v13900_v2 = vld [vmem:[#allocation2 + $0xd2] sm:$0xff] }
 0x36c   :  { %10372 = vmatpush3.bf16.msra.mxu0 %v11714_v52  ;;  %v13906_v52 = vpack.c.bf16 %v13900_v2, %v13898_v31 }
 0x36d   :  { %10436 = vmatpush3.bf16.msra.mxu1 %v11717_v54  ;;  %11381 = vmatprep.subr.bf16.mxu0 %v11718_v32  ;;  %v3197_v54 = vpack.c.bf16 %v3188_v61, %v3187_v17  ;;  %v13935_v17 = vpack.c.bf16 %v3189_v63, %v3188_v61  ;;  %v11719_v61 = vld [vmem:[%s16465_s6 + $0x208] sm:$0xff]  }
 0x36e   :  { %3816 = vmatmul.mubr.bf16.gmra.mrb[160].mxu0 %v3123_v28  ;;  %v13923_v28 = vpack.c.bf16 %v13915_v59, %v13913_v22 }
 0x36f   :  { %3913 = vmatmul.mubr.bf16.gmra.mrb[160].mxu1 %v3171_v3  ;;  %3823 = vmatprep.mubr.bf16.mxu0 %v16488_v48  ;;  %v16489_v48 = vpack.c.bf16 %v13691_v51, %v13681_v60  ;;  %v3198_v3 = vpack.c.bf16 %v13917_v39, %v3189_v63  ;;  %v16490_v60 = vpack.c.bf16 %v13708_v50, %v13701_v53  ;;  %v13931_v51 = vld [vmem:[#allocation2 + $0x102] sm:$0xff] }
 0x370   :  { %3920 = vmatprep.mubr.bf16.mxu1 %v3196_v4  ;;  %v13933_v4 = vld [vmem:[#allocation2 + $0x112] sm:$0xff]  ;;  %v3240_v53 = vpack.c.bf16 %v13814_v29, %v13779_v45  ;;  %v16491_v50 = vpack.c.bf16 %v13633_v27, %v13715_v12  ;;  %v16492_v12 = vpack.c.bf16 %v13644_v0, %v13639_v10  ;;  %v11723_v10 = vld [vmem:[%s16465_s6 + $0x228] sm:$0xff]   ;;  %v16493_v0 = vpack.c.bf16 %v13657_v37, %v13651_v7 }
 0x371   :  { %v13939_v46 = vpack.c.bf16 %v13933_v4, %v13931_v51  ;;  %v11721_v27 = vld [vmem:[%s16465_s6 + $0x218] sm:$0xff]   ;;  %v3243_v7 = vpack.c.bf16 %v13898_v31, %v13891_v13  ;;  %v3244_v31 = vpack.c.bf16 %v13913_v22, %v13900_v2 }
 0x372   :  { %v3280_v29 = vld [vmem:[#allocation2 + $0xd1] sm:$0xff] }
 0x373   :  { %v11725_v37 = vld [vmem:[%s16465_s6 + $0x238] sm:$0xff]  }
 0x374   :  { %v3286_v2 = vld [vmem:[#allocation2 + $0x131] sm:$0xff] }
 0x376   :  { %3824 = vmatmul.mubr.bf16.gmra.mrb[164].mxu0 %v13902_v34 }
 0x377   :  { %3921 = vmatmul.mubr.bf16.gmra.mrb[164].mxu1 %v13906_v52  ;;  %3831 = vmatprep.mubr.bf16.mxu0 %v16489_v48 }
 0x378   :  { %3928 = vmatprep.mubr.bf16.mxu1 %v3197_v54  ;;  %v3239_v54 = vpack.c.bf16 %v13777_v44, %v13746_v38  ;;  %v3241_v38 = vpack.c.bf16 %v13854_v43, %v13816_v1  ;;  %v13972_v43 = vld [vmem:[#allocation2 + $0x82] sm:$0xff]  ;;  %v3278_v44 = vld [vmem:[#allocation2 + $0x91] sm:$0xff]  ;;  %v3266_v1 = vpack.c.bf16 %v13750_v19, %v13821_v35 }
 0x379   :  { %v3242_v45 = vpack.c.bf16 %v13972_v43, %v13856_v36  ;;  %v11724_v36 = vld [vmem:[%s16465_s6 + $0x230] sm:$0xff]  }
 0x37a   :  { %v3282_v35 = vld [vmem:[#allocation2 + $0xf1] sm:$0xff] }
 0x37e   :  { %3832 = vmatmul.mubr.bf16.gmra.mrb[168].mxu0 %v13919_v8 }
 0x37f   :  { %3929 = vmatmul.mubr.bf16.gmra.mrb[168].mxu1 %v13923_v28  ;;  %3839 = vmatprep.mubr.bf16.mxu0 %v16490_v60 }
 0x380   :  { %3936 = vmatprep.mubr.bf16.mxu1 %v3198_v3  ;;  %v3245_v3 = vpack.c.bf16 %v13931_v51, %v13915_v59  ;;  %v3270_v51 = vpack.c.bf16 %v13750_v19, %v13917_v39 }
 0x386   :  { %3840 = vmatmul.mubr.bf16.gmra.mrb[172].mxu0 %v13935_v17 }
 0x387   :  { %3937 = vmatmul.mubr.bf16.gmra.mrb[172].mxu1 %v13939_v46  ;;  %3977 = vmatprep.mubr.bf16.mxu0 %v3239_v54 }
 0x388   :  { %4074 = vmatprep.mubr.bf16.mxu1 %v13686_v30  ;;  %v11720_v30 = vld [vmem:[%s16465_s6 + $0x210] sm:$0xff]  }
 0x38e   :  { %3978 = vmatmul.mubr.bf16.vlgmr.msra.gmra.mrb[176].mxu0 %v16491_v50 }
 0x38f   :  { %4075 = vmatmul.mubr.bf16.vlgmr.msra.gmra.mrb[176].mxu1 %v13784_v47  ;;  %3985 = vmatprep.mubr.bf16.mxu0 %v3240_v53  ;;  %v3279_v47 = vld [vmem:[#allocation2 + $0xc1] sm:$0xff] }
 0x390   :  { %4082 = vmatprep.mubr.bf16.mxu1 %v13696_v55  ;;  %11382 = vmatpush3.bf16.msra.mxu0 %v11718_v32  ;;  %v11722_v55 = vld [vmem:[%s16465_s6 + $0x220] sm:$0xff]   ;;  %v3219_v48 = vpack.c.bf16 %v3279_v47, %v13737_v42 }
 0x391   :  { %11383 = vmatprep.subr.bf16.mxu0 %v11719_v61  ;;  %v3281_v32 = vld [vmem:[#allocation2 + $0xe1] sm:$0xff] }
 0x392   :  { %v3292_v13 = vpack.c.bf16 %v3282_v35, %v3281_v32  ;;  %v3220_v63 = vpack.c.bf16 %v3281_v32, %v3280_v29  ;;  %v3238_v42 = vld [vmem:[#allocation2 + $0x122] sm:$0xff] }
 0x393   :  { %v3246_v54 = vpack.c.bf16 %v3238_v42, %v13933_v4 }
 0x394   :  { %11384 = vmatpush3.bf16.msra.mxu0 %v11719_v61 }
 0x395   :  { %11385 = vmatprep.subr.bf16.mxu0 %v11720_v30 }
 0x396   :  { %3986 = vmatmul.mubr.bf16.gmra.mrb[180].mxu0 %v16492_v12 }
 0x397   :  { %4083 = vmatmul.mubr.bf16.gmra.mrb[180].mxu1 %v13823_v20  ;;  %3993 = vmatprep.mubr.bf16.mxu0 %v3241_v38  ;;  %v3291_v20 = vpack.c.bf16 %v3280_v29, %v3279_v47 }
 0x398   :  { %4090 = vmatprep.mubr.bf16.mxu1 %v13706_v5  ;;  %11386 = vmatpush3.bf16.msra.mxu0 %v11720_v30  ;;  %v3290_v5 = vpack.c.bf16 %v3278_v44, %v13728_v18 }
 0x399   :  { %11387 = vmatprep.subr.bf16.mxu0 %v11721_v27 }
 0x39c   :  { %11388 = vmatpush3.bf16.msra.mxu0 %v11721_v27 }
 0x39d   :  { %11389 = vmatprep.subr.bf16.mxu0 %v11722_v55 }
 0x39e   :  { %3994 = vmatmul.mubr.bf16.gmra.mrb[184].mxu0 %v16493_v0 }
 0x39f   :  { %4091 = vmatmul.mubr.bf16.gmra.mrb[184].mxu1 %v13861_v23  ;;  %4001 = vmatprep.mubr.bf16.mxu0 %v3242_v45  ;;  %v16494_v23 = vpack.c.bf16 %v13728_v18, %v13663_v49  ;;  %v3283_v49 = vld [vmem:[#allocation2 + $0x101] sm:$0xff]  ;;  %v3284_v18 = vld [vmem:[#allocation2 + $0x111] sm:$0xff] }
 0x3a0   :  { %4098 = vmatprep.mubr.bf16.mxu1 %v3290_v5  ;;  %11390 = vmatpush3.bf16.msra.mxu0 %v11722_v55  ;;  %v3293_v60 = vpack.c.bf16 %v3284_v18, %v3283_v49  ;;  %v3221_v22 = vpack.c.bf16 %v3283_v49, %v3282_v35  ;;  %v3222_v59 = vpack.c.bf16 %v13748_v24, %v3284_v18 }
 0x3a1   :  { %11391 = vmatprep.subr.bf16.mxu0 %v11723_v10 }
 0x3a4   :  { %11392 = vmatpush3.bf16.msra.mxu0 %v11723_v10 }
 0x3a5   :  { %11393 = vmatprep.subr.bf16.mxu0 %v11724_v36 }
 0x3a6   :  { %4002 = vmatmul.mubr.bf16.gmra.mrb[188].mxu0 %v16494_v23 }
 0x3a7   :  { %4099 = vmatmul.mubr.bf16.gmra.mrb[188].mxu1 %v3266_v1  ;;  %4009 = vmatprep.mubr.bf16.mxu0 %v3243_v7 }
 0x3a8   :  { %4106 = vmatprep.mubr.bf16.mxu1 %v3291_v20  ;;  %11394 = vmatpush3.bf16.msra.mxu0 %v11724_v36 }
 0x3a9   :  { %11395 = vmatprep.subr.bf16.mxu0 %v11725_v37 }
 0x3ac   :  { %11396 = vmatpush3.bf16.msra.mxu0 %v11725_v37 }
 0x3ae   :  { %4010 = vmatmul.mubr.bf16.gmra.mrb[192].mxu0 %v3219_v48 }
 0x3af   :  { %4107 = vmatmul.mubr.bf16.gmra.mrb[192].mxu1 %v13902_v34  ;;  %4017 = vmatprep.mubr.bf16.mxu0 %v3244_v31  ;;  %v3294_v34 = vpack.c.bf16 %v3286_v2, %v13748_v24  ;;  %v3310_v24 = vld [vmem:[#allocation2 + $0x132] sm:$0xff] }
 0x3b0   :  { %4114 = vmatprep.mubr.bf16.mxu1 %v3292_v13  ;;  %v3318_v19 = vpack.c.bf16 %v3310_v24, %v3238_v42 }
 0x3b6   :  { %4018 = vmatmul.mubr.bf16.gmra.mrb[196].mxu0 %v3220_v63 }
 0x3b7   :  { %4115 = vmatmul.mubr.bf16.gmra.mrb[196].mxu1 %v13919_v8  ;;  %4025 = vmatprep.mubr.bf16.mxu0 %v3245_v3  ;;  %v3302_v8 = vld [vmem:[#allocation2 + $0x92] sm:$0xff] }
 0x3b8   :  { %4122 = vmatprep.mubr.bf16.mxu1 %v3293_v60  ;;  %v3314_v4 = vpack.c.bf16 %v3302_v8, %v13972_v43 }
 0x3be   :  { %4026 = vmatmul.mubr.bf16.gmra.mrb[200].mxu0 %v3221_v22 }
 0x3bf   :  { %4123 = vmatmul.mubr.bf16.gmra.mrb[200].mxu1 %v13935_v17  ;;  %4033 = vmatprep.mubr.bf16.mxu0 %v3246_v54 }
 0x3c0   :  { %4130 = vmatprep.mubr.bf16.mxu1 %v3294_v34 }
 0x3c6   :  { %4034 = vmatmul.mubr.bf16.gmra.mrb[204].mxu0 %v3222_v59 }
 0x3c7   :  { %4131 = vmatmul.mubr.bf16.gmra.mrb[204].mxu1 %v3270_v51  ;;  %11397 = vmatprep.mubr.bf16.mxu0 %v13791_v25 }
 0x3ce   :  { %11398 = vmatmul.mubr.bf16.vlgmr.msra.gmra.mrb[208].mxu0 %v13830_v41 }
 0x3cf   :  { %11401 = vmatprep.mubr.bf16.mxu0 %v13868_v6 }
 0x3d6   :  { %11402 = vmatmul.mubr.bf16.gmra.mrb[212].mxu0 %v3314_v4 }
 0x3d7   :  { %11405 = vmatprep.mubr.bf16.mxu0 %v13906_v52 }
 0x3de   :  { %11406 = vmatmul.mubr.bf16.gmra.mrb[216].mxu0 %v13923_v28 }
 0x3df   :  { %11409 = vmatprep.mubr.bf16.mxu0 %v13939_v46 }
 0x3e6   :  { %11410 = vmatmul.mubr.bf16.gmra.mrb[220].mxu0 %v3318_v19 }
 0x421   :  { %v10245_v39 = vpop.f32.mrb[144].mxu0 }
 0x422   :  { %v10309_v17 = vpop.f32.mrb[144].mxu1  ;;  %v10246_v25 = vpop.f32.mrb[145].mxu0 }
 0x423   :  { %v10247_v53 = vadd.f32 %v10246_v25, %v10245_v39  ;;  %v10310_v41 = vpop.f32.mrb[145].mxu1  ;;  %v10248_v61 = vpop.f32.mrb[146].mxu0 }
 0x424   :  { %v10311_v6 = vadd.f32 %v10310_v41, %v10309_v17  ;;  %v10312_v50 = vpop.f32.mrb[146].mxu1  ;;  %v10249_v30 = vpop.f32.mrb[147].mxu0 }
 0x425   :  { %v10250_v38 = vadd.f32 %v10249_v30, %v10248_v61  ;;  %v10313_v27 = vpop.f32.mrb[147].mxu1 }
 0x426   :  { %v10314_v12 = vadd.f32 %v10313_v27, %v10312_v50  ;;  %v14017_v52 = vadd.f32 %v10311_v6, %v10247_v53 }
 0x428   :  { %v14019_v28 = vadd.f32 %v10314_v12, %v10250_v38 }
 0x429   :  { %v10251_v46 = vpop.f32.mrb[148].mxu0 }
 0x42a   :  { %v10315_v55 = vpop.f32.mrb[148].mxu1  ;;  %v10252_v43 = vpop.f32.mrb[149].mxu0 }
 0x42b   :  { %v10253_v44 = vadd.f32 %v10252_v43, %v10251_v46  ;;  %v10316_v45 = vpop.f32.mrb[149].mxu1  ;;  %v10254_v10 = vpop.f32.mrb[150].mxu0 }
 0x42c   :  { %v10317_v0 = vadd.f32 %v10316_v45, %v10315_v55  ;;  %v10318_v5 = vpop.f32.mrb[150].mxu1  ;;  %v10255_v36 = vpop.f32.mrb[151].mxu0 }
 0x42d   :  { %v10256_v47 = vadd.f32 %v10255_v36, %v10254_v10  ;;  %v10319_v29 = vpop.f32.mrb[151].mxu1 }
 0x42e   :  { %v10320_v1 = vadd.f32 %v10319_v29, %v10318_v5  ;;  %v14021_v7 = vadd.f32 %v10317_v0, %v10253_v44 }
 0x430   :  { %v14023_v37 = vadd.f32 %v10320_v1, %v10256_v47 }
 0x431   :  { %v10257_v23 = vpop.f32.mrb[152].mxu0 }
 0x432   :  { %v10321_v20 = vpop.f32.mrb[152].mxu1  ;;  %v10258_v32 = vpop.f32.mrb[153].mxu0 }
 0x433   :  { %v10259_v35 = vadd.f32 %v10258_v32, %v10257_v23  ;;  %v10322_v48 = vpop.f32.mrb[153].mxu1  ;;  %v10260_v31 = vpop.f32.mrb[154].mxu0 }
 0x434   :  { %v10323_v13 = vadd.f32 %v10322_v48, %v10321_v20  ;;  %v10324_v49 = vpop.f32.mrb[154].mxu1  ;;  %v10261_v18 = vpop.f32.mrb[155].mxu0 }
 0x435   :  { %v10262_v63 = vadd.f32 %v10261_v18, %v10260_v31  ;;  %v10325_v3 = vpop.f32.mrb[155].mxu1 }
 0x436   :  { %v10326_v60 = vadd.f32 %v10325_v3, %v10324_v49  ;;  %v14025_v42 = vadd.f32 %v10323_v13, %v10259_v35 }
 0x438   :  { %v14027_v2 = vadd.f32 %v10326_v60, %v10262_v63 }
 0x439   :  { %v10263_v22 = vpop.f32.mrb[156].mxu0 }
 0x43a   :  { %v10327_v54 = vpop.f32.mrb[156].mxu1  ;;  %v10264_v34 = vpop.f32.mrb[157].mxu0 }
 0x43b   :  { %v10265_v59 = vadd.f32 %v10264_v34, %v10263_v22  ;;  %v10328_v51 = vpop.f32.mrb[157].mxu1  ;;  %v10266_v8 = vpop.f32.mrb[158].mxu0 }
 0x43c   :  { %v10329_v4 = vadd.f32 %v10328_v51, %v10327_v54  ;;  %v10330_v24 = vpop.f32.mrb[158].mxu1  ;;  %v10267_v19 = vpop.f32.mrb[159].mxu0 }
 0x43d   :  { %v10268_v39 = vadd.f32 %v10267_v19, %v10266_v8  ;;  %v10331_v17 = vpop.f32.mrb[159].mxu1 }
 0x43e   :  { %v10332_v25 = vadd.f32 %v10331_v17, %v10330_v24  ;;  %v14029_v53 = vadd.f32 %v10329_v4, %v10265_v59 }
 0x440   :  { %v14031_v41 = vadd.f32 %v10332_v25, %v10268_v39 }
 0x441   :  { %v10269_v61 = vpop.f32.mrb[160].mxu0 }
 0x442   :  { %v10333_v6 = vpop.f32.mrb[160].mxu1  ;;  %v10270_v50 = vpop.f32.mrb[161].mxu0 }
 0x443   :  { %v10271_v30 = vadd.f32 %v10270_v50, %v10269_v61  ;;  %v10334_v38 = vpop.f32.mrb[161].mxu1  ;;  %v10272_v27 = vpop.f32.mrb[162].mxu0 }
 0x444   :  { %v10335_v12 = vadd.f32 %v10334_v38, %v10333_v6  ;;  %v10336_v46 = vpop.f32.mrb[162].mxu1  ;;  %v10273_v55 = vpop.f32.mrb[163].mxu0 }
 0x445   :  { %v10274_v43 = vadd.f32 %v10273_v55, %v10272_v27  ;;  %v10337_v44 = vpop.f32.mrb[163].mxu1 }
 0x446   :  { %v10338_v45 = vadd.f32 %v10337_v44, %v10336_v46  ;;  %v14033_v10 = vadd.f32 %v10335_v12, %v10271_v30 }
 0x448   :  { %v14035_v0 = vadd.f32 %v10338_v45, %v10274_v43 }
 0x449   :  { %v10275_v5 = vpop.f32.mrb[164].mxu0 }
 0x44a   :  { %v10339_v36 = vpop.f32.mrb[164].mxu1  ;;  %v10276_v47 = vpop.f32.mrb[165].mxu0 }
 0x44b   :  { %v10277_v29 = vadd.f32 %v10276_v47, %v10275_v5  ;;  %v10340_v1 = vpop.f32.mrb[165].mxu1  ;;  %v10278_v23 = vpop.f32.mrb[166].mxu0 }
 0x44c   :  { %v10341_v20 = vadd.f32 %v10340_v1, %v10339_v36  ;;  %v10342_v32 = vpop.f32.mrb[166].mxu1  ;;  %v10279_v35 = vpop.f32.mrb[167].mxu0 }
 0x44d   :  { %v10280_v48 = vadd.f32 %v10279_v35, %v10278_v23  ;;  %v10343_v31 = vpop.f32.mrb[167].mxu1 }
 0x44e   :  { %v10344_v13 = vadd.f32 %v10343_v31, %v10342_v32  ;;  %v14037_v49 = vadd.f32 %v10341_v20, %v10277_v29 }
 0x450   :  { %v14039_v18 = vadd.f32 %v10344_v13, %v10280_v48 }
 0x451   :  { %v10281_v63 = vpop.f32.mrb[168].mxu0 }
 0x452   :  { %v10345_v3 = vpop.f32.mrb[168].mxu1  ;;  %v10282_v60 = vpop.f32.mrb[169].mxu0 }
 0x453   :  { %v10283_v22 = vadd.f32 %v10282_v60, %v10281_v63  ;;  %v10346_v54 = vpop.f32.mrb[169].mxu1  ;;  %v10284_v34 = vpop.f32.mrb[170].mxu0 }
 0x454   :  { %v10347_v59 = vadd.f32 %v10346_v54, %v10345_v3  ;;  %v10348_v51 = vpop.f32.mrb[170].mxu1  ;;  %v10285_v8 = vpop.f32.mrb[171].mxu0 }
 0x455   :  { %v10286_v4 = vadd.f32 %v10285_v8, %v10284_v34  ;;  %v10349_v24 = vpop.f32.mrb[171].mxu1 }
 0x456   :  { %v10350_v19 = vadd.f32 %v10349_v24, %v10348_v51  ;;  %v14041_v39 = vadd.f32 %v10347_v59, %v10283_v22 }
 0x458   :  { %v14043_v17 = vadd.f32 %v10350_v19, %v10286_v4 }
 0x459   :  { %v10287_v25 = vpop.f32.mrb[172].mxu0 }
 0x45a   :  { %v10351_v61 = vpop.f32.mrb[172].mxu1  ;;  %v10288_v6 = vpop.f32.mrb[173].mxu0 }
 0x45b   :  { %v10289_v50 = vadd.f32 %v10288_v6, %v10287_v25  ;;  %v10352_v30 = vpop.f32.mrb[173].mxu1  ;;  %v10290_v38 = vpop.f32.mrb[174].mxu0 }
 0x45c   :  { %v10353_v27 = vadd.f32 %v10352_v30, %v10351_v61  ;;  %v10354_v12 = vpop.f32.mrb[174].mxu1  ;;  %v10291_v46 = vpop.f32.mrb[175].mxu0 }
 0x45d   :  { %v10292_v55 = vadd.f32 %v10291_v46, %v10290_v38  ;;  %v10355_v43 = vpop.f32.mrb[175].mxu1 }
 0x45e   :  { %v10356_v44 = vadd.f32 %v10355_v43, %v10354_v12  ;;  %v14045_v45 = vadd.f32 %v10353_v27, %v10289_v50 }
 0x460   :  { %v14047_v5 = vadd.f32 %v10356_v44, %v10292_v55 }
 0x461   :  { %v10373_v36 = vpop.f32.mrb[176].mxu0 }
 0x462   :  { %v10437_v47 = vpop.f32.mrb[176].mxu1  ;;  %v10374_v29 = vpop.f32.mrb[177].mxu0 }
 0x463   :  { %v10375_v1 = vadd.f32 %v10374_v29, %v10373_v36  ;;  %v10438_v23 = vpop.f32.mrb[177].mxu1  ;;  %v10376_v20 = vpop.f32.mrb[178].mxu0 }
 0x464   :  { %v10439_v32 = vadd.f32 %v10438_v23, %v10437_v47  ;;  %v10440_v35 = vpop.f32.mrb[178].mxu1  ;;  %v10377_v48 = vpop.f32.mrb[179].mxu0 }
 0x465   :  { %v3980_v31 = vadd.f32 %v10375_v1, %v14017_v52  ;;  %v10378_v13 = vadd.f32 %v10377_v48, %v10376_v20  ;;  %v10441_v63 = vpop.f32.mrb[179].mxu1 }
 0x466   :  { %v10442_v3 = vadd.f32 %v10441_v63, %v10440_v35 }
 0x467   :  { %v3983_v60 = vadd.f32 %v10378_v13, %v14019_v28  ;;  %v14051_v22 = vadd.f32 %v10439_v32, %v3980_v31 }
 0x469   :  { %v10379_v54 = vpop.f32.mrb[180].mxu0  ;;  %v14053_v34 = vadd.f32 %v10442_v3, %v3983_v60 }
 0x46a   :  { %v10443_v59 = vpop.f32.mrb[180].mxu1  ;;  %v10380_v51 = vpop.f32.mrb[181].mxu0 }
 0x46b   :  { %v10381_v8 = vadd.f32 %v10380_v51, %v10379_v54  ;;  %v10444_v4 = vpop.f32.mrb[181].mxu1  ;;  %v10382_v24 = vpop.f32.mrb[182].mxu0 }
 0x46c   :  { %v10445_v19 = vadd.f32 %v10444_v4, %v10443_v59  ;;  %v10446_v25 = vpop.f32.mrb[182].mxu1  ;;  %v10383_v61 = vpop.f32.mrb[183].mxu0 }
 0x46d   :  { %v3988_v52 = vadd.f32 %v10381_v8, %v14021_v7  ;;  %v10384_v6 = vadd.f32 %v10383_v61, %v10382_v24  ;;  %v10447_v50 = vpop.f32.mrb[183].mxu1 }
 0x46e   :  { %v10448_v30 = vadd.f32 %v10447_v50, %v10446_v25 }
 0x46f   :  { %v3991_v28 = vadd.f32 %v10384_v6, %v14023_v37  ;;  %v14057_v38 = vadd.f32 %v10445_v19, %v3988_v52 }
 0x471   :  { %v10385_v27 = vpop.f32.mrb[184].mxu0  ;;  %v14059_v12 = vadd.f32 %v10448_v30, %v3991_v28 }
 0x472   :  { %v10449_v46 = vpop.f32.mrb[184].mxu1  ;;  %v10386_v55 = vpop.f32.mrb[185].mxu0 }
 0x473   :  { %v10387_v43 = vadd.f32 %v10386_v55, %v10385_v27  ;;  %v10450_v44 = vpop.f32.mrb[185].mxu1  ;;  %v10388_v36 = vpop.f32.mrb[186].mxu0 }
 0x474   :  { %v10451_v47 = vadd.f32 %v10450_v44, %v10449_v46  ;;  %v10452_v29 = vpop.f32.mrb[186].mxu1  ;;  %v10389_v1 = vpop.f32.mrb[187].mxu0  ;;  %v11726_v46 = vld [vmem:[%s16463_s3 + $0x280] sm:$0xff]  }
 0x475   :  { %v3996_v7 = vadd.f32 %v10387_v43, %v14025_v42  ;;  %v10390_v23 = vadd.f32 %v10389_v1, %v10388_v36  ;;  %v10453_v20 = vpop.f32.mrb[187].mxu1  ;;  %v11735_v44 = vld [vmem:[%s16463_s3 + $0x300] sm:$0xff]   ;;  %10501 = vmatprep.subr.bf16.mxu1 %v11726_v46  ;;  %v11732_v46 = vld [vmem:[%s16463_s3 + $0x298] sm:$0xff]  }
 0x476   :  { %v10454_v32 = vadd.f32 %v10453_v20, %v10452_v29  ;;  %v11737_v1 = vld [vmem:[%s16463_s3 + $0x2c0] sm:$0xff]   ;;  %10565 = vmatprep.subr.bf16.mxu0 %v11735_v44 }
 0x477   :  { %v3999_v37 = vadd.f32 %v10390_v23, %v14027_v2  ;;  %v14063_v35 = vadd.f32 %v10451_v47, %v3996_v7  ;;  %10566 = vmatpush3.bf16.msra.mxu0 %v11737_v1  ;;  %v11734_v1 = vld [vmem:[%s16463_s3 + $0x2a0] sm:$0xff]  }
 0x479   :  { %v10391_v48 = vpop.f32.mrb[188].mxu0  ;;  %v14065_v31 = vadd.f32 %v10454_v32, %v3999_v37  ;;  %v11728_v32 = vld [vmem:[%s16463_s3 + $0x288] sm:$0xff]  }
 0x47a   :  { %v10455_v13 = vpop.f32.mrb[188].mxu1  ;;  %v10392_v63 = vpop.f32.mrb[189].mxu0  ;;  %v11738_v37 = vld [vmem:[%s16463_s3 + $0x308] sm:$0xff]  }
 0x47b   :  { %v10393_v3 = vadd.f32 %v10392_v63, %v10391_v48  ;;  %v10456_v60 = vpop.f32.mrb[189].mxu1  ;;  %v10394_v54 = vpop.f32.mrb[190].mxu0  ;;  %10567 = vmatprep.subr.bf16.mxu0 %v11738_v37  ;;  %v11747_v37 = vld [vmem:[%s16463_s3 + $0x320] sm:$0xff]  }
 0x47c   :  { %v10457_v59 = vadd.f32 %v10456_v60, %v10455_v13  ;;  %v10458_v51 = vpop.f32.mrb[190].mxu1  ;;  %v10395_v8 = vpop.f32.mrb[191].mxu0 }
 0x47d   :  { %v4004_v42 = vadd.f32 %v10393_v3, %v14029_v53  ;;  %v10396_v4 = vadd.f32 %v10395_v8, %v10394_v54  ;;  %v10459_v24 = vpop.f32.mrb[191].mxu1 }
 0x47e   :  { %v10460_v19 = vadd.f32 %v10459_v24, %v10458_v51  ;;  %v11730_v51 = vld [vmem:[%s16463_s3 + $0x290] sm:$0xff]  }
 0x47f   :  { %v4007_v2 = vadd.f32 %v10396_v4, %v14031_v41  ;;  %v14069_v25 = vadd.f32 %v10457_v59, %v4004_v42  ;;  %v11727_v41 = vld [vmem:[%s16463_s3 + $0x240] sm:$0xff]   ;;  %v11731_v24 = vld [vmem:[%s16463_s3 + $0x250] sm:$0xff]  }
 0x480   :  { %10502 = vmatpush3.bf16.msra.mxu1 %v11727_v41 }
 0x481   :  { %v10397_v61 = vpop.f32.mrb[192].mxu0  ;;  %v14071_v52 = vadd.f32 %v10460_v19, %v4007_v2  ;;  %10503 = vmatprep.subr.bf16.mxu1 %v11728_v32  ;;  %v11741_v19 = vld [vmem:[%s16463_s3 + $0x310] sm:$0xff]  }
 0x482   :  { %v10461_v6 = vpop.f32.mrb[192].mxu1  ;;  %v10398_v50 = vpop.f32.mrb[193].mxu0 }
 0x483   :  { %v10399_v30 = vadd.f32 %v10398_v50, %v10397_v61  ;;  %v10462_v28 = vpop.f32.mrb[193].mxu1  ;;  %v10400_v27 = vpop.f32.mrb[194].mxu0  ;;  %v11743_v50 = vld [vmem:[%s16463_s3 + $0x2d0] sm:$0xff]  }
 0x484   :  { %v10463_v53 = vadd.f32 %v10462_v28, %v10461_v6  ;;  %v10464_v55 = vpop.f32.mrb[194].mxu1  ;;  %v10401_v43 = vpop.f32.mrb[195].mxu0 }
 0x485   :  { %v4012_v36 = vadd.f32 %v10399_v30, %v14033_v10  ;;  %v10402_v47 = vadd.f32 %v10401_v43, %v10400_v27  ;;  %v10465_v29 = vpop.f32.mrb[195].mxu1  ;;  %v11729_v10 = vld [vmem:[%s16463_s3 + $0x248] sm:$0xff]  }
 0x486   :  { %v10466_v7 = vadd.f32 %v10465_v29, %v10464_v55  ;;  %10504 = vmatpush3.bf16.msra.mxu1 %v11729_v10  ;;  %v11736_v10 = vld [vmem:[%s16463_s3 + $0x260] sm:$0xff]  }
 0x487   :  { %v4015_v23 = vadd.f32 %v10402_v47, %v14035_v0  ;;  %v14087_v20 = vadd.f32 %v10463_v53, %v4012_v36  ;;  %v11739_v0 = vld [vmem:[%s16463_s3 + $0x2c8] sm:$0xff]   ;;  %10505 = vmatprep.subr.bf16.mxu1 %v11730_v51  ;;  %v11744_v53 = vld [vmem:[%s16463_s3 + $0x318] sm:$0xff]  }
 0x488   :  { %10568 = vmatpush3.bf16.msra.mxu0 %v11739_v0  ;;  %v11740_v51 = vld [vmem:[%s16463_s3 + $0x2a8] sm:$0xff]  }
 0x489   :  { %v10403_v48 = vpop.f32.mrb[196].mxu0  ;;  %v14098_v13 = vadd.f32 %v10466_v7, %v4015_v23  ;;  %10569 = vmatprep.subr.bf16.mxu0 %v11741_v19 }
 0x48a   :  { %v10467_v63 = vpop.f32.mrb[196].mxu1  ;;  %v10404_v3 = vpop.f32.mrb[197].mxu0  ;;  %10506 = vmatpush3.bf16.msra.mxu1 %v11731_v24 }
 0x48b   :  { %v10405_v60 = vadd.f32 %v10404_v3, %v10403_v48  ;;  %v10468_v54 = vpop.f32.mrb[197].mxu1  ;;  %v10406_v59 = vpop.f32.mrb[198].mxu0  ;;  %10507 = vmatprep.subr.bf16.mxu1 %v11732_v46  ;;  %v11749_v3 = vld [vmem:[%s16463_s3 + $0x2e0] sm:$0xff]  }
 0x48c   :  { %v10469_v8 = vadd.f32 %v10468_v54, %v10467_v63  ;;  %v10470_v42 = vpop.f32.mrb[198].mxu1  ;;  %v10407_v4 = vpop.f32.mrb[199].mxu0  ;;  %10570 = vmatpush3.bf16.msra.mxu0 %v11743_v50  ;;  %v11746_v50 = vld [vmem:[%s16463_s3 + $0x2b0] sm:$0xff]  }
 0x48d   :  { %v4020_v2 = vadd.f32 %v10405_v60, %v14037_v49  ;;  %v10408_v61 = vadd.f32 %v10407_v4, %v10406_v59  ;;  %v10471_v6 = vpop.f32.mrb[199].mxu1  ;;  %v11733_v49 = vld [vmem:[%s16463_s3 + $0x258] sm:$0xff]   ;;  %10571 = vmatprep.subr.bf16.mxu0 %v11744_v53 }
 0x48e   :  { %v10472_v30 = vadd.f32 %v10471_v6, %v10470_v42  ;;  %10508 = vmatpush3.bf16.msra.mxu1 %v11733_v49 }
 0x48f   :  { %v4023_v28 = vadd.f32 %v10408_v61, %v14039_v18  ;;  %v14117_v27 = vadd.f32 %v10469_v8, %v4020_v2  ;;  %v11745_v18 = vld [vmem:[%s16463_s3 + $0x2d8] sm:$0xff]   ;;  %10509 = vmatprep.subr.bf16.mxu1 %v11734_v1  ;;  %v11750_v8 = vld [vmem:[%s16463_s3 + $0x328] sm:$0xff]  }
 0x490   :  { %10572 = vmatpush3.bf16.msra.mxu0 %v11745_v18  ;;  %v11755_v18 = vld [vmem:[%s16463_s3 + $0x2f0] sm:$0xff]   ;;  %v11754_v1 = vld [vmem:[%s16463_s3 + $0x278] sm:$0xff]  }
 0x491   :  { %v10409_v55 = vpop.f32.mrb[200].mxu0  ;;  %v14128_v43 = vadd.f32 %v10472_v30, %v4023_v28  ;;  %10573 = vmatprep.subr.bf16.mxu0 %v11747_v37  ;;  %v11748_v30 = vld [vmem:[%s16463_s3 + $0x270] sm:$0xff]   ;;  %v11752_v28 = vld [vmem:[%s16463_s3 + $0x2b8] sm:$0xff]  }
 0x492   :  { %v10473_v41 = vpop.f32.mrb[200].mxu1  ;;  %v10410_v44 = vpop.f32.mrb[201].mxu0  ;;  %10510 = vmatpush3.bf16.msra.mxu1 %v11736_v10 }
 0x493   :  { %v10411_v36 = vadd.f32 %v10410_v44, %v10409_v55  ;;  %v10474_v47 = vpop.f32.mrb[201].mxu1  ;;  %v10412_v29 = vpop.f32.mrb[202].mxu0  ;;  %10511 = vmatprep.subr.bf16.mxu1 %v11740_v51  ;;  %v11753_v55 = vld [vmem:[%s16463_s3 + $0x330] sm:$0xff]  }
 0x494   :  { %v10475_v7 = vadd.f32 %v10474_v47, %v10473_v41  ;;  %v10476_v23 = vpop.f32.mrb[202].mxu1  ;;  %v10413_v32 = vpop.f32.mrb[203].mxu0  ;;  %10574 = vmatpush3.bf16.msra.mxu0 %v11749_v3  ;;  %v11756_v47 = vld [vmem:[%s16463_s3 + $0x338] sm:$0xff]  }
 0x495   :  { %v4028_v48 = vadd.f32 %v10411_v36, %v14041_v39  ;;  %v10414_v0 = vadd.f32 %v10413_v32, %v10412_v29  ;;  %v10477_v63 = vpop.f32.mrb[203].mxu1  ;;  %v11742_v39 = vld [vmem:[%s16463_s3 + $0x268] sm:$0xff]   ;;  %10575 = vmatprep.subr.bf16.mxu0 %v11750_v8  ;;  %v11758_v32 = vld [vmem:[%s16463_s3 + $0x380] sm:$0xff]  }
 0x496   :  { %v10478_v60 = vadd.f32 %v10477_v63, %v10476_v23  ;;  %10512 = vmatpush3.bf16.msra.mxu1 %v11742_v39 }
 0x497   :  { %v4031_v54 = vadd.f32 %v10414_v0, %v14043_v17  ;;  %v14147_v59 = vadd.f32 %v10475_v7, %v4028_v48  ;;  %v11751_v17 = vld [vmem:[%s16463_s3 + $0x2e8] sm:$0xff]   ;;  %10513 = vmatprep.subr.bf16.mxu1 %v11746_v50 }
 0x498   :  { %10576 = vmatpush3.bf16.msra.mxu0 %v11751_v17 }
 0x499   :  { %v10415_v42 = vpop.f32.mrb[204].mxu0  ;;  %v14158_v4 = vadd.f32 %v10478_v60, %v4031_v54  ;;  %10577 = vmatprep.subr.bf16.mxu0 %v11753_v55 }
 0x49a   :  { %v10479_v24 = vpop.f32.mrb[204].mxu1  ;;  %v10416_v19 = vpop.f32.mrb[205].mxu0  ;;  %10514 = vmatpush3.bf16.msra.mxu1 %v11748_v30 }
 0x49b   :  { %v10417_v2 = vadd.f32 %v10416_v19, %v10415_v42  ;;  %v10480_v61 = vpop.f32.mrb[205].mxu1  ;;  %v10418_v6 = vpop.f32.mrb[206].mxu0  ;;  %10515 = vmatprep.subr.bf16.mxu1 %v11752_v28 }
 0x49c   :  { %v10481_v46 = vadd.f32 %v10480_v61, %v10479_v24  ;;  %v10482_v49 = vpop.f32.mrb[206].mxu1  ;;  %v10419_v53 = vpop.f32.mrb[207].mxu0  ;;  %10578 = vmatpush3.bf16.msra.mxu0 %v11755_v18 }
 0x49d   :  { %v4036_v41 = vadd.f32 %v10417_v2, %v14045_v45  ;;  %v10420_v44 = vadd.f32 %v10419_v53, %v10418_v6  ;;  %v10483_v36 = vpop.f32.mrb[207].mxu1  ;;  %v11757_v45 = vld [vmem:[%s16463_s3 + $0x2f8] sm:$0xff]   ;;  %10579 = vmatprep.subr.bf16.mxu0 %v11756_v47 }
 0x49e   :  { %v10484_v29 = vadd.f32 %v10483_v36, %v10482_v49  ;;  %10516 = vmatpush3.bf16.msra.mxu1 %v11754_v1 }
 0x49f   :  { %v4039_v7 = vadd.f32 %v10420_v44, %v14047_v5  ;;  %v14186_v23 = vadd.f32 %v10481_v46, %v4036_v41  ;;  %10629 = vmatprep.subr.bf16.mxu1 %v11758_v32 }
 0x4a0   :  { %10580 = vmatpush3.bf16.msra.mxu0 %v11757_v45 }
 0x4a1   :  { %v11399_v10 = vpop.f32.mrb[208].mxu0  ;;  %v14194_v37 = vadd.f32 %v10484_v29, %v4039_v7 }
 0x4a2   :  { %v14197_v48 = vadd.f32 %v11399_v10, %v14057_v38  ;;  %v4173_v5 = vpop.f32.mrb[209].mxu0 }
 0x4a3   :  { %v14200_v0 = vadd.f32 %v4173_v5, %v14051_v22  ;;  %v11400_v63 = vpop.f32.mrb[210].mxu0 }
 0x4a4   :  { %v14203_v3 = vadd.f32 %v11400_v63, %v14059_v12  ;;  %v4176_v60 = vpop.f32.mrb[211].mxu0  ;;  %v4261_v39 = vmul.f32 %v14197_v48, %v14197_v48 }
 0x4a5   :  { %v14206_v54 = vadd.f32 %v4176_v60, %v14053_v34  ;;  %v4259_v51 = vmul.f32 %v14200_v0, %v14200_v0 }
 0x4a6   :  { %v4262_v24 = vmul.f32 %v14203_v3, %v14203_v3 }
 0x4a7   :  { %v4238_v38 = vadd.f32 %v14206_v54, %v14200_v0  ;;  %v4260_v22 = vmul.f32 %v14206_v54, %v14206_v54 }
 0x4a9   :  { %v4239_v8 = vadd.f32 %v4238_v38, %v14197_v48  ;;  %v4275_v12 = vadd.f32 %v4260_v22, %v4259_v51  ;;  %v11403_v42 = vpop.f32.mrb[212].mxu0 }
 0x4aa   :  { %v14218_v17 = vadd.f32 %v11403_v42, %v14069_v25  ;;  %v4189_v34 = vpop.f32.mrb[213].mxu0 }
 0x4ab   :  { %v4276_v19 = vadd.f32 %v4275_v12, %v4261_v39  ;;  %v14223_v2 = vadd.f32 %v4189_v34, %v14063_v35  ;;  %v4240_v61 = vadd.f32 %v4239_v8, %v14203_v3  ;;  %v11404_v6 = vpop.f32.mrb[214].mxu0  ;;  %v11767_v12 = vld [vmem:[%s16463_s3 + $0x400] sm:$0xff]  }
 0x4ac   :  { %v14227_v50 = vadd.f32 %v11404_v6, %v14071_v52  ;;  %v4192_v30 = vpop.f32.mrb[215].mxu0  ;;  %v4265_v52 = vmul.f32 %v14218_v17, %v14218_v17  ;;  %10693 = vmatprep.subr.bf16.mxu0 %v11767_v12 }
 0x4ad   :  { %v4241_v28 = vadd.f32 %v4240_v61, %v14223_v2  ;;  %v4263_v25 = vmul.f32 %v14223_v2, %v14223_v2  ;;  %v4277_v46 = vadd.f32 %v4276_v19, %v4262_v24  ;;  %v14233_v49 = vadd.f32 %v4192_v30, %v14065_v31 }
 0x4ae   :  { %v4266_v31 = vmul.f32 %v14227_v50, %v14227_v50 }
 0x4af   :  { %v4278_v53 = vadd.f32 %v4277_v46, %v4263_v25  ;;  %v4242_v35 = vadd.f32 %v4241_v28, %v14233_v49  ;;  %v4264_v55 = vmul.f32 %v14233_v49, %v14233_v49 }
 0x4b1   :  { %v4243_v18 = vadd.f32 %v4242_v35, %v14218_v17  ;;  %v4279_v41 = vadd.f32 %v4278_v53, %v4264_v55  ;;  %v11407_v44 = vpop.f32.mrb[216].mxu0 }
 0x4b2   :  { %v14242_v36 = vadd.f32 %v11407_v44, %v14117_v27  ;;  %v4205_v47 = vpop.f32.mrb[217].mxu0 }
 0x4b3   :  { %v4280_v29 = vadd.f32 %v4279_v41, %v4265_v52  ;;  %v14247_v1 = vadd.f32 %v4205_v47, %v14087_v20  ;;  %v4244_v7 = vadd.f32 %v4243_v18, %v14227_v50  ;;  %v11408_v45 = vpop.f32.mrb[218].mxu0 }
 0x4b4   :  { %v14251_v32 = vadd.f32 %v11408_v45, %v14128_v43  ;;  %v4208_v10 = vpop.f32.mrb[219].mxu0  ;;  %v4269_v43 = vmul.f32 %v14242_v36, %v14242_v36 }
 0x4b5   :  { %v4245_v5 = vadd.f32 %v4244_v7, %v14247_v1  ;;  %v4267_v27 = vmul.f32 %v14247_v1, %v14247_v1  ;;  %v4281_v63 = vadd.f32 %v4280_v29, %v4266_v31  ;;  %v14257_v60 = vadd.f32 %v4208_v10, %v14098_v13 }
 0x4b6   :  { %v4270_v34 = vmul.f32 %v14251_v32, %v14251_v32 }
 0x4b7   :  { %v4282_v51 = vadd.f32 %v4281_v63, %v4267_v27  ;;  %v4246_v20 = vadd.f32 %v4245_v5, %v14257_v60  ;;  %v4268_v38 = vmul.f32 %v14257_v60, %v14257_v60 }
 0x4b9   :  { %v4247_v22 = vadd.f32 %v4246_v20, %v14242_v36  ;;  %v4283_v39 = vadd.f32 %v4282_v51, %v4268_v38  ;;  %v11411_v8 = vpop.f32.mrb[220].mxu0 }
 0x4ba   :  { %v14269_v13 = vadd.f32 %v11411_v8, %v14186_v23  ;;  %v4221_v42 = vpop.f32.mrb[221].mxu0 }
 0x4bb   :  { %v4284_v24 = vadd.f32 %v4283_v39, %v4269_v43  ;;  %v14274_v19 = vadd.f32 %v4221_v42, %v14147_v59  ;;  %v4248_v61 = vadd.f32 %v4247_v22, %v14251_v32  ;;  %v11412_v6 = vpop.f32.mrb[222].mxu0 }
 0x4bc   :  { %v14278_v30 = vadd.f32 %v11412_v6, %v14194_v37  ;;  %v4224_v28 = vpop.f32.mrb[223].mxu0  ;;  %v4273_v37 = vmul.f32 %v14269_v13, %v14269_v13 }
 0x4bd   :  { %v4249_v25 = vadd.f32 %v4248_v61, %v14274_v19  ;;  %v4271_v23 = vmul.f32 %v14274_v19, %v14274_v19  ;;  %v4285_v46 = vadd.f32 %v4284_v24, %v4270_v34  ;;  %v14284_v53 = vadd.f32 %v4224_v28, %v14158_v4 }
 0x4be   :  { %v4274_v41 = vmul.f32 %v14278_v30, %v14278_v30 }
 0x4bf   :  { %v4286_v35 = vadd.f32 %v4285_v46, %v4271_v23  ;;  %v4250_v59 = vadd.f32 %v4249_v25, %v14284_v53  ;;  %v4272_v55 = vmul.f32 %v14284_v53, %v14284_v53 }
 0x4c1   :  { %v4251_v52 = vadd.f32 %v4250_v59, %v14269_v13  ;;  %v4287_v18 = vadd.f32 %v4286_v35, %v4272_v55 }
 0x4c3   :  { %v4252_v44 = vadd.f32 %v4251_v52, %v14278_v30  ;;  %v4288_v47 = vadd.f32 %v4287_v18, %v4273_v37 }
 0x4c5   :  { %v4253_v4 = vrot.slane %v4252_v44, 4  ;;  %v4289_v31 = vadd.f32 %v4288_v47, %v4274_v41 }
 0x4c7   :  { %v4254_v29 = vadd.f32 %v4253_v4, %v4252_v44  ;;  %v4290_v7 = vrot.slane %v4289_v31, 4 }
 0x4c9   :  { %v4255_v45 = vrot.slane %v4254_v29, 2  ;;  %v4291_v10 = vadd.f32 %v4290_v7, %v4289_v31  ;;  %v9125_v7 = vld [vmem:[%s16469_s8] ss:$0 sm:$0xff] }
 0x4cb   :  { %v4256_v5 = vadd.f32 %v4255_v45, %v4254_v29  ;;  %v4292_v27 = vrot.slane %v4291_v10, 2 }
 0x4cd   :  { %v4257_v63 = vrot.slane %v4256_v5, 1  ;;  %v4293_v51 = vadd.f32 %v4292_v27, %v4291_v10 }
 0x4cf   :  { %v4258_v20 = vadd.f32 %v4257_v63, %v4256_v5  ;;  %v4294_v38 = vrot.slane %v4293_v51, 1 }
 0x4d1   :  { %v4295_v43 = vadd.f32 %v4294_v38, %v4293_v51  ;;  %v4296_v22 = vmul.f32 0.0078125, %v4258_v20 }
 0x4d3   :  { %v4297_v39 = vmul.f32 0.0078125, %v4295_v43  ;;  %v4298_v8 = vmul.f32 %v4296_v22, %v4296_v22  ;;  %v4300_v12 = vsub.f32 %v14200_v0, %v4296_v22  ;;  %v4301_v42 = vsub.f32 %v14206_v54, %v4296_v22 }
 0x4d4   :  { %v4302_v34 = vsub.f32 %v14197_v48, %v4296_v22  ;;  %v4303_v24 = vsub.f32 %v14203_v3, %v4296_v22  ;;  %v4304_v61 = vsub.f32 %v14223_v2, %v4296_v22  ;;  %v4305_v6 = vsub.f32 %v14233_v49, %v4296_v22 }
 0x4d5   :  { %v4299_v28 = vsub.f32 %v4297_v39, %v4298_v8  ;;  %v4306_v25 = vsub.f32 %v14218_v17, %v4296_v22  ;;  %v4307_v23 = vsub.f32 %v14227_v50, %v4296_v22  ;;  %v4308_v46 = vsub.f32 %v14247_v1, %v4296_v22  ;;  %v4236_v17 = vld [vmem:[%s16468_s7] sm:$0x1] }
 0x4d6   :  { %v4309_v35 = vsub.f32 %v14257_v60, %v4296_v22  ;;  %v4310_v0 = vsub.f32 %v14242_v36, %v4296_v22  ;;  %v4311_v54 = vsub.f32 %v14251_v32, %v4296_v22  ;;  %v4312_v48 = vsub.f32 %v14274_v19, %v4296_v22 }
 0x4d7   :  { %v4313_v3 = vsub.f32 %v14284_v53, %v4296_v22  ;;  %v4314_v2 = vsub.f32 %v14269_v13, %v4296_v22  ;;  %v4315_v49 = vsub.f32 %v14278_v30, %v4296_v22  ;;  %v4316_v59 = vadd.f32 1e-05, %v4299_v28 }
 0x4d9   :  { %11976 = vrsqrt.f32 %v4316_v59  ;;  %v16496_v59 = vld [vmem:[#allocation6_spill] sm:$0xff] }
 0x4e3   :  { %v11977_v50 = vpop.eup %11976 }
 0x4e4   :  { %v4318_v1 = vmul.f32 %v11977_v50, %v4236_v17  ;;  %v16497_v50 = vld [vmem:[#allocation3_spill] sm:$0xff] }
 0x4e6   :  { %v4322_v36 = vrot.slane %v4318_v1, %v13559_v15 }
 0x4e8   :  { %v4323_v60 = vmul.f32 %v4322_v36, %v4300_v12  ;;  %v4324_v32 = vmul.f32 %v4322_v36, %v4301_v42  ;;  %v4325_v55 = vmul.f32 %v4322_v36, %v4302_v34  ;;  %v4326_v19 = vmul.f32 %v4322_v36, %v4303_v24 }
 0x4e9   :  { %v4327_v37 = vmul.f32 %v4322_v36, %v4304_v61  ;;  %v4328_v53 = vmul.f32 %v4322_v36, %v4305_v6  ;;  %v4329_v52 = vmul.f32 %v4322_v36, %v4306_v25  ;;  %v4330_v13 = vmul.f32 %v4322_v36, %v4307_v23 }
 0x4ea   :  { %v4331_v18 = vmul.f32 %v4322_v36, %v4308_v46  ;;  %v4332_v30 = vmul.f32 %v4322_v36, %v4309_v35  ;;  %v4333_v41 = vmul.f32 %v4322_v36, %v4310_v0  ;;  %v4334_v44 = vmul.f32 %v4322_v36, %v4311_v54 }
 0x4eb   :  { %v4335_v47 = vmul.f32 %v4322_v36, %v4312_v48  ;;  %v4336_v4 = vmul.f32 %v4322_v36, %v4313_v3  ;;  %v4337_v31 = vmul.f32 %v4322_v36, %v4314_v2  ;;  %v4338_v29 = vmul.f32 %v4322_v36, %v4315_v49  ;;  %v16495_v2 = vld [vmem:[#allocation4_spill] sm:$0xff]  ;;  %v16498_v36 = vld [vmem:[#allocation5_spill] sm:$0xff] }
 0x4ec   :  { %v4345_v45 = vadd.f32 %v9125_v7, %v4323_v60  ;;  %v4346_v10 = vadd.f32 %v9125_v7, %v4324_v32  ;;  %v4347_v5 = vadd.f32 %v9125_v7, %v4325_v55  ;;  %v4348_v27 = vadd.f32 %v9125_v7, %v4326_v19 }
 0x4ed   :  { %v4349_v63 = vadd.f32 %v9125_v7, %v4327_v37  ;;  %v4350_v51 = vadd.f32 %v9125_v7, %v4328_v53  ;;  %v4351_v20 = vadd.f32 %v9125_v7, %v4329_v52  ;;  %v4352_v39 = vadd.f32 %v9125_v7, %v4330_v13 }
 0x4ee   :  { %v14319_v38 = vadd.f32 %v4345_v45, %v12896_v40  ;;  %v14322_v43 = vadd.f32 %v4346_v10, %v12903_v33  ;;  %v14325_v22 = vadd.f32 %v4347_v5, %v12893_v62  ;;  %v14328_v8 = vadd.f32 %v4348_v27, %v12900_v58 }
 0x4ef   :  { %v4353_v12 = vadd.f32 %v9125_v7, %v4331_v18  ;;  %v14331_v42 = vadd.f32 %v4349_v63, %v12913_v14  ;;  %v4354_v34 = vadd.f32 %v9125_v7, %v4332_v30  ;;  %v4355_v24 = vadd.f32 %v9125_v7, %v4333_v41 }
 0x4f0   :  { %v14334_v61 = vadd.f32 %v4350_v51, %v12923_v11  ;;  %v14337_v40 = vadd.f32 %v4351_v20, %v12910_v26  ;;  %v4393_v33 = vmul.f32 1.442695, %v14319_v38  ;;  %v4395_v62 = vmul.f32 1.442695, %v14322_v43 }
 0x4f1   :  { %v4397_v6 = vmul.f32 1.442695, %v14325_v22  ;;  %v4356_v58 = vadd.f32 %v9125_v7, %v4334_v44  ;;  %v14343_v28 = vadd.f32 %v4352_v39, %v12917_v56  ;;  %v4399_v14 = vmul.f32 1.442695, %v14328_v8 }
 0x4f2   :  { %v4357_v25 = vadd.f32 %v9125_v7, %v4335_v47  ;;  %v14347_v23 = vadd.f32 %v4353_v12, %v12961_v9  ;;  %11978 = vpow2.f32 %v4393_v33  ;;  %v4401_v26 = vmul.f32 1.442695, %v14331_v42 }
 0x4f3   :  { %v4358_v11 = vadd.f32 %v9125_v7, %v4336_v4  ;;  %v14351_v46 = vadd.f32 %v4354_v34, %v12971_v21  ;;  %11980 = vpow2.f32 %v4395_v62  ;;  %v4403_v35 = vmul.f32 1.442695, %v14334_v61 }
 0x4f4   :  { %v4359_v0 = vadd.f32 %v9125_v7, %v4337_v31  ;;  %v14355_v56 = vadd.f32 %v4355_v24, %v12958_v16  ;;  %11982 = vpow2.f32 %v4397_v6  ;;  %v4405_v54 = vmul.f32 1.442695, %v14337_v40 }
 0x4f5   :  { %v4360_v48 = vadd.f32 %v9125_v7, %v4338_v29  ;;  %v14359_v9 = vadd.f32 %v4356_v58, %v12965_v57  ;;  %11984 = vpow2.f32 %v4399_v14  ;;  %v4407_v3 = vmul.f32 1.442695, %v14343_v28 }
 0x4f6   :  { %v14363_v21 = vadd.f32 %v4357_v25, %v16495_v2  ;;  %11986 = vpow2.f32 %v4401_v26  ;;  %v4409_v49 = vmul.f32 1.442695, %v14347_v23  ;;  %v14367_v17 = vadd.f32 %v4358_v11, %v16496_v59 }
 0x4f7   :  { %11988 = vpow2.f32 %v4403_v35  ;;  %v4411_v16 = vmul.f32 1.442695, %v14351_v46  ;;  %v14371_v1 = vadd.f32 %v4359_v0, %v16497_v50  ;;  %v4413_v57 = vmul.f32 1.442695, %v14355_v56 }
 0x4f8   :  { %11990 = vpow2.f32 %v4405_v54  ;;  %v14375_v60 = vadd.f32 %v4360_v48, %v16498_v36  ;;  %v4415_v32 = vmul.f32 1.442695, %v14359_v9  ;;  %v4417_v55 = vmul.f32 1.442695, %v14363_v21 }
 0x4f9   :  { %11992 = vpow2.f32 %v4407_v3  ;;  %vm4377_vm0 = vcmp.gt.f32.partialorder %v14319_v38, 0.0  ;;  %vm4378_vm1 = vcmp.gt.f32.partialorder %v14322_v43, 0.0  ;;  %v4419_v19 = vmul.f32 1.442695, %v14367_v17 }
 0x4fa   :  { %11994 = vpow2.f32 %v4409_v49  ;;  %vm4379_vm2 = vcmp.gt.f32.partialorder %v14325_v22, 0.0  ;;  %vm4380_vm3 = vcmp.gt.f32.partialorder %v14328_v8, 0.0  ;;  %v4421_v53 = vmul.f32 1.442695, %v14371_v1 }
 0x4fb   :  { %11996 = vpow2.f32 %v4411_v16  ;;  %vm4381_vm4 = vcmp.gt.f32.partialorder %v14331_v42, 0.0  ;;  %v4423_v13 = vmul.f32 1.442695, %v14375_v60  ;;  %vm4382_vm5 = vcmp.gt.f32.partialorder %v14334_v61, 0.0 }
 0x4fc   :  { %v11979_v37 = vpop.eup %11978  ;;  %11998 = vpow2.f32 %v4413_v57  ;;  %vm4383_vm6 = vcmp.gt.f32.partialorder %v14337_v40, 0.0  ;;  %vm4384_vm7 = vcmp.gt.f32.partialorder %v14343_v28, 0.0  ;;  %vm4385_vm8 = vcmp.gt.f32.partialorder %v14347_v23, 0.0 }
 0x4fd   :  { %v11981_v52 = vpop.eup %11980  ;;  %12000 = vpow2.f32 %v4415_v32  ;;  %v9126_v18 = vadd.f32 -1.0, %v11979_v37  ;;  %vm4386_vm9 = vcmp.gt.f32.partialorder %v14351_v46, 0.0  ;;  %vm4387_vm10 = vcmp.gt.f32.partialorder %v14355_v56, 0.0 }
 0x4fe   :  { %v11983_v30 = vpop.eup %11982  ;;  %12002 = vpow2.f32 %v4417_v55  ;;  %v9127_v41 = vadd.f32 -1.0, %v11981_v52  ;;  %vm4388_vm11 = vcmp.gt.f32.partialorder %v14359_v9, 0.0  ;;  %vm4389_vm12 = vcmp.gt.f32.partialorder %v14363_v21, 0.0 }
 0x4ff   :  { %v11985_v44 = vpop.eup %11984  ;;  %12004 = vpow2.f32 %v4419_v19  ;;  %v9128_v47 = vadd.f32 -1.0, %v11983_v30  ;;  %v4441_v4 = vmul.f32 1.6732632, %v9126_v18  ;;  %vm4390_vm13 = vcmp.gt.f32.partialorder %v14367_v17, 0.0 }
 0x500   :  { %v11987_v31 = vpop.eup %11986  ;;  %12006 = vpow2.f32 %v4421_v53  ;;  %v9129_v29 = vadd.f32 -1.0, %v11985_v44  ;;  %v4442_v7 = vmul.f32 1.6732632, %v9127_v41  ;;  %vm4391_vm14 = vcmp.gt.f32.partialorder %v14371_v1, 0.0 }
 0x501   :  { %v11989_v45 = vpop.eup %11988  ;;  %12008 = vpow2.f32 %v4423_v13  ;;  %v9130_v10 = vadd.f32 -1.0, %v11987_v31  ;;  %v4443_v5 = vmul.f32 1.6732632, %v9128_v47  ;;  %v4457_v27 = vsel %vm4377_vm0, %v14319_v38, %v4441_v4  ;;  %v4674_v13 = vld [vmem:[#allocation2 + $0x1] sm:$0xff] }
 0x502   :  { %v11991_v63 = vpop.eup %11990  ;;  %v9131_v51 = vadd.f32 -1.0, %v11989_v45  ;;  %v4444_v20 = vmul.f32 1.6732632, %v9129_v29  ;;  %v4458_v39 = vsel %vm4378_vm1, %v14322_v43, %v4442_v7  ;;  %v14399_v12 = vmul.f32 1.050701, %v4457_v27  ;;  %v4698_v47 = vld [vmem:[#allocation2 + $0x2] sm:$0xff] }
 0x503   :  { %v11993_v34 = vpop.eup %11992  ;;  %v9132_v24 = vadd.f32 -1.0, %v11991_v63  ;;  %v4445_v33 = vmul.f32 1.6732632, %v9130_v10  ;;  %v4459_v38 = vsel %vm4379_vm2, %v14325_v22, %v4443_v5  ;;  %v14405_v62 = vmul.f32 1.050701, %v4458_v39 }
 0x504   :  { %v11995_v6 = vpop.eup %11994  ;;  %v9133_v58 = vadd.f32 -1.0, %v11993_v34  ;;  %v4446_v14 = vmul.f32 1.6732632, %v9131_v51  ;;  %v4460_v43 = vsel %vm4380_vm3, %v14328_v8, %v4444_v20  ;;  %v14411_v25 = vmul.f32 1.050701, %v4459_v38  ;;  %4489 = vst [vmem:[#allocation2 + $0x11] sm:$0xff] %v14399_v12 }
 0x505   :  { %v11997_v26 = vpop.eup %11996  ;;  %v9134_v11 = vadd.f32 -1.0, %v11995_v6  ;;  %v4447_v22 = vmul.f32 1.6732632, %v9132_v24  ;;  %v4461_v35 = vsel %vm4381_vm4, %v14331_v42, %v4445_v33  ;;  %v14418_v0 = vmul.f32 1.050701, %v4460_v43  ;;  %4490 = vst [vmem:[#allocation2 + $0x21] sm:$0xff] %v14405_v62 }
 0x506   :  { %v11999_v54 = vpop.eup %11998  ;;  %v9135_v8 = vadd.f32 -1.0, %v11997_v26  ;;  %v4448_v48 = vmul.f32 1.6732632, %v9133_v58  ;;  %v4462_v3 = vsel %vm4382_vm5, %v14334_v61, %v4446_v14  ;;  %v14425_v2 = vmul.f32 1.050701, %v4461_v35  ;;  %4491 = vst [vmem:[#allocation2 + $0x31] sm:$0xff] %v14411_v25 }
 0x507   :  { %v12001_v49 = vpop.eup %12000  ;;  %vm4392_vm15 = vcmp.gt.f32.partialorder %v14375_v60, 0.0  ;;  %v9136_v42 = vadd.f32 -1.0, %v11999_v54  ;;  %v4449_v59 = vmul.f32 1.6732632, %v9134_v11  ;;  %v4463_v16 = vsel %vm4383_vm6, %v14337_v40, %v4447_v22  ;;  %4492 = vst [vmem:[#allocation2 + $0x41] sm:$0xff] %v14418_v0  ;;  %v14486_v43 = vld [vmem:[#allocation2] sm:$0xff] }
 0x508   :  { %v14432_v50 = vmul.f32 1.050701, %v4462_v3  ;;  %v12003_v57 = vpop.eup %12002  ;;  %v9137_v36 = vadd.f32 -1.0, %v12001_v49  ;;  %v4450_v61 = vmul.f32 1.6732632, %v9135_v8  ;;  %v4464_v32 = vsel %vm4384_vm7, %v14343_v28, %v4448_v48  ;;  %4493 = vst [vmem:[#allocation2 + $0x51] sm:$0xff] %v14425_v2 }
 0x509   :  { %v14438_v55 = vmul.f32 1.050701, %v4463_v16  ;;  %v12005_v19 = vpop.eup %12004  ;;  %v9138_v37 = vadd.f32 -1.0, %v12003_v57  ;;  %v4451_v53 = vmul.f32 1.6732632, %v9136_v42  ;;  %v4465_v40 = vsel %vm4385_vm8, %v14347_v23, %v4449_v59  ;;  %v11759_v11 = vld [vmem:[%s16463_s3 + $0x340] sm:$0xff]  }
 0x50a   :  { %v14444_v52 = vmul.f32 1.050701, %v4464_v32  ;;  %4494 = vst [vmem:[#allocation2 + $0x61] sm:$0xff] %v14432_v50  ;;  %v12007_v18 = vpop.eup %12006  ;;  %v9139_v30 = vadd.f32 -1.0, %v12005_v19  ;;  %v4452_v41 = vmul.f32 1.6732632, %v9137_v36  ;;  %v4466_v28 = vsel %vm4386_vm9, %v14351_v46, %v4450_v61 }
 0x50b   :  { %v14450_v44 = vmul.f32 1.050701, %v4465_v40  ;;  %4495 = vst [vmem:[#allocation2 + $0x71] sm:$0xff] %v14438_v55  ;;  %v12009_v4 = vpop.eup %12008  ;;  %v9140_v31 = vadd.f32 -1.0, %v12007_v18  ;;  %v4453_v23 = vmul.f32 1.6732632, %v9138_v37  ;;  %v4467_v29 = vsel %vm4387_vm10, %v14355_v56, %v4451_v53 }
 0x50c   :  { %v14456_v7 = vmul.f32 1.050701, %v4466_v28  ;;  %4496 = vst [vmem:[#allocation2 + $0x81] sm:$0xff] %v14444_v52  ;;  %v4722_v45 = vld [vmem:[#allocation2 + $0x10] sm:$0xff]  ;;  %v9141_v10 = vadd.f32 -1.0, %v12009_v4  ;;  %v4468_v46 = vsel %vm4388_vm11, %v14359_v9, %v4452_v41  ;;  %v4723_v63 = vld [vmem:[#allocation2 + $0x20] sm:$0xff]  ;;  %v4690_v39 = vpack.c.bf16 %v14399_v12, %v4674_v13 }
 0x50d   :  { %v4454_v5 = vmul.f32 1.6732632, %v9139_v30  ;;  %v14462_v27 = vmul.f32 1.050701, %v4467_v29  ;;  %4497 = vst [vmem:[#allocation2 + $0xb1] sm:$0xff] %v14450_v44  ;;  %v4469_v56 = vsel %vm4389_vm12, %v14363_v21, %v4453_v23  ;;  %v14472_v34 = vld [vmem:[#allocation2 + $0x12] sm:$0xff]  ;;  %v4738_v6 = vpack.c.bf16 %v4723_v63, %v4722_v45 }
 0x50e   :  { %16499 = vst [vmem:[#allocation4_spill] sm:$0xff] %v14456_v7  ;;  %v4455_v51 = vmul.f32 1.6732632, %v9140_v31  ;;  %v14468_v20 = vmul.f32 1.050701, %v4468_v46  ;;  %4498 = vst [vmem:[#allocation2 + $0xc1] sm:$0xff] %v14456_v7  ;;  %5330 = vmatprep.mubr.bf16.mxu1 %v4690_v39  ;;  %v4666_v26 = vpack.c.bf16 %v4722_v45, %v14486_v43  ;;  %v14501_v35 = vpack.c.bf16 %v14411_v25, %v14405_v62 }
 0x50f   :  { %16500 = vst [vmem:[#allocation6_spill] sm:$0xff] %v14462_v27  ;;  %v4724_v24 = vld [vmem:[#allocation2 + $0x30] sm:$0xff]  ;;  %v4456_v9 = vmul.f32 1.6732632, %v9141_v10  ;;  %v4470_v33 = vsel %vm4390_vm13, %v14367_v17, %v4454_v5  ;;  %v14477_v38 = vmul.f32 1.050701, %v4469_v56  ;;  %v4714_v17 = vpack.c.bf16 %v14472_v34, %v4698_v47  ;;  %5427 = vmatprep.mubr.bf16.mxu0 %v4738_v6 }
 0x510   :  { %16501 = vst [vmem:[#allocation3_spill] sm:$0xff] %v14468_v20  ;;  %4499 = vst [vmem:[#allocation2 + $0xd1] sm:$0xff] %v14462_v27  ;;  %v4725_v21 = vld [vmem:[#allocation2 + $0x40] sm:$0xff]  ;;  %v4471_v58 = vsel %vm4391_vm14, %v14371_v1, %v4455_v51  ;;  %v14483_v14 = vmul.f32 1.050701, %v4470_v33  ;;  %v11760_v8 = vld [vmem:[%s16463_s3 + $0x388] sm:$0xff]   ;;  %5331 = vmatmul.mubr.bf16.vlgmr.msra.gmra.mrb[208].mxu1 %v4666_v26  ;;  %v14528_v61 = vpack.c.bf16 %v4724_v24, %v4723_v63 }
 0x511   :  { %16502 = vst [vmem:[#allocation5_spill] sm:$0xff] %v14477_v38  ;;  %4500 = vst [vmem:[#allocation2 + $0xe1] sm:$0xff] %v14468_v20  ;;  %v4472_v22 = vsel %vm4392_vm15, %v14375_v60, %v4456_v9  ;;  %v14496_v1 = vmul.f32 1.050701, %v4471_v58  ;;  %v4739_v54 = vpack.c.bf16 %v4725_v21, %v4724_v24  ;;  %5428 = vmatmul.mubr.bf16.vlgmr.msra.gmra.mrb[224].mxu0 %v4714_v17  ;;  %v11769_v60 = vld [vmem:[%s16463_s3 + $0x3c0] sm:$0xff]   ;;  %5338 = vmatprep.mubr.bf16.mxu1 %v14501_v35  ;;  %v11770_v3 = vld [vmem:[%s16463_s3 + $0x408] sm:$0xff]  }
 0x512   :  { %16503 = vst [vmem:[#allocation7_spill] sm:$0xff] %v14483_v14  ;;  %4501 = vst [vmem:[#allocation2 + $0xf1] sm:$0xff] %v14477_v38  ;;  %v14506_v48 = vmul.f32 1.050701, %v4472_v22  ;;  %10630 = vmatpush3.bf16.msra.mxu1 %v11759_v11  ;;  %v11761_v49 = vld [vmem:[%s16463_s3 + $0x348] sm:$0xff]   ;;  %v14523_v59 = vld [vmem:[#allocation2 + $0x32] sm:$0xff]  ;;  %10694 = vmatpush3.bf16.msra.mxu0 %v11769_v60  ;;  %v14542_v53 = vpack.c.bf16 %v14425_v2, %v14418_v0  ;;  %v14585_v63 = vpack.c.bf16 %v14438_v55, %v14432_v50 }
 0x513   :  { %16504 = vst [vmem:[#allocation8_spill] sm:$0xff] %v14496_v1  ;;  %4502 = vst [vmem:[#allocation2 + $0x101] sm:$0xff] %v14483_v14  ;;  %5435 = vmatprep.mubr.bf16.mxu0 %v4739_v54  ;;  %v14521_v42 = vld [vmem:[#allocation2 + $0x22] sm:$0xff]  ;;  %10631 = vmatprep.subr.bf16.mxu1 %v11760_v8  ;;  %v11762_v16 = vld [vmem:[%s16463_s3 + $0x390] sm:$0xff]  }
 0x514   :  { %16505 = vst [vmem:[#allocation9_spill] sm:$0xff] %v14506_v48  ;;  %4503 = vst [vmem:[#allocation2 + $0x111] sm:$0xff] %v14496_v1  ;;  %v4726_v57 = vld [vmem:[#allocation2 + $0x50] sm:$0xff]  ;;  %v4727_v36 = vld [vmem:[#allocation2 + $0x60] sm:$0xff]  ;;  %10695 = vmatprep.subr.bf16.mxu0 %v11770_v3  ;;  %v14532_v32 = vpack.c.bf16 %v14523_v59, %v14521_v42 }
 0x515   :  { %4504 = vst [vmem:[#allocation2 + $0x121] sm:$0xff] %v14506_v48  ;;  %v11763_v19 = vld [vmem:[%s16463_s3 + $0x350] sm:$0xff]   ;;  %v11771_v37 = vld [vmem:[%s16463_s3 + $0x3c8] sm:$0xff]   ;;  %v4740_v40 = vpack.c.bf16 %v4727_v36, %v4726_v57  ;;  %v11764_v13 = vld [vmem:[%s16463_s3 + $0x398] sm:$0xff]   ;;  %v14571_v45 = vpack.c.bf16 %v4726_v57, %v4725_v21 }
 0x516   :  { %10632 = vmatpush3.bf16.msra.mxu1 %v11761_v49  ;;  %v11773_v18 = vld [vmem:[%s16463_s3 + $0x410] sm:$0xff]   ;;  %v11765_v30 = vld [vmem:[%s16463_s3 + $0x358] sm:$0xff]   ;;  %v11766_v41 = vld [vmem:[%s16463_s3 + $0x3a0] sm:$0xff]   ;;  %10696 = vmatpush3.bf16.msra.mxu0 %v11771_v37 }
 0x517   :  { %10633 = vmatprep.subr.bf16.mxu1 %v11762_v16  ;;  %v11775_v28 = vld [vmem:[%s16463_s3 + $0x3d0] sm:$0xff]   ;;  %v14562_v47 = vld [vmem:[#allocation2 + $0x42] sm:$0xff]  ;;  %10697 = vmatprep.subr.bf16.mxu0 %v11773_v18  ;;  %v11776_v31 = vld [vmem:[%s16463_s3 + $0x418] sm:$0xff]  }
 0x518   :  { %5339 = vmatmul.mubr.bf16.gmra.mrb[212].mxu1 %v14528_v61  ;;  %v14564_v4 = vld [vmem:[#allocation2 + $0x52] sm:$0xff]  ;;  %v14569_v29 = vld [vmem:[#allocation2 + $0x80] sm:$0xff]  ;;  %v11772_v56 = vld [vmem:[%s16463_s3 + $0x3a8] sm:$0xff]  }
 0x519   :  { %5436 = vmatmul.mubr.bf16.gmra.mrb[228].mxu0 %v14532_v32  ;;  %5346 = vmatprep.mubr.bf16.mxu1 %v14542_v53  ;;  %v4728_v23 = vld [vmem:[#allocation2 + $0x70] sm:$0xff]  ;;  %v14575_v10 = vpack.c.bf16 %v14564_v4, %v14562_v47  ;;  %v11768_v5 = vld [vmem:[%s16463_s3 + $0x360] sm:$0xff]   ;;  %v11777_v46 = vld [vmem:[%s16463_s3 + $0x3d8] sm:$0xff]  }
 0x51a   :  { %5443 = vmatprep.mubr.bf16.mxu0 %v4740_v40  ;;  %10634 = vmatpush3.bf16.msra.mxu1 %v11763_v19  ;;  %v4741_v51 = vpack.c.bf16 %v14569_v29, %v4728_v23  ;;  %v11779_v39 = vld [vmem:[%s16463_s3 + $0x420] sm:$0xff]   ;;  %v11774_v24 = vld [vmem:[%s16463_s3 + $0x368] sm:$0xff]   ;;  %v11778_v9 = vld [vmem:[%s16463_s3 + $0x3b0] sm:$0xff]   ;;  %v14613_v22 = vpack.c.bf16 %v4728_v23, %v4727_v36 }
 0x51b   :  { %10635 = vmatprep.subr.bf16.mxu1 %v11764_v13  ;;  %10698 = vmatpush3.bf16.msra.mxu0 %v11775_v28  ;;  %v11781_v33 = vld [vmem:[%s16463_s3 + $0x3e0] sm:$0xff]   ;;  %v14608_v21 = vld [vmem:[#allocation2 + $0x72] sm:$0xff]  ;;  %v11782_v58 = vld [vmem:[%s16463_s3 + $0x428] sm:$0xff]  }
 0x51c   :  { %10699 = vmatprep.subr.bf16.mxu0 %v11776_v31  ;;  %v14606_v6 = vld [vmem:[#allocation2 + $0x62] sm:$0xff]  ;;  %v4730_v17 = vld [vmem:[#allocation2 + $0xb0] sm:$0xff]  ;;  %v11784_v16 = vld [vmem:[%s16463_s3 + $0x3b8] sm:$0xff]  }
 0x51d   :  { %v4682_v26 = vld [vmem:[#allocation2 + $0xa1] sm:$0xff]  ;;  %v14617_v54 = vpack.c.bf16 %v14608_v21, %v14606_v6  ;;  %v11780_v8 = vld [vmem:[%s16463_s3 + $0x370] sm:$0xff]   ;;  %v11786_v19 = vld [vmem:[%s16463_s3 + $0x378] sm:$0xff]   ;;  %v4670_v28 = vpack.c.bf16 %v4730_v17, %v14486_v43 }
 0x51e   :  { %10636 = vmatpush3.bf16.msra.mxu1 %v11765_v30  ;;  %v4731_v11 = vld [vmem:[#allocation2 + $0xc0] sm:$0xff]  ;;  %v11783_v60 = vld [vmem:[%s16463_s3 + $0x3e8] sm:$0xff]   ;;  %v4694_v3 = vpack.c.bf16 %v14450_v44, %v4682_v26  ;;  %v11785_v57 = vld [vmem:[%s16463_s3 + $0x430] sm:$0xff]  }
 0x51f   :  { %10637 = vmatprep.subr.bf16.mxu1 %v11766_v41  ;;  %10700 = vmatpush3.bf16.msra.mxu0 %v11777_v46  ;;  %v4742_v49 = vpack.c.bf16 %v4731_v11, %v4730_v17  ;;  %v4706_v36 = vld [vmem:[#allocation2 + $0xa2] sm:$0xff]  ;;  %v11787_v37 = vld [vmem:[%s16463_s3 + $0x3f0] sm:$0xff]   ;;  %v11788_v13 = vld [vmem:[%s16463_s3 + $0x438] sm:$0xff]  }
 0x520   :  { %5347 = vmatmul.mubr.bf16.gmra.mrb[216].mxu1 %v14571_v45  ;;  %10701 = vmatprep.subr.bf16.mxu0 %v11779_v39  ;;  %v14640_v40 = vld [vmem:[#allocation2 + $0xb2] sm:$0xff]  ;;  %v11790_v18 = vld [vmem:[%s16463_s3 + $0x440] sm:$0xff]  }
 0x521   :  { %5444 = vmatmul.mubr.bf16.gmra.mrb[232].mxu0 %v14575_v10  ;;  %5354 = vmatprep.mubr.bf16.mxu1 %v14585_v63  ;;  %v4732_v30 = vld [vmem:[#allocation2 + $0xd0] sm:$0xff]  ;;  %v4733_v41 = vld [vmem:[#allocation2 + $0xe0] sm:$0xff]  ;;  %v4718_v31 = vpack.c.bf16 %v14640_v40, %v4706_v36  ;;  %v11789_v23 = vld [vmem:[%s16463_s3 + $0x3f8] sm:$0xff]  }
 0x522   :  { %5451 = vmatprep.mubr.bf16.mxu0 %v4741_v51  ;;  %10638 = vmatpush3.bf16.msra.mxu1 %v11768_v5  ;;  %v14655_v5 = vpack.c.bf16 %v14462_v27, %v14456_v7  ;;  %v4743_v46 = vpack.c.bf16 %v4733_v41, %v4732_v30  ;;  %v14658_v51 = vld [vmem:[#allocation2 + $0xc2] sm:$0xff]  ;;  %v4734_v39 = vld [vmem:[#allocation2 + $0xf0] sm:$0xff] }
 0x523   :  { %10639 = vmatprep.subr.bf16.mxu1 %v11772_v56  ;;  %10702 = vmatpush3.bf16.msra.mxu0 %v11781_v33  ;;  %v14660_v56 = vld [vmem:[#allocation2 + $0xd2] sm:$0xff]  ;;  %v14675_v17 = vld [vmem:[#allocation2 + $0xe2] sm:$0xff] }
 0x524   :  { %10703 = vmatprep.subr.bf16.mxu0 %v11782_v58  ;;  %v14666_v33 = vpack.c.bf16 %v14660_v56, %v14658_v51  ;;  %v14670_v58 = vpack.c.bf16 %v14477_v38, %v14468_v20  ;;  %v14692_v36 = vld [vmem:[#allocation2 + $0x102] sm:$0xff] }
 0x526   :  { %10640 = vmatpush3.bf16.msra.mxu1 %v11774_v24  ;;  %v4735_v24 = vld [vmem:[#allocation2 + $0x100] sm:$0xff] }
 0x527   :  { %10641 = vmatprep.subr.bf16.mxu1 %v11778_v9  ;;  %10704 = vmatpush3.bf16.msra.mxu0 %v11783_v60  ;;  %v14662_v9 = vpack.c.bf16 %v4732_v30, %v4731_v11  ;;  %v4744_v26 = vpack.c.bf16 %v4735_v24, %v4734_v39  ;;  %v14677_v11 = vld [vmem:[#allocation2 + $0xf2] sm:$0xff]  ;;  %v14679_v60 = vld [vmem:[#allocation2 + $0x120] sm:$0xff]  ;;  %v4786_v30 = vpack.c.bf16 %v14521_v42, %v14472_v34 }
 0x528   :  { %5355 = vmatmul.mubr.bf16.gmra.mrb[220].mxu1 %v14613_v22  ;;  %10705 = vmatprep.subr.bf16.mxu0 %v11785_v57  ;;  %v11792_v34 = vld [vmem:[%s16463_s3 + $0x450] sm:$0xff]   ;;  %v4788_v42 = vpack.c.bf16 %v14606_v6, %v14564_v4  ;;  %v4764_v4 = vpack.c.bf16 %v14432_v50, %v14425_v2 }
 0x529   :  { %5452 = vmatmul.mubr.bf16.gmra.mrb[236].mxu0 %v14617_v54  ;;  %5362 = vmatprep.mubr.bf16.mxu1 %v4694_v3  ;;  %v14681_v3 = vpack.c.bf16 %v4734_v39, %v4733_v41  ;;  %v4762_v41 = vpack.c.bf16 %v14405_v62, %v14399_v12  ;;  %v4766_v39 = vpack.c.bf16 %v14456_v7, %v14450_v44 }
 0x52a   :  { %5459 = vmatprep.mubr.bf16.mxu0 %v4742_v49  ;;  %10642 = vmatpush3.bf16.msra.mxu1 %v11780_v8  ;;  %v4736_v8 = vld [vmem:[#allocation2 + $0x110] sm:$0xff]  ;;  %v14685_v49 = vpack.c.bf16 %v14677_v11, %v14675_v17 }
 0x52b   :  { %10643 = vmatprep.subr.bf16.mxu1 %v11784_v16  ;;  %10706 = vmatpush3.bf16.msra.mxu0 %v11787_v37  ;;  %v4697_v16 = vpack.c.bf16 %v14496_v1, %v14483_v14  ;;  %v4745_v57 = vpack.c.bf16 %v14679_v60, %v4736_v8  ;;  %v14696_v37 = vpack.c.bf16 %v4736_v8, %v4735_v24  ;;  %v4833_v8 = vld [vmem:[#allocation2 + $0x131] sm:$0xff] }
 0x52c   :  { %10707 = vmatprep.subr.bf16.mxu0 %v11788_v13  ;;  %v4792_v24 = vpack.c.bf16 %v14692_v36, %v14677_v11 }
 0x52e   :  { %10644 = vmatpush3.bf16.msra.mxu1 %v11786_v19  ;;  %v14694_v19 = vld [vmem:[#allocation2 + $0x112] sm:$0xff] }
 0x52f   :  { %11413 = vmatprep.subr.bf16.mxu1 %v11790_v18  ;;  %10708 = vmatpush3.bf16.msra.mxu0 %v11789_v23  ;;  %v14700_v13 = vpack.c.bf16 %v14694_v19, %v14692_v36  ;;  %v4813_v23 = vpack.c.bf16 %v14486_v43, %v14569_v29  ;;  %v4791_v29 = vpack.c.bf16 %v14675_v17, %v14660_v56  ;;  %v4758_v56 = vld [vmem:[#allocation2 + $0xf1] sm:$0xff]  ;;  %v4785_v17 = vld [vmem:[#allocation2 + $0x122] sm:$0xff] }
 0x530   :  { %5363 = vmatmul.mubr.bf16.gmra.mrb[224].mxu1 %v4670_v28  ;;  %v4787_v28 = vpack.c.bf16 %v14562_v47, %v14523_v59  ;;  %v11793_v59 = vld [vmem:[%s16463_s3 + $0x458] sm:$0xff]   ;;  %v4817_v36 = vpack.c.bf16 %v14486_v43, %v14679_v60 }
 0x531   :  { %5460 = vmatmul.mubr.bf16.gmra.mrb[240].mxu0 %v4718_v31  ;;  %5370 = vmatprep.mubr.bf16.mxu1 %v14655_v5  ;;  %v11791_v31 = vld [vmem:[%s16463_s3 + $0x448] sm:$0xff]   ;;  %v4825_v47 = vld [vmem:[#allocation2 + $0x91] sm:$0xff] }
 0x532   :  { %5467 = vmatprep.mubr.bf16.mxu0 %v4743_v46  ;;  %v4790_v46 = vpack.c.bf16 %v14658_v51, %v14640_v40  ;;  %v4830_v40 = vld [vmem:[#allocation2 + $0x101] sm:$0xff]  ;;  %v4831_v51 = vld [vmem:[#allocation2 + $0x111] sm:$0xff] }
 0x538   :  { %5371 = vmatmul.mubr.bf16.gmra.mrb[228].mxu1 %v14662_v9 }
 0x539   :  { %5468 = vmatmul.mubr.bf16.gmra.mrb[244].mxu0 %v14666_v33  ;;  %5378 = vmatprep.mubr.bf16.mxu1 %v14670_v58 }
 0x53a   :  { %5475 = vmatprep.mubr.bf16.mxu0 %v4744_v26  ;;  %v4840_v26 = vpack.c.bf16 %v4831_v51, %v4830_v40 }
 0x540   :  { %5379 = vmatmul.mubr.bf16.gmra.mrb[232].mxu1 %v14681_v3 }
 0x541   :  { %5476 = vmatmul.mubr.bf16.gmra.mrb[248].mxu0 %v14685_v49  ;;  %5386 = vmatprep.mubr.bf16.mxu1 %v4697_v16  ;;  %v4768_v16 = vpack.c.bf16 %v4830_v40, %v4758_v56 }
 0x542   :  { %5483 = vmatprep.mubr.bf16.mxu0 %v4745_v57 }
 0x548   :  { %5387 = vmatmul.mubr.bf16.gmra.mrb[236].mxu1 %v14696_v37 }
 0x549   :  { %5484 = vmatmul.mubr.bf16.gmra.mrb[252].mxu0 %v14700_v13  ;;  %5524 = vmatprep.mubr.bf16.mxu1 %v4786_v30 }
 0x54a   :  { %5621 = vmatprep.mubr.bf16.mxu0 %v14501_v35  ;;  %v4763_v35 = vpack.c.bf16 %v14418_v0, %v14411_v25 }
 0x550   :  { %5525 = vmatmul.mubr.bf16.vlgmr.msra.gmra.mrb[240].mxu1 %v4762_v41 }
 0x551   :  { %5622 = vmatmul.mubr.bf16.vlgmr.msra.gmra.mrb[0].mxu0 %v14528_v61  ;;  %5532 = vmatprep.mubr.bf16.mxu1 %v4787_v28  ;;  %v11794_v61 = vld [vmem:[%s16463_s3 + $0x460] sm:$0xff]  }
 0x552   :  { %5629 = vmatprep.mubr.bf16.mxu0 %v14542_v53  ;;  %11414 = vmatpush3.bf16.msra.mxu1 %v11790_v18  ;;  %v14731_v53 = vld [vmem:[#allocation2 + $0x82] sm:$0xff]  ;;  %v11796_v18 = vld [vmem:[%s16463_s3 + $0x470] sm:$0xff]  }
 0x553   :  { %11415 = vmatprep.subr.bf16.mxu1 %v11791_v31  ;;  %v4789_v6 = vpack.c.bf16 %v14731_v53, %v14608_v21  ;;  %v4765_v21 = vpack.c.bf16 %v14444_v52, %v14438_v55 }
 0x556   :  { %11416 = vmatpush3.bf16.msra.mxu1 %v11791_v31 }
 0x557   :  { %11417 = vmatprep.subr.bf16.mxu1 %v11792_v34 }
 0x558   :  { %5533 = vmatmul.mubr.bf16.gmra.mrb[244].mxu1 %v4763_v35 }
 0x559   :  { %5630 = vmatmul.mubr.bf16.gmra.mrb[4].mxu0 %v14571_v45  ;;  %5540 = vmatprep.mubr.bf16.mxu1 %v4788_v42  ;;  %v4837_v45 = vpack.c.bf16 %v4825_v47, %v14444_v52 }
 0x55a   :  { %5637 = vmatprep.mubr.bf16.mxu0 %v14585_v63  ;;  %11418 = vmatpush3.bf16.msra.mxu1 %v11792_v34  ;;  %v11795_v63 = vld [vmem:[%s16463_s3 + $0x468] sm:$0xff]  }
 0x55b   :  { %11419 = vmatprep.subr.bf16.mxu1 %v11793_v59 }
 0x55e   :  { %11420 = vmatpush3.bf16.msra.mxu1 %v11793_v59 }
 0x55f   :  { %11421 = vmatprep.subr.bf16.mxu1 %v11794_v61 }
 0x560   :  { %5541 = vmatmul.mubr.bf16.gmra.mrb[248].mxu1 %v4764_v4 }
 0x561   :  { %5638 = vmatmul.mubr.bf16.gmra.mrb[8].mxu0 %v14613_v22  ;;  %5548 = vmatprep.mubr.bf16.mxu1 %v4789_v6  ;;  %v11797_v22 = vld [vmem:[%s16463_s3 + $0x478] sm:$0xff]  }
 0x562   :  { %5645 = vmatprep.mubr.bf16.mxu0 %v4837_v45  ;;  %11422 = vmatpush3.bf16.msra.mxu1 %v11794_v61 }
 0x563   :  { %11423 = vmatprep.subr.bf16.mxu1 %v11795_v63 }
 0x566   :  { %11424 = vmatpush3.bf16.msra.mxu1 %v11795_v63 }
 0x567   :  { %11425 = vmatprep.subr.bf16.mxu1 %v11796_v18 }
 0x568   :  { %5549 = vmatmul.mubr.bf16.gmra.mrb[252].mxu1 %v4765_v21 }
 0x569   :  { %5646 = vmatmul.mubr.bf16.gmra.mrb[12].mxu0 %v4813_v23  ;;  %5556 = vmatprep.mubr.bf16.mxu1 %v4790_v46 }
 0x56a   :  { %5653 = vmatprep.mubr.bf16.mxu0 %v14655_v5  ;;  %11426 = vmatpush3.bf16.msra.mxu1 %v11796_v18  ;;  %v4767_v5 = vpack.c.bf16 %v14468_v20, %v14462_v27 }
 0x56b   :  { %11427 = vmatprep.subr.bf16.mxu1 %v11797_v22 }
 0x56e   :  { %11428 = vmatpush3.bf16.msra.mxu1 %v11797_v22 }
 0x570   :  { %5557 = vmatmul.mubr.bf16.gmra.mrb[0].mxu1 %v4766_v39 }
 0x571   :  { %5654 = vmatmul.mubr.bf16.gmra.mrb[16].mxu0 %v14662_v9  ;;  %5564 = vmatprep.mubr.bf16.mxu1 %v4791_v29  ;;  %v4832_v9 = vld [vmem:[#allocation2 + $0x121] sm:$0xff] }
 0x572   :  { %5661 = vmatprep.mubr.bf16.mxu0 %v14670_v58  ;;  %v4793_v58 = vpack.c.bf16 %v4785_v17, %v14694_v19  ;;  %v4841_v57 = vpack.c.bf16 %v4833_v8, %v4832_v9  ;;  %v4769_v11 = vpack.c.bf16 %v4832_v9, %v4831_v51 }
 0x578   :  { %5565 = vmatmul.mubr.bf16.gmra.mrb[4].mxu1 %v4767_v5 }
 0x579   :  { %5662 = vmatmul.mubr.bf16.gmra.mrb[20].mxu0 %v14681_v3  ;;  %5572 = vmatprep.mubr.bf16.mxu1 %v4792_v24  ;;  %v4849_v3 = vld [vmem:[#allocation2 + $0x92] sm:$0xff] }
 0x57a   :  { %5669 = vmatprep.mubr.bf16.mxu0 %v4840_v26  ;;  %v4861_v19 = vpack.c.bf16 %v4849_v3, %v14731_v53 }
 0x580   :  { %5573 = vmatmul.mubr.bf16.gmra.mrb[8].mxu1 %v4768_v16 }
 0x581   :  { %5670 = vmatmul.mubr.bf16.gmra.mrb[24].mxu0 %v14696_v37  ;;  %5580 = vmatprep.mubr.bf16.mxu1 %v4793_v58  ;;  %v4857_v37 = vld [vmem:[#allocation2 + $0x132] sm:$0xff] }
 0x582   :  { %5677 = vmatprep.mubr.bf16.mxu0 %v4841_v57  ;;  %v4865_v43 = vpack.c.bf16 %v4857_v37, %v4785_v17 }
 0x588   :  { %5581 = vmatmul.mubr.bf16.gmra.mrb[12].mxu1 %v4769_v11 }
 0x589   :  { %5678 = vmatmul.mubr.bf16.gmra.mrb[28].mxu0 %v4817_v36  ;;  %11429 = vmatprep.mubr.bf16.mxu1 %v14532_v32 }
 0x590   :  { %11430 = vmatmul.mubr.bf16.vlgmr.msra.gmra.mrb[16].mxu1 %v14575_v10 }
 0x591   :  { %11433 = vmatprep.mubr.bf16.mxu1 %v14617_v54 }
 0x598   :  { %11434 = vmatmul.mubr.bf16.gmra.mrb[20].mxu1 %v4861_v19 }
 0x599   :  { %11437 = vmatprep.mubr.bf16.mxu1 %v14666_v33 }
 0x5a0   :  { %11438 = vmatmul.mubr.bf16.gmra.mrb[24].mxu1 %v14685_v49 }
 0x5a1   :  { %11441 = vmatprep.mubr.bf16.mxu1 %v14700_v13 }
 0x5a8   :  { %11442 = vmatmul.mubr.bf16.gmra.mrb[28].mxu1 %v4865_v43 }
 0x5e3   :  { %v10517_v60 = vpop.f32.mrb[208].mxu1 }
 0x5e4   :  { %v10581_v30 = vpop.f32.mrb[224].mxu0  ;;  %v10518_v32 = vpop.f32.mrb[209].mxu1 }
 0x5e5   :  { %v10582_v41 = vpop.f32.mrb[225].mxu0  ;;  %v10519_v10 = vadd.f32 %v10518_v32, %v10517_v60  ;;  %v10520_v54 = vpop.f32.mrb[210].mxu1 }
 0x5e6   :  { %v10583_v28 = vadd.f32 %v10582_v41, %v10581_v30  ;;  %v10584_v31 = vpop.f32.mrb[226].mxu0  ;;  %v10521_v34 = vpop.f32.mrb[211].mxu1 }
 0x5e7   :  { %v10585_v35 = vpop.f32.mrb[227].mxu0  ;;  %v10522_v33 = vadd.f32 %v10521_v34, %v10520_v54 }
 0x5e8   :  { %v14777_v42 = vadd.f32 %v10583_v28, %v10519_v10  ;;  %v10586_v59 = vadd.f32 %v10585_v35, %v10584_v31 }
 0x5ea   :  { %v14779_v49 = vadd.f32 %v10586_v59, %v10522_v33 }
 0x5eb   :  { %v10523_v13 = vpop.f32.mrb[212].mxu1 }
 0x5ec   :  { %v10587_v61 = vpop.f32.mrb[228].mxu0  ;;  %v10524_v53 = vpop.f32.mrb[213].mxu1 }
 0x5ed   :  { %v10588_v47 = vpop.f32.mrb[229].mxu0  ;;  %v10525_v4 = vadd.f32 %v10524_v53, %v10523_v13  ;;  %v10526_v45 = vpop.f32.mrb[214].mxu1 }
 0x5ee   :  { %v10589_v6 = vadd.f32 %v10588_v47, %v10587_v61  ;;  %v10590_v63 = vpop.f32.mrb[230].mxu0  ;;  %v10527_v18 = vpop.f32.mrb[215].mxu1 }
 0x5ef   :  { %v10591_v21 = vpop.f32.mrb[231].mxu0  ;;  %v10528_v46 = vadd.f32 %v10527_v18, %v10526_v45 }
 0x5f0   :  { %v14781_v23 = vadd.f32 %v10589_v6, %v10525_v4  ;;  %v10592_v22 = vadd.f32 %v10591_v21, %v10590_v63 }
 0x5f2   :  { %v14783_v39 = vadd.f32 %v10592_v22, %v10528_v46 }
 0x5f3   :  { %v10529_v29 = vpop.f32.mrb[216].mxu1 }
 0x5f4   :  { %v10593_v40 = vpop.f32.mrb[232].mxu0  ;;  %v10530_v51 = vpop.f32.mrb[217].mxu1 }
 0x5f5   :  { %v10594_v5 = vpop.f32.mrb[233].mxu0  ;;  %v10531_v24 = vadd.f32 %v10530_v51, %v10529_v29  ;;  %v10532_v56 = vpop.f32.mrb[218].mxu1 }
 0x5f6   :  { %v10595_v26 = vadd.f32 %v10594_v5, %v10593_v40  ;;  %v10596_v17 = vpop.f32.mrb[234].mxu0  ;;  %v10533_v9 = vpop.f32.mrb[219].mxu1 }
 0x5f7   :  { %v10597_v8 = vpop.f32.mrb[235].mxu0  ;;  %v10534_v58 = vadd.f32 %v10533_v9, %v10532_v56 }
 0x5f8   :  { %v14785_v16 = vadd.f32 %v10595_v26, %v10531_v24  ;;  %v10598_v57 = vadd.f32 %v10597_v8, %v10596_v17 }
 0x5fa   :  { %v14787_v11 = vadd.f32 %v10598_v57, %v10534_v58 }
 0x5fb   :  { %v10535_v36 = vpop.f32.mrb[220].mxu1 }
 0x5fc   :  { %v10599_v3 = vpop.f32.mrb[236].mxu0  ;;  %v10536_v19 = vpop.f32.mrb[221].mxu1 }
 0x5fd   :  { %v10600_v37 = vpop.f32.mrb[237].mxu0  ;;  %v10537_v43 = vadd.f32 %v10536_v19, %v10535_v36  ;;  %v10538_v30 = vpop.f32.mrb[222].mxu1 }
 0x5fe   :  { %v10601_v60 = vadd.f32 %v10600_v37, %v10599_v3  ;;  %v10602_v32 = vpop.f32.mrb[238].mxu0  ;;  %v10539_v41 = vpop.f32.mrb[223].mxu1 }
 0x5ff   :  { %v10603_v10 = vpop.f32.mrb[239].mxu0  ;;  %v10540_v54 = vadd.f32 %v10539_v41, %v10538_v30 }
 0x600   :  { %v14789_v28 = vadd.f32 %v10601_v60, %v10537_v43  ;;  %v10604_v31 = vadd.f32 %v10603_v10, %v10602_v32 }
 0x602   :  { %v14791_v34 = vadd.f32 %v10604_v31, %v10540_v54 }
 0x603   :  { %v10541_v35 = vpop.f32.mrb[224].mxu1 }
 0x604   :  { %v10605_v33 = vpop.f32.mrb[240].mxu0  ;;  %v10542_v59 = vpop.f32.mrb[225].mxu1 }
 0x605   :  { %v10606_v13 = vpop.f32.mrb[241].mxu0  ;;  %v10543_v61 = vadd.f32 %v10542_v59, %v10541_v35  ;;  %v10544_v47 = vpop.f32.mrb[226].mxu1 }
 0x606   :  { %v10607_v53 = vadd.f32 %v10606_v13, %v10605_v33  ;;  %v10608_v4 = vpop.f32.mrb[242].mxu0  ;;  %v10545_v6 = vpop.f32.mrb[227].mxu1 }
 0x607   :  { %v10609_v45 = vpop.f32.mrb[243].mxu0  ;;  %v10546_v18 = vadd.f32 %v10545_v6, %v10544_v47 }
 0x608   :  { %v14793_v63 = vadd.f32 %v10607_v53, %v10543_v61  ;;  %v10610_v21 = vadd.f32 %v10609_v45, %v10608_v4 }
 0x60a   :  { %v14795_v46 = vadd.f32 %v10610_v21, %v10546_v18 }
 0x60b   :  { %v10547_v22 = vpop.f32.mrb[228].mxu1 }
 0x60c   :  { %v10611_v29 = vpop.f32.mrb[244].mxu0  ;;  %v10548_v40 = vpop.f32.mrb[229].mxu1 }
 0x60d   :  { %v10612_v51 = vpop.f32.mrb[245].mxu0  ;;  %v10549_v5 = vadd.f32 %v10548_v40, %v10547_v22  ;;  %v10550_v26 = vpop.f32.mrb[230].mxu1 }
 0x60e   :  { %v10613_v24 = vadd.f32 %v10612_v51, %v10611_v29  ;;  %v10614_v56 = vpop.f32.mrb[246].mxu0  ;;  %v10551_v17 = vpop.f32.mrb[231].mxu1 }
 0x60f   :  { %v10615_v9 = vpop.f32.mrb[247].mxu0  ;;  %v10552_v58 = vadd.f32 %v10551_v17, %v10550_v26 }
 0x610   :  { %v14797_v8 = vadd.f32 %v10613_v24, %v10549_v5  ;;  %v10616_v57 = vadd.f32 %v10615_v9, %v10614_v56 }
 0x612   :  { %v14799_v36 = vadd.f32 %v10616_v57, %v10552_v58 }
 0x613   :  { %v10553_v3 = vpop.f32.mrb[232].mxu1 }
 0x614   :  { %v10617_v19 = vpop.f32.mrb[248].mxu0  ;;  %v10554_v37 = vpop.f32.mrb[233].mxu1 }
 0x615   :  { %v10618_v43 = vpop.f32.mrb[249].mxu0  ;;  %v10555_v60 = vadd.f32 %v10554_v37, %v10553_v3  ;;  %v10556_v32 = vpop.f32.mrb[234].mxu1 }
 0x616   :  { %v10619_v30 = vadd.f32 %v10618_v43, %v10617_v19  ;;  %v10620_v41 = vpop.f32.mrb[250].mxu0  ;;  %v10557_v10 = vpop.f32.mrb[235].mxu1 }
 0x617   :  { %v10621_v54 = vpop.f32.mrb[251].mxu0  ;;  %v10558_v35 = vadd.f32 %v10557_v10, %v10556_v32 }
 0x618   :  { %v14801_v31 = vadd.f32 %v10619_v30, %v10555_v60  ;;  %v10622_v33 = vadd.f32 %v10621_v54, %v10620_v41 }
 0x61a   :  { %v14803_v59 = vadd.f32 %v10622_v33, %v10558_v35 }
 0x61b   :  { %v10559_v13 = vpop.f32.mrb[236].mxu1 }
 0x61c   :  { %v10623_v61 = vpop.f32.mrb[252].mxu0  ;;  %v10560_v53 = vpop.f32.mrb[237].mxu1 }
 0x61d   :  { %v10624_v47 = vpop.f32.mrb[253].mxu0  ;;  %v10561_v4 = vadd.f32 %v10560_v53, %v10559_v13  ;;  %v10562_v45 = vpop.f32.mrb[238].mxu1 }
 0x61e   :  { %v10625_v6 = vadd.f32 %v10624_v47, %v10623_v61  ;;  %v10626_v18 = vpop.f32.mrb[254].mxu0  ;;  %v10563_v21 = vpop.f32.mrb[239].mxu1 }
 0x61f   :  { %v10627_v22 = vpop.f32.mrb[255].mxu0  ;;  %v10564_v40 = vadd.f32 %v10563_v21, %v10562_v45 }
 0x620   :  { %v14805_v29 = vadd.f32 %v10625_v6, %v10561_v4  ;;  %v10628_v51 = vadd.f32 %v10627_v22, %v10626_v18 }
 0x622   :  { %v14807_v5 = vadd.f32 %v10628_v51, %v10564_v40 }
 0x623   :  { %v10645_v24 = vpop.f32.mrb[240].mxu1 }
 0x624   :  { %v10709_v26 = vpop.f32.mrb[0].mxu0  ;;  %v10646_v56 = vpop.f32.mrb[241].mxu1 }
 0x625   :  { %v10710_v17 = vpop.f32.mrb[1].mxu0  ;;  %v10647_v9 = vadd.f32 %v10646_v56, %v10645_v24  ;;  %v10648_v57 = vpop.f32.mrb[242].mxu1 }
 0x626   :  { %v10711_v58 = vadd.f32 %v10710_v17, %v10709_v26  ;;  %v10712_v3 = vpop.f32.mrb[2].mxu0  ;;  %v10649_v19 = vpop.f32.mrb[243].mxu1 }
 0x627   :  { %v10713_v37 = vpop.f32.mrb[3].mxu0  ;;  %v5527_v43 = vadd.f32 %v10647_v9, %v14777_v42  ;;  %v10650_v60 = vadd.f32 %v10649_v19, %v10648_v57 }
 0x628   :  { %v10714_v30 = vadd.f32 %v10713_v37, %v10712_v3 }
 0x629   :  { %v5530_v32 = vadd.f32 %v10650_v60, %v14779_v49  ;;  %v14811_v41 = vadd.f32 %v10711_v58, %v5527_v43 }
 0x62b   :  { %v10651_v10 = vpop.f32.mrb[244].mxu1  ;;  %v14813_v35 = vadd.f32 %v10714_v30, %v5530_v32 }
 0x62c   :  { %v10715_v54 = vpop.f32.mrb[4].mxu0  ;;  %v10652_v33 = vpop.f32.mrb[245].mxu1 }
 0x62d   :  { %v10716_v13 = vpop.f32.mrb[5].mxu0  ;;  %v10653_v61 = vadd.f32 %v10652_v33, %v10651_v10  ;;  %v10654_v47 = vpop.f32.mrb[246].mxu1 }
 0x62e   :  { %v10717_v53 = vadd.f32 %v10716_v13, %v10715_v54  ;;  %v10718_v4 = vpop.f32.mrb[6].mxu0  ;;  %v10655_v6 = vpop.f32.mrb[247].mxu1 }
 0x62f   :  { %v10719_v45 = vpop.f32.mrb[7].mxu0  ;;  %v5535_v42 = vadd.f32 %v10653_v61, %v14781_v23  ;;  %v10656_v18 = vadd.f32 %v10655_v6, %v10654_v47 }
 0x630   :  { %v10720_v21 = vadd.f32 %v10719_v45, %v10718_v4 }
 0x631   :  { %v5538_v49 = vadd.f32 %v10656_v18, %v14783_v39  ;;  %v14817_v22 = vadd.f32 %v10717_v53, %v5535_v42 }
 0x633   :  { %v10657_v40 = vpop.f32.mrb[248].mxu1  ;;  %v14819_v24 = vadd.f32 %v10720_v21, %v5538_v49  ;;  %v11798_v21 = vld [vmem:[%s16465_s6 + $0x280] sm:$0xff]  }
 0x634   :  { %v10721_v51 = vpop.f32.mrb[8].mxu0  ;;  %v10658_v26 = vpop.f32.mrb[249].mxu1  ;;  %v11799_v49 = vld [vmem:[%s16465_s6 + $0x240] sm:$0xff]   ;;  %10773 = vmatprep.subr.bf16.mxu0 %v11798_v21 }
 0x635   :  { %v10722_v56 = vpop.f32.mrb[9].mxu0  ;;  %v10659_v17 = vadd.f32 %v10658_v26, %v10657_v40  ;;  %v10660_v58 = vpop.f32.mrb[250].mxu1  ;;  %v11807_v40 = vld [vmem:[%s16465_s6 + $0x300] sm:$0xff]   ;;  %10774 = vmatpush3.bf16.msra.mxu0 %v11799_v49 }
 0x636   :  { %v10723_v9 = vadd.f32 %v10722_v56, %v10721_v51  ;;  %v10724_v57 = vpop.f32.mrb[10].mxu0  ;;  %v10661_v3 = vpop.f32.mrb[251].mxu1  ;;  %10837 = vmatprep.subr.bf16.mxu1 %v11807_v40 }
 0x637   :  { %v10725_v19 = vpop.f32.mrb[11].mxu0  ;;  %v5543_v23 = vadd.f32 %v10659_v17, %v14785_v16  ;;  %v10662_v37 = vadd.f32 %v10661_v3, %v10660_v58 }
 0x638   :  { %v10726_v43 = vadd.f32 %v10725_v19, %v10724_v57  ;;  %v11800_v19 = vld [vmem:[%s16465_s6 + $0x288] sm:$0xff]  }
 0x639   :  { %v5546_v39 = vadd.f32 %v10662_v37, %v14787_v11  ;;  %v14823_v60 = vadd.f32 %v10723_v9, %v5543_v23  ;;  %10775 = vmatprep.subr.bf16.mxu0 %v11800_v19 }
 0x63b   :  { %v10663_v30 = vpop.f32.mrb[252].mxu1  ;;  %v14825_v10 = vadd.f32 %v10726_v43, %v5546_v39  ;;  %v11801_v43 = vld [vmem:[%s16465_s6 + $0x248] sm:$0xff]  }
 0x63c   :  { %v10727_v32 = vpop.f32.mrb[12].mxu0  ;;  %v10664_v54 = vpop.f32.mrb[253].mxu1  ;;  %v11810_v39 = vld [vmem:[%s16465_s6 + $0x308] sm:$0xff]   ;;  %10776 = vmatpush3.bf16.msra.mxu0 %v11801_v43  ;;  %v11819_v43 = vld [vmem:[%s16465_s6 + $0x320] sm:$0xff]  }
 0x63d   :  { %v10728_v33 = vpop.f32.mrb[13].mxu0  ;;  %v10665_v13 = vadd.f32 %v10664_v54, %v10663_v30  ;;  %v10666_v53 = vpop.f32.mrb[254].mxu1 }
 0x63e   :  { %v10729_v61 = vadd.f32 %v10728_v33, %v10727_v32  ;;  %v10730_v47 = vpop.f32.mrb[14].mxu0  ;;  %v10667_v4 = vpop.f32.mrb[255].mxu1  ;;  %v11811_v33 = vld [vmem:[%s16465_s6 + $0x2c8] sm:$0xff]  }
 0x63f   :  { %v10731_v6 = vpop.f32.mrb[15].mxu0  ;;  %v5551_v16 = vadd.f32 %v10665_v13, %v14789_v28  ;;  %v10668_v45 = vadd.f32 %v10667_v4, %v10666_v53  ;;  %v11802_v53 = vld [vmem:[%s16465_s6 + $0x290] sm:$0xff]  }
 0x640   :  { %v10732_v42 = vadd.f32 %v10731_v6, %v10730_v47  ;;  %v11813_v47 = vld [vmem:[%s16465_s6 + $0x310] sm:$0xff]   ;;  %10777 = vmatprep.subr.bf16.mxu0 %v11802_v53 }
 0x641   :  { %v5554_v11 = vadd.f32 %v10668_v45, %v14791_v34  ;;  %v14829_v18 = vadd.f32 %v10729_v61, %v5551_v16  ;;  %v11809_v34 = vld [vmem:[%s16465_s6 + $0x2c0] sm:$0xff]  }
 0x642   :  { %10838 = vmatpush3.bf16.msra.mxu1 %v11809_v34 }
 0x643   :  { %v10669_v51 = vpop.f32.mrb[0].mxu1  ;;  %v14840_v26 = vadd.f32 %v10732_v42, %v5554_v11  ;;  %10839 = vmatprep.subr.bf16.mxu1 %v11810_v39 }
 0x644   :  { %v10733_v28 = vpop.f32.mrb[16].mxu0  ;;  %v10670_v56 = vpop.f32.mrb[1].mxu1 }
 0x645   :  { %v10734_v17 = vpop.f32.mrb[17].mxu0  ;;  %v10671_v9 = vadd.f32 %v10670_v56, %v10669_v51  ;;  %v10672_v57 = vpop.f32.mrb[2].mxu1  ;;  %v11804_v51 = vld [vmem:[%s16465_s6 + $0x298] sm:$0xff]  }
 0x646   :  { %v10735_v58 = vadd.f32 %v10734_v17, %v10733_v28  ;;  %v10736_v3 = vpop.f32.mrb[18].mxu0  ;;  %v10673_v23 = vpop.f32.mrb[3].mxu1  ;;  %10840 = vmatpush3.bf16.msra.mxu1 %v11811_v33  ;;  %v11805_v56 = vld [vmem:[%s16465_s6 + $0x258] sm:$0xff]  }
 0x647   :  { %v10737_v37 = vpop.f32.mrb[19].mxu0  ;;  %v5559_v30 = vadd.f32 %v10671_v9, %v14793_v63  ;;  %v10674_v32 = vadd.f32 %v10673_v23, %v10672_v57  ;;  %v11803_v63 = vld [vmem:[%s16465_s6 + $0x250] sm:$0xff]   ;;  %10841 = vmatprep.subr.bf16.mxu1 %v11813_v47  ;;  %v11816_v17 = vld [vmem:[%s16465_s6 + $0x318] sm:$0xff]  }
 0x648   :  { %v10738_v54 = vadd.f32 %v10737_v37, %v10736_v3  ;;  %10778 = vmatpush3.bf16.msra.mxu0 %v11803_v63  ;;  %v11817_v3 = vld [vmem:[%s16465_s6 + $0x2d8] sm:$0xff]   ;;  %v11806_v37 = vld [vmem:[%s16465_s6 + $0x2a0] sm:$0xff]  }
 0x649   :  { %v5562_v13 = vadd.f32 %v10674_v32, %v14795_v46  ;;  %v14859_v61 = vadd.f32 %v10735_v58, %v5559_v30  ;;  %v11815_v46 = vld [vmem:[%s16465_s6 + $0x2d0] sm:$0xff]   ;;  %10779 = vmatprep.subr.bf16.mxu0 %v11804_v51 }
 0x64a   :  { %10842 = vmatpush3.bf16.msra.mxu1 %v11815_v46 }
 0x64b   :  { %v10675_v4 = vpop.f32.mrb[4].mxu1  ;;  %v14870_v16 = vadd.f32 %v10738_v54, %v5562_v13  ;;  %10843 = vmatprep.subr.bf16.mxu1 %v11816_v17  ;;  %v11825_v17 = vld [vmem:[%s16465_s6 + $0x330] sm:$0xff]  }
 0x64c   :  { %v10739_v6 = vpop.f32.mrb[20].mxu0  ;;  %v10676_v45 = vpop.f32.mrb[5].mxu1  ;;  %10780 = vmatpush3.bf16.msra.mxu0 %v11805_v56  ;;  %v11824_v56 = vld [vmem:[%s16465_s6 + $0x2b8] sm:$0xff]  }
 0x64d   :  { %v10740_v42 = vpop.f32.mrb[21].mxu0  ;;  %v10677_v11 = vadd.f32 %v10676_v45, %v10675_v4  ;;  %v10678_v49 = vpop.f32.mrb[6].mxu1  ;;  %10781 = vmatprep.subr.bf16.mxu0 %v11806_v37  ;;  %v11812_v4 = vld [vmem:[%s16465_s6 + $0x2a8] sm:$0xff]  }
 0x64e   :  { %v10741_v21 = vadd.f32 %v10740_v42, %v10739_v6  ;;  %v10742_v40 = vpop.f32.mrb[22].mxu0  ;;  %v10679_v28 = vpop.f32.mrb[7].mxu1  ;;  %10844 = vmatpush3.bf16.msra.mxu1 %v11817_v3  ;;  %v11814_v45 = vld [vmem:[%s16465_s6 + $0x268] sm:$0xff]   ;;  %v11828_v3 = vld [vmem:[%s16465_s6 + $0x338] sm:$0xff]  }
 0x64f   :  { %v10743_v34 = vpop.f32.mrb[23].mxu0  ;;  %v5567_v9 = vadd.f32 %v10677_v11, %v14797_v8  ;;  %v10680_v58 = vadd.f32 %v10679_v28, %v10678_v49  ;;  %v11808_v8 = vld [vmem:[%s16465_s6 + $0x260] sm:$0xff]   ;;  %10845 = vmatprep.subr.bf16.mxu1 %v11819_v43  ;;  %v11822_v42 = vld [vmem:[%s16465_s6 + $0x328] sm:$0xff]  }
 0x650   :  { %v10744_v57 = vadd.f32 %v10743_v34, %v10742_v40  ;;  %10782 = vmatpush3.bf16.msra.mxu0 %v11808_v8  ;;  %v11823_v40 = vld [vmem:[%s16465_s6 + $0x2e8] sm:$0xff]   ;;  %v11818_v34 = vld [vmem:[%s16465_s6 + $0x2b0] sm:$0xff]   ;;  %v11826_v8 = vld [vmem:[%s16465_s6 + $0x278] sm:$0xff]  }
 0x651   :  { %v5570_v19 = vadd.f32 %v10680_v58, %v14799_v36  ;;  %v14889_v23 = vadd.f32 %v10741_v21, %v5567_v9  ;;  %v11821_v36 = vld [vmem:[%s16465_s6 + $0x2e0] sm:$0xff]   ;;  %10783 = vmatprep.subr.bf16.mxu0 %v11812_v4 }
 0x652   :  { %10846 = vmatpush3.bf16.msra.mxu1 %v11821_v36 }
 0x653   :  { %v10681_v39 = vpop.f32.mrb[8].mxu1  ;;  %v14900_v32 = vadd.f32 %v10744_v57, %v5570_v19  ;;  %10847 = vmatprep.subr.bf16.mxu1 %v11822_v42 }
 0x654   :  { %v10745_v30 = vpop.f32.mrb[24].mxu0  ;;  %v10682_v54 = vpop.f32.mrb[9].mxu1  ;;  %10784 = vmatpush3.bf16.msra.mxu0 %v11814_v45 }
 0x655   :  { %v10746_v33 = vpop.f32.mrb[25].mxu0  ;;  %v10683_v13 = vadd.f32 %v10682_v54, %v10681_v39  ;;  %v10684_v63 = vpop.f32.mrb[10].mxu1  ;;  %10785 = vmatprep.subr.bf16.mxu0 %v11818_v34  ;;  %v11829_v54 = vld [vmem:[%s16465_s6 + $0x2f8] sm:$0xff]  }
 0x656   :  { %v10747_v53 = vadd.f32 %v10746_v33, %v10745_v30  ;;  %v10748_v47 = vpop.f32.mrb[26].mxu0  ;;  %v10685_v6 = vpop.f32.mrb[11].mxu1  ;;  %10848 = vmatpush3.bf16.msra.mxu1 %v11823_v40  ;;  %v11830_v33 = vld [vmem:[%s16465_s6 + $0x380] sm:$0xff]  }
 0x657   :  { %v10749_v46 = vpop.f32.mrb[27].mxu0  ;;  %v5575_v11 = vadd.f32 %v10683_v13, %v14801_v31  ;;  %v10686_v21 = vadd.f32 %v10685_v6, %v10684_v63  ;;  %v11820_v31 = vld [vmem:[%s16465_s6 + $0x270] sm:$0xff]   ;;  %10849 = vmatprep.subr.bf16.mxu1 %v11825_v17 }
 0x658   :  { %v10750_v49 = vadd.f32 %v10749_v46, %v10748_v47  ;;  %10786 = vmatpush3.bf16.msra.mxu0 %v11820_v31 }
 0x659   :  { %v5578_v51 = vadd.f32 %v10686_v21, %v14803_v59  ;;  %v14919_v28 = vadd.f32 %v10747_v53, %v5575_v11  ;;  %v11827_v59 = vld [vmem:[%s16465_s6 + $0x2f0] sm:$0xff]   ;;  %10787 = vmatprep.subr.bf16.mxu0 %v11824_v56 }
 0x65a   :  { %10850 = vmatpush3.bf16.msra.mxu1 %v11827_v59 }
 0x65b   :  { %v10687_v9 = vpop.f32.mrb[12].mxu1  ;;  %v14936_v57 = vadd.f32 %v10750_v49, %v5578_v51  ;;  %10851 = vmatprep.subr.bf16.mxu1 %v11828_v3 }
 0x65c   :  { %v10751_v58 = vpop.f32.mrb[28].mxu0  ;;  %v10688_v19 = vpop.f32.mrb[13].mxu1  ;;  %10788 = vmatpush3.bf16.msra.mxu0 %v11826_v8 }
 0x65d   :  { %v10752_v37 = vpop.f32.mrb[29].mxu0  ;;  %v10689_v43 = vadd.f32 %v10688_v19, %v10687_v9  ;;  %v10690_v30 = vpop.f32.mrb[14].mxu1  ;;  %10901 = vmatprep.subr.bf16.mxu0 %v11830_v33 }
 0x65e   :  { %v10753_v39 = vadd.f32 %v10752_v37, %v10751_v58  ;;  %v10754_v36 = vpop.f32.mrb[30].mxu0  ;;  %v10691_v13 = vpop.f32.mrb[15].mxu1  ;;  %10852 = vmatpush3.bf16.msra.mxu1 %v11829_v54 }
 0x65f   :  { %v10755_v53 = vpop.f32.mrb[31].mxu0  ;;  %v5583_v63 = vadd.f32 %v10689_v43, %v14805_v29  ;;  %v10692_v47 = vadd.f32 %v10691_v13, %v10690_v30 }
 0x660   :  { %v10756_v4 = vadd.f32 %v10755_v53, %v10754_v36 }
 0x661   :  { %v5586_v6 = vadd.f32 %v10692_v47, %v14807_v5  ;;  %v5680_v46 = vadd.f32 %v10753_v39, %v5583_v63 }
 0x663   :  { %v11431_v45 = vpop.f32.mrb[16].mxu1  ;;  %v14952_v42 = vadd.f32 %v10756_v4, %v5586_v6 }
 0x664   :  { %v14955_v11 = vadd.f32 %v11431_v45, %v14817_v22  ;;  %v5720_v21 = vpop.f32.mrb[17].mxu1 }
 0x665   :  { %v14958_v49 = vadd.f32 %v5720_v21, %v14811_v41  ;;  %v11432_v40 = vpop.f32.mrb[18].mxu1 }
 0x666   :  { %v14961_v29 = vadd.f32 %v11432_v40, %v14819_v24  ;;  %v5723_v51 = vpop.f32.mrb[19].mxu1  ;;  %v5810_v41 = vmul.f32 %v14955_v11, %v14955_v11 }
 0x667   :  { %v14964_v5 = vadd.f32 %v5723_v51, %v14813_v35  ;;  %v5808_v34 = vmul.f32 %v14958_v49, %v14958_v49 }
 0x668   :  { %v5811_v9 = vmul.f32 %v14961_v29, %v14961_v29 }
 0x669   :  { %v5787_v31 = vadd.f32 %v14964_v5, %v14958_v49  ;;  %v5809_v22 = vmul.f32 %v14964_v5, %v14964_v5 }
 0x66b   :  { %v5788_v56 = vadd.f32 %v5787_v31, %v14955_v11  ;;  %v5824_v24 = vadd.f32 %v5809_v22, %v5808_v34  ;;  %v11435_v17 = vpop.f32.mrb[20].mxu1 }
 0x66c   :  { %v14976_v59 = vadd.f32 %v11435_v17, %v14829_v18  ;;  %v5736_v35 = vpop.f32.mrb[21].mxu1 }
 0x66d   :  { %v5825_v58 = vadd.f32 %v5824_v24, %v5810_v41  ;;  %v14981_v3 = vadd.f32 %v5736_v35, %v14823_v60  ;;  %v5789_v19 = vadd.f32 %v5788_v56, %v14961_v29  ;;  %v11436_v37 = vpop.f32.mrb[22].mxu1 }
 0x66e   :  { %v14985_v8 = vadd.f32 %v11436_v37, %v14840_v26  ;;  %v5739_v43 = vpop.f32.mrb[23].mxu1  ;;  %v5814_v26 = vmul.f32 %v14976_v59, %v14976_v59 }
 0x66f   :  { %v5790_v39 = vadd.f32 %v5789_v19, %v14981_v3  ;;  %v5812_v18 = vmul.f32 %v14981_v3, %v14981_v3  ;;  %v5826_v30 = vadd.f32 %v5825_v58, %v5811_v9  ;;  %v14991_v36 = vadd.f32 %v5739_v43, %v14825_v10 }
 0x670   :  { %v5815_v10 = vmul.f32 %v14985_v8, %v14985_v8 }
 0x671   :  { %v5827_v54 = vadd.f32 %v5826_v30, %v5812_v18  ;;  %v5791_v60 = vadd.f32 %v5790_v39, %v14991_v36  ;;  %v5813_v33 = vmul.f32 %v14991_v36, %v14991_v36 }
 0x673   :  { %v5792_v13 = vadd.f32 %v5791_v60, %v14976_v59  ;;  %v5828_v53 = vadd.f32 %v5827_v54, %v5813_v33  ;;  %v11439_v63 = vpop.f32.mrb[24].mxu1 }
 0x674   :  { %v15000_v47 = vadd.f32 %v11439_v63, %v14889_v23  ;;  %v5752_v4 = vpop.f32.mrb[25].mxu1 }
 0x675   :  { %v5829_v6 = vadd.f32 %v5828_v53, %v5814_v26  ;;  %v15005_v45 = vadd.f32 %v5752_v4, %v14859_v61  ;;  %v5793_v21 = vadd.f32 %v5792_v13, %v14985_v8  ;;  %v11440_v40 = vpop.f32.mrb[26].mxu1  ;;  %v11839_v61 = vld [vmem:[%s16465_s6 + $0x400] sm:$0xff]  }
 0x676   :  { %v15009_v51 = vadd.f32 %v11440_v40, %v14900_v32  ;;  %v5755_v34 = vpop.f32.mrb[27].mxu1  ;;  %10965 = vmatprep.subr.bf16.mxu1 %v11839_v61  ;;  %v5818_v17 = vmul.f32 %v15000_v47, %v15000_v47 }
 0x677   :  { %v5794_v31 = vadd.f32 %v5793_v21, %v15005_v45  ;;  %v5816_v23 = vmul.f32 %v15005_v45, %v15005_v45  ;;  %v5830_v22 = vadd.f32 %v5829_v6, %v5815_v10  ;;  %v15015_v41 = vadd.f32 %v5755_v34, %v14870_v16 }
 0x678   :  { %v5819_v37 = vmul.f32 %v15009_v51, %v15009_v51 }
 0x679   :  { %v5831_v56 = vadd.f32 %v5830_v22, %v5816_v23  ;;  %v5795_v24 = vadd.f32 %v5794_v31, %v15015_v41  ;;  %v5817_v32 = vmul.f32 %v15015_v41, %v15015_v41 }
 0x67b   :  { %v5796_v35 = vadd.f32 %v5795_v24, %v15000_v47  ;;  %v5832_v9 = vadd.f32 %v5831_v56, %v5817_v32  ;;  %v11443_v58 = vpop.f32.mrb[28].mxu1 }
 0x67c   :  { %v15026_v16 = vadd.f32 %v11443_v58, %v5680_v46  ;;  %v5768_v19 = vpop.f32.mrb[29].mxu1 }
 0x67d   :  { %v5833_v43 = vadd.f32 %v5832_v9, %v5818_v17  ;;  %v15031_v39 = vadd.f32 %v5768_v19, %v14919_v28  ;;  %v5797_v18 = vadd.f32 %v5796_v35, %v15009_v51  ;;  %v11444_v30 = vpop.f32.mrb[30].mxu1 }
 0x67e   :  { %v15035_v54 = vadd.f32 %v11444_v30, %v14952_v42  ;;  %v5771_v60 = vpop.f32.mrb[31].mxu1  ;;  %v5822_v42 = vmul.f32 %v15026_v16, %v15026_v16 }
 0x67f   :  { %v5798_v33 = vadd.f32 %v5797_v18, %v15031_v39  ;;  %v5820_v46 = vmul.f32 %v15031_v39, %v15031_v39  ;;  %v5834_v26 = vadd.f32 %v5833_v43, %v5819_v37  ;;  %v15041_v13 = vadd.f32 %v5771_v60, %v14936_v57 }
 0x680   :  { %v5823_v6 = vmul.f32 %v15035_v54, %v15035_v54 }
 0x681   :  { %v5835_v53 = vadd.f32 %v5834_v26, %v5820_v46  ;;  %v5799_v28 = vadd.f32 %v5798_v33, %v15041_v13  ;;  %v5821_v63 = vmul.f32 %v15041_v13, %v15041_v13 }
 0x683   :  { %v5800_v4 = vadd.f32 %v5799_v28, %v15026_v16  ;;  %v5836_v10 = vadd.f32 %v5835_v53, %v5821_v63 }
 0x685   :  { %v5801_v21 = vadd.f32 %v5800_v4, %v15035_v54  ;;  %v5837_v40 = vadd.f32 %v5836_v10, %v5822_v42 }
 0x687   :  { %v5802_v57 = vrot.slane %v5801_v21, 4  ;;  %v5838_v34 = vadd.f32 %v5837_v40, %v5823_v6 }
 0x689   :  { %v5803_v31 = vadd.f32 %v5802_v57, %v5801_v21  ;;  %v5839_v23 = vrot.slane %v5838_v34, 4 }
 0x68b   :  { %v5804_v22 = vrot.slane %v5803_v31, 2  ;;  %v5840_v61 = vadd.f32 %v5839_v23, %v5838_v34 }
 0x68d   :  { %v5805_v56 = vadd.f32 %v5804_v22, %v5803_v31  ;;  %v5841_v24 = vrot.slane %v5840_v61, 2 }
 0x68f   :  { %v5806_v32 = vrot.slane %v5805_v56, 1  ;;  %v5842_v17 = vadd.f32 %v5841_v24, %v5840_v61  ;;  %v9360_v24 = vld [vmem:[%s16467_s5 + $0x1] ss:$0 sm:$0xff] }
 0x691   :  { %v5807_v35 = vadd.f32 %v5806_v32, %v5805_v56  ;;  %v5843_v9 = vrot.slane %v5842_v17, 1 }
 0x693   :  { %v5844_v58 = vadd.f32 %v5843_v9, %v5842_v17  ;;  %v5845_v19 = vmul.f32 0.0078125, %v5807_v35 }
 0x695   :  { %v5846_v37 = vmul.f32 0.0078125, %v5844_v58  ;;  %v5847_v43 = vmul.f32 %v5845_v19, %v5845_v19  ;;  %v5849_v18 = vsub.f32 %v14958_v49, %v5845_v19  ;;  %v5850_v30 = vsub.f32 %v14964_v5, %v5845_v19 }
 0x696   :  { %v5851_v60 = vsub.f32 %v14955_v11, %v5845_v19  ;;  %v5852_v33 = vsub.f32 %v14961_v29, %v5845_v19  ;;  %v5853_v46 = vsub.f32 %v14981_v3, %v5845_v19  ;;  %v5854_v26 = vsub.f32 %v14991_v36, %v5845_v19 }
 0x697   :  { %v5848_v53 = vsub.f32 %v5846_v37, %v5847_v43  ;;  %v5855_v28 = vsub.f32 %v14976_v59, %v5845_v19  ;;  %v5856_v63 = vsub.f32 %v14985_v8, %v5845_v19  ;;  %v5857_v42 = vsub.f32 %v15005_v45, %v5845_v19  ;;  %v9358_v59 = vld [vmem:[%s16466_s4 + $0x1] sm:$0x1] }
 0x698   :  { %v5858_v4 = vsub.f32 %v15015_v41, %v5845_v19  ;;  %v5859_v49 = vsub.f32 %v15000_v47, %v5845_v19  ;;  %v5860_v5 = vsub.f32 %v15009_v51, %v5845_v19  ;;  %v5861_v11 = vsub.f32 %v15031_v39, %v5845_v19 }
 0x699   :  { %v5862_v29 = vsub.f32 %v15041_v13, %v5845_v19  ;;  %v5863_v3 = vsub.f32 %v15026_v16, %v5845_v19  ;;  %v5864_v36 = vsub.f32 %v15035_v54, %v5845_v19  ;;  %v5865_v10 = vadd.f32 1e-05, %v5848_v53 }
 0x69b   :  { %12010 = vrsqrt.f32 %v5865_v10 }
 0x6a5   :  { %v12011_v8 = vpop.eup %12010 }
 0x6a6   :  { %v5867_v45 = vmul.f32 %v12011_v8, %v9358_v59 }
 0x6a8   :  { %v5871_v47 = vrot.slane %v5867_v45, %v13559_v15 }
 0x6aa   :  { %v5872_v41 = vmul.f32 %v5871_v47, %v5849_v18  ;;  %v5873_v51 = vmul.f32 %v5871_v47, %v5850_v30  ;;  %v5874_v6 = vmul.f32 %v5871_v47, %v5851_v60  ;;  %v5875_v39 = vmul.f32 %v5871_v47, %v5852_v33 }
 0x6ab   :  { %v5876_v21 = vmul.f32 %v5871_v47, %v5853_v46  ;;  %v5877_v13 = vmul.f32 %v5871_v47, %v5854_v26  ;;  %v5878_v40 = vmul.f32 %v5871_v47, %v5855_v28  ;;  %v5879_v16 = vmul.f32 %v5871_v47, %v5856_v63 }
 0x6ac   :  { %v5880_v57 = vmul.f32 %v5871_v47, %v5857_v42  ;;  %v5881_v54 = vmul.f32 %v5871_v47, %v5858_v4  ;;  %v5882_v34 = vmul.f32 %v5871_v47, %v5859_v49  ;;  %v5883_v31 = vmul.f32 %v5871_v47, %v5860_v5 }
 0x6ad   :  { %v5884_v23 = vmul.f32 %v5871_v47, %v5861_v11  ;;  %v5885_v22 = vmul.f32 %v5871_v47, %v5862_v29  ;;  %v5886_v61 = vmul.f32 %v5871_v47, %v5863_v3  ;;  %v5887_v56 = vmul.f32 %v5871_v47, %v5864_v36 }
 0x6ae   :  { %v15075_v32 = vadd.f32 %v9360_v24, %v5872_v41  ;;  %v15077_v17 = vadd.f32 %v9360_v24, %v5873_v51  ;;  %v15079_v35 = vadd.f32 %v9360_v24, %v5874_v6  ;;  %v15081_v9 = vadd.f32 %v9360_v24, %v5875_v39 }
 0x6af   :  { %v15083_v58 = vadd.f32 %v9360_v24, %v5876_v21  ;;  %v15085_v19 = vadd.f32 %v9360_v24, %v5877_v13  ;;  %v15087_v37 = vadd.f32 %v9360_v24, %v5878_v40  ;;  %v15092_v60 = vadd.f32 %v9360_v24, %v5879_v16 }
 0x6b0   :  { %v5926_v43 = vmul.f32 1.442695, %v15075_v32  ;;  %v5928_v18 = vmul.f32 1.442695, %v15077_v17  ;;  %v5930_v30 = vmul.f32 1.442695, %v15079_v35  ;;  %v15095_v46 = vadd.f32 %v9360_v24, %v5880_v57 }
 0x6b1   :  { %v5932_v33 = vmul.f32 1.442695, %v15081_v9  ;;  %v5934_v26 = vmul.f32 1.442695, %v15083_v58  ;;  %v15098_v53 = vadd.f32 %v9360_v24, %v5881_v54  ;;  %v5936_v28 = vmul.f32 1.442695, %v15085_v19 }
 0x6b2   :  { %12012 = vpow2.f32 %v5926_v43  ;;  %v15101_v63 = vadd.f32 %v9360_v24, %v5882_v34  ;;  %v5938_v42 = vmul.f32 1.442695, %v15087_v37  ;;  %v15104_v4 = vadd.f32 %v9360_v24, %v5883_v31 }
 0x6b3   :  { %12014 = vpow2.f32 %v5928_v18  ;;  %v5940_v49 = vmul.f32 1.442695, %v15092_v60  ;;  %v15107_v5 = vadd.f32 %v9360_v24, %v5884_v23  ;;  %v5942_v11 = vmul.f32 1.442695, %v15095_v46 }
 0x6b4   :  { %12016 = vpow2.f32 %v5930_v30  ;;  %v15110_v29 = vadd.f32 %v9360_v24, %v5885_v22  ;;  %v5944_v3 = vmul.f32 1.442695, %v15098_v53  ;;  %v15113_v36 = vadd.f32 %v9360_v24, %v5886_v61 }
 0x6b5   :  { %12018 = vpow2.f32 %v5932_v33  ;;  %v5946_v10 = vmul.f32 1.442695, %v15101_v63  ;;  %v15116_v59 = vadd.f32 %v9360_v24, %v5887_v56  ;;  %v5948_v8 = vmul.f32 1.442695, %v15104_v4 }
 0x6b6   :  { %12020 = vpow2.f32 %v5934_v26  ;;  %v5950_v45 = vmul.f32 1.442695, %v15107_v5  ;;  %vm5910_vm0 = vcmp.gt.f32.partialorder %v15075_v32, 0.0  ;;  %vm5911_vm1 = vcmp.gt.f32.partialorder %v15077_v17, 0.0 }
 0x6b7   :  { %12022 = vpow2.f32 %v5936_v28  ;;  %v5952_v47 = vmul.f32 1.442695, %v15110_v29  ;;  %vm5912_vm2 = vcmp.gt.f32.partialorder %v15079_v35, 0.0  ;;  %vm5913_vm3 = vcmp.gt.f32.partialorder %v15081_v9, 0.0 }
 0x6b8   :  { %12024 = vpow2.f32 %v5938_v42  ;;  %v5954_v51 = vmul.f32 1.442695, %v15113_v36  ;;  %vm5914_vm4 = vcmp.gt.f32.partialorder %v15083_v58, 0.0  ;;  %v5956_v39 = vmul.f32 1.442695, %v15116_v59 }
 0x6b9   :  { %12026 = vpow2.f32 %v5940_v49  ;;  %vm5915_vm5 = vcmp.gt.f32.partialorder %v15085_v19, 0.0  ;;  %vm5916_vm6 = vcmp.gt.f32.partialorder %v15087_v37, 0.0  ;;  %vm5917_vm7 = vcmp.gt.f32.partialorder %v15092_v60, 0.0 }
 0x6ba   :  { %12028 = vpow2.f32 %v5942_v11  ;;  %vm5918_vm8 = vcmp.gt.f32.partialorder %v15095_v46, 0.0  ;;  %vm5919_vm9 = vcmp.gt.f32.partialorder %v15098_v53, 0.0  ;;  %vm5920_vm10 = vcmp.gt.f32.partialorder %v15101_v63, 0.0 }
 0x6bb   :  { %12030 = vpow2.f32 %v5944_v3  ;;  %vm5921_vm11 = vcmp.gt.f32.partialorder %v15104_v4, 0.0  ;;  %vm5922_vm12 = vcmp.gt.f32.partialorder %v15107_v5, 0.0  ;;  %vm5923_vm13 = vcmp.gt.f32.partialorder %v15110_v29, 0.0 }
 0x6bc   :  { %v12013_v41 = vpop.eup %12012  ;;  %12032 = vpow2.f32 %v5946_v10  ;;  %vm5924_vm14 = vcmp.gt.f32.partialorder %v15113_v36, 0.0  ;;  %vm5925_vm15 = vcmp.gt.f32.partialorder %v15116_v59, 0.0 }
 0x6bd   :  { %v12015_v6 = vpop.eup %12014  ;;  %12034 = vpow2.f32 %v5948_v8  ;;  %v9361_v21 = vadd.f32 -1.0, %v12013_v41 }
 0x6be   :  { %v12017_v13 = vpop.eup %12016  ;;  %12036 = vpow2.f32 %v5950_v45  ;;  %v9362_v40 = vadd.f32 -1.0, %v12015_v6 }
 0x6bf   :  { %v12019_v16 = vpop.eup %12018  ;;  %12038 = vpow2.f32 %v5952_v47  ;;  %v9363_v57 = vadd.f32 -1.0, %v12017_v13  ;;  %v5974_v54 = vmul.f32 1.6732632, %v9361_v21 }
 0x6c0   :  { %v12021_v34 = vpop.eup %12020  ;;  %12040 = vpow2.f32 %v5954_v51  ;;  %v9364_v31 = vadd.f32 -1.0, %v12019_v16  ;;  %v5975_v23 = vmul.f32 1.6732632, %v9362_v40 }
 0x6c1   :  { %v12023_v22 = vpop.eup %12022  ;;  %12042 = vpow2.f32 %v5956_v39  ;;  %v9365_v61 = vadd.f32 -1.0, %v12021_v34  ;;  %v5976_v56 = vmul.f32 1.6732632, %v9363_v57  ;;  %v5990_v24 = vsel %vm5910_vm0, %v15075_v32, %v5974_v54 }
 0x6c2   :  { %v12025_v43 = vpop.eup %12024  ;;  %v9366_v18 = vadd.f32 -1.0, %v12023_v22  ;;  %v5977_v30 = vmul.f32 1.6732632, %v9364_v31  ;;  %v5991_v33 = vsel %vm5911_vm1, %v15077_v17, %v5975_v23  ;;  %v15140_v26 = vmul.f32 1.050701, %v5990_v24 }
 0x6c3   :  { %v12027_v28 = vpop.eup %12026  ;;  %v9367_v42 = vadd.f32 -1.0, %v12025_v43  ;;  %v5978_v49 = vmul.f32 1.6732632, %v9365_v61  ;;  %v5992_v32 = vsel %vm5912_vm2, %v15079_v35, %v5976_v56  ;;  %v15146_v11 = vmul.f32 1.050701, %v5991_v33 }
 0x6c4   :  { %v12029_v3 = vpop.eup %12028  ;;  %v9368_v10 = vadd.f32 -1.0, %v12027_v28  ;;  %v5979_v8 = vmul.f32 1.6732632, %v9366_v18  ;;  %v5993_v17 = vsel %vm5913_vm3, %v15081_v9, %v5977_v30  ;;  %v15152_v45 = vmul.f32 1.050701, %v5992_v32  ;;  %6022 = vst [vmem:[#allocation2 + $0x11] sm:$0xff] %v15140_v26 }
 0x6c5   :  { %v12031_v47 = vpop.eup %12030  ;;  %v9369_v41 = vadd.f32 -1.0, %v12029_v3  ;;  %v5980_v35 = vmul.f32 1.6732632, %v9367_v42  ;;  %v5994_v51 = vsel %vm5914_vm4, %v15083_v58, %v5978_v49  ;;  %v15159_v6 = vmul.f32 1.050701, %v5993_v17  ;;  %6023 = vst [vmem:[#allocation2 + $0x21] sm:$0xff] %v15146_v11 }
 0x6c6   :  { %v12033_v39 = vpop.eup %12032  ;;  %v9370_v9 = vadd.f32 -1.0, %v12031_v47  ;;  %v5981_v21 = vmul.f32 1.6732632, %v9368_v10  ;;  %v5995_v13 = vsel %vm5915_vm5, %v15085_v19, %v5979_v8  ;;  %v15166_v40 = vmul.f32 1.050701, %v5994_v51  ;;  %6024 = vst [vmem:[#allocation2 + $0x31] sm:$0xff] %v15152_v45 }
 0x6c7   :  { %v12035_v16 = vpop.eup %12034  ;;  %v9371_v58 = vadd.f32 -1.0, %v12033_v39  ;;  %v5982_v57 = vmul.f32 1.6732632, %v9369_v41  ;;  %v5996_v54 = vsel %vm5916_vm6, %v15087_v37, %v5980_v35  ;;  %v15173_v34 = vmul.f32 1.050701, %v5995_v13  ;;  %6025 = vst [vmem:[#allocation2 + $0x41] sm:$0xff] %v15159_v6 }
 0x6c8   :  { %v12037_v31 = vpop.eup %12036  ;;  %v9372_v23 = vadd.f32 -1.0, %v12035_v16  ;;  %v5983_v19 = vmul.f32 1.6732632, %v9370_v9  ;;  %v5997_v22 = vsel %vm5917_vm7, %v15092_v60, %v5981_v21  ;;  %v15179_v61 = vmul.f32 1.050701, %v5996_v54  ;;  %6026 = vst [vmem:[#allocation2 + $0x51] sm:$0xff] %v15166_v40 }
 0x6c9   :  { %v12039_v56 = vpop.eup %12038  ;;  %v9373_v24 = vadd.f32 -1.0, %v12037_v31  ;;  %v5984_v43 = vmul.f32 1.6732632, %v9371_v58  ;;  %v5998_v37 = vsel %vm5918_vm8, %v15095_v46, %v5982_v57  ;;  %v15185_v18 = vmul.f32 1.050701, %v5997_v22  ;;  %6027 = vst [vmem:[#allocation2 + $0x61] sm:$0xff] %v15173_v34 }
 0x6ca   :  { %v6207_v30 = vld [vmem:[#allocation2 + $0x1] sm:$0xff]  ;;  %v12041_v33 = vpop.eup %12040  ;;  %v9374_v28 = vadd.f32 -1.0, %v12039_v56  ;;  %v5985_v42 = vmul.f32 1.6732632, %v9372_v23  ;;  %v5999_v60 = vsel %vm5919_vm9, %v15098_v53, %v5983_v19  ;;  %v15191_v49 = vmul.f32 1.050701, %v5998_v37 }
 0x6cb   :  { %6028 = vst [vmem:[#allocation2 + $0x71] sm:$0xff] %v15179_v61  ;;  %v6231_v32 = vld [vmem:[#allocation2 + $0x2] sm:$0xff]  ;;  %v12043_v3 = vpop.eup %12042  ;;  %v9375_v10 = vadd.f32 -1.0, %v12041_v33  ;;  %v5986_v46 = vmul.f32 1.6732632, %v9373_v24  ;;  %v6000_v8 = vsel %vm5920_vm10, %v15101_v63, %v5984_v43  ;;  %6029 = vst [vmem:[#allocation2 + $0x81] sm:$0xff] %v15185_v18  ;;  %v6223_v13 = vpack.c.bf16 %v15140_v26, %v6207_v30 }
 0x6cc   :  { %v15197_v17 = vmul.f32 1.050701, %v5999_v60  ;;  %v6255_v47 = vld [vmem:[#allocation2 + $0x10] sm:$0xff]  ;;  %v9376_v41 = vadd.f32 -1.0, %v12043_v3  ;;  %v5987_v35 = vmul.f32 1.6732632, %v9374_v28  ;;  %v6001_v53 = vsel %vm5921_vm11, %v15104_v4, %v5985_v42 }
 0x6cd   :  { %v15203_v51 = vmul.f32 1.050701, %v6000_v8  ;;  %6030 = vst [vmem:[#allocation2 + $0xb1] sm:$0xff] %v15191_v49  ;;  %v6256_v39 = vld [vmem:[#allocation2 + $0x20] sm:$0xff]  ;;  %v5988_v9 = vmul.f32 1.6732632, %v9375_v10  ;;  %v6002_v63 = vsel %vm5922_vm12, %v15107_v5, %v5986_v46  ;;  %6863 = vmatprep.mubr.bf16.mxu0 %v6223_v13  ;;  %v15241_v37 = vpack.c.bf16 %v15152_v45, %v15146_v11 }
 0x6ce   :  { %v15209_v21 = vmul.f32 1.050701, %v6001_v53  ;;  %6031 = vst [vmem:[#allocation2 + $0xc1] sm:$0xff] %v15197_v17  ;;  %v15213_v16 = vld [vmem:[#allocation2 + $0x12] sm:$0xff]  ;;  %v5989_v4 = vmul.f32 1.6732632, %v9376_v41  ;;  %v6003_v57 = vsel %vm5923_vm13, %v15110_v29, %v5987_v35  ;;  %v6271_v31 = vpack.c.bf16 %v6256_v39, %v6255_v47 }
 0x6cf   :  { %v6257_v58 = vld [vmem:[#allocation2 + $0x30] sm:$0xff]  ;;  %v6018_v54 = vmul.f32 1.050701, %v6002_v63  ;;  %6032 = vst [vmem:[#allocation2 + $0xd1] sm:$0xff] %v15203_v51  ;;  %v15219_v23 = vld [vmem:[#allocation2 + $0x40] sm:$0xff]  ;;  %v6004_v5 = vsel %vm5924_vm14, %v15113_v36, %v5988_v9  ;;  %v6247_v29 = vpack.c.bf16 %v15213_v16, %v6231_v32  ;;  %v11832_v33 = vld [vmem:[%s16465_s6 + $0x388] sm:$0xff]   ;;  %v15265_v3 = vpack.c.bf16 %v15179_v61, %v15173_v34 }
 0x6d0   :  { %v15224_v19 = vmul.f32 1.050701, %v6003_v57  ;;  %6033 = vst [vmem:[#allocation2 + $0xe1] sm:$0xff] %v15209_v21  ;;  %v15227_v22 = vld [vmem:[#allocation2] sm:$0xff]  ;;  %v6005_v43 = vsel %vm5925_vm15, %v15116_v59, %v5989_v4  ;;  %v15237_v36 = vmul.f32 1.050701, %v6004_v5  ;;  %6960 = vmatprep.mubr.bf16.mxu1 %v6271_v31  ;;  %v6272_v30 = vpack.c.bf16 %v15219_v23, %v6257_v58 }
 0x6d1   :  { %v6199_v56 = vpack.c.bf16 %v6255_v47, %v15227_v22  ;;  %v11831_v24 = vld [vmem:[%s16465_s6 + $0x340] sm:$0xff]   ;;  %6034 = vst [vmem:[#allocation2 + $0xf1] sm:$0xff] %v6018_v54  ;;  %v6021_v28 = vmul.f32 1.050701, %v6005_v43  ;;  %6961 = vmatmul.mubr.bf16.vlgmr.msra.gmra.mrb[32].mxu1 %v6247_v29  ;;  %v15250_v59 = vpack.c.bf16 %v15166_v40, %v15159_v6  ;;  %v11842_v60 = vld [vmem:[%s16465_s6 + $0x408] sm:$0xff]   ;;  %v15269_v46 = vld [vmem:[#allocation2 + $0x32] sm:$0xff]  ;;  %v15276_v47 = vpack.c.bf16 %v15203_v51, %v15197_v17 }
 0x6d2   :  { %6035 = vst [vmem:[#allocation2 + $0x101] sm:$0xff] %v15224_v19  ;;  %v11841_v42 = vld [vmem:[%s16465_s6 + $0x3c0] sm:$0xff]   ;;  %6036 = vst [vmem:[#allocation2 + $0x111] sm:$0xff] %v15237_v36  ;;  %6968 = vmatprep.mubr.bf16.mxu1 %v6272_v30  ;;  %v11833_v32 = vld [vmem:[%s16465_s6 + $0x348] sm:$0xff]   ;;  %v15281_v53 = vpack.c.bf16 %v6018_v54, %v15209_v21  ;;  %v15287_v13 = vpack.c.bf16 %v6257_v58, %v6256_v39 }
 0x6d3   :  { %6864 = vmatmul.mubr.bf16.vlgmr.msra.gmra.mrb[32].mxu0 %v6199_v56  ;;  %6037 = vst [vmem:[#allocation2 + $0x121] sm:$0xff] %v6021_v28  ;;  %v15267_v10 = vld [vmem:[#allocation2 + $0x22] sm:$0xff]  ;;  %v11834_v8 = vld [vmem:[%s16465_s6 + $0x390] sm:$0xff]   ;;  %10966 = vmatpush3.bf16.msra.mxu1 %v11841_v42  ;;  %v11836_v5 = vld [vmem:[%s16465_s6 + $0x398] sm:$0xff]  }
 0x6d4   :  { %6871 = vmatprep.mubr.bf16.mxu0 %v15241_v37  ;;  %10902 = vmatpush3.bf16.msra.mxu0 %v11831_v24  ;;  %v6259_v41 = vld [vmem:[#allocation2 + $0x50] sm:$0xff]  ;;  %v15278_v35 = vld [vmem:[#allocation2 + $0x60] sm:$0xff]  ;;  %v15291_v4 = vpack.c.bf16 %v15269_v46, %v15267_v10  ;;  %v11843_v54 = vld [vmem:[%s16465_s6 + $0x3c8] sm:$0xff]   ;;  %v6319_v7 = vpack.c.bf16 %v15267_v10, %v15213_v16 }
 0x6d5   :  { %10903 = vmatprep.subr.bf16.mxu0 %v11832_v33  ;;  %10967 = vmatprep.subr.bf16.mxu1 %v11842_v60  ;;  %v11835_v57 = vld [vmem:[%s16465_s6 + $0x350] sm:$0xff]   ;;  %v6273_v58 = vpack.c.bf16 %v15278_v35, %v6259_v41  ;;  %v11837_v24 = vld [vmem:[%s16465_s6 + $0x358] sm:$0xff]   ;;  %v11838_v43 = vld [vmem:[%s16465_s6 + $0x3a0] sm:$0xff]  }
 0x6d6   :  { %v11845_v56 = vld [vmem:[%s16465_s6 + $0x410] sm:$0xff]   ;;  %v15326_v28 = vld [vmem:[#allocation2 + $0x42] sm:$0xff]  ;;  %v11848_v60 = vld [vmem:[%s16465_s6 + $0x418] sm:$0xff]  }
 0x6d7   :  { %10968 = vmatpush3.bf16.msra.mxu1 %v11843_v54  ;;  %v11847_v30 = vld [vmem:[%s16465_s6 + $0x3d0] sm:$0xff]   ;;  %v15338_v54 = vpack.c.bf16 %v6259_v41, %v15219_v23  ;;  %v11844_v23 = vld [vmem:[%s16465_s6 + $0x3a8] sm:$0xff]   ;;  %v11851_v41 = vld [vmem:[%s16465_s6 + $0x420] sm:$0xff]  }
 0x6d8   :  { %10904 = vmatpush3.bf16.msra.mxu0 %v11833_v32  ;;  %v15328_v42 = vld [vmem:[#allocation2 + $0x52] sm:$0xff]  ;;  %10969 = vmatprep.subr.bf16.mxu1 %v11845_v56  ;;  %v6264_v29 = vld [vmem:[#allocation2 + $0xc0] sm:$0xff] }
 0x6d9   :  { %10905 = vmatprep.subr.bf16.mxu0 %v11834_v8  ;;  %6969 = vmatmul.mubr.bf16.gmra.mrb[36].mxu1 %v15291_v4  ;;  %v6261_v8 = vld [vmem:[#allocation2 + $0x70] sm:$0xff]  ;;  %v11849_v56 = vld [vmem:[%s16465_s6 + $0x3d8] sm:$0xff]   ;;  %v15418_v1 = vld [vmem:[#allocation2 + $0xc2] sm:$0xff] }
 0x6da   :  { %6976 = vmatprep.mubr.bf16.mxu1 %v6273_v58  ;;  %v15342_v58 = vpack.c.bf16 %v15328_v42, %v15326_v28  ;;  %v15371_v33 = vld [vmem:[#allocation2 + $0x72] sm:$0xff]  ;;  %v15377_v39 = vpack.c.bf16 %v6261_v8, %v15278_v35  ;;  %v15449_v20 = vld [vmem:[#allocation2 + $0x102] sm:$0xff] }
 0x6db   :  { %6872 = vmatmul.mubr.bf16.gmra.mrb[36].mxu0 %v15287_v13  ;;  %10970 = vmatpush3.bf16.msra.mxu1 %v11847_v30  ;;  %v11853_v30 = vld [vmem:[%s16465_s6 + $0x3e0] sm:$0xff]   ;;  %v11856_v35 = vld [vmem:[%s16465_s6 + $0x3b8] sm:$0xff]  }
 0x6dc   :  { %6879 = vmatprep.mubr.bf16.mxu0 %v15250_v59  ;;  %10906 = vmatpush3.bf16.msra.mxu0 %v11835_v57  ;;  %v15335_v57 = vld [vmem:[#allocation2 + $0x80] sm:$0xff]  ;;  %v15451_v27 = vld [vmem:[#allocation2 + $0x112] sm:$0xff] }
 0x6dd   :  { %10907 = vmatprep.subr.bf16.mxu0 %v11836_v5  ;;  %v11840_v5 = vld [vmem:[%s16465_s6 + $0x360] sm:$0xff]   ;;  %v6274_v32 = vpack.c.bf16 %v15335_v57, %v6261_v8  ;;  %10971 = vmatprep.subr.bf16.mxu1 %v11848_v60  ;;  %v11857_v8 = vld [vmem:[%s16465_s6 + $0x430] sm:$0xff]  }
 0x6de   :  { %v15369_v60 = vld [vmem:[#allocation2 + $0x62] sm:$0xff]  ;;  %v6358_v10 = vld [vmem:[#allocation2 + $0x91] sm:$0xff] }
 0x6df   :  { %10972 = vmatpush3.bf16.msra.mxu1 %v11849_v56  ;;  %v6263_v56 = vld [vmem:[#allocation2 + $0xb0] sm:$0xff]  ;;  %v15381_v31 = vpack.c.bf16 %v15371_v33, %v15369_v60  ;;  %v6321_v16 = vpack.c.bf16 %v15369_v60, %v15328_v42 }
 0x6e0   :  { %10908 = vmatpush3.bf16.msra.mxu0 %v11837_v24  ;;  %v11846_v24 = vld [vmem:[%s16465_s6 + $0x368] sm:$0xff]   ;;  %10973 = vmatprep.subr.bf16.mxu1 %v11851_v41  ;;  %v6275_v9 = vpack.c.bf16 %v6264_v29, %v6263_v56  ;;  %v6366_v60 = vld [vmem:[#allocation2 + $0x131] sm:$0xff] }
 0x6e1   :  { %10909 = vmatprep.subr.bf16.mxu0 %v11838_v43  ;;  %6977 = vmatmul.mubr.bf16.gmra.mrb[40].mxu1 %v15342_v58  ;;  %v11850_v43 = vld [vmem:[%s16465_s6 + $0x3b0] sm:$0xff]   ;;  %v11855_v41 = vld [vmem:[%s16465_s6 + $0x3e8] sm:$0xff]  }
 0x6e2   :  { %6984 = vmatprep.mubr.bf16.mxu1 %v6274_v32  ;;  %v11854_v32 = vld [vmem:[%s16465_s6 + $0x428] sm:$0xff]  }
 0x6e3   :  { %6880 = vmatmul.mubr.bf16.gmra.mrb[40].mxu0 %v15338_v54  ;;  %10974 = vmatpush3.bf16.msra.mxu1 %v11853_v30  ;;  %v11859_v30 = vld [vmem:[%s16465_s6 + $0x3f0] sm:$0xff]  }
 0x6e4   :  { %6887 = vmatprep.mubr.bf16.mxu0 %v15265_v3  ;;  %10910 = vmatpush3.bf16.msra.mxu0 %v11840_v5  ;;  %v6215_v5 = vld [vmem:[#allocation2 + $0xa1] sm:$0xff] }
 0x6e5   :  { %10911 = vmatprep.subr.bf16.mxu0 %v11844_v23  ;;  %v11852_v23 = vld [vmem:[%s16465_s6 + $0x370] sm:$0xff]   ;;  %v6227_v63 = vpack.c.bf16 %v15191_v49, %v6215_v5  ;;  %10975 = vmatprep.subr.bf16.mxu1 %v11854_v32 }
 0x6e6   :  { %v15404_v32 = vld [vmem:[#allocation2 + $0xb2] sm:$0xff] }
 0x6e7   :  { %10976 = vmatpush3.bf16.msra.mxu1 %v11855_v41  ;;  %v6265_v5 = vld [vmem:[#allocation2 + $0xd0] sm:$0xff]  ;;  %v6203_v41 = vpack.c.bf16 %v6263_v56, %v15227_v22 }
 0x6e8   :  { %10912 = vmatpush3.bf16.msra.mxu0 %v11846_v24  ;;  %v6239_v24 = vld [vmem:[#allocation2 + $0xa2] sm:$0xff]  ;;  %10977 = vmatprep.subr.bf16.mxu1 %v11857_v8  ;;  %v15420_v56 = vld [vmem:[#allocation2 + $0xd2] sm:$0xff] }
 0x6e9   :  { %10913 = vmatprep.subr.bf16.mxu0 %v11850_v43  ;;  %6985 = vmatmul.mubr.bf16.gmra.mrb[44].mxu1 %v15381_v31  ;;  %v11858_v43 = vld [vmem:[%s16465_s6 + $0x378] sm:$0xff]   ;;  %v6251_v48 = vpack.c.bf16 %v15404_v32, %v6239_v24  ;;  %v6267_v24 = vld [vmem:[#allocation2 + $0xf0] sm:$0xff]  ;;  %v15426_v14 = vpack.c.bf16 %v15420_v56, %v15418_v1 }
 0x6ea   :  { %6992 = vmatprep.mubr.bf16.mxu1 %v6275_v9  ;;  %v11862_v9 = vld [vmem:[%s16465_s6 + $0x440] sm:$0xff]  }
 0x6eb   :  { %6888 = vmatmul.mubr.bf16.gmra.mrb[44].mxu0 %v15377_v39  ;;  %10978 = vmatpush3.bf16.msra.mxu1 %v11859_v30  ;;  %v15422_v30 = vpack.c.bf16 %v6265_v5, %v6264_v29 }
 0x6ec   :  { %6895 = vmatprep.mubr.bf16.mxu0 %v6227_v63  ;;  %10914 = vmatpush3.bf16.msra.mxu0 %v11852_v23  ;;  %v11860_v63 = vld [vmem:[%s16465_s6 + $0x438] sm:$0xff]   ;;  %v6266_v23 = vld [vmem:[#allocation2 + $0xe0] sm:$0xff] }
 0x6ed   :  { %10915 = vmatprep.subr.bf16.mxu0 %v11856_v35  ;;  %v11861_v35 = vld [vmem:[%s16465_s6 + $0x3f8] sm:$0xff]   ;;  %v6276_v8 = vpack.c.bf16 %v6266_v23, %v6265_v5  ;;  %10979 = vmatprep.subr.bf16.mxu1 %v11860_v63  ;;  %v15437_v29 = vpack.c.bf16 %v6267_v24, %v6266_v23 }
 0x6ef   :  { %10980 = vmatpush3.bf16.msra.mxu1 %v11861_v35  ;;  %v6269_v35 = vld [vmem:[#allocation2 + $0x110] sm:$0xff] }
 0x6f0   :  { %10916 = vmatpush3.bf16.msra.mxu0 %v11858_v43  ;;  %v6268_v43 = vld [vmem:[#allocation2 + $0x100] sm:$0xff] }
 0x6f1   :  { %11445 = vmatprep.subr.bf16.mxu0 %v11862_v9  ;;  %6993 = vmatmul.mubr.bf16.gmra.mrb[48].mxu1 %v6251_v48  ;;  %v6277_v63 = vpack.c.bf16 %v6268_v43, %v6267_v24  ;;  %v15431_v48 = vld [vmem:[#allocation2 + $0xe2] sm:$0xff]  ;;  %v15453_v23 = vpack.c.bf16 %v6269_v35, %v6268_v43  ;;  %v15457_v24 = vpack.c.bf16 %v15451_v27, %v15449_v20 }
 0x6f2   :  { %7000 = vmatprep.mubr.bf16.mxu1 %v6276_v8  ;;  %v15435_v8 = vld [vmem:[#allocation2 + $0x120] sm:$0xff] }
 0x6f3   :  { %6896 = vmatmul.mubr.bf16.gmra.mrb[48].mxu0 %v6203_v41  ;;  %v15433_v41 = vld [vmem:[#allocation2 + $0xf2] sm:$0xff]  ;;  %v6278_v38 = vpack.c.bf16 %v15435_v8, %v6269_v35 }
 0x6f4   :  { %6903 = vmatprep.mubr.bf16.mxu0 %v15276_v47  ;;  %v15441_v5 = vpack.c.bf16 %v15433_v41, %v15431_v48 }
 0x6f9   :  { %7001 = vmatmul.mubr.bf16.gmra.mrb[52].mxu1 %v15426_v14 }
 0x6fa   :  { %7008 = vmatprep.mubr.bf16.mxu1 %v6277_v63  ;;  %v16506_v63 = vpack.c.bf16 %v15237_v36, %v15224_v19  ;;  %v11863_v19 = vld [vmem:[%s16465_s6 + $0x448] sm:$0xff]   ;;  %v16507_v36 = vpack.c.bf16 %v15146_v11, %v15140_v26  ;;  %v11865_v26 = vld [vmem:[%s16465_s6 + $0x458] sm:$0xff]   ;;  %v16508_v11 = vpack.c.bf16 %v15159_v6, %v15152_v45  ;;  %v16509_v6 = vpack.c.bf16 %v15173_v34, %v15166_v40 }
 0x6fb   :  { %6904 = vmatmul.mubr.bf16.gmra.mrb[52].mxu0 %v15422_v30  ;;  %v11867_v45 = vld [vmem:[%s16465_s6 + $0x468] sm:$0xff]   ;;  %v11869_v40 = vld [vmem:[%s16465_s6 + $0x478] sm:$0xff]   ;;  %v16510_v34 = vpack.c.bf16 %v15185_v18, %v15179_v61 }
 0x6fc   :  { %6911 = vmatprep.mubr.bf16.mxu0 %v15281_v53  ;;  %v6363_v61 = vld [vmem:[#allocation2 + $0x101] sm:$0xff] }
 0x701   :  { %7009 = vmatmul.mubr.bf16.gmra.mrb[56].mxu1 %v15441_v5 }
 0x702   :  { %7016 = vmatprep.mubr.bf16.mxu1 %v6278_v38  ;;  %v6320_v38 = vpack.c.bf16 %v15326_v28, %v15269_v46  ;;  %v6323_v28 = vpack.c.bf16 %v15418_v1, %v15404_v32  ;;  %v16511_v1 = vpack.c.bf16 %v15197_v17, %v15191_v49  ;;  %v6291_v49 = vld [vmem:[#allocation2 + $0xf1] sm:$0xff]  ;;  %v6318_v17 = vld [vmem:[#allocation2 + $0x122] sm:$0xff] }
 0x703   :  { %6912 = vmatmul.mubr.bf16.gmra.mrb[56].mxu0 %v15437_v29  ;;  %v6301_v32 = vpack.c.bf16 %v6363_v61, %v6291_v49 }
 0x704   :  { %6919 = vmatprep.mubr.bf16.mxu0 %v16506_v63 }
 0x709   :  { %7017 = vmatmul.mubr.bf16.gmra.mrb[60].mxu1 %v15457_v24 }
 0x70a   :  { %7154 = vmatprep.mubr.bf16.mxu1 %v15241_v37  ;;  %v11866_v37 = vld [vmem:[%s16465_s6 + $0x460] sm:$0xff]  }
 0x70b   :  { %6920 = vmatmul.mubr.bf16.gmra.mrb[60].mxu0 %v15453_v23 }
 0x70c   :  { %7057 = vmatprep.mubr.bf16.mxu0 %v6319_v7  ;;  %v11864_v7 = vld [vmem:[%s16465_s6 + $0x450] sm:$0xff]  }
 0x711   :  { %7155 = vmatmul.mubr.bf16.vlgmr.msra.gmra.mrb[64].mxu1 %v15287_v13  ;;  %v6370_v13 = vpack.c.bf16 %v6358_v10, %v15185_v18  ;;  %v6364_v18 = vld [vmem:[#allocation2 + $0x111] sm:$0xff] }
 0x712   :  { %7162 = vmatprep.mubr.bf16.mxu1 %v15250_v59  ;;  %v6310_v59 = vld [vmem:[#allocation2 + $0x82] sm:$0xff]  ;;  %v6373_v42 = vpack.c.bf16 %v6364_v18, %v6363_v61 }
 0x713   :  { %7058 = vmatmul.mubr.bf16.vlgmr.msra.gmra.mrb[64].mxu0 %v16507_v36  ;;  %v6322_v46 = vpack.c.bf16 %v6310_v59, %v15371_v33  ;;  %v6346_v33 = vpack.c.bf16 %v15227_v22, %v15335_v57  ;;  %v16512_v57 = vpack.c.bf16 %v15209_v21, %v15203_v51  ;;  %v6350_v51 = vpack.c.bf16 %v15227_v22, %v15435_v8  ;;  %v6382_v21 = vld [vmem:[#allocation2 + $0x92] sm:$0xff] }
 0x714   :  { %7065 = vmatprep.mubr.bf16.mxu0 %v6320_v38  ;;  %11446 = vmatpush3.bf16.msra.mxu0 %v11862_v9 }
 0x715   :  { %11447 = vmatprep.subr.bf16.mxu0 %v11863_v19 }
 0x718   :  { %11448 = vmatpush3.bf16.msra.mxu0 %v11863_v19 }
 0x719   :  { %11449 = vmatprep.subr.bf16.mxu0 %v11864_v7  ;;  %7163 = vmatmul.mubr.bf16.gmra.mrb[68].mxu1 %v15338_v54  ;;  %v6365_v54 = vld [vmem:[#allocation2 + $0x121] sm:$0xff] }
 0x71a   :  { %7170 = vmatprep.mubr.bf16.mxu1 %v15265_v3  ;;  %v11868_v3 = vld [vmem:[%s16465_s6 + $0x470] sm:$0xff]   ;;  %v6374_v9 = vpack.c.bf16 %v6366_v60, %v6365_v54 }
 0x71b   :  { %7066 = vmatmul.mubr.bf16.gmra.mrb[68].mxu0 %v16508_v11 }
 0x71c   :  { %7073 = vmatprep.mubr.bf16.mxu0 %v6321_v16  ;;  %11450 = vmatpush3.bf16.msra.mxu0 %v11864_v7 }
 0x71d   :  { %11451 = vmatprep.subr.bf16.mxu0 %v11865_v26 }
 0x720   :  { %11452 = vmatpush3.bf16.msra.mxu0 %v11865_v26 }
 0x721   :  { %11453 = vmatprep.subr.bf16.mxu0 %v11866_v37  ;;  %7171 = vmatmul.mubr.bf16.gmra.mrb[72].mxu1 %v15377_v39  ;;  %v6324_v39 = vpack.c.bf16 %v15431_v48, %v15420_v56  ;;  %v6390_v56 = vld [vmem:[#allocation2 + $0x132] sm:$0xff] }
 0x722   :  { %7178 = vmatprep.mubr.bf16.mxu1 %v6370_v13  ;;  %v6398_v43 = vpack.c.bf16 %v6390_v56, %v6318_v17 }
 0x723   :  { %7074 = vmatmul.mubr.bf16.gmra.mrb[72].mxu0 %v16509_v6 }
 0x724   :  { %7081 = vmatprep.mubr.bf16.mxu0 %v6322_v46  ;;  %11454 = vmatpush3.bf16.msra.mxu0 %v11866_v37 }
 0x725   :  { %11455 = vmatprep.subr.bf16.mxu0 %v11867_v45 }
 0x728   :  { %11456 = vmatpush3.bf16.msra.mxu0 %v11867_v45 }
 0x729   :  { %11457 = vmatprep.subr.bf16.mxu0 %v11868_v3  ;;  %7179 = vmatmul.mubr.bf16.gmra.mrb[76].mxu1 %v6346_v33 }
 0x72a   :  { %7186 = vmatprep.mubr.bf16.mxu1 %v15276_v47  ;;  %v6325_v47 = vpack.c.bf16 %v15449_v20, %v15433_v41  ;;  %v6302_v20 = vpack.c.bf16 %v6365_v54, %v6364_v18 }
 0x72b   :  { %7082 = vmatmul.mubr.bf16.gmra.mrb[76].mxu0 %v16510_v34 }
 0x72c   :  { %7089 = vmatprep.mubr.bf16.mxu0 %v6323_v28  ;;  %11458 = vmatpush3.bf16.msra.mxu0 %v11868_v3 }
 0x72d   :  { %11459 = vmatprep.subr.bf16.mxu0 %v11869_v40 }
 0x730   :  { %11460 = vmatpush3.bf16.msra.mxu0 %v11869_v40 }
 0x731   :  { %7187 = vmatmul.mubr.bf16.gmra.mrb[80].mxu1 %v15422_v30 }
 0x732   :  { %7194 = vmatprep.mubr.bf16.mxu1 %v15281_v53  ;;  %v6326_v53 = vpack.c.bf16 %v6318_v17, %v15451_v27  ;;  %v6394_v27 = vpack.c.bf16 %v6382_v21, %v6310_v59 }
 0x733   :  { %7090 = vmatmul.mubr.bf16.gmra.mrb[80].mxu0 %v16511_v1 }
 0x734   :  { %7097 = vmatprep.mubr.bf16.mxu0 %v6324_v39 }
 0x739   :  { %7195 = vmatmul.mubr.bf16.gmra.mrb[84].mxu1 %v15437_v29 }
 0x73a   :  { %7202 = vmatprep.mubr.bf16.mxu1 %v6373_v42 }
 0x73b   :  { %7098 = vmatmul.mubr.bf16.gmra.mrb[84].mxu0 %v16512_v57 }
 0x73c   :  { %7105 = vmatprep.mubr.bf16.mxu0 %v6325_v47 }
 0x741   :  { %7203 = vmatmul.mubr.bf16.gmra.mrb[88].mxu1 %v15453_v23 }
 0x742   :  { %7210 = vmatprep.mubr.bf16.mxu1 %v6374_v9 }
 0x743   :  { %7106 = vmatmul.mubr.bf16.gmra.mrb[88].mxu0 %v6301_v32 }
 0x744   :  { %7113 = vmatprep.mubr.bf16.mxu0 %v6326_v53 }
 0x749   :  { %7211 = vmatmul.mubr.bf16.gmra.mrb[92].mxu1 %v6350_v51 }
 0x74b   :  { %7114 = vmatmul.mubr.bf16.gmra.mrb[92].mxu0 %v6302_v20 }
 0x74c   :  { %11461 = vmatprep.mubr.bf16.mxu0 %v15291_v4 }
 0x753   :  { %11462 = vmatmul.mubr.bf16.vlgmr.msra.gmra.mrb[96].mxu0 %v15342_v58 }
 0x754   :  { %11465 = vmatprep.mubr.bf16.mxu0 %v15381_v31 }
 0x75b   :  { %11466 = vmatmul.mubr.bf16.gmra.mrb[100].mxu0 %v6394_v27 }
 0x75c   :  { %11469 = vmatprep.mubr.bf16.mxu0 %v15426_v14 }
 0x763   :  { %11470 = vmatmul.mubr.bf16.gmra.mrb[104].mxu0 %v15441_v5 }
 0x764   :  { %11473 = vmatprep.mubr.bf16.mxu0 %v15457_v24 }
 0x76b   :  { %11474 = vmatmul.mubr.bf16.gmra.mrb[108].mxu0 %v6398_v43 }
 0x7a4   :  { %v10853_v30 = vpop.f32.mrb[32].mxu1 }
 0x7a5   :  { %v10854_v4 = vpop.f32.mrb[33].mxu1 }
 0x7a6   :  { %v10789_v22 = vpop.f32.mrb[32].mxu0  ;;  %v10855_v58 = vadd.f32 %v10854_v4, %v10853_v30  ;;  %v10856_v31 = vpop.f32.mrb[34].mxu1 }
 0x7a7   :  { %v10790_v48 = vpop.f32.mrb[33].mxu0  ;;  %v10857_v29 = vpop.f32.mrb[35].mxu1 }
 0x7a8   :  { %v10791_v41 = vadd.f32 %v10790_v48, %v10789_v22  ;;  %v10792_v35 = vpop.f32.mrb[34].mxu0  ;;  %v10858_v23 = vadd.f32 %v10857_v29, %v10856_v31 }
 0x7a9   :  { %v10793_v8 = vpop.f32.mrb[35].mxu0 }
 0x7aa   :  { %v15536_v63 = vadd.f32 %v10855_v58, %v10791_v41  ;;  %v10794_v14 = vadd.f32 %v10793_v8, %v10792_v35 }
 0x7ac   :  { %v15538_v5 = vadd.f32 %v10858_v23, %v10794_v14  ;;  %v10859_v38 = vpop.f32.mrb[36].mxu1 }
 0x7ad   :  { %v10860_v36 = vpop.f32.mrb[37].mxu1 }
 0x7ae   :  { %v10795_v24 = vpop.f32.mrb[36].mxu0  ;;  %v10861_v16 = vadd.f32 %v10860_v36, %v10859_v38  ;;  %v10862_v11 = vpop.f32.mrb[38].mxu1 }
 0x7af   :  { %v10796_v19 = vpop.f32.mrb[37].mxu0  ;;  %v10863_v59 = vpop.f32.mrb[39].mxu1 }
 0x7b0   :  { %v10797_v7 = vadd.f32 %v10796_v19, %v10795_v24  ;;  %v10798_v26 = vpop.f32.mrb[38].mxu0  ;;  %v10864_v13 = vadd.f32 %v10863_v59, %v10862_v11 }
 0x7b1   :  { %v10799_v37 = vpop.f32.mrb[39].mxu0 }
 0x7b2   :  { %v15540_v10 = vadd.f32 %v10861_v16, %v10797_v7  ;;  %v10800_v46 = vadd.f32 %v10799_v37, %v10798_v26 }
 0x7b4   :  { %v15542_v45 = vadd.f32 %v10864_v13, %v10800_v46  ;;  %v10865_v3 = vpop.f32.mrb[40].mxu1 }
 0x7b5   :  { %v10866_v28 = vpop.f32.mrb[41].mxu1 }
 0x7b6   :  { %v10801_v6 = vpop.f32.mrb[40].mxu0  ;;  %v10867_v34 = vadd.f32 %v10866_v28, %v10865_v3  ;;  %v10868_v1 = vpop.f32.mrb[42].mxu1 }
 0x7b7   :  { %v10802_v33 = vpop.f32.mrb[41].mxu0  ;;  %v10869_v18 = vpop.f32.mrb[43].mxu1 }
 0x7b8   :  { %v10803_v40 = vadd.f32 %v10802_v33, %v10801_v6  ;;  %v10804_v39 = vpop.f32.mrb[42].mxu0  ;;  %v10870_v57 = vadd.f32 %v10869_v18, %v10868_v1 }
 0x7b9   :  { %v10805_v61 = vpop.f32.mrb[43].mxu0 }
 0x7ba   :  { %v15544_v47 = vadd.f32 %v10867_v34, %v10803_v40  ;;  %v10806_v42 = vadd.f32 %v10805_v61, %v10804_v39 }
 0x7bc   :  { %v15546_v49 = vadd.f32 %v10870_v57, %v10806_v42  ;;  %v10871_v54 = vpop.f32.mrb[44].mxu1 }
 0x7bd   :  { %v10872_v32 = vpop.f32.mrb[45].mxu1 }
 0x7be   :  { %v10807_v17 = vpop.f32.mrb[44].mxu0  ;;  %v10873_v9 = vadd.f32 %v10872_v32, %v10871_v54  ;;  %v10874_v51 = vpop.f32.mrb[46].mxu1 }
 0x7bf   :  { %v10808_v60 = vpop.f32.mrb[45].mxu0  ;;  %v10875_v27 = vpop.f32.mrb[47].mxu1 }
 0x7c0   :  { %v10809_v53 = vadd.f32 %v10808_v60, %v10807_v17  ;;  %v10810_v20 = vpop.f32.mrb[46].mxu0  ;;  %v10876_v22 = vadd.f32 %v10875_v27, %v10874_v51 }
 0x7c1   :  { %v10811_v21 = vpop.f32.mrb[47].mxu0 }
 0x7c2   :  { %v15548_v56 = vadd.f32 %v10873_v9, %v10809_v53  ;;  %v10812_v43 = vadd.f32 %v10811_v21, %v10810_v20 }
 0x7c4   :  { %v15550_v30 = vadd.f32 %v10876_v22, %v10812_v43  ;;  %v10877_v4 = vpop.f32.mrb[48].mxu1 }
 0x7c5   :  { %v10878_v58 = vpop.f32.mrb[49].mxu1 }
 0x7c6   :  { %v10813_v48 = vpop.f32.mrb[48].mxu0  ;;  %v10879_v31 = vadd.f32 %v10878_v58, %v10877_v4  ;;  %v10880_v29 = vpop.f32.mrb[50].mxu1 }
 0x7c7   :  { %v10814_v41 = vpop.f32.mrb[49].mxu0  ;;  %v10881_v23 = vpop.f32.mrb[51].mxu1 }
 0x7c8   :  { %v10815_v35 = vadd.f32 %v10814_v41, %v10813_v48  ;;  %v10816_v8 = vpop.f32.mrb[50].mxu0  ;;  %v10882_v19 = vadd.f32 %v10881_v23, %v10880_v29 }
 0x7c9   :  { %v10817_v14 = vpop.f32.mrb[51].mxu0 }
 0x7ca   :  { %v15552_v24 = vadd.f32 %v10879_v31, %v10815_v35  ;;  %v10818_v38 = vadd.f32 %v10817_v14, %v10816_v8 }
 0x7cc   :  { %v15554_v36 = vadd.f32 %v10882_v19, %v10818_v38  ;;  %v10883_v16 = vpop.f32.mrb[52].mxu1 }
 0x7cd   :  { %v10884_v11 = vpop.f32.mrb[53].mxu1 }
 0x7ce   :  { %v10819_v7 = vpop.f32.mrb[52].mxu0  ;;  %v10885_v59 = vadd.f32 %v10884_v11, %v10883_v16  ;;  %v10886_v13 = vpop.f32.mrb[54].mxu1 }
 0x7cf   :  { %v10820_v26 = vpop.f32.mrb[53].mxu0  ;;  %v10887_v3 = vpop.f32.mrb[55].mxu1 }
 0x7d0   :  { %v10821_v37 = vadd.f32 %v10820_v26, %v10819_v7  ;;  %v10822_v46 = vpop.f32.mrb[54].mxu0  ;;  %v10888_v40 = vadd.f32 %v10887_v3, %v10886_v13 }
 0x7d1   :  { %v10823_v6 = vpop.f32.mrb[55].mxu0 }
 0x7d2   :  { %v15556_v33 = vadd.f32 %v10885_v59, %v10821_v37  ;;  %v10824_v28 = vadd.f32 %v10823_v6, %v10822_v46 }
 0x7d4   :  { %v15558_v34 = vadd.f32 %v10888_v40, %v10824_v28  ;;  %v10889_v1 = vpop.f32.mrb[56].mxu1 }
 0x7d5   :  { %v10890_v18 = vpop.f32.mrb[57].mxu1 }
 0x7d6   :  { %v10825_v39 = vpop.f32.mrb[56].mxu0  ;;  %v10891_v57 = vadd.f32 %v10890_v18, %v10889_v1  ;;  %v10892_v54 = vpop.f32.mrb[58].mxu1 }
 0x7d7   :  { %v10826_v61 = vpop.f32.mrb[57].mxu0  ;;  %v10893_v32 = vpop.f32.mrb[59].mxu1 }
 0x7d8   :  { %v10827_v42 = vadd.f32 %v10826_v61, %v10825_v39  ;;  %v10828_v17 = vpop.f32.mrb[58].mxu0  ;;  %v10894_v20 = vadd.f32 %v10893_v32, %v10892_v54 }
 0x7d9   :  { %v10829_v60 = vpop.f32.mrb[59].mxu0 }
 0x7da   :  { %v15560_v53 = vadd.f32 %v10891_v57, %v10827_v42  ;;  %v10830_v9 = vadd.f32 %v10829_v60, %v10828_v17 }
 0x7dc   :  { %v15562_v51 = vadd.f32 %v10894_v20, %v10830_v9  ;;  %v10895_v27 = vpop.f32.mrb[60].mxu1 }
 0x7dd   :  { %v10896_v22 = vpop.f32.mrb[61].mxu1 }
 0x7de   :  { %v10831_v21 = vpop.f32.mrb[60].mxu0  ;;  %v10897_v4 = vadd.f32 %v10896_v22, %v10895_v27  ;;  %v10898_v58 = vpop.f32.mrb[62].mxu1 }
 0x7df   :  { %v10832_v43 = vpop.f32.mrb[61].mxu0  ;;  %v10899_v31 = vpop.f32.mrb[63].mxu1 }
 0x7e0   :  { %v10833_v48 = vadd.f32 %v10832_v43, %v10831_v21  ;;  %v10834_v41 = vpop.f32.mrb[62].mxu0  ;;  %v10900_v14 = vadd.f32 %v10899_v31, %v10898_v58 }
 0x7e1   :  { %v10835_v35 = vpop.f32.mrb[63].mxu0 }
 0x7e2   :  { %v15564_v8 = vadd.f32 %v10897_v4, %v10833_v48  ;;  %v10836_v29 = vadd.f32 %v10835_v35, %v10834_v41 }
 0x7e4   :  { %v15566_v23 = vadd.f32 %v10900_v14, %v10836_v29  ;;  %v10981_v19 = vpop.f32.mrb[64].mxu1 }
 0x7e5   :  { %v10982_v16 = vpop.f32.mrb[65].mxu1 }
 0x7e6   :  { %v10917_v38 = vpop.f32.mrb[64].mxu0  ;;  %v10983_v11 = vadd.f32 %v10982_v16, %v10981_v19  ;;  %v10984_v59 = vpop.f32.mrb[66].mxu1 }
 0x7e7   :  { %v10918_v7 = vpop.f32.mrb[65].mxu0  ;;  %v10985_v13 = vpop.f32.mrb[67].mxu1 }
 0x7e8   :  { %v10919_v26 = vadd.f32 %v10918_v7, %v10917_v38  ;;  %v10920_v37 = vpop.f32.mrb[66].mxu0  ;;  %v10986_v28 = vadd.f32 %v10985_v13, %v10984_v59 }
 0x7e9   :  { %v10921_v46 = vpop.f32.mrb[67].mxu0 }
 0x7ea   :  { %v7060_v6 = vadd.f32 %v10919_v26, %v15536_v63  ;;  %v10922_v3 = vadd.f32 %v10921_v46, %v10920_v37 }
 0x7ec   :  { %v7063_v40 = vadd.f32 %v10922_v3, %v15538_v5  ;;  %v15570_v39 = vadd.f32 %v10983_v11, %v7060_v6  ;;  %v10987_v61 = vpop.f32.mrb[68].mxu1 }
 0x7ed   :  { %v10988_v57 = vpop.f32.mrb[69].mxu1 }
 0x7ee   :  { %v10923_v1 = vpop.f32.mrb[68].mxu0  ;;  %v15572_v18 = vadd.f32 %v10986_v28, %v7063_v40  ;;  %v10989_v54 = vadd.f32 %v10988_v57, %v10987_v61  ;;  %v10990_v32 = vpop.f32.mrb[70].mxu1 }
 0x7ef   :  { %v10924_v42 = vpop.f32.mrb[69].mxu0  ;;  %v10991_v20 = vpop.f32.mrb[71].mxu1 }
 0x7f0   :  { %v10925_v17 = vadd.f32 %v10924_v42, %v10923_v1  ;;  %v10926_v60 = vpop.f32.mrb[70].mxu0  ;;  %v10992_v27 = vadd.f32 %v10991_v20, %v10990_v32 }
 0x7f1   :  { %v10927_v9 = vpop.f32.mrb[71].mxu0 }
 0x7f2   :  { %v7068_v63 = vadd.f32 %v10925_v17, %v15540_v10  ;;  %v10928_v21 = vadd.f32 %v10927_v9, %v10926_v60 }
 0x7f4   :  { %v7071_v5 = vadd.f32 %v10928_v21, %v15542_v45  ;;  %v15576_v43 = vadd.f32 %v10989_v54, %v7068_v63  ;;  %v10993_v48 = vpop.f32.mrb[72].mxu1 }
 0x7f5   :  { %v10994_v58 = vpop.f32.mrb[73].mxu1 }
 0x7f6   :  { %v10929_v22 = vpop.f32.mrb[72].mxu0  ;;  %v15578_v4 = vadd.f32 %v10992_v27, %v7071_v5  ;;  %v10995_v31 = vadd.f32 %v10994_v58, %v10993_v48  ;;  %v10996_v14 = vpop.f32.mrb[74].mxu1 }
 0x7f7   :  { %v10930_v41 = vpop.f32.mrb[73].mxu0  ;;  %v10997_v19 = vpop.f32.mrb[75].mxu1 }
 0x7f8   :  { %v10931_v35 = vadd.f32 %v10930_v41, %v10929_v22  ;;  %v10932_v29 = vpop.f32.mrb[74].mxu0  ;;  %v10998_v16 = vadd.f32 %v10997_v19, %v10996_v14  ;;  %v11872_v14 = vld [vmem:[%s16470_s9 + $0x48] sm:$0xff]  }
 0x7f9   :  { %v10933_v38 = vpop.f32.mrb[75].mxu0 }
 0x7fa   :  { %v7076_v10 = vadd.f32 %v10931_v35, %v15544_v47  ;;  %v10934_v7 = vadd.f32 %v10933_v38, %v10932_v29  ;;  %v11873_v38 = vld [vmem:[%s16470_s9 + $0x8] sm:$0xff]  }
 0x7fc   :  { %v7079_v45 = vadd.f32 %v10934_v7, %v15546_v49  ;;  %v15582_v26 = vadd.f32 %v10995_v31, %v7076_v10  ;;  %v10999_v37 = vpop.f32.mrb[76].mxu1 }
 0x7fd   :  { %v11000_v13 = vpop.f32.mrb[77].mxu1 }
 0x7fe   :  { %v10935_v11 = vpop.f32.mrb[76].mxu0  ;;  %v15584_v59 = vadd.f32 %v10998_v16, %v7079_v45  ;;  %v11001_v3 = vadd.f32 %v11000_v13, %v10999_v37  ;;  %v11002_v40 = vpop.f32.mrb[78].mxu1  ;;  %v11879_v13 = vld [vmem:[%s16470_s9 + $0xc0] sm:$0xff]  }
 0x7ff   :  { %v10936_v46 = vpop.f32.mrb[77].mxu0  ;;  %v11003_v61 = vpop.f32.mrb[79].mxu1  ;;  %11109 = vmatprep.subr.bf16.mxu0 %v11879_v13 }
 0x800   :  { %v10937_v6 = vadd.f32 %v10936_v46, %v10935_v11  ;;  %v10938_v28 = vpop.f32.mrb[78].mxu0  ;;  %v11004_v57 = vadd.f32 %v11003_v61, %v11002_v40  ;;  %v11874_v46 = vld [vmem:[%s16470_s9 + $0x50] sm:$0xff]   ;;  %v11881_v40 = vld [vmem:[%s16470_s9 + $0x80] sm:$0xff]  }
 0x801   :  { %v10939_v1 = vpop.f32.mrb[79].mxu0  ;;  %11110 = vmatpush3.bf16.msra.mxu0 %v11881_v40 }
 0x802   :  { %v7084_v47 = vadd.f32 %v10937_v6, %v15548_v56  ;;  %v10940_v42 = vadd.f32 %v10939_v1, %v10938_v28  ;;  %v11870_v56 = vld [vmem:[%s16470_s9 + $0x40] sm:$0xff]   ;;  %v11875_v28 = vld [vmem:[%s16470_s9 + $0x10] sm:$0xff]  }
 0x803   :  { %11045 = vmatprep.subr.bf16.mxu1 %v11870_v56 }
 0x804   :  { %v7087_v49 = vadd.f32 %v10940_v42, %v15550_v30  ;;  %v15588_v17 = vadd.f32 %v11001_v3, %v7084_v47  ;;  %v11005_v60 = vpop.f32.mrb[80].mxu1  ;;  %v11871_v30 = vld [vmem:[%s16470_s9] sm:$0xff]  }
 0x805   :  { %v11006_v20 = vpop.f32.mrb[81].mxu1  ;;  %11046 = vmatpush3.bf16.msra.mxu1 %v11871_v30  ;;  %v11878_v30 = vld [vmem:[%s16470_s9 + $0x60] sm:$0xff]  }
 0x806   :  { %v10941_v54 = vpop.f32.mrb[80].mxu0  ;;  %v15590_v32 = vadd.f32 %v11004_v57, %v7087_v49  ;;  %v11007_v21 = vadd.f32 %v11006_v20, %v11005_v60  ;;  %v11008_v5 = vpop.f32.mrb[82].mxu1  ;;  %11047 = vmatprep.subr.bf16.mxu1 %v11872_v14  ;;  %v11876_v49 = vld [vmem:[%s16470_s9 + $0x58] sm:$0xff]  }
 0x807   :  { %v10942_v9 = vpop.f32.mrb[81].mxu0  ;;  %v11009_v48 = vpop.f32.mrb[83].mxu1  ;;  %v11888_v14 = vld [vmem:[%s16470_s9 + $0xd8] sm:$0xff]  }
 0x808   :  { %v10943_v63 = vadd.f32 %v10942_v9, %v10941_v54  ;;  %v10944_v27 = vpop.f32.mrb[82].mxu0  ;;  %v11010_v35 = vadd.f32 %v11009_v48, %v11008_v5  ;;  %v11882_v54 = vld [vmem:[%s16470_s9 + $0xc8] sm:$0xff]  }
 0x809   :  { %v10945_v22 = vpop.f32.mrb[83].mxu0  ;;  %11048 = vmatpush3.bf16.msra.mxu1 %v11873_v38  ;;  %11111 = vmatprep.subr.bf16.mxu0 %v11882_v54 }
 0x80a   :  { %v7092_v41 = vadd.f32 %v10943_v63, %v15552_v24  ;;  %v10946_v58 = vadd.f32 %v10945_v22, %v10944_v27  ;;  %11049 = vmatprep.subr.bf16.mxu1 %v11874_v46  ;;  %v11885_v63 = vld [vmem:[%s16470_s9 + $0xd0] sm:$0xff]  }
 0x80c   :  { %v7095_v31 = vadd.f32 %v10946_v58, %v15554_v36  ;;  %v15600_v29 = vadd.f32 %v11007_v21, %v7092_v41  ;;  %v11011_v10 = vpop.f32.mrb[84].mxu1  ;;  %v11887_v41 = vld [vmem:[%s16470_s9 + $0x90] sm:$0xff]  }
 0x80d   :  { %v11012_v16 = vpop.f32.mrb[85].mxu1  ;;  %11050 = vmatpush3.bf16.msra.mxu1 %v11875_v28 }
 0x80e   :  { %v10947_v19 = vpop.f32.mrb[84].mxu0  ;;  %v15608_v7 = vadd.f32 %v11010_v35, %v7095_v31  ;;  %v11013_v36 = vadd.f32 %v11012_v16, %v11011_v10  ;;  %v11014_v37 = vpop.f32.mrb[86].mxu1  ;;  %11051 = vmatprep.subr.bf16.mxu1 %v11876_v49  ;;  %v11880_v31 = vld [vmem:[%s16470_s9 + $0x20] sm:$0xff]  }
 0x80f   :  { %v10948_v24 = vpop.f32.mrb[85].mxu0  ;;  %v11015_v3 = vpop.f32.mrb[87].mxu1 }
 0x810   :  { %v10949_v45 = vadd.f32 %v10948_v24, %v10947_v19  ;;  %v10950_v11 = vpop.f32.mrb[86].mxu0  ;;  %v11016_v47 = vadd.f32 %v11015_v3, %v11014_v37  ;;  %v11893_v3 = vld [vmem:[%s16470_s9 + $0xa0] sm:$0xff]  }
 0x811   :  { %v10951_v6 = vpop.f32.mrb[87].mxu0 }
 0x812   :  { %v7100_v1 = vadd.f32 %v10949_v45, %v15556_v33  ;;  %v10952_v61 = vadd.f32 %v10951_v6, %v10950_v11  ;;  %v11877_v33 = vld [vmem:[%s16470_s9 + $0x18] sm:$0xff]   ;;  %v11884_v45 = vld [vmem:[%s16470_s9 + $0x68] sm:$0xff]   ;;  %v11891_v6 = vld [vmem:[%s16470_s9 + $0xe0] sm:$0xff]  }
 0x813   :  { %11052 = vmatpush3.bf16.msra.mxu1 %v11877_v33 }
 0x814   :  { %v7103_v42 = vadd.f32 %v10952_v61, %v15558_v34  ;;  %v15624_v57 = vadd.f32 %v11013_v36, %v7100_v1  ;;  %v11017_v9 = vpop.f32.mrb[88].mxu1  ;;  %v11883_v34 = vld [vmem:[%s16470_s9 + $0x88] sm:$0xff]   ;;  %11053 = vmatprep.subr.bf16.mxu1 %v11878_v30  ;;  %v11889_v36 = vld [vmem:[%s16470_s9 + $0x98] sm:$0xff]  }
 0x815   :  { %v11018_v27 = vpop.f32.mrb[89].mxu1  ;;  %11112 = vmatpush3.bf16.msra.mxu0 %v11883_v34  ;;  %v11894_v34 = vld [vmem:[%s16470_s9 + $0xe8] sm:$0xff]  }
 0x816   :  { %v10953_v60 = vpop.f32.mrb[88].mxu0  ;;  %v15635_v20 = vadd.f32 %v11016_v47, %v7103_v42  ;;  %v11019_v22 = vadd.f32 %v11018_v27, %v11017_v9  ;;  %v11020_v56 = vpop.f32.mrb[90].mxu1  ;;  %11113 = vmatprep.subr.bf16.mxu0 %v11885_v63  ;;  %v11890_v47 = vld [vmem:[%s16470_s9 + $0x70] sm:$0xff]   ;;  %v11895_v63 = vld [vmem:[%s16470_s9 + $0xa8] sm:$0xff]  }
 0x817   :  { %v10954_v21 = vpop.f32.mrb[89].mxu0  ;;  %v11021_v35 = vpop.f32.mrb[91].mxu1  ;;  %11054 = vmatpush3.bf16.msra.mxu1 %v11880_v31  ;;  %v11892_v42 = vld [vmem:[%s16470_s9 + $0x30] sm:$0xff]  }
 0x818   :  { %v10955_v5 = vadd.f32 %v10954_v21, %v10953_v60  ;;  %v10956_v48 = vpop.f32.mrb[90].mxu0  ;;  %v11022_v10 = vadd.f32 %v11021_v35, %v11020_v56  ;;  %11055 = vmatprep.subr.bf16.mxu1 %v11884_v45  ;;  %v11899_v35 = vld [vmem:[%s16470_s9 + $0xb0] sm:$0xff]  }
 0x819   :  { %v10957_v58 = vpop.f32.mrb[91].mxu0  ;;  %11114 = vmatpush3.bf16.msra.mxu0 %v11887_v41 }
 0x81a   :  { %v7108_v38 = vadd.f32 %v10955_v5, %v15560_v53  ;;  %v10958_v19 = vadd.f32 %v10957_v58, %v10956_v48  ;;  %v11886_v53 = vld [vmem:[%s16470_s9 + $0x28] sm:$0xff]   ;;  %11115 = vmatprep.subr.bf16.mxu0 %v11888_v14  ;;  %v11897_v5 = vld [vmem:[%s16470_s9 + $0xf0] sm:$0xff]  }
 0x81b   :  { %11056 = vmatpush3.bf16.msra.mxu1 %v11886_v53 }
 0x81c   :  { %v7111_v24 = vadd.f32 %v10958_v19, %v15562_v51  ;;  %v15657_v16 = vadd.f32 %v11019_v22, %v7108_v38  ;;  %v11023_v37 = vpop.f32.mrb[92].mxu1  ;;  %11057 = vmatprep.subr.bf16.mxu1 %v11890_v47 }
 0x81d   :  { %v11024_v13 = vpop.f32.mrb[93].mxu1  ;;  %11116 = vmatpush3.bf16.msra.mxu0 %v11889_v36 }
 0x81e   :  { %v10959_v11 = vpop.f32.mrb[92].mxu0  ;;  %v15668_v51 = vadd.f32 %v11022_v10, %v7111_v24  ;;  %v11025_v40 = vadd.f32 %v11024_v13, %v11023_v37  ;;  %v11026_v61 = vpop.f32.mrb[94].mxu1  ;;  %11117 = vmatprep.subr.bf16.mxu0 %v11891_v6  ;;  %v11901_v24 = vld [vmem:[%s16470_s9 + $0xb8] sm:$0xff]  }
 0x81f   :  { %v10960_v46 = vpop.f32.mrb[93].mxu0  ;;  %v11027_v54 = vpop.f32.mrb[95].mxu1  ;;  %11058 = vmatpush3.bf16.msra.mxu1 %v11892_v42 }
 0x820   :  { %v10961_v28 = vadd.f32 %v10960_v46, %v10959_v11  ;;  %v10962_v1 = vpop.f32.mrb[94].mxu0  ;;  %v11028_v9 = vadd.f32 %v11027_v54, %v11026_v61 }
 0x821   :  { %v10963_v49 = vpop.f32.mrb[95].mxu0  ;;  %11118 = vmatpush3.bf16.msra.mxu0 %v11893_v3 }
 0x822   :  { %v7116_v33 = vadd.f32 %v10961_v28, %v15564_v8  ;;  %v10964_v60 = vadd.f32 %v10963_v49, %v10962_v1  ;;  %v11896_v8 = vld [vmem:[%s16470_s9 + $0x78] sm:$0xff]   ;;  %11119 = vmatprep.subr.bf16.mxu0 %v11894_v34 }
 0x823   :  { %11059 = vmatprep.subr.bf16.mxu1 %v11896_v8 }
 0x824   :  { %v7119_v21 = vadd.f32 %v10964_v60, %v15566_v23  ;;  %v15690_v27 = vadd.f32 %v11025_v40, %v7116_v33  ;;  %v11898_v23 = vld [vmem:[%s16470_s9 + $0x38] sm:$0xff]  }
 0x825   :  { %11120 = vmatpush3.bf16.msra.mxu0 %v11895_v63  ;;  %11060 = vmatpush3.bf16.msra.mxu1 %v11898_v23 }
 0x826   :  { %v11463_v22 = vpop.f32.mrb[96].mxu0  ;;  %v15698_v48 = vadd.f32 %v11028_v9, %v7119_v21  ;;  %11121 = vmatprep.subr.bf16.mxu0 %v11897_v5 }
 0x827   :  { %v15704_v56 = vadd.f32 %v11463_v22, %v15576_v43  ;;  %v7253_v30 = vpop.f32.mrb[97].mxu0  ;;  %v11900_v43 = vld [vmem:[%s16470_s9 + $0xf8] sm:$0xff]  }
 0x828   :  { %v15707_v41 = vadd.f32 %v7253_v30, %v15570_v39  ;;  %v11464_v58 = vpop.f32.mrb[98].mxu0  ;;  %v11902_v39 = vld [vmem:[%s16470_s9 + $0x140] sm:$0xff]  }
 0x829   :  { %v15713_v31 = vadd.f32 %v11464_v58, %v15578_v4  ;;  %v7256_v14 = vpop.f32.mrb[99].mxu0  ;;  %11122 = vmatpush3.bf16.msra.mxu0 %v11899_v35  ;;  %11173 = vmatprep.subr.bf16.mxu1 %v11902_v39 }
 0x82a   :  { %v15719_v38 = vadd.f32 %v7256_v14, %v15572_v18  ;;  %v7341_v19 = vmul.f32 %v15707_v41, %v15707_v41  ;;  %11123 = vmatprep.subr.bf16.mxu0 %v11900_v43  ;;  %v7343_v18 = vmul.f32 %v15704_v56, %v15704_v56 }
 0x82b   :  { %v7344_v46 = vmul.f32 %v15713_v31, %v15713_v31 }
 0x82c   :  { %v7320_v4 = vadd.f32 %v15719_v38, %v15707_v41  ;;  %v7342_v10 = vmul.f32 %v15719_v38, %v15719_v38 }
 0x82d   :  { %11124 = vmatpush3.bf16.msra.mxu0 %v11901_v24 }
 0x82e   :  { %v7321_v45 = vadd.f32 %v7320_v4, %v15704_v56  ;;  %v7357_v36 = vadd.f32 %v7342_v10, %v7341_v19  ;;  %v11467_v53 = vpop.f32.mrb[100].mxu0 }
 0x82f   :  { %v15737_v11 = vadd.f32 %v11467_v53, %v15588_v17  ;;  %v7269_v37 = vpop.f32.mrb[101].mxu0 }
 0x830   :  { %v7358_v13 = vadd.f32 %v7357_v36, %v7343_v18  ;;  %v15742_v6 = vadd.f32 %v7269_v37, %v15582_v26  ;;  %v7322_v3 = vadd.f32 %v7321_v45, %v15713_v31  ;;  %v11468_v28 = vpop.f32.mrb[102].mxu0 }
 0x831   :  { %v15746_v40 = vadd.f32 %v11468_v28, %v15590_v32  ;;  %v7272_v1 = vpop.f32.mrb[103].mxu0  ;;  %v7347_v32 = vmul.f32 %v15737_v11, %v15737_v11 }
 0x832   :  { %v7323_v61 = vadd.f32 %v7322_v3, %v15742_v6  ;;  %v7345_v17 = vmul.f32 %v15742_v6, %v15742_v6  ;;  %v7359_v47 = vadd.f32 %v7358_v13, %v7344_v46  ;;  %v15752_v42 = vadd.f32 %v7272_v1, %v15584_v59  ;;  %v11910_v59 = vld [vmem:[%s16470_s9 + $0x1c0] sm:$0xff]  }
 0x833   :  { %v7348_v21 = vmul.f32 %v15746_v40, %v15746_v40  ;;  %11237 = vmatprep.subr.bf16.mxu0 %v11910_v59 }
 0x834   :  { %v7360_v49 = vadd.f32 %v7359_v47, %v7345_v17  ;;  %v7324_v26 = vadd.f32 %v7323_v61, %v15752_v42  ;;  %v7346_v54 = vmul.f32 %v15752_v42, %v15752_v42 }
 0x836   :  { %v7325_v33 = vadd.f32 %v7324_v26, %v15737_v11  ;;  %v7361_v60 = vadd.f32 %v7360_v49, %v7346_v54  ;;  %v11471_v9 = vpop.f32.mrb[104].mxu0 }
 0x837   :  { %v15761_v34 = vadd.f32 %v11471_v9, %v15624_v57  ;;  %v7285_v63 = vpop.f32.mrb[105].mxu0 }
 0x838   :  { %v7362_v8 = vadd.f32 %v7361_v60, %v7347_v32  ;;  %v15769_v5 = vadd.f32 %v7285_v63, %v15600_v29  ;;  %v7326_v22 = vadd.f32 %v7325_v33, %v15746_v40  ;;  %v11472_v23 = vpop.f32.mrb[106].mxu0 }
 0x839   :  { %v15773_v30 = vadd.f32 %v11472_v23, %v15635_v20  ;;  %v7288_v57 = vpop.f32.mrb[107].mxu0  ;;  %v7351_v20 = vmul.f32 %v15761_v34, %v15761_v34 }
 0x83a   :  { %v7327_v58 = vadd.f32 %v7326_v22, %v15769_v5  ;;  %v7349_v35 = vmul.f32 %v15769_v5, %v15769_v5  ;;  %v7363_v14 = vadd.f32 %v7362_v8, %v7348_v21  ;;  %v15779_v43 = vadd.f32 %v7288_v57, %v15608_v7 }
 0x83b   :  { %v7352_v7 = vmul.f32 %v15773_v30, %v15773_v30 }
 0x83c   :  { %v7364_v39 = vadd.f32 %v7363_v14, %v7349_v35  ;;  %v7328_v29 = vadd.f32 %v7327_v58, %v15779_v43  ;;  %v7350_v19 = vmul.f32 %v15779_v43, %v15779_v43 }
 0x83e   :  { %v7329_v4 = vadd.f32 %v7328_v29, %v15761_v34  ;;  %v7365_v10 = vadd.f32 %v7364_v39, %v7350_v19  ;;  %v11475_v24 = vpop.f32.mrb[108].mxu0 }
 0x83f   :  { %v15788_v18 = vadd.f32 %v11475_v24, %v15690_v27  ;;  %v7301_v45 = vpop.f32.mrb[109].mxu0 }
 0x840   :  { %v7366_v36 = vadd.f32 %v7365_v10, %v7351_v20  ;;  %v15793_v53 = vadd.f32 %v7301_v45, %v15657_v16  ;;  %v7330_v37 = vadd.f32 %v7329_v4, %v15773_v30  ;;  %v11476_v46 = vpop.f32.mrb[110].mxu0 }
 0x841   :  { %v15797_v13 = vadd.f32 %v11476_v46, %v15698_v48  ;;  %v7304_v3 = vpop.f32.mrb[111].mxu0  ;;  %v7355_v48 = vmul.f32 %v15788_v18, %v15788_v18 }
 0x842   :  { %v7331_v28 = vadd.f32 %v7330_v37, %v15793_v53  ;;  %v7353_v27 = vmul.f32 %v15793_v53, %v15793_v53  ;;  %v7367_v1 = vadd.f32 %v7366_v36, %v7352_v7  ;;  %v15803_v61 = vadd.f32 %v7304_v3, %v15668_v51 }
 0x843   :  { %v7356_v54 = vmul.f32 %v15797_v13, %v15797_v13 }
 0x844   :  { %v7368_v17 = vadd.f32 %v7367_v1, %v7353_v27  ;;  %v7332_v16 = vadd.f32 %v7331_v28, %v15803_v61  ;;  %v7354_v47 = vmul.f32 %v15803_v61, %v15803_v61 }
 0x846   :  { %v7333_v49 = vadd.f32 %v7332_v16, %v15788_v18  ;;  %v7369_v26 = vadd.f32 %v7368_v17, %v7354_v47 }
 0x848   :  { %v7334_v32 = vadd.f32 %v7333_v49, %v15797_v13  ;;  %v7370_v33 = vadd.f32 %v7369_v26, %v7355_v48 }
 0x84a   :  { %v7335_v51 = vrot.slane %v7334_v32, 4  ;;  %v7371_v60 = vadd.f32 %v7370_v33, %v7356_v54 }
 0x84c   :  { %v7336_v9 = vadd.f32 %v7335_v51, %v7334_v32  ;;  %v7372_v63 = vrot.slane %v7371_v60, 4 }
 0x84e   :  { %v7337_v59 = vrot.slane %v7336_v9, 2  ;;  %v7373_v21 = vadd.f32 %v7372_v63, %v7371_v60 }
 0x850   :  { %v7338_v8 = vadd.f32 %v7337_v59, %v7336_v9  ;;  %v7374_v22 = vrot.slane %v7373_v21, 2 }
 0x852   :  { %v7339_v23 = vrot.slane %v7338_v8, 1  ;;  %v7375_v57 = vadd.f32 %v7374_v22, %v7373_v21 }
 0x854   :  { %v7340_v58 = vadd.f32 %v7339_v23, %v7338_v8  ;;  %v7376_v35 = vrot.slane %v7375_v57, 1 }
 0x856   :  { %v7377_v14 = vadd.f32 %v7376_v35, %v7375_v57  ;;  %v7378_v39 = vmul.f32 0.0078125, %v7340_v58 }
 0x858   :  { %v7379_v29 = vmul.f32 0.0078125, %v7377_v14  ;;  %v7380_v19 = vmul.f32 %v7378_v39, %v7378_v39  ;;  %v7382_v20 = vsub.f32 %v15707_v41, %v7378_v39  ;;  %v7383_v4 = vsub.f32 %v15719_v38, %v7378_v39 }
 0x859   :  { %v7384_v10 = vsub.f32 %v15704_v56, %v7378_v39  ;;  %v7385_v24 = vsub.f32 %v15713_v31, %v7378_v39  ;;  %v7386_v45 = vsub.f32 %v15742_v6, %v7378_v39  ;;  %v7387_v7 = vsub.f32 %v15752_v42, %v7378_v39 }
 0x85a   :  { %v7381_v36 = vsub.f32 %v7379_v29, %v7380_v19  ;;  %v7388_v37 = vsub.f32 %v15737_v11, %v7378_v39  ;;  %v7389_v46 = vsub.f32 %v15746_v40, %v7378_v39  ;;  %v7390_v3 = vsub.f32 %v15769_v5, %v7378_v39  ;;  %v9593_v11 = vld [vmem:[%s16468_s7 + $0x1] sm:$0x1] }
 0x85b   :  { %v7391_v28 = vsub.f32 %v15779_v43, %v7378_v39  ;;  %v7392_v41 = vsub.f32 %v15761_v34, %v7378_v39  ;;  %v7393_v38 = vsub.f32 %v15773_v30, %v7378_v39  ;;  %v7394_v56 = vsub.f32 %v15793_v53, %v7378_v39 }
 0x85c   :  { %v7395_v31 = vsub.f32 %v15803_v61, %v7378_v39  ;;  %v7396_v6 = vsub.f32 %v15788_v18, %v7378_v39  ;;  %v7397_v42 = vsub.f32 %v15797_v13, %v7378_v39  ;;  %v7398_v27 = vadd.f32 1e-05, %v7381_v36 }
 0x85e   :  { %12044 = vrsqrt.f32 %v7398_v27  ;;  %v16517_v27 = vld [vmem:[#allocation7_spill] sm:$0xff] }
 0x868   :  { %v12045_v40 = vpop.eup %12044 }
 0x869   :  { %v7400_v5 = vmul.f32 %v12045_v40, %v9593_v11 }
 0x86b   :  { %v7404_v34 = vrot.slane %v7400_v5, %v13559_v15  ;;  %v9595_v15 = vld [vmem:[%s16469_s8 + $0x1] ss:$0 sm:$0xff]  ;;  %v16518_v5 = vld [vmem:[#allocation8_spill] sm:$0xff] }
 0x86d   :  { %v7405_v43 = vmul.f32 %v7404_v34, %v7382_v20  ;;  %v7406_v30 = vmul.f32 %v7404_v34, %v7383_v4  ;;  %v7407_v1 = vmul.f32 %v7404_v34, %v7384_v10  ;;  %v7408_v53 = vmul.f32 %v7404_v34, %v7385_v24 }
 0x86e   :  { %v7409_v17 = vmul.f32 %v7404_v34, %v7386_v45  ;;  %v7410_v61 = vmul.f32 %v7404_v34, %v7387_v7  ;;  %v7411_v16 = vmul.f32 %v7404_v34, %v7388_v37  ;;  %v7412_v18 = vmul.f32 %v7404_v34, %v7389_v46  ;;  %v16513_v7 = vld [vmem:[#allocation4_spill] sm:$0xff] }
 0x86f   :  { %v7413_v47 = vmul.f32 %v7404_v34, %v7390_v3  ;;  %v7414_v13 = vmul.f32 %v7404_v34, %v7391_v28  ;;  %v7415_v48 = vmul.f32 %v7404_v34, %v7392_v41  ;;  %v7416_v49 = vmul.f32 %v7404_v34, %v7393_v38  ;;  %v16514_v3 = vld [vmem:[#allocation6_spill] sm:$0xff] }
 0x870   :  { %v7417_v26 = vmul.f32 %v7404_v34, %v7394_v56  ;;  %v7418_v54 = vmul.f32 %v7404_v34, %v7395_v31  ;;  %v7419_v32 = vmul.f32 %v7404_v34, %v7396_v6  ;;  %v7420_v33 = vmul.f32 %v7404_v34, %v7397_v42  ;;  %v16516_v31 = vld [vmem:[#allocation5_spill] sm:$0xff] }
 0x871   :  { %v7427_v51 = vadd.f32 %v9595_v15, %v7405_v43  ;;  %v7428_v60 = vadd.f32 %v9595_v15, %v7406_v30  ;;  %v7429_v9 = vadd.f32 %v9595_v15, %v7407_v1  ;;  %v7430_v63 = vadd.f32 %v9595_v15, %v7408_v53  ;;  %v16519_v30 = vld [vmem:[#allocation9_spill] sm:$0xff] }
 0x872   :  { %v7431_v59 = vadd.f32 %v9595_v15, %v7409_v17  ;;  %v7432_v21 = vadd.f32 %v9595_v15, %v7410_v61  ;;  %v7433_v8 = vadd.f32 %v9595_v15, %v7411_v16  ;;  %v7434_v58 = vadd.f32 %v9595_v15, %v7412_v18 }
 0x873   :  { %v15838_v22 = vadd.f32 %v7427_v51, %v14399_v12  ;;  %v15841_v23 = vadd.f32 %v7428_v60, %v14405_v62  ;;  %v15844_v57 = vadd.f32 %v7429_v9, %v14411_v25  ;;  %v15847_v35 = vadd.f32 %v7430_v63, %v14418_v0 }
 0x874   :  { %v7435_v14 = vadd.f32 %v9595_v15, %v7413_v47  ;;  %v15850_v39 = vadd.f32 %v7431_v59, %v14425_v2  ;;  %v7436_v29 = vadd.f32 %v9595_v15, %v7414_v13  ;;  %v7437_v19 = vadd.f32 %v9595_v15, %v7415_v48 }
 0x875   :  { %v15853_v20 = vadd.f32 %v7432_v21, %v14432_v50  ;;  %v15856_v12 = vadd.f32 %v7433_v8, %v14438_v55  ;;  %v7475_v62 = vmul.f32 1.442695, %v15838_v22  ;;  %v7477_v25 = vmul.f32 1.442695, %v15841_v23 }
 0x876   :  { %v7479_v4 = vmul.f32 1.442695, %v15844_v57  ;;  %v7438_v0 = vadd.f32 %v9595_v15, %v7416_v49  ;;  %v15862_v10 = vadd.f32 %v7434_v58, %v14444_v52  ;;  %v7481_v2 = vmul.f32 1.442695, %v15847_v35 }
 0x877   :  { %v7439_v24 = vadd.f32 %v9595_v15, %v7417_v26  ;;  %v15866_v45 = vadd.f32 %v7435_v14, %v14450_v44  ;;  %12046 = vpow2.f32 %v7475_v62  ;;  %v7483_v50 = vmul.f32 1.442695, %v15850_v39  ;;  %v16515_v44 = vld [vmem:[#allocation3_spill] sm:$0xff] }
 0x878   :  { %v7440_v55 = vadd.f32 %v9595_v15, %v7418_v54  ;;  %v15870_v36 = vadd.f32 %v7436_v29, %v16513_v7  ;;  %12048 = vpow2.f32 %v7477_v25  ;;  %v7485_v37 = vmul.f32 1.442695, %v15853_v20 }
 0x879   :  { %v7441_v46 = vadd.f32 %v9595_v15, %v7419_v32  ;;  %v15874_v52 = vadd.f32 %v7437_v19, %v16514_v3  ;;  %12050 = vpow2.f32 %v7479_v4  ;;  %v7487_v28 = vmul.f32 1.442695, %v15856_v12 }
 0x87a   :  { %v7442_v41 = vadd.f32 %v9595_v15, %v7420_v33  ;;  %v15878_v38 = vadd.f32 %v7438_v0, %v16515_v44  ;;  %12052 = vpow2.f32 %v7481_v2  ;;  %v7489_v56 = vmul.f32 1.442695, %v15862_v10 }
 0x87b   :  { %v15882_v6 = vadd.f32 %v7439_v24, %v16516_v31  ;;  %12054 = vpow2.f32 %v7483_v50  ;;  %v7491_v42 = vmul.f32 1.442695, %v15866_v45  ;;  %v15886_v11 = vadd.f32 %v7440_v55, %v16517_v27 }
 0x87c   :  { %12056 = vpow2.f32 %v7485_v37  ;;  %v7493_v40 = vmul.f32 1.442695, %v15870_v36  ;;  %v15890_v34 = vadd.f32 %v7441_v46, %v16518_v5  ;;  %v7495_v43 = vmul.f32 1.442695, %v15874_v52 }
 0x87d   :  { %12058 = vpow2.f32 %v7487_v28  ;;  %v15894_v1 = vadd.f32 %v7442_v41, %v16519_v30  ;;  %v7497_v53 = vmul.f32 1.442695, %v15878_v38  ;;  %v7499_v17 = vmul.f32 1.442695, %v15882_v6 }
 0x87e   :  { %12060 = vpow2.f32 %v7489_v56  ;;  %vm7459_vm0 = vcmp.gt.f32.partialorder %v15838_v22, 0.0  ;;  %vm7460_vm1 = vcmp.gt.f32.partialorder %v15841_v23, 0.0  ;;  %v7501_v61 = vmul.f32 1.442695, %v15886_v11 }
 0x87f   :  { %12062 = vpow2.f32 %v7491_v42  ;;  %vm7461_vm2 = vcmp.gt.f32.partialorder %v15844_v57, 0.0  ;;  %vm7462_vm3 = vcmp.gt.f32.partialorder %v15847_v35, 0.0  ;;  %v7503_v18 = vmul.f32 1.442695, %v15890_v34 }
 0x880   :  { %12064 = vpow2.f32 %v7493_v40  ;;  %vm7463_vm4 = vcmp.gt.f32.partialorder %v15850_v39, 0.0  ;;  %v7505_v13 = vmul.f32 1.442695, %v15894_v1  ;;  %vm7464_vm5 = vcmp.gt.f32.partialorder %v15853_v20, 0.0 }
 0x881   :  { %v12047_v16 = vpop.eup %12046  ;;  %12066 = vpow2.f32 %v7495_v43  ;;  %vm7465_vm6 = vcmp.gt.f32.partialorder %v15856_v12, 0.0  ;;  %vm7466_vm7 = vcmp.gt.f32.partialorder %v15862_v10, 0.0  ;;  %vm7467_vm8 = vcmp.gt.f32.partialorder %v15866_v45, 0.0 }
 0x882   :  { %v12049_v47 = vpop.eup %12048  ;;  %12068 = vpow2.f32 %v7497_v53  ;;  %v9596_v48 = vadd.f32 -1.0, %v12047_v16  ;;  %vm7468_vm9 = vcmp.gt.f32.partialorder %v15870_v36, 0.0  ;;  %vm7469_vm10 = vcmp.gt.f32.partialorder %v15874_v52, 0.0 }
 0x883   :  { %v12051_v49 = vpop.eup %12050  ;;  %12070 = vpow2.f32 %v7499_v17  ;;  %v9597_v26 = vadd.f32 -1.0, %v12049_v47  ;;  %vm7470_vm11 = vcmp.gt.f32.partialorder %v15878_v38, 0.0  ;;  %vm7471_vm12 = vcmp.gt.f32.partialorder %v15882_v6, 0.0  ;;  %v7755_v47 = vld [vmem:[#allocation2 + $0x1] sm:$0xff] }
 0x884   :  { %v12053_v54 = vpop.eup %12052  ;;  %12072 = vpow2.f32 %v7501_v61  ;;  %v9598_v32 = vadd.f32 -1.0, %v12051_v49  ;;  %v7523_v33 = vmul.f32 1.6732632, %v9596_v48  ;;  %vm7472_vm13 = vcmp.gt.f32.partialorder %v15886_v11, 0.0 }
 0x885   :  { %v12055_v15 = vpop.eup %12054  ;;  %12074 = vpow2.f32 %v7503_v18  ;;  %v9599_v51 = vadd.f32 -1.0, %v12053_v54  ;;  %v7524_v60 = vmul.f32 1.6732632, %v9597_v26  ;;  %vm7473_vm14 = vcmp.gt.f32.partialorder %v15890_v34, 0.0  ;;  %v7779_v54 = vld [vmem:[#allocation2 + $0x2] sm:$0xff] }
 0x886   :  { %v12057_v9 = vpop.eup %12056  ;;  %12076 = vpow2.f32 %v7505_v13  ;;  %v9600_v63 = vadd.f32 -1.0, %v12055_v15  ;;  %v7525_v59 = vmul.f32 1.6732632, %v9598_v32  ;;  %v7539_v21 = vsel %vm7459_vm0, %v15838_v22, %v7523_v33 }
 0x887   :  { %v12059_v8 = vpop.eup %12058  ;;  %v9601_v58 = vadd.f32 -1.0, %v12057_v9  ;;  %v7526_v14 = vmul.f32 1.6732632, %v9599_v51  ;;  %v7540_v29 = vsel %vm7460_vm1, %v15841_v23, %v7524_v60  ;;  %v15918_v19 = vmul.f32 1.050701, %v7539_v21 }
 0x888   :  { %v12061_v62 = vpop.eup %12060  ;;  %v9602_v25 = vadd.f32 -1.0, %v12059_v8  ;;  %v7527_v4 = vmul.f32 1.6732632, %v9600_v63  ;;  %v7541_v22 = vsel %vm7461_vm2, %v15844_v57, %v7525_v59  ;;  %v15924_v0 = vmul.f32 1.050701, %v7540_v29 }
 0x889   :  { %v12063_v2 = vpop.eup %12062  ;;  %v9603_v24 = vadd.f32 -1.0, %v12061_v62  ;;  %v7528_v50 = vmul.f32 1.6732632, %v9601_v58  ;;  %v7542_v23 = vsel %vm7462_vm3, %v15847_v35, %v7526_v14  ;;  %v15930_v55 = vmul.f32 1.050701, %v7541_v22  ;;  %7571 = vst [vmem:[#allocation2 + $0x11] sm:$0xff] %v15918_v19 }
 0x88a   :  { %v12065_v7 = vpop.eup %12064  ;;  %v9604_v37 = vadd.f32 -1.0, %v12063_v2  ;;  %v7529_v57 = vmul.f32 1.6732632, %v9602_v25  ;;  %v7543_v46 = vsel %vm7463_vm4, %v15850_v39, %v7527_v4  ;;  %v15937_v3 = vmul.f32 1.050701, %v7542_v23  ;;  %7572 = vst [vmem:[#allocation2 + $0x21] sm:$0xff] %v15924_v0 }
 0x88b   :  { %v12067_v28 = vpop.eup %12066  ;;  %v9605_v35 = vadd.f32 -1.0, %v12065_v7  ;;  %v7530_v41 = vmul.f32 1.6732632, %v9603_v24  ;;  %v7544_v44 = vsel %vm7464_vm5, %v15853_v20, %v7528_v50  ;;  %v15944_v56 = vmul.f32 1.050701, %v7543_v46  ;;  %7573 = vst [vmem:[#allocation2 + $0x31] sm:$0xff] %v15930_v55 }
 0x88c   :  { %v12069_v31 = vpop.eup %12068  ;;  %vm7474_vm15 = vcmp.gt.f32.partialorder %v15894_v1, 0.0  ;;  %v9606_v39 = vadd.f32 -1.0, %v12067_v28  ;;  %v7531_v42 = vmul.f32 1.6732632, %v9604_v37  ;;  %v7545_v27 = vsel %vm7465_vm6, %v15856_v12, %v7529_v57  ;;  %7574 = vst [vmem:[#allocation2 + $0x41] sm:$0xff] %v15937_v3  ;;  %v16005_v50 = vld [vmem:[#allocation2] sm:$0xff] }
 0x88d   :  { %v15951_v40 = vmul.f32 1.050701, %v7544_v44  ;;  %v12071_v5 = vpop.eup %12070  ;;  %v9607_v43 = vadd.f32 -1.0, %v12069_v31  ;;  %v7532_v20 = vmul.f32 1.6732632, %v9605_v35  ;;  %v7546_v30 = vsel %vm7466_vm7, %v15862_v10, %v7530_v41  ;;  %7575 = vst [vmem:[#allocation2 + $0x51] sm:$0xff] %v15944_v56 }
 0x88e   :  { %v15957_v53 = vmul.f32 1.050701, %v7545_v27  ;;  %v12073_v17 = vpop.eup %12072  ;;  %v9608_v61 = vadd.f32 -1.0, %v12071_v5  ;;  %v7533_v16 = vmul.f32 1.6732632, %v9606_v39  ;;  %v7547_v12 = vsel %vm7467_vm8, %v15866_v45, %v7531_v42  ;;  %v11903_v7 = vld [vmem:[%s16470_s9 + $0x100] sm:$0xff]  }
 0x88f   :  { %v15963_v18 = vmul.f32 1.050701, %v7546_v30  ;;  %7576 = vst [vmem:[#allocation2 + $0x61] sm:$0xff] %v15951_v40  ;;  %v12075_v13 = vpop.eup %12074  ;;  %v9609_v48 = vadd.f32 -1.0, %v12073_v17  ;;  %v7534_v49 = vmul.f32 1.6732632, %v9607_v43  ;;  %v7548_v10 = vsel %vm7468_vm9, %v15870_v36, %v7532_v20 }
 0x890   :  { %v15969_v26 = vmul.f32 1.050701, %v7547_v12  ;;  %7577 = vst [vmem:[#allocation2 + $0x71] sm:$0xff] %v15957_v53  ;;  %v12077_v32 = vpop.eup %12076  ;;  %v9610_v33 = vadd.f32 -1.0, %v12075_v13  ;;  %v7535_v45 = vmul.f32 1.6732632, %v9608_v61  ;;  %v7549_v15 = vsel %vm7469_vm10, %v15874_v52, %v7533_v16 }
 0x891   :  { %v15975_v51 = vmul.f32 1.050701, %v7548_v10  ;;  %7578 = vst [vmem:[#allocation2 + $0x81] sm:$0xff] %v15963_v18  ;;  %v7803_v60 = vld [vmem:[#allocation2 + $0x10] sm:$0xff]  ;;  %v9611_v9 = vadd.f32 -1.0, %v12077_v32  ;;  %v7550_v36 = vsel %vm7470_vm11, %v15878_v38, %v7534_v49  ;;  %v7804_v21 = vld [vmem:[#allocation2 + $0x20] sm:$0xff]  ;;  %v7771_v14 = vpack.c.bf16 %v15918_v19, %v7755_v47 }
 0x892   :  { %v7536_v63 = vmul.f32 1.6732632, %v9609_v48  ;;  %v15981_v59 = vmul.f32 1.050701, %v7549_v15  ;;  %7579 = vst [vmem:[#allocation2 + $0xb1] sm:$0xff] %v15969_v26  ;;  %v7551_v52 = vsel %vm7471_vm12, %v15882_v6, %v7535_v45  ;;  %v15991_v29 = vld [vmem:[#allocation2 + $0x12] sm:$0xff]  ;;  %v7819_v22 = vpack.c.bf16 %v7804_v21, %v7803_v60 }
 0x893   :  { %v7537_v8 = vmul.f32 1.6732632, %v9610_v33  ;;  %v15987_v58 = vmul.f32 1.050701, %v7550_v36  ;;  %7580 = vst [vmem:[#allocation2 + $0xc1] sm:$0xff] %v15975_v51  ;;  %v7805_v62 = vld [vmem:[#allocation2 + $0x30] sm:$0xff]  ;;  %8418 = vmatprep.mubr.bf16.mxu1 %v7771_v14  ;;  %v7747_v23 = vpack.c.bf16 %v7803_v60, %v16005_v50  ;;  %v16019_v57 = vpack.c.bf16 %v15930_v55, %v15924_v0 }
 0x894   :  { %v7538_v38 = vmul.f32 1.6732632, %v9611_v9  ;;  %v7552_v25 = vsel %vm7472_vm13, %v15886_v11, %v7536_v63  ;;  %v7567_v4 = vmul.f32 1.050701, %v7551_v52  ;;  %7581 = vst [vmem:[#allocation2 + $0xd1] sm:$0xff] %v15981_v59  ;;  %v15997_v2 = vld [vmem:[#allocation2 + $0x40] sm:$0xff]  ;;  %v7795_v11 = vpack.c.bf16 %v15991_v29, %v7779_v54  ;;  %8515 = vmatprep.mubr.bf16.mxu0 %v7819_v22 }
 0x895   :  { %v7553_v6 = vsel %vm7473_vm14, %v15890_v34, %v7537_v8  ;;  %v16002_v24 = vmul.f32 1.050701, %v7552_v25  ;;  %7582 = vst [vmem:[#allocation2 + $0xe1] sm:$0xff] %v15987_v58  ;;  %v7820_v46 = vpack.c.bf16 %v15997_v2, %v7805_v62  ;;  %v11904_v28 = vld [vmem:[%s16470_s9 + $0x148] sm:$0xff]   ;;  %v11911_v35 = vld [vmem:[%s16470_s9 + $0x180] sm:$0xff]   ;;  %8419 = vmatmul.mubr.bf16.vlgmr.msra.gmra.mrb[96].mxu1 %v7747_v23  ;;  %v11906_v39 = vld [vmem:[%s16470_s9 + $0x150] sm:$0xff]   ;;  %v16046_v42 = vpack.c.bf16 %v15957_v53, %v15951_v40 }
 0x896   :  { %v7554_v37 = vsel %vm7474_vm15, %v15894_v1, %v7538_v38  ;;  %v16015_v34 = vmul.f32 1.050701, %v7553_v6  ;;  %7583 = vst [vmem:[#allocation2 + $0xf1] sm:$0xff] %v7567_v4  ;;  %8516 = vmatmul.mubr.bf16.vlgmr.msra.gmra.mrb[112].mxu0 %v7795_v11  ;;  %v16031_v1 = vpack.c.bf16 %v15944_v56, %v15937_v3  ;;  %v11914_v44 = vld [vmem:[%s16470_s9 + $0x1c8] sm:$0xff]   ;;  %8426 = vmatprep.mubr.bf16.mxu1 %v16019_v57  ;;  %v16050_v5 = vld [vmem:[#allocation2 + $0x32] sm:$0xff]  ;;  %v16055_v30 = vld [vmem:[#allocation2 + $0x60] sm:$0xff] }
 0x897   :  { %v7570_v41 = vmul.f32 1.050701, %v7554_v37  ;;  %7584 = vst [vmem:[#allocation2 + $0x101] sm:$0xff] %v16002_v24  ;;  %8523 = vmatprep.mubr.bf16.mxu0 %v7820_v46  ;;  %11174 = vmatpush3.bf16.msra.mxu1 %v11903_v7  ;;  %v11905_v31 = vld [vmem:[%s16470_s9 + $0x108] sm:$0xff]   ;;  %v7807_v20 = vld [vmem:[#allocation2 + $0x50] sm:$0xff]  ;;  %v16059_v17 = vpack.c.bf16 %v15981_v59, %v15975_v51  ;;  %v16062_v61 = vpack.c.bf16 %v7567_v4, %v15987_v58  ;;  %v11908_v32 = vld [vmem:[%s16470_s9 + $0x158] sm:$0xff]  }
 0x898   :  { %7585 = vst [vmem:[#allocation2 + $0x111] sm:$0xff] %v16015_v34  ;;  %v16048_v27 = vld [vmem:[#allocation2 + $0x22] sm:$0xff]  ;;  %11175 = vmatprep.subr.bf16.mxu1 %v11904_v28  ;;  %11238 = vmatpush3.bf16.msra.mxu0 %v11911_v35  ;;  %v7778_v16 = vpack.c.bf16 %v16015_v34, %v16002_v24  ;;  %v7843_v12 = vpack.c.bf16 %v15924_v0, %v15918_v19  ;;  %v11907_v48 = vld [vmem:[%s16470_s9 + $0x110] sm:$0xff]   ;;  %v11920_v15 = vld [vmem:[%s16470_s9 + $0x1d8] sm:$0xff]  }
 0x899   :  { %7586 = vst [vmem:[#allocation2 + $0x121] sm:$0xff] %v7570_v41  ;;  %v11915_v43 = vld [vmem:[%s16470_s9 + $0x188] sm:$0xff]   ;;  %11239 = vmatprep.subr.bf16.mxu0 %v11914_v44  ;;  %v16068_v47 = vpack.c.bf16 %v7805_v62, %v7804_v21  ;;  %v16072_v13 = vpack.c.bf16 %v16050_v5, %v16048_v27  ;;  %v11917_v49 = vld [vmem:[%s16470_s9 + $0x1d0] sm:$0xff]   ;;  %v7844_v10 = vpack.c.bf16 %v15937_v3, %v15930_v55  ;;  %v11909_v9 = vld [vmem:[%s16470_s9 + $0x118] sm:$0xff]  }
 0x89a   :  { %v7821_v54 = vpack.c.bf16 %v16055_v30, %v7807_v20  ;;  %v11919_v33 = vld [vmem:[%s16470_s9 + $0x190] sm:$0xff]   ;;  %v7845_v45 = vpack.c.bf16 %v15951_v40, %v15944_v56  ;;  %v7846_v60 = vpack.c.bf16 %v15963_v18, %v15957_v53  ;;  %v11912_v63 = vld [vmem:[%s16470_s9 + $0x160] sm:$0xff]   ;;  %v11921_v8 = vld [vmem:[%s16470_s9 + $0x198] sm:$0xff]   ;;  %v7847_v52 = vpack.c.bf16 %v15975_v51, %v15969_v26 }
 0x89b   :  { %11176 = vmatpush3.bf16.msra.mxu1 %v11905_v31  ;;  %v16105_v36 = vld [vmem:[#allocation2 + $0x42] sm:$0xff]  ;;  %v16107_v21 = vld [vmem:[#allocation2 + $0x52] sm:$0xff]  ;;  %v7848_v14 = vpack.c.bf16 %v15987_v58, %v15981_v59  ;;  %v16119_v25 = vpack.c.bf16 %v7807_v20, %v15997_v2 }
 0x89c   :  { %11177 = vmatprep.subr.bf16.mxu1 %v11906_v39  ;;  %11240 = vmatpush3.bf16.msra.mxu0 %v11915_v43  ;;  %v7809_v62 = vld [vmem:[#allocation2 + $0x70] sm:$0xff]  ;;  %v16116_v38 = vld [vmem:[#allocation2 + $0x80] sm:$0xff]  ;;  %v16123_v4 = vpack.c.bf16 %v16107_v21, %v16105_v36  ;;  %v11916_v2 = vld [vmem:[%s16470_s9 + $0x168] sm:$0xff]   ;;  %v7868_v24 = vpack.c.bf16 %v16105_v36, %v16050_v5 }
 0x89d   :  { %8427 = vmatmul.mubr.bf16.gmra.mrb[100].mxu1 %v16068_v47  ;;  %11241 = vmatprep.subr.bf16.mxu0 %v11917_v49  ;;  %v11913_v22 = vld [vmem:[%s16470_s9 + $0x120] sm:$0xff]   ;;  %v7822_v23 = vpack.c.bf16 %v16116_v38, %v7809_v62  ;;  %v11926_v7 = vld [vmem:[%s16470_s9 + $0x1e8] sm:$0xff]   ;;  %v11922_v46 = vld [vmem:[%s16470_s9 + $0x170] sm:$0xff]   ;;  %v16158_v43 = vpack.c.bf16 %v7809_v62, %v16055_v30 }
 0x89e   :  { %8524 = vmatmul.mubr.bf16.gmra.mrb[116].mxu0 %v16072_v13  ;;  %8434 = vmatprep.mubr.bf16.mxu1 %v16031_v1  ;;  %v11923_v6 = vld [vmem:[%s16470_s9 + $0x1e0] sm:$0xff]   ;;  %v11918_v37 = vld [vmem:[%s16470_s9 + $0x128] sm:$0xff]   ;;  %v16152_v35 = vld [vmem:[#allocation2 + $0x72] sm:$0xff] }
 0x89f   :  { %8531 = vmatprep.mubr.bf16.mxu0 %v7821_v54  ;;  %11178 = vmatpush3.bf16.msra.mxu1 %v11907_v48  ;;  %v11925_v11 = vld [vmem:[%s16470_s9 + $0x1a0] sm:$0xff]   ;;  %v11927_v41 = vld [vmem:[%s16470_s9 + $0x1a8] sm:$0xff]   ;;  %v7811_v31 = vld [vmem:[#allocation2 + $0xb0] sm:$0xff] }
 0x8a0   :  { %11179 = vmatprep.subr.bf16.mxu1 %v11908_v32  ;;  %11242 = vmatpush3.bf16.msra.mxu0 %v11919_v33  ;;  %v16150_v28 = vld [vmem:[#allocation2 + $0x62] sm:$0xff]  ;;  %v11924_v48 = vld [vmem:[%s16470_s9 + $0x130] sm:$0xff]   ;;  %v11928_v30 = vld [vmem:[%s16470_s9 + $0x178] sm:$0xff]  }
 0x8a1   :  { %11243 = vmatprep.subr.bf16.mxu0 %v11920_v15  ;;  %v7763_v44 = vld [vmem:[#allocation2 + $0xa1] sm:$0xff]  ;;  %v16162_v20 = vpack.c.bf16 %v16152_v35, %v16150_v28  ;;  %v11929_v49 = vld [vmem:[%s16470_s9 + $0x1f0] sm:$0xff]   ;;  %v11932_v15 = vld [vmem:[%s16470_s9 + $0x1f8] sm:$0xff]  }
 0x8a2   :  { %v7812_v39 = vld [vmem:[#allocation2 + $0xc0] sm:$0xff]  ;;  %v7775_v54 = vpack.c.bf16 %v15969_v26, %v7763_v44  ;;  %v11931_v33 = vld [vmem:[%s16470_s9 + $0x1b0] sm:$0xff]   ;;  %v11933_v62 = vld [vmem:[%s16470_s9 + $0x1b8] sm:$0xff]  }
 0x8a3   :  { %11180 = vmatpush3.bf16.msra.mxu1 %v11909_v9  ;;  %v7823_v32 = vpack.c.bf16 %v7812_v39, %v7811_v31  ;;  %v7787_v9 = vld [vmem:[#allocation2 + $0xa2] sm:$0xff]  ;;  %v11937_v19 = vld [vmem:[%s16470_s9 + $0x218] sm:$0xff]   ;;  %v11940_v3 = vld [vmem:[%s16470_s9 + $0x230] sm:$0xff]  }
 0x8a4   :  { %11181 = vmatprep.subr.bf16.mxu1 %v11912_v63  ;;  %11244 = vmatpush3.bf16.msra.mxu0 %v11921_v8  ;;  %v11930_v63 = vld [vmem:[%s16470_s9 + $0x138] sm:$0xff]   ;;  %v7816_v44 = vld [vmem:[#allocation2 + $0x100] sm:$0xff]  ;;  %v11935_v34 = vld [vmem:[%s16470_s9 + $0x208] sm:$0xff]  }
 0x8a5   :  { %8435 = vmatmul.mubr.bf16.gmra.mrb[104].mxu1 %v16119_v25  ;;  %11245 = vmatprep.subr.bf16.mxu0 %v11923_v6  ;;  %v16185_v8 = vld [vmem:[#allocation2 + $0xb2] sm:$0xff]  ;;  %v11938_v0 = vld [vmem:[%s16470_s9 + $0x220] sm:$0xff]   ;;  %v11939_v55 = vld [vmem:[%s16470_s9 + $0x228] sm:$0xff]  }
 0x8a6   :  { %8532 = vmatmul.mubr.bf16.gmra.mrb[120].mxu0 %v16123_v4  ;;  %8442 = vmatprep.mubr.bf16.mxu1 %v16046_v42  ;;  %v7813_v6 = vld [vmem:[#allocation2 + $0xd0] sm:$0xff]  ;;  %v11941_v56 = vld [vmem:[%s16470_s9 + $0x238] sm:$0xff]   ;;  %v7911_v53 = vld [vmem:[#allocation2 + $0x101] sm:$0xff] }
 0x8a7   :  { %8539 = vmatprep.mubr.bf16.mxu0 %v7822_v23  ;;  %11182 = vmatpush3.bf16.msra.mxu1 %v11913_v22  ;;  %v11934_v22 = vld [vmem:[%s16470_s9 + $0x200] sm:$0xff]   ;;  %v7839_v26 = vld [vmem:[#allocation2 + $0xf1] sm:$0xff] }
 0x8a8   :  { %11183 = vmatprep.subr.bf16.mxu1 %v11916_v2  ;;  %11246 = vmatpush3.bf16.msra.mxu0 %v11925_v11  ;;  %v7814_v23 = vld [vmem:[#allocation2 + $0xe0] sm:$0xff]  ;;  %v7751_v2 = vpack.c.bf16 %v7811_v31, %v16005_v50  ;;  %v7799_v11 = vpack.c.bf16 %v16185_v8, %v7787_v9  ;;  %v7930_v58 = vld [vmem:[#allocation2 + $0x92] sm:$0xff] }
 0x8a9   :  { %11247 = vmatprep.subr.bf16.mxu0 %v11926_v7  ;;  %v7824_v7 = vpack.c.bf16 %v7814_v23, %v7813_v6  ;;  %v7866_v51 = vld [vmem:[#allocation2 + $0x122] sm:$0xff] }
 0x8ab   :  { %11184 = vmatpush3.bf16.msra.mxu1 %v11918_v37  ;;  %v16196_v37 = vld [vmem:[#allocation2 + $0xc2] sm:$0xff] }
 0x8ac   :  { %11185 = vmatprep.subr.bf16.mxu1 %v11922_v46  ;;  %11248 = vmatpush3.bf16.msra.mxu0 %v11927_v41  ;;  %v16198_v46 = vld [vmem:[#allocation2 + $0xd2] sm:$0xff] }
 0x8ad   :  { %8443 = vmatmul.mubr.bf16.gmra.mrb[108].mxu1 %v16158_v43  ;;  %11249 = vmatprep.subr.bf16.mxu0 %v11929_v49  ;;  %v7815_v41 = vld [vmem:[#allocation2 + $0xf0] sm:$0xff]  ;;  %v16204_v31 = vpack.c.bf16 %v16198_v46, %v16196_v37 }
 0x8ae   :  { %8540 = vmatmul.mubr.bf16.gmra.mrb[124].mxu0 %v16162_v20  ;;  %8450 = vmatprep.mubr.bf16.mxu1 %v7775_v54  ;;  %v7825_v49 = vpack.c.bf16 %v7816_v44, %v7815_v41  ;;  %v16209_v54 = vld [vmem:[#allocation2 + $0xe2] sm:$0xff] }
 0x8af   :  { %8547 = vmatprep.mubr.bf16.mxu0 %v7823_v32  ;;  %11186 = vmatpush3.bf16.msra.mxu1 %v11924_v48  ;;  %v16200_v48 = vpack.c.bf16 %v7813_v6, %v7812_v39  ;;  %v16211_v32 = vld [vmem:[#allocation2 + $0xf2] sm:$0xff]  ;;  %v16215_v39 = vpack.c.bf16 %v7815_v41, %v7814_v23  ;;  %v7872_v40 = vpack.c.bf16 %v16209_v54, %v16198_v46 }
 0x8b0   :  { %11187 = vmatprep.subr.bf16.mxu1 %v11928_v30  ;;  %11250 = vmatpush3.bf16.msra.mxu0 %v11931_v33  ;;  %v7817_v30 = vld [vmem:[#allocation2 + $0x110] sm:$0xff]  ;;  %v16213_v33 = vld [vmem:[#allocation2 + $0x120] sm:$0xff] }
 0x8b1   :  { %11251 = vmatprep.subr.bf16.mxu0 %v11932_v15  ;;  %v16219_v15 = vpack.c.bf16 %v16211_v32, %v16209_v54  ;;  %v7826_v9 = vpack.c.bf16 %v16213_v33, %v7817_v30  ;;  %v16231_v6 = vpack.c.bf16 %v7817_v30, %v7816_v44  ;;  %v7898_v59 = vpack.c.bf16 %v16005_v50, %v16213_v33 }
 0x8b3   :  { %11188 = vmatpush3.bf16.msra.mxu1 %v11930_v63  ;;  %v16227_v63 = vld [vmem:[#allocation2 + $0x102] sm:$0xff] }
 0x8b4   :  { %11252 = vmatpush3.bf16.msra.mxu0 %v11933_v62  ;;  %11477 = vmatprep.subr.bf16.mxu1 %v11934_v22  ;;  %v16229_v62 = vld [vmem:[#allocation2 + $0x112] sm:$0xff] }
 0x8b5   :  { %8451 = vmatmul.mubr.bf16.gmra.mrb[112].mxu1 %v7751_v2  ;;  %v16235_v23 = vpack.c.bf16 %v16229_v62, %v16227_v63  ;;  %v7867_v2 = vpack.c.bf16 %v16048_v27, %v15991_v29  ;;  %v11936_v29 = vld [vmem:[%s16470_s9 + $0x210] sm:$0xff]  }
 0x8b6   :  { %8548 = vmatmul.mubr.bf16.gmra.mrb[128].mxu0 %v7799_v11  ;;  %8458 = vmatprep.mubr.bf16.mxu1 %v16059_v17  ;;  %v7906_v27 = vld [vmem:[#allocation2 + $0x91] sm:$0xff] }
 0x8b7   :  { %8555 = vmatprep.mubr.bf16.mxu0 %v7824_v7 }
 0x8bd   :  { %8459 = vmatmul.mubr.bf16.gmra.mrb[116].mxu1 %v16200_v48 }
 0x8be   :  { %8556 = vmatmul.mubr.bf16.gmra.mrb[132].mxu0 %v16204_v31  ;;  %8466 = vmatprep.mubr.bf16.mxu1 %v16062_v61 }
 0x8bf   :  { %8563 = vmatprep.mubr.bf16.mxu0 %v7825_v49 }
 0x8c5   :  { %8467 = vmatmul.mubr.bf16.gmra.mrb[120].mxu1 %v16215_v39 }
 0x8c6   :  { %8564 = vmatmul.mubr.bf16.gmra.mrb[136].mxu0 %v16219_v15  ;;  %8474 = vmatprep.mubr.bf16.mxu1 %v7778_v16  ;;  %v7918_v16 = vpack.c.bf16 %v7906_v27, %v15963_v18  ;;  %v7912_v18 = vld [vmem:[#allocation2 + $0x111] sm:$0xff] }
 0x8c7   :  { %8571 = vmatprep.mubr.bf16.mxu0 %v7826_v9 }
 0x8cd   :  { %8475 = vmatmul.mubr.bf16.gmra.mrb[124].mxu1 %v16231_v6 }
 0x8ce   :  { %8572 = vmatmul.mubr.bf16.gmra.mrb[140].mxu0 %v16235_v23  ;;  %8612 = vmatprep.mubr.bf16.mxu1 %v7867_v2 }
 0x8cf   :  { %8709 = vmatprep.mubr.bf16.mxu0 %v16019_v57  ;;  %v7869_v57 = vpack.c.bf16 %v16150_v28, %v16107_v21 }
 0x8d5   :  { %8613 = vmatmul.mubr.bf16.vlgmr.msra.gmra.mrb[128].mxu1 %v7843_v12  ;;  %v7871_v12 = vpack.c.bf16 %v16196_v37, %v16185_v8 }
 0x8d6   :  { %8710 = vmatmul.mubr.bf16.vlgmr.msra.gmra.mrb[144].mxu0 %v16068_v47  ;;  %8620 = vmatprep.mubr.bf16.mxu1 %v7868_v24  ;;  %v7921_v47 = vpack.c.bf16 %v7912_v18, %v7911_v53 }
 0x8d7   :  { %8717 = vmatprep.mubr.bf16.mxu0 %v16031_v1  ;;  %11478 = vmatpush3.bf16.msra.mxu1 %v11934_v22  ;;  %v7858_v1 = vld [vmem:[#allocation2 + $0x82] sm:$0xff] }
 0x8d8   :  { %11479 = vmatprep.subr.bf16.mxu1 %v11935_v34  ;;  %v7870_v5 = vpack.c.bf16 %v7858_v1, %v16152_v35 }
 0x8db   :  { %11480 = vmatpush3.bf16.msra.mxu1 %v11935_v34 }
 0x8dc   :  { %11481 = vmatprep.subr.bf16.mxu1 %v11936_v29 }
 0x8dd   :  { %8621 = vmatmul.mubr.bf16.gmra.mrb[132].mxu1 %v7844_v10  ;;  %v7913_v10 = vld [vmem:[#allocation2 + $0x121] sm:$0xff] }
 0x8de   :  { %8718 = vmatmul.mubr.bf16.gmra.mrb[148].mxu0 %v16119_v25  ;;  %8628 = vmatprep.mubr.bf16.mxu1 %v7869_v57  ;;  %v7850_v21 = vpack.c.bf16 %v7913_v10, %v7912_v18 }
 0x8df   :  { %8725 = vmatprep.mubr.bf16.mxu0 %v16046_v42  ;;  %11482 = vmatpush3.bf16.msra.mxu1 %v11936_v29  ;;  %v7894_v42 = vpack.c.bf16 %v16005_v50, %v16116_v38 }
 0x8e0   :  { %11483 = vmatprep.subr.bf16.mxu1 %v11937_v19 }
 0x8e3   :  { %11484 = vmatpush3.bf16.msra.mxu1 %v11937_v19 }
 0x8e4   :  { %11485 = vmatprep.subr.bf16.mxu1 %v11938_v0 }
 0x8e5   :  { %8629 = vmatmul.mubr.bf16.gmra.mrb[136].mxu1 %v7845_v45  ;;  %v7914_v45 = vld [vmem:[#allocation2 + $0x131] sm:$0xff] }
 0x8e6   :  { %8726 = vmatmul.mubr.bf16.gmra.mrb[152].mxu0 %v16158_v43  ;;  %8636 = vmatprep.mubr.bf16.mxu1 %v7870_v5  ;;  %v7922_v36 = vpack.c.bf16 %v7914_v45, %v7913_v10 }
 0x8e7   :  { %8733 = vmatprep.mubr.bf16.mxu0 %v7918_v16  ;;  %11486 = vmatpush3.bf16.msra.mxu1 %v11938_v0 }
 0x8e8   :  { %11487 = vmatprep.subr.bf16.mxu1 %v11939_v55 }
 0x8eb   :  { %11488 = vmatpush3.bf16.msra.mxu1 %v11939_v55 }
 0x8ec   :  { %11489 = vmatprep.subr.bf16.mxu1 %v11940_v3 }
 0x8ed   :  { %8637 = vmatmul.mubr.bf16.gmra.mrb[140].mxu1 %v7846_v60  ;;  %v7849_v60 = vpack.c.bf16 %v7911_v53, %v7839_v26 }
 0x8ee   :  { %8734 = vmatmul.mubr.bf16.gmra.mrb[156].mxu0 %v7894_v42  ;;  %8644 = vmatprep.mubr.bf16.mxu1 %v7871_v12 }
 0x8ef   :  { %8741 = vmatprep.mubr.bf16.mxu0 %v16059_v17  ;;  %11490 = vmatpush3.bf16.msra.mxu1 %v11940_v3  ;;  %v7873_v17 = vpack.c.bf16 %v16227_v63, %v16211_v32 }
 0x8f0   :  { %11491 = vmatprep.subr.bf16.mxu1 %v11941_v56 }
 0x8f3   :  { %11492 = vmatpush3.bf16.msra.mxu1 %v11941_v56 }
 0x8f5   :  { %8645 = vmatmul.mubr.bf16.gmra.mrb[144].mxu1 %v7847_v52  ;;  %v7942_v52 = vpack.c.bf16 %v7930_v58, %v7858_v1 }
 0x8f6   :  { %8742 = vmatmul.mubr.bf16.gmra.mrb[160].mxu0 %v16200_v48  ;;  %8652 = vmatprep.mubr.bf16.mxu1 %v7872_v40 }
 0x8f7   :  { %8749 = vmatprep.mubr.bf16.mxu0 %v16062_v61  ;;  %v7874_v61 = vpack.c.bf16 %v7866_v51, %v16229_v62 }
 0x8fd   :  { %8653 = vmatmul.mubr.bf16.gmra.mrb[148].mxu1 %v7848_v14  ;;  %v7938_v14 = vld [vmem:[#allocation2 + $0x132] sm:$0xff] }
 0x8fe   :  { %8750 = vmatmul.mubr.bf16.gmra.mrb[164].mxu0 %v16215_v39  ;;  %8660 = vmatprep.mubr.bf16.mxu1 %v7873_v17  ;;  %v7946_v38 = vpack.c.bf16 %v7938_v14, %v7866_v51 }
 0x8ff   :  { %8757 = vmatprep.mubr.bf16.mxu0 %v7921_v47 }
 0x905   :  { %8661 = vmatmul.mubr.bf16.gmra.mrb[152].mxu1 %v7849_v60 }
 0x906   :  { %8758 = vmatmul.mubr.bf16.gmra.mrb[168].mxu0 %v16231_v6  ;;  %8668 = vmatprep.mubr.bf16.mxu1 %v7874_v61 }
 0x907   :  { %8765 = vmatprep.mubr.bf16.mxu0 %v7922_v36 }
 0x90d   :  { %8669 = vmatmul.mubr.bf16.gmra.mrb[156].mxu1 %v7850_v21 }
 0x90e   :  { %8766 = vmatmul.mubr.bf16.gmra.mrb[172].mxu0 %v7898_v59  ;;  %11493 = vmatprep.mubr.bf16.mxu1 %v16072_v13  ;;  %v16317_v13 = vld [vmem:[%s16471_s10] ss:$0 sm:$0xff] }
 0x915   :  { %11494 = vmatmul.mubr.bf16.vlgmr.msra.gmra.mrb[160].mxu1 %v16123_v4 }
 0x916   :  { %11497 = vmatprep.mubr.bf16.mxu1 %v16162_v20 }
 0x91d   :  { %11498 = vmatmul.mubr.bf16.gmra.mrb[164].mxu1 %v7942_v52 }
 0x91e   :  { %11501 = vmatprep.mubr.bf16.mxu1 %v16204_v31 }
 0x925   :  { %11502 = vmatmul.mubr.bf16.gmra.mrb[168].mxu1 %v16219_v15 }
 0x926   :  { %11505 = vmatprep.mubr.bf16.mxu1 %v16235_v23 }
 0x92d   :  { %11506 = vmatmul.mubr.bf16.gmra.mrb[172].mxu1 %v7946_v38 }
 0x968   :  { %v11061_v50 = vpop.f32.mrb[96].mxu1 }
 0x969   :  { %v11125_v25 = vpop.f32.mrb[112].mxu0  ;;  %v11062_v4 = vpop.f32.mrb[97].mxu1 }
 0x96a   :  { %v11126_v28 = vpop.f32.mrb[113].mxu0  ;;  %v11063_v35 = vadd.f32 %v11062_v4, %v11061_v50  ;;  %v11064_v20 = vpop.f32.mrb[98].mxu1 }
 0x96b   :  { %v11127_v43 = vadd.f32 %v11126_v28, %v11125_v25  ;;  %v11128_v8 = vpop.f32.mrb[114].mxu0  ;;  %v11065_v22 = vpop.f32.mrb[99].mxu1 }
 0x96c   :  { %v11129_v11 = vpop.f32.mrb[115].mxu0  ;;  %v8421_v7 = vadd.f32 %v11063_v35, %v16317_v13  ;;  %v11066_v37 = vadd.f32 %v11065_v22, %v11064_v20 }
 0x96d   :  { %v11130_v46 = vadd.f32 %v11129_v11, %v11128_v8 }
 0x96e   :  { %v16320_v41 = vadd.f32 %v11127_v43, %v8421_v7  ;;  %v8424_v44 = vadd.f32 %v11066_v37, %v16317_v13 }
 0x970   :  { %v16323_v48 = vadd.f32 %v11130_v46, %v8424_v44  ;;  %v11067_v31 = vpop.f32.mrb[100].mxu1 }
 0x971   :  { %v11131_v49 = vpop.f32.mrb[116].mxu0  ;;  %v11068_v54 = vpop.f32.mrb[101].mxu1 }
 0x972   :  { %v11132_v32 = vpop.f32.mrb[117].mxu0  ;;  %v11069_v30 = vadd.f32 %v11068_v54, %v11067_v31  ;;  %v11070_v39 = vpop.f32.mrb[102].mxu1 }
 0x973   :  { %v11133_v33 = vadd.f32 %v11132_v32, %v11131_v49  ;;  %v11134_v15 = vpop.f32.mrb[118].mxu0  ;;  %v11071_v9 = vpop.f32.mrb[103].mxu1 }
 0x974   :  { %v11135_v63 = vpop.f32.mrb[119].mxu0  ;;  %v8429_v62 = vadd.f32 %v11069_v30, %v16317_v13  ;;  %v11072_v6 = vadd.f32 %v11071_v9, %v11070_v39 }
 0x975   :  { %v11136_v23 = vadd.f32 %v11135_v63, %v11134_v15 }
 0x976   :  { %v16326_v2 = vadd.f32 %v11133_v33, %v8429_v62  ;;  %v8432_v24 = vadd.f32 %v11072_v6, %v16317_v13 }
 0x978   :  { %v16329_v34 = vadd.f32 %v11136_v23, %v8432_v24  ;;  %v11073_v29 = vpop.f32.mrb[104].mxu1 }
 0x979   :  { %v11137_v57 = vpop.f32.mrb[120].mxu0  ;;  %v11074_v19 = vpop.f32.mrb[105].mxu1 }
 0x97a   :  { %v11138_v0 = vpop.f32.mrb[121].mxu0  ;;  %v11075_v1 = vadd.f32 %v11074_v19, %v11073_v29  ;;  %v11076_v5 = vpop.f32.mrb[106].mxu1 }
 0x97b   :  { %v11139_v27 = vadd.f32 %v11138_v0, %v11137_v57  ;;  %v11140_v16 = vpop.f32.mrb[122].mxu0  ;;  %v11077_v55 = vpop.f32.mrb[107].mxu1 }
 0x97c   :  { %v11141_v3 = vpop.f32.mrb[123].mxu0  ;;  %v8437_v42 = vadd.f32 %v11075_v1, %v16317_v13  ;;  %v11078_v12 = vadd.f32 %v11077_v55, %v11076_v5 }
 0x97d   :  { %v11142_v56 = vadd.f32 %v11141_v3, %v11140_v16 }
 0x97e   :  { %v16332_v40 = vadd.f32 %v11139_v27, %v8437_v42  ;;  %v8440_v53 = vadd.f32 %v11078_v12, %v16317_v13 }
 0x980   :  { %v16335_v18 = vadd.f32 %v11142_v56, %v8440_v53  ;;  %v11079_v17 = vpop.f32.mrb[108].mxu1 }
 0x981   :  { %v11143_v47 = vpop.f32.mrb[124].mxu0  ;;  %v11080_v26 = vpop.f32.mrb[109].mxu1 }
 0x982   :  { %v11144_v51 = vpop.f32.mrb[125].mxu0  ;;  %v11081_v10 = vadd.f32 %v11080_v26, %v11079_v17  ;;  %v11082_v60 = vpop.f32.mrb[110].mxu1 }
 0x983   :  { %v11145_v45 = vadd.f32 %v11144_v51, %v11143_v47  ;;  %v11146_v61 = vpop.f32.mrb[126].mxu0  ;;  %v11083_v36 = vpop.f32.mrb[111].mxu1 }
 0x984   :  { %v11147_v21 = vpop.f32.mrb[127].mxu0  ;;  %v8445_v59 = vadd.f32 %v11081_v10, %v16317_v13  ;;  %v11084_v58 = vadd.f32 %v11083_v36, %v11082_v60 }
 0x985   :  { %v11148_v52 = vadd.f32 %v11147_v21, %v11146_v61 }
 0x986   :  { %v16338_v14 = vadd.f32 %v11145_v45, %v8445_v59  ;;  %v8448_v38 = vadd.f32 %v11084_v58, %v16317_v13 }
 0x988   :  { %v16341_v50 = vadd.f32 %v11148_v52, %v8448_v38  ;;  %v11085_v25 = vpop.f32.mrb[112].mxu1 }
 0x989   :  { %v11149_v4 = vpop.f32.mrb[128].mxu0  ;;  %v11086_v28 = vpop.f32.mrb[113].mxu1 }
 0x98a   :  { %v11150_v35 = vpop.f32.mrb[129].mxu0  ;;  %v11087_v43 = vadd.f32 %v11086_v28, %v11085_v25  ;;  %v11088_v8 = vpop.f32.mrb[114].mxu1 }
 0x98b   :  { %v11151_v20 = vadd.f32 %v11150_v35, %v11149_v4  ;;  %v11152_v22 = vpop.f32.mrb[130].mxu0  ;;  %v11089_v11 = vpop.f32.mrb[115].mxu1 }
 0x98c   :  { %v11153_v7 = vpop.f32.mrb[131].mxu0  ;;  %v8453_v37 = vadd.f32 %v11087_v43, %v16317_v13  ;;  %v11090_v46 = vadd.f32 %v11089_v11, %v11088_v8 }
 0x98d   :  { %v11154_v44 = vadd.f32 %v11153_v7, %v11152_v22 }
 0x98e   :  { %v16344_v31 = vadd.f32 %v11151_v20, %v8453_v37  ;;  %v8456_v49 = vadd.f32 %v11090_v46, %v16317_v13 }
 0x990   :  { %v16347_v54 = vadd.f32 %v11154_v44, %v8456_v49  ;;  %v11091_v32 = vpop.f32.mrb[116].mxu1 }
 0x991   :  { %v11155_v30 = vpop.f32.mrb[132].mxu0  ;;  %v11092_v33 = vpop.f32.mrb[117].mxu1 }
 0x992   :  { %v11156_v39 = vpop.f32.mrb[133].mxu0  ;;  %v11093_v15 = vadd.f32 %v11092_v33, %v11091_v32  ;;  %v11094_v63 = vpop.f32.mrb[118].mxu1 }
 0x993   :  { %v11157_v9 = vadd.f32 %v11156_v39, %v11155_v30  ;;  %v11158_v62 = vpop.f32.mrb[134].mxu0  ;;  %v11095_v6 = vpop.f32.mrb[119].mxu1 }
 0x994   :  { %v11159_v23 = vpop.f32.mrb[135].mxu0  ;;  %v8461_v24 = vadd.f32 %v11093_v15, %v16317_v13  ;;  %v11096_v29 = vadd.f32 %v11095_v6, %v11094_v63 }
 0x995   :  { %v11160_v57 = vadd.f32 %v11159_v23, %v11158_v62 }
 0x996   :  { %v16350_v19 = vadd.f32 %v11157_v9, %v8461_v24  ;;  %v8464_v0 = vadd.f32 %v11096_v29, %v16317_v13 }
 0x998   :  { %v16353_v1 = vadd.f32 %v11160_v57, %v8464_v0  ;;  %v11097_v27 = vpop.f32.mrb[120].mxu1 }
 0x999   :  { %v11161_v5 = vpop.f32.mrb[136].mxu0  ;;  %v11098_v16 = vpop.f32.mrb[121].mxu1 }
 0x99a   :  { %v11162_v55 = vpop.f32.mrb[137].mxu0  ;;  %v11099_v3 = vadd.f32 %v11098_v16, %v11097_v27  ;;  %v11100_v12 = vpop.f32.mrb[122].mxu1 }
 0x99b   :  { %v11163_v42 = vadd.f32 %v11162_v55, %v11161_v5  ;;  %v11164_v56 = vpop.f32.mrb[138].mxu0  ;;  %v11101_v53 = vpop.f32.mrb[123].mxu1 }
 0x99c   :  { %v11165_v17 = vpop.f32.mrb[139].mxu0  ;;  %v8469_v47 = vadd.f32 %v11099_v3, %v16317_v13  ;;  %v11102_v26 = vadd.f32 %v11101_v53, %v11100_v12 }
 0x99d   :  { %v11166_v51 = vadd.f32 %v11165_v17, %v11164_v56 }
 0x99e   :  { %v16356_v10 = vadd.f32 %v11163_v42, %v8469_v47  ;;  %v8472_v45 = vadd.f32 %v11102_v26, %v16317_v13 }
 0x9a0   :  { %v16359_v60 = vadd.f32 %v11166_v51, %v8472_v45  ;;  %v11103_v61 = vpop.f32.mrb[124].mxu1 }
 0x9a1   :  { %v11167_v36 = vpop.f32.mrb[140].mxu0  ;;  %v11104_v21 = vpop.f32.mrb[125].mxu1 }
 0x9a2   :  { %v11168_v59 = vpop.f32.mrb[141].mxu0  ;;  %v11105_v58 = vadd.f32 %v11104_v21, %v11103_v61  ;;  %v11106_v38 = vpop.f32.mrb[126].mxu1 }
 0x9a3   :  { %v11169_v52 = vadd.f32 %v11168_v59, %v11167_v36  ;;  %v11170_v25 = vpop.f32.mrb[142].mxu0  ;;  %v11107_v4 = vpop.f32.mrb[127].mxu1 }
 0x9a4   :  { %v11171_v28 = vpop.f32.mrb[143].mxu0  ;;  %v8477_v35 = vadd.f32 %v11105_v58, %v16317_v13  ;;  %v11108_v43 = vadd.f32 %v11107_v4, %v11106_v38 }
 0x9a5   :  { %v11172_v20 = vadd.f32 %v11171_v28, %v11170_v25 }
 0x9a6   :  { %v16362_v8 = vadd.f32 %v11169_v52, %v8477_v35  ;;  %v8480_v22 = vadd.f32 %v11108_v43, %v16317_v13 }
 0x9a8   :  { %v16365_v11 = vadd.f32 %v11172_v20, %v8480_v22  ;;  %v11189_v7 = vpop.f32.mrb[128].mxu1 }
 0x9a9   :  { %v11253_v37 = vpop.f32.mrb[144].mxu0  ;;  %v11190_v46 = vpop.f32.mrb[129].mxu1 }
 0x9aa   :  { %v11254_v44 = vpop.f32.mrb[145].mxu0  ;;  %v11191_v49 = vadd.f32 %v11190_v46, %v11189_v7  ;;  %v11192_v30 = vpop.f32.mrb[130].mxu1 }
 0x9ab   :  { %v11255_v32 = vadd.f32 %v11254_v44, %v11253_v37  ;;  %v11256_v33 = vpop.f32.mrb[146].mxu0  ;;  %v11193_v39 = vpop.f32.mrb[131].mxu1 }
 0x9ac   :  { %v11257_v15 = vpop.f32.mrb[147].mxu0  ;;  %v8615_v9 = vadd.f32 %v11191_v49, %v16320_v41  ;;  %v11194_v63 = vadd.f32 %v11193_v39, %v11192_v30 }
 0x9ad   :  { %v11258_v62 = vadd.f32 %v11257_v15, %v11256_v33 }
 0x9ae   :  { %v8618_v6 = vadd.f32 %v11194_v63, %v16323_v48  ;;  %v16369_v23 = vadd.f32 %v11255_v32, %v8615_v9 }
 0x9b0   :  { %v11195_v13 = vpop.f32.mrb[132].mxu1  ;;  %v16371_v29 = vadd.f32 %v11258_v62, %v8618_v6 }
 0x9b1   :  { %v11259_v24 = vpop.f32.mrb[148].mxu0  ;;  %v11196_v57 = vpop.f32.mrb[133].mxu1 }
 0x9b2   :  { %v11260_v0 = vpop.f32.mrb[149].mxu0  ;;  %v11197_v27 = vadd.f32 %v11196_v57, %v11195_v13  ;;  %v11198_v16 = vpop.f32.mrb[134].mxu1 }
 0x9b3   :  { %v11261_v5 = vadd.f32 %v11260_v0, %v11259_v24  ;;  %v11262_v55 = vpop.f32.mrb[150].mxu0  ;;  %v11199_v3 = vpop.f32.mrb[135].mxu1 }
 0x9b4   :  { %v11263_v42 = vpop.f32.mrb[151].mxu0  ;;  %v8623_v41 = vadd.f32 %v11197_v27, %v16326_v2  ;;  %v11200_v12 = vadd.f32 %v11199_v3, %v11198_v16 }
 0x9b5   :  { %v11264_v56 = vadd.f32 %v11263_v42, %v11262_v55 }
 0x9b6   :  { %v8626_v48 = vadd.f32 %v11200_v12, %v16329_v34  ;;  %v16375_v53 = vadd.f32 %v11261_v5, %v8623_v41 }
 0x9b8   :  { %v11201_v17 = vpop.f32.mrb[136].mxu1  ;;  %v16377_v26 = vadd.f32 %v11264_v56, %v8626_v48 }
 0x9b9   :  { %v11265_v47 = vpop.f32.mrb[152].mxu0  ;;  %v11202_v51 = vpop.f32.mrb[137].mxu1 }
 0x9ba   :  { %v11266_v45 = vpop.f32.mrb[153].mxu0  ;;  %v11203_v61 = vadd.f32 %v11202_v51, %v11201_v17  ;;  %v11204_v21 = vpop.f32.mrb[138].mxu1 }
 0x9bb   :  { %v11267_v36 = vadd.f32 %v11266_v45, %v11265_v47  ;;  %v11268_v59 = vpop.f32.mrb[154].mxu0  ;;  %v11205_v58 = vpop.f32.mrb[139].mxu1 }
 0x9bc   :  { %v11269_v52 = vpop.f32.mrb[155].mxu0  ;;  %v8631_v2 = vadd.f32 %v11203_v61, %v16332_v40  ;;  %v11206_v38 = vadd.f32 %v11205_v58, %v11204_v21 }
 0x9bd   :  { %v11270_v25 = vadd.f32 %v11269_v52, %v11268_v59 }
 0x9be   :  { %v8634_v34 = vadd.f32 %v11206_v38, %v16335_v18  ;;  %v16381_v4 = vadd.f32 %v11267_v36, %v8631_v2 }
 0x9c0   :  { %v11207_v28 = vpop.f32.mrb[140].mxu1  ;;  %v16383_v43 = vadd.f32 %v11270_v25, %v8634_v34 }
 0x9c1   :  { %v11271_v35 = vpop.f32.mrb[156].mxu0  ;;  %v11208_v20 = vpop.f32.mrb[141].mxu1 }
 0x9c2   :  { %v11272_v22 = vpop.f32.mrb[157].mxu0  ;;  %v11209_v7 = vadd.f32 %v11208_v20, %v11207_v28  ;;  %v11210_v46 = vpop.f32.mrb[142].mxu1 }
 0x9c3   :  { %v11273_v37 = vadd.f32 %v11272_v22, %v11271_v35  ;;  %v11274_v44 = vpop.f32.mrb[158].mxu0  ;;  %v11211_v49 = vpop.f32.mrb[143].mxu1 }
 0x9c4   :  { %v11275_v32 = vpop.f32.mrb[159].mxu0  ;;  %v8639_v40 = vadd.f32 %v11209_v7, %v16338_v14  ;;  %v11212_v30 = vadd.f32 %v11211_v49, %v11210_v46 }
 0x9c5   :  { %v11276_v33 = vadd.f32 %v11275_v32, %v11274_v44 }
 0x9c6   :  { %v8642_v18 = vadd.f32 %v11212_v30, %v16341_v50  ;;  %v16387_v39 = vadd.f32 %v11273_v37, %v8639_v40 }
 0x9c8   :  { %v11213_v15 = vpop.f32.mrb[144].mxu1  ;;  %v16389_v63 = vadd.f32 %v11276_v33, %v8642_v18 }
 0x9c9   :  { %v11277_v9 = vpop.f32.mrb[160].mxu0  ;;  %v11214_v62 = vpop.f32.mrb[145].mxu1 }
 0x9ca   :  { %v11278_v6 = vpop.f32.mrb[161].mxu0  ;;  %v11215_v13 = vadd.f32 %v11214_v62, %v11213_v15  ;;  %v11216_v57 = vpop.f32.mrb[146].mxu1 }
 0x9cb   :  { %v11279_v24 = vadd.f32 %v11278_v6, %v11277_v9  ;;  %v11280_v0 = vpop.f32.mrb[162].mxu0  ;;  %v11217_v27 = vpop.f32.mrb[147].mxu1 }
 0x9cc   :  { %v11281_v5 = vpop.f32.mrb[163].mxu0  ;;  %v8647_v14 = vadd.f32 %v11215_v13, %v16344_v31  ;;  %v11218_v16 = vadd.f32 %v11217_v27, %v11216_v57 }
 0x9cd   :  { %v11282_v55 = vadd.f32 %v11281_v5, %v11280_v0 }
 0x9ce   :  { %v8650_v50 = vadd.f32 %v11218_v16, %v16347_v54  ;;  %v16393_v3 = vadd.f32 %v11279_v24, %v8647_v14 }
 0x9d0   :  { %v11219_v42 = vpop.f32.mrb[148].mxu1  ;;  %v16395_v12 = vadd.f32 %v11282_v55, %v8650_v50 }
 0x9d1   :  { %v11283_v41 = vpop.f32.mrb[164].mxu0  ;;  %v11220_v56 = vpop.f32.mrb[149].mxu1 }
 0x9d2   :  { %v11284_v48 = vpop.f32.mrb[165].mxu0  ;;  %v11221_v17 = vadd.f32 %v11220_v56, %v11219_v42  ;;  %v11222_v51 = vpop.f32.mrb[150].mxu1 }
 0x9d3   :  { %v11285_v47 = vadd.f32 %v11284_v48, %v11283_v41  ;;  %v11286_v45 = vpop.f32.mrb[166].mxu0  ;;  %v11223_v61 = vpop.f32.mrb[151].mxu1 }
 0x9d4   :  { %v11287_v36 = vpop.f32.mrb[167].mxu0  ;;  %v8655_v31 = vadd.f32 %v11221_v17, %v16350_v19  ;;  %v11224_v21 = vadd.f32 %v11223_v61, %v11222_v51 }
 0x9d5   :  { %v11288_v59 = vadd.f32 %v11287_v36, %v11286_v45 }
 0x9d6   :  { %v8658_v54 = vadd.f32 %v11224_v21, %v16353_v1  ;;  %v8752_v58 = vadd.f32 %v11285_v47, %v8655_v31 }
 0x9d8   :  { %v11225_v52 = vpop.f32.mrb[152].mxu1  ;;  %v8755_v38 = vadd.f32 %v11288_v59, %v8658_v54 }
 0x9d9   :  { %v11289_v2 = vpop.f32.mrb[168].mxu0  ;;  %v11226_v25 = vpop.f32.mrb[153].mxu1 }
 0x9da   :  { %v11290_v34 = vpop.f32.mrb[169].mxu0  ;;  %v11227_v28 = vadd.f32 %v11226_v25, %v11225_v52  ;;  %v11228_v20 = vpop.f32.mrb[154].mxu1 }
 0x9db   :  { %v11291_v35 = vadd.f32 %v11290_v34, %v11289_v2  ;;  %v11292_v22 = vpop.f32.mrb[170].mxu0  ;;  %v11229_v7 = vpop.f32.mrb[155].mxu1 }
 0x9dc   :  { %v11293_v37 = vpop.f32.mrb[171].mxu0  ;;  %v8663_v46 = vadd.f32 %v11227_v28, %v16356_v10  ;;  %v11230_v44 = vadd.f32 %v11229_v7, %v11228_v20 }
 0x9dd   :  { %v11294_v19 = vadd.f32 %v11293_v37, %v11292_v22 }
 0x9de   :  { %v8666_v49 = vadd.f32 %v11230_v44, %v16359_v60  ;;  %v8760_v32 = vadd.f32 %v11291_v35, %v8663_v46 }
 0x9e0   :  { %v11231_v1 = vpop.f32.mrb[156].mxu1  ;;  %v8763_v30 = vadd.f32 %v11294_v19, %v8666_v49 }
 0x9e1   :  { %v11295_v40 = vpop.f32.mrb[172].mxu0  ;;  %v11232_v33 = vpop.f32.mrb[157].mxu1 }
 0x9e2   :  { %v11296_v18 = vpop.f32.mrb[173].mxu0  ;;  %v11233_v15 = vadd.f32 %v11232_v33, %v11231_v1  ;;  %v11234_v62 = vpop.f32.mrb[158].mxu1 }
 0x9e3   :  { %v11297_v9 = vadd.f32 %v11296_v18, %v11295_v40  ;;  %v11298_v6 = vpop.f32.mrb[174].mxu0  ;;  %v11235_v13 = vpop.f32.mrb[159].mxu1 }
 0x9e4   :  { %v11299_v24 = vpop.f32.mrb[175].mxu0  ;;  %v8671_v57 = vadd.f32 %v11233_v15, %v16362_v8  ;;  %v11236_v0 = vadd.f32 %v11235_v13, %v11234_v62 }
 0x9e5   :  { %v11300_v10 = vadd.f32 %v11299_v24, %v11298_v6 }
 0x9e6   :  { %v8674_v27 = vadd.f32 %v11236_v0, %v16365_v11  ;;  %v8768_v5 = vadd.f32 %v11297_v9, %v8671_v57 }
 0x9e8   :  { %v11495_v60 = vpop.f32.mrb[160].mxu1  ;;  %v8771_v14 = vadd.f32 %v11300_v10, %v8674_v27 }
 0x9e9   :  { %v8817_v16 = vadd.f32 %v11495_v60, %v16375_v53  ;;  %v8808_v55 = vpop.f32.mrb[161].mxu1 }
 0x9ea   :  { %v8809_v50 = vadd.f32 %v8808_v55, %v16369_v23  ;;  %v11496_v42 = vpop.f32.mrb[162].mxu1 }
 0x9eb   :  { %8873 = vst [vmem:[%s16472_s11 + $0x10] sm:$0xff] %v8817_v16  ;;  %v8820_v41 = vadd.f32 %v11496_v42, %v16377_v26  ;;  %v8811_v8 = vpop.f32.mrb[163].mxu1 }
 0x9ec   :  { %8871 = vst [vmem:[%s16472_s11] sm:$0xff] %v8809_v50  ;;  %v8812_v11 = vadd.f32 %v8811_v8, %v16371_v29 }
 0x9ed   :  { %8874 = vst [vmem:[%s16472_s11 + $0x18] sm:$0xff] %v8820_v41 }
 0x9ee   :  { %8872 = vst [vmem:[%s16472_s11 + $0x8] sm:$0xff] %v8812_v11 }
 0x9f0   :  { %v11499_v23 = vpop.f32.mrb[164].mxu1 }
 0x9f1   :  { %v8833_v53 = vadd.f32 %v11499_v23, %v16387_v39  ;;  %v8824_v56 = vpop.f32.mrb[165].mxu1 }
 0x9f2   :  { %v8825_v26 = vadd.f32 %v8824_v56, %v16381_v4  ;;  %v11500_v48 = vpop.f32.mrb[166].mxu1 }
 0x9f3   :  { %8877 = vst [vmem:[%s16472_s11 + $0x30] sm:$0xff] %v8833_v53  ;;  %v8836_v29 = vadd.f32 %v11500_v48, %v16389_v63  ;;  %v8827_v17 = vpop.f32.mrb[167].mxu1 }
 0x9f4   :  { %8875 = vst [vmem:[%s16472_s11 + $0x20] sm:$0xff] %v8825_v26  ;;  %v8828_v47 = vadd.f32 %v8827_v17, %v16383_v43 }
 0x9f5   :  { %8878 = vst [vmem:[%s16472_s11 + $0x38] sm:$0xff] %v8836_v29 }
 0x9f6   :  { %8876 = vst [vmem:[%s16472_s11 + $0x28] sm:$0xff] %v8828_v47 }
 0x9f8   :  { %v11503_v4 = vpop.f32.mrb[168].mxu1 }
 0x9f9   :  { %v8849_v39 = vadd.f32 %v11503_v4, %v8752_v58  ;;  %v8840_v51 = vpop.f32.mrb[169].mxu1 }
 0x9fa   :  { %v8841_v63 = vadd.f32 %v8840_v51, %v16393_v3  ;;  %v11504_v45 = vpop.f32.mrb[170].mxu1 }
 0x9fb   :  { %8881 = vst [vmem:[%s16472_s11 + $0x50] sm:$0xff] %v8849_v39  ;;  %v8852_v61 = vadd.f32 %v11504_v45, %v8755_v38  ;;  %v8843_v43 = vpop.f32.mrb[171].mxu1 }
 0x9fc   :  { %8879 = vst [vmem:[%s16472_s11 + $0x40] sm:$0xff] %v8841_v63  ;;  %v8844_v36 = vadd.f32 %v8843_v43, %v16395_v12 }
 0x9fd   :  { %8882 = vst [vmem:[%s16472_s11 + $0x58] sm:$0xff] %v8852_v61 }
 0x9fe   :  { %8880 = vst [vmem:[%s16472_s11 + $0x48] sm:$0xff] %v8844_v36 }
 0xa00   :  { %v11507_v3 = vpop.f32.mrb[172].mxu1 }
 0xa01   :  { %v8865_v31 = vadd.f32 %v11507_v3, %v8768_v5  ;;  %v8856_v21 = vpop.f32.mrb[173].mxu1 }
 0xa02   :  { %v8857_v59 = vadd.f32 %v8856_v21, %v8760_v32  ;;  %v11508_v54 = vpop.f32.mrb[174].mxu1 }
 0xa03   :  { %8885 = vst [vmem:[%s16472_s11 + $0x70] sm:$0xff] %v8865_v31  ;;  %v8868_v58 = vadd.f32 %v11508_v54, %v8771_v14  ;;  %v8859_v52 = vpop.f32.mrb[175].mxu1 }
 0xa04   :  { %8883 = vst [vmem:[%s16472_s11 + $0x60] sm:$0xff] %v8857_v59  ;;  %v8860_v12 = vadd.f32 %v8859_v52, %v8763_v30 }
 0xa05   :  { %8886 = vst [vmem:[%s16472_s11 + $0x78] sm:$0xff] %v8868_v58 }
 0xa06   :  { %8884 = vst [vmem:[%s16472_s11 + $0x68] sm:$0xff] %v8860_v12 }

</bundles_post_ra>
